<compile_context>
chip_gen: v5e
topology: v5e:2x2
jax: 0.10.0
libtpu: 0.0.40
codegen_flags: <defaults>
</compile_context>

<pallas_src>
import jax
import jax.numpy as jnp
from jax import lax
from jax.experimental import pallas as pl
from jax.experimental.pallas import tpu as pltpu


# --------------------------------------------------------------------------- #
# Fused kernel: Conv3x3 -> BN -> ReLU -> Conv3x3 -> BN -> ReLU  (one batch elt)
# --------------------------------------------------------------------------- #
def _double_conv_kernel(x_ref, w1_ref, s1_ref, sh1_ref, w2_ref, s2_ref, sh2_ref,
                        o_ref, xp_ref, col1_ref, yp_ref, col2_ref):
    """Refs:
      x_ref:    (1, H, W, Cin)        input tile (bf16, no HBM padding)
      w1_ref:   (9*Cin, Cmid)         conv1 weights, (ky,kx,ci) flattened (bf16)
      s1_ref:   (1, Cmid)   sh1_ref: (1, Cmid)    folded BN1 scale/shift (f32)
      w2_ref:   (9*Cmid, Cout)        conv2 weights (bf16)
      s2_ref:   (1, Cout)   sh2_ref: (1, Cout)    folded BN2 scale/shift (f32)
      o_ref:    (1, H, W, Cout)       output tile (f32)
      xp_ref:   (H+2, W+2, Cin)       zero-halo input scratch (bf16, VMEM)
      col1_ref: (H, W, 9*Cin)         im2col slab for conv1 (bf16, VMEM)
      yp_ref:   (H+2, W+2, Cmid)      zero-halo intermediate scratch (bf16, VMEM)
      col2_ref: (H, W, 9*Cmid)        im2col slab for conv2 (bf16, VMEM)
    """
    H = o_ref.shape[1]
    W = o_ref.shape[2]
    Cin = x_ref.shape[3]
    Cmid = w1_ref.shape[1]

    # ---------------- stage 1: conv1 + BN1 + ReLU ---------------- #
    # Zero halo built in VMEM (replaces wrapper-side jnp.pad).
    xp_ref[...] = jnp.zeros_like(xp_ref)
    xp_ref[1:H + 1, 1:W + 1, :] = x_ref[0]

    # im2col: pack the 9 shifted taps along the channel axis -> one MXU matmul
    # with K = 9*Cin instead of 9 tiny K=Cin matmuls.
    for ky in range(3):
        for kx in range(3):
            k = ky * 3 + kx
            col1_ref[:, :, k * Cin:(k + 1) * Cin] = xp_ref[ky:ky + H, kx:kx + W, :]

    a1 = lax.dot_general(
        col1_ref[...], w1_ref[...],
        dimension_numbers=(((2,), (0,)), ((), ())),
        preferred_element_type=jnp.float32,
    )                                                    # (H, W, Cmid) f32
    y1 = jnp.maximum(a1 * s1_ref[...] + sh1_ref[...], 0.0)   # BN + ReLU in f32

    # ---------------- stage 2: conv2 + BN2 + ReLU ---------------- #
    # Intermediate activation never leaves VMEM.
    yp_ref[...] = jnp.zeros_like(yp_ref)
    yp_ref[1:H + 1, 1:W + 1, :] = y1.astype(yp_ref.dtype)

    for ky in range(3):
        for kx in range(3):
            k = ky * 3 + kx
            col2_ref[:, :, k * Cmid:(k + 1) * Cmid] = yp_ref[ky:ky + H, kx:kx + W, :]

    a2 = lax.dot_general(
        col2_ref[...], w2_ref[...],
        dimension_numbers=(((2,), (0,)), ((), ())),
        preferred_element_type=jnp.float32,
    )                                                    # (H, W, Cout) f32
    y2 = jnp.maximum(a2 * s2_ref[...] + sh2_ref[...], 0.0)

    o_ref[...] = y2[jnp.newaxis].astype(o_ref.dtype)


# --------------------------------------------------------------------------- #
# Wrappers
# --------------------------------------------------------------------------- #
_COMPUTE_DTYPE = jnp.bfloat16   # MXU input dtype (f32 accumulation is kept)


def _pack_weights(w_hwio, dtype):
    """(3, 3, Cin, Cout) -> (9*Cin, Cout), row index = (ky*3+kx)*Cin + ci."""
    kh, kw, cin, cout = w_hwio.shape
    return w_hwio.reshape(kh * kw * cin, cout).astype(dtype)


def double_conv_nhwc(x_nhwc, params):
    """Fused DoubleConv on NHWC input (kernel-native layout, no transposes)."""
    N, H, W, Cin = x_nhwc.shape
    Cmid = params["w1_hwio"].shape[-1]
    Cout = params["w2_hwio"].shape[-1]

    w1 = _pack_weights(params["w1_hwio"], _COMPUTE_DTYPE)      # (9*Cin, Cmid)
    w2 = _pack_weights(params["w2_hwio"], _COMPUTE_DTYPE)      # (9*Cmid, Cout)
    s1 = params["s1"].reshape(1, Cmid).astype(jnp.float32)
    sh1 = params["sh1"].reshape(1, Cmid).astype(jnp.float32)
    s2 = params["s2"].reshape(1, Cout).astype(jnp.float32)
    sh2 = params["sh2"].reshape(1, Cout).astype(jnp.float32)

    out = pl.pallas_call(
        _double_conv_kernel,
        out_shape=jax.ShapeDtypeStruct((N, H, W, Cout), x_nhwc.dtype),
        grid_spec=pltpu.PrefetchScalarGridSpec(
            num_scalar_prefetch=0,
            grid=(N,),
            in_specs=[
                pl.BlockSpec((1, H, W, Cin), lambda n: (n, 0, 0, 0)),
                pl.BlockSpec((9 * Cin, Cmid), lambda n: (0, 0)),
                pl.BlockSpec((1, Cmid), lambda n: (0, 0)),
                pl.BlockSpec((1, Cmid), lambda n: (0, 0)),
                pl.BlockSpec((9 * Cmid, Cout), lambda n: (0, 0)),
                pl.BlockSpec((1, Cout), lambda n: (0, 0)),
                pl.BlockSpec((1, Cout), lambda n: (0, 0)),
            ],
            out_specs=pl.BlockSpec((1, H, W, Cout), lambda n: (n, 0, 0, 0)),
            scratch_shapes=[
                pltpu.VMEM((H + 2, W + 2, Cin), _COMPUTE_DTYPE),    # xp
                pltpu.VMEM((H, W, 9 * Cin), _COMPUTE_DTYPE),        # col1
                pltpu.VMEM((H + 2, W + 2, Cmid), _COMPUTE_DTYPE),   # yp
                pltpu.VMEM((H, W, 9 * Cmid), _COMPUTE_DTYPE),       # col2
            ],
        ),
        compiler_params=pltpu.CompilerParams(
            dimension_semantics=("parallel",),   # megacore batch split on v7x
        ),
    )(x_nhwc.astype(_COMPUTE_DTYPE), w1, s1, sh1, w2, s2, sh2)
    return out


@jax.jit
def double_conv_forward(x_nchw, params):
    """DoubleConv forward, NCHW in/out to match the PyTorch module.

    The transposes are boundary glue only; an NHWC end-to-end model should call
    double_conv_nhwc directly and avoid both HBM passes.
    """
    x = jnp.transpose(x_nchw, (0, 2, 3, 1))                  # NCHW -> NHWC
    y = double_conv_nhwc(x, params)
    return jnp.transpose(y, (0, 3, 1, 2))                    # NHWC -> NCHW


# --------------------------------------------------------------------------- #
# Parameters & pure-JAX reference
# --------------------------------------------------------------------------- #
def _fold_bn(gamma, beta, mean, var, eps=1e-5):
    scale = gamma / jnp.sqrt(var + eps)
    shift = beta - mean * scale
    return scale, shift


def make_double_conv_params(key, in_channels, out_channels):
    """Deterministic synthetic parameters matching DoubleConv.__init__ shapes."""
    ks = jax.random.split(key, 10)
    # Conv weights in PyTorch layout (Cout, Cin, 3, 3), then HWIO.
    w1_oihw = 0.1 * jax.random.normal(ks[0], (out_channels, in_channels, 3, 3), jnp.float32)
    w2_oihw = 0.1 * jax.random.normal(ks[1], (out_channels, out_channels, 3, 3), jnp.float32)
    w1 = jnp.transpose(w1_oihw, (2, 3, 1, 0))   # (3, 3, Cin, Cout)
    w2 = jnp.transpose(w2_oihw, (2, 3, 1, 0))   # (3, 3, Cout, Cout)

    g1 = 1.0 + 0.1 * jax.random.normal(ks[2], (out_channels,), jnp.float32)
    b1 = 0.1 * jax.random.normal(ks[3], (out_channels,), jnp.float32)
    m1 = 0.1 * jax.random.normal(ks[4], (out_channels,), jnp.float32)
    v1 = jax.random.uniform(ks[5], (out_channels,), jnp.float32, 0.5, 1.5)

    g2 = 1.0 + 0.1 * jax.random.normal(ks[6], (out_channels,), jnp.float32)
    b2 = 0.1 * jax.random.normal(ks[7], (out_channels,), jnp.float32)
    m2 = 0.1 * jax.random.normal(ks[8], (out_channels,), jnp.float32)
    v2 = jax.random.uniform(ks[9], (out_channels,), jnp.float32, 0.5, 1.5)

    s1, sh1 = _fold_bn(g1, b1, m1, v1)
    s2, sh2 = _fold_bn(g2, b2, m2, v2)
    # TODO(synk): training-mode BatchNorm (batch statistics) is not supported;
    # running stats are folded (inference semantics), matching model.eval().
    return dict(w1_hwio=w1, s1=s1, sh1=sh1, w2_hwio=w2, s2=s2, sh2=sh2)


def _reference_forward(x_nchw, params):
    """Pure-JAX f32 reference (NCHW conv) for correctness checking."""
    def conv(x, w_hwio):
        return lax.conv_general_dilated(
            x, w_hwio, window_strides=(1, 1), padding="SAME",
            dimension_numbers=("NCHW", "HWIO", "NCHW"))

    def bn_relu(x, scale, shift):
        return jnp.maximum(x * scale[None, :, None, None] + shift[None, :, None, None], 0.0)

    y = bn_relu(conv(x_nchw, params["w1_hwio"]), params["s1"], params["sh1"])
    y = bn_relu(conv(y, params["w2_hwio"]), params["s2"], params["sh2"])
    return y


if __name__ == "__main__":
    key = jax.random.PRNGKey(0)
    k_x, k_p = jax.random.split(key)

    N, Cin, Cout, H, W = 2, 4, 8, 16, 16
    x = jax.random.normal(k_x, (N, Cin, H, W), jnp.float32)   # NCHW, like PyTorch
    params = make_double_conv_params(k_p, Cin, Cout)

    out = double_conv_forward(x, params)
    out = jax.block_until_ready(out)

    ref = _reference_forward(x, params)
    assert out.shape == (N, Cout, H, W), out.shape
    # Loose tolerance: MXU inputs are bf16 (accumulation + epilogue in f32).
    max_err = float(jnp.max(jnp.abs(out - ref)))
    assert jnp.allclose(out, ref, atol=5e-2, rtol=5e-2), max_err

    print("KERNEL_OK")
</pallas_src>

<mosaic_0001>
module attributes {stable_mosaic.version = 11 : i64} {
  func.func @_double_conv_kernel(%arg0: i32, %arg1: memref<1x16x16x4xbf16, #tpu.memory_space<vmem>>, %arg2: memref<36x8xbf16, #tpu.memory_space<vmem>>, %arg3: memref<1x8xf32, #tpu.memory_space<vmem>>, %arg4: memref<1x8xf32, #tpu.memory_space<vmem>>, %arg5: memref<72x8xbf16, #tpu.memory_space<vmem>>, %arg6: memref<1x8xf32, #tpu.memory_space<vmem>>, %arg7: memref<1x8xf32, #tpu.memory_space<vmem>>, %arg8: memref<1x16x16x8xf32, #tpu.memory_space<vmem>>, %arg9: memref<18x18x4xbf16, #tpu.memory_space<vmem>>, %arg10: memref<16x16x36xbf16, #tpu.memory_space<vmem>>, %arg11: memref<18x18x8xbf16, #tpu.memory_space<vmem>>, %arg12: memref<16x16x72xbf16, #tpu.memory_space<vmem>>) attributes {dimension_semantics = [#tpu.dimension_semantics<parallel>], iteration_bounds = array<i64: 2>, scalar_prefetch = 0 : i64, scratch_operands = 4 : i64, tpu.core_type = #tpu.core_type<tc>, window_params = [{transform_indices = @transform_0, window_bounds = array<i64: 1, 16, 16, 4>}, {pipeline_mode = #tpu.pipeline_mode<synchronous>, transform_indices = @transform_1, window_bounds = array<i64: 36, 8>}, {pipeline_mode = #tpu.pipeline_mode<synchronous>, transform_indices = @transform_2, window_bounds = array<i64: 1, 8>}, {pipeline_mode = #tpu.pipeline_mode<synchronous>, transform_indices = @transform_3, window_bounds = array<i64: 1, 8>}, {pipeline_mode = #tpu.pipeline_mode<synchronous>, transform_indices = @transform_4, window_bounds = array<i64: 72, 8>}, {pipeline_mode = #tpu.pipeline_mode<synchronous>, transform_indices = @transform_5, window_bounds = array<i64: 1, 8>}, {pipeline_mode = #tpu.pipeline_mode<synchronous>, transform_indices = @transform_6, window_bounds = array<i64: 1, 8>}, {transform_indices = @transform_7, window_bounds = array<i64: 1, 16, 16, 8>}]} {
    %cst = arith.constant 0.000000e+00 : bf16
    %0 = vector.broadcast %cst : bf16 to vector<18x18x4xbf16>
    %c0 = arith.constant 0 : index
    %c0_0 = arith.constant 0 : index
    %c0_1 = arith.constant 0 : index
    %1 = vector.load %arg9[%c0, %c0_0, %c0_1] : memref<18x18x4xbf16, #tpu.memory_space<vmem>>, vector<18x18x4xbf16>
    tpu.vector_store %arg9[%c0, %c0_0, %c0_1], %0 {strides = array<i32>} : memref<18x18x4xbf16, #tpu.memory_space<vmem>>, vector<18x18x4xbf16>,
    %c0_2 = arith.constant 0 : index
    %c0_3 = arith.constant 0 : index
    %c0_4 = arith.constant 0 : index
    %c0_5 = arith.constant 0 : index
    %2 = vector.load %arg1[%c0_2, %c0_3, %c0_4, %c0_5] : memref<1x16x16x4xbf16, #tpu.memory_space<vmem>>, vector<1x16x16x4xbf16>
    %3 = vector.shape_cast %2 : vector<1x16x16x4xbf16> to vector<16x16x4xbf16>
    %c1 = arith.constant 1 : index
    %c1_6 = arith.constant 1 : index
    %c0_7 = arith.constant 0 : index
    %4 = vector.load %arg9[%c1, %c1_6, %c0_7] : memref<18x18x4xbf16, #tpu.memory_space<vmem>>, vector<16x16x4xbf16>
    tpu.vector_store %arg9[%c1, %c1_6, %c0_7], %3 {strides = array<i32>} : memref<18x18x4xbf16, #tpu.memory_space<vmem>>, vector<16x16x4xbf16>,
    %c0_8 = arith.constant 0 : index
    %c0_9 = arith.constant 0 : index
    %c0_10 = arith.constant 0 : index
    %5 = vector.load %arg9[%c0_8, %c0_9, %c0_10] : memref<18x18x4xbf16, #tpu.memory_space<vmem>>, vector<16x16x4xbf16>
    %c0_11 = arith.constant 0 : index
    %c0_12 = arith.constant 0 : index
    %c0_13 = arith.constant 0 : index
    %6 = vector.load %arg10[%c0_11, %c0_12, %c0_13] : memref<16x16x36xbf16, #tpu.memory_space<vmem>>, vector<16x16x4xbf16>
    tpu.vector_store %arg10[%c0_11, %c0_12, %c0_13], %5 {strides = array<i32>} : memref<16x16x36xbf16, #tpu.memory_space<vmem>>, vector<16x16x4xbf16>,
    %c0_14 = arith.constant 0 : index
    %c1_15 = arith.constant 1 : index
    %c0_16 = arith.constant 0 : index
    %7 = vector.load %arg9[%c0_14, %c1_15, %c0_16] : memref<18x18x4xbf16, #tpu.memory_space<vmem>>, vector<16x16x4xbf16>
    %c0_17 = arith.constant 0 : index
    %c0_18 = arith.constant 0 : index
    %c4 = arith.constant 4 : index
    %8 = vector.load %arg10[%c0_17, %c0_18, %c4] : memref<16x16x36xbf16, #tpu.memory_space<vmem>>, vector<16x16x4xbf16>
    tpu.vector_store %arg10[%c0_17, %c0_18, %c4], %7 {strides = array<i32>} : memref<16x16x36xbf16, #tpu.memory_space<vmem>>, vector<16x16x4xbf16>,
    %c0_19 = arith.constant 0 : index
    %c2 = arith.constant 2 : index
    %c0_20 = arith.constant 0 : index
    %9 = vector.load %arg9[%c0_19, %c2, %c0_20] : memref<18x18x4xbf16, #tpu.memory_space<vmem>>, vector<16x16x4xbf16>
    %c0_21 = arith.constant 0 : index
    %c0_22 = arith.constant 0 : index
    %c8 = arith.constant 8 : index
    %10 = vector.load %arg10[%c0_21, %c0_22, %c8] : memref<16x16x36xbf16, #tpu.memory_space<vmem>>, vector<16x16x4xbf16>
    tpu.vector_store %arg10[%c0_21, %c0_22, %c8], %9 {strides = array<i32>} : memref<16x16x36xbf16, #tpu.memory_space<vmem>>, vector<16x16x4xbf16>,
    %c1_23 = arith.constant 1 : index
    %c0_24 = arith.constant 0 : index
    %c0_25 = arith.constant 0 : index
    %11 = vector.load %arg9[%c1_23, %c0_24, %c0_25] : memref<18x18x4xbf16, #tpu.memory_space<vmem>>, vector<16x16x4xbf16>
    %c0_26 = arith.constant 0 : index
    %c0_27 = arith.constant 0 : index
    %c12 = arith.constant 12 : index
    %12 = vector.load %arg10[%c0_26, %c0_27, %c12] : memref<16x16x36xbf16, #tpu.memory_space<vmem>>, vector<16x16x4xbf16>
    tpu.vector_store %arg10[%c0_26, %c0_27, %c12], %11 {strides = array<i32>} : memref<16x16x36xbf16, #tpu.memory_space<vmem>>, vector<16x16x4xbf16>,
    %c1_28 = arith.constant 1 : index
    %c1_29 = arith.constant 1 : index
    %c0_30 = arith.constant 0 : index
    %13 = vector.load %arg9[%c1_28, %c1_29, %c0_30] : memref<18x18x4xbf16, #tpu.memory_space<vmem>>, vector<16x16x4xbf16>
    %c0_31 = arith.constant 0 : index
    %c0_32 = arith.constant 0 : index
    %c16 = arith.constant 16 : index
    %14 = vector.load %arg10[%c0_31, %c0_32, %c16] : memref<16x16x36xbf16, #tpu.memory_space<vmem>>, vector<16x16x4xbf16>
    tpu.vector_store %arg10[%c0_31, %c0_32, %c16], %13 {strides = array<i32>} : memref<16x16x36xbf16, #tpu.memory_space<vmem>>, vector<16x16x4xbf16>,
    %c1_33 = arith.constant 1 : index
    %c2_34 = arith.constant 2 : index
    %c0_35 = arith.constant 0 : index
    %15 = vector.load %arg9[%c1_33, %c2_34, %c0_35] : memref<18x18x4xbf16, #tpu.memory_space<vmem>>, vector<16x16x4xbf16>
    %c0_36 = arith.constant 0 : index
    %c0_37 = arith.constant 0 : index
    %c20 = arith.constant 20 : index
    %16 = vector.load %arg10[%c0_36, %c0_37, %c20] : memref<16x16x36xbf16, #tpu.memory_space<vmem>>, vector<16x16x4xbf16>
    tpu.vector_store %arg10[%c0_36, %c0_37, %c20], %15 {strides = array<i32>} : memref<16x16x36xbf16, #tpu.memory_space<vmem>>, vector<16x16x4xbf16>,
    %c2_38 = arith.constant 2 : index
    %c0_39 = arith.constant 0 : index
    %c0_40 = arith.constant 0 : index
    %17 = vector.load %arg9[%c2_38, %c0_39, %c0_40] : memref<18x18x4xbf16, #tpu.memory_space<vmem>>, vector<16x16x4xbf16>
    %c0_41 = arith.constant 0 : index
    %c0_42 = arith.constant 0 : index
    %c24 = arith.constant 24 : index
    %18 = vector.load %arg10[%c0_41, %c0_42, %c24] : memref<16x16x36xbf16, #tpu.memory_space<vmem>>, vector<16x16x4xbf16>
    tpu.vector_store %arg10[%c0_41, %c0_42, %c24], %17 {strides = array<i32>} : memref<16x16x36xbf16, #tpu.memory_space<vmem>>, vector<16x16x4xbf16>,
    %c2_43 = arith.constant 2 : index
    %c1_44 = arith.constant 1 : index
    %c0_45 = arith.constant 0 : index
    %19 = vector.load %arg9[%c2_43, %c1_44, %c0_45] : memref<18x18x4xbf16, #tpu.memory_space<vmem>>, vector<16x16x4xbf16>
    %c0_46 = arith.constant 0 : index
    %c0_47 = arith.constant 0 : index
    %c28 = arith.constant 28 : index
    %20 = vector.load %arg10[%c0_46, %c0_47, %c28] : memref<16x16x36xbf16, #tpu.memory_space<vmem>>, vector<16x16x4xbf16>
    tpu.vector_store %arg10[%c0_46, %c0_47, %c28], %19 {strides = array<i32>} : memref<16x16x36xbf16, #tpu.memory_space<vmem>>, vector<16x16x4xbf16>,
    %c2_48 = arith.constant 2 : index
    %c2_49 = arith.constant 2 : index
    %c0_50 = arith.constant 0 : index
    %21 = vector.load %arg9[%c2_48, %c2_49, %c0_50] : memref<18x18x4xbf16, #tpu.memory_space<vmem>>, vector<16x16x4xbf16>
    %c0_51 = arith.constant 0 : index
    %c0_52 = arith.constant 0 : index
    %c32 = arith.constant 32 : index
    %22 = vector.load %arg10[%c0_51, %c0_52, %c32] : memref<16x16x36xbf16, #tpu.memory_space<vmem>>, vector<16x16x4xbf16>
    tpu.vector_store %arg10[%c0_51, %c0_52, %c32], %21 {strides = array<i32>} : memref<16x16x36xbf16, #tpu.memory_space<vmem>>, vector<16x16x4xbf16>,
    %c0_53 = arith.constant 0 : index
    %c0_54 = arith.constant 0 : index
    %c0_55 = arith.constant 0 : index
    %23 = vector.load %arg10[%c0_53, %c0_54, %c0_55] : memref<16x16x36xbf16, #tpu.memory_space<vmem>>, vector<16x16x36xbf16>
    %c0_56 = arith.constant 0 : index
    %c0_57 = arith.constant 0 : index
    %24 = vector.load %arg2[%c0_56, %c0_57] : memref<36x8xbf16, #tpu.memory_space<vmem>>, vector<36x8xbf16>
    %cst_58 = arith.constant dense<0.000000e+00> : vector<16x16x8xf32>
    %25 = tpu.matmul %23, %24, %cst_58 {dimension_numbers = #tpu.dot_dimension_numbers<[2], [0], [0, 1], [1], [0, 0, 0, 1, 1, 1], [], []>} : vector<16x16x36xbf16>, vector<36x8xbf16>, vector<16x16x8xf32> -> vector<16x16x8xf32>
    %c0_59 = arith.constant 0 : index
    %c0_60 = arith.constant 0 : index
    %26 = vector.load %arg3[%c0_59, %c0_60] : memref<1x8xf32, #tpu.memory_space<vmem>>, vector<1x8xf32>
    %27 = vector.shape_cast %26 : vector<1x8xf32> to vector<1x1x8xf32>
    %28 = vector.broadcast %27 : vector<1x1x8xf32> to vector<16x16x8xf32>
    %29 = arith.mulf %25, %28 : vector<16x16x8xf32>
    %c0_61 = arith.constant 0 : index
    %c0_62 = arith.constant 0 : index
    %30 = vector.load %arg4[%c0_61, %c0_62] : memref<1x8xf32, #tpu.memory_space<vmem>>, vector<1x8xf32>
    %31 = vector.shape_cast %30 : vector<1x8xf32> to vector<1x1x8xf32>
    %32 = vector.broadcast %31 : vector<1x1x8xf32> to vector<16x16x8xf32>
    %33 = arith.addf %29, %32 : vector<16x16x8xf32>
    %cst_63 = arith.constant 0.000000e+00 : f32
    %34 = vector.broadcast %cst_63 : f32 to vector<16x16x8xf32>
    %35 = arith.maximumf %33, %34 : vector<16x16x8xf32>
    %cst_64 = arith.constant 0.000000e+00 : bf16
    %36 = vector.broadcast %cst_64 : bf16 to vector<18x18x8xbf16>
    %c0_65 = arith.constant 0 : index
    %c0_66 = arith.constant 0 : index
    %c0_67 = arith.constant 0 : index
    %37 = vector.load %arg11[%c0_65, %c0_66, %c0_67] : memref<18x18x8xbf16, #tpu.memory_space<vmem>>, vector<18x18x8xbf16>
    tpu.vector_store %arg11[%c0_65, %c0_66, %c0_67], %36 {strides = array<i32>} : memref<18x18x8xbf16, #tpu.memory_space<vmem>>, vector<18x18x8xbf16>,
    %38 = arith.truncf %35 : vector<16x16x8xf32> to vector<16x16x8xbf16>
    %c1_68 = arith.constant 1 : index
    %c1_69 = arith.constant 1 : index
    %c0_70 = arith.constant 0 : index
    %39 = vector.load %arg11[%c1_68, %c1_69, %c0_70] : memref<18x18x8xbf16, #tpu.memory_space<vmem>>, vector<16x16x8xbf16>
    tpu.vector_store %arg11[%c1_68, %c1_69, %c0_70], %38 {strides = array<i32>} : memref<18x18x8xbf16, #tpu.memory_space<vmem>>, vector<16x16x8xbf16>,
    %c0_71 = arith.constant 0 : index
    %c0_72 = arith.constant 0 : index
    %c0_73 = arith.constant 0 : index
    %40 = vector.load %arg11[%c0_71, %c0_72, %c0_73] : memref<18x18x8xbf16, #tpu.memory_space<vmem>>, vector<16x16x8xbf16>
    %c0_74 = arith.constant 0 : index
    %c0_75 = arith.constant 0 : index
    %c0_76 = arith.constant 0 : index
    %41 = vector.load %arg12[%c0_74, %c0_75, %c0_76] : memref<16x16x72xbf16, #tpu.memory_space<vmem>>, vector<16x16x8xbf16>
    tpu.vector_store %arg12[%c0_74, %c0_75, %c0_76], %40 {strides = array<i32>} : memref<16x16x72xbf16, #tpu.memory_space<vmem>>, vector<16x16x8xbf16>,
    %c0_77 = arith.constant 0 : index
    %c1_78 = arith.constant 1 : index
    %c0_79 = arith.constant 0 : index
    %42 = vector.load %arg11[%c0_77, %c1_78, %c0_79] : memref<18x18x8xbf16, #tpu.memory_space<vmem>>, vector<16x16x8xbf16>
    %c0_80 = arith.constant 0 : index
    %c0_81 = arith.constant 0 : index
    %c8_82 = arith.constant 8 : index
    %43 = vector.load %arg12[%c0_80, %c0_81, %c8_82] : memref<16x16x72xbf16, #tpu.memory_space<vmem>>, vector<16x16x8xbf16>
    tpu.vector_store %arg12[%c0_80, %c0_81, %c8_82], %42 {strides = array<i32>} : memref<16x16x72xbf16, #tpu.memory_space<vmem>>, vector<16x16x8xbf16>,
    %c0_83 = arith.constant 0 : index
    %c2_84 = arith.constant 2 : index
    %c0_85 = arith.constant 0 : index
    %44 = vector.load %arg11[%c0_83, %c2_84, %c0_85] : memref<18x18x8xbf16, #tpu.memory_space<vmem>>, vector<16x16x8xbf16>
    %c0_86 = arith.constant 0 : index
    %c0_87 = arith.constant 0 : index
    %c16_88 = arith.constant 16 : index
    %45 = vector.load %arg12[%c0_86, %c0_87, %c16_88] : memref<16x16x72xbf16, #tpu.memory_space<vmem>>, vector<16x16x8xbf16>
    tpu.vector_store %arg12[%c0_86, %c0_87, %c16_88], %44 {strides = array<i32>} : memref<16x16x72xbf16, #tpu.memory_space<vmem>>, vector<16x16x8xbf16>,
    %c1_89 = arith.constant 1 : index
    %c0_90 = arith.constant 0 : index
    %c0_91 = arith.constant 0 : index
    %46 = vector.load %arg11[%c1_89, %c0_90, %c0_91] : memref<18x18x8xbf16, #tpu.memory_space<vmem>>, vector<16x16x8xbf16>
    %c0_92 = arith.constant 0 : index
    %c0_93 = arith.constant 0 : index
    %c24_94 = arith.constant 24 : index
    %47 = vector.load %arg12[%c0_92, %c0_93, %c24_94] : memref<16x16x72xbf16, #tpu.memory_space<vmem>>, vector<16x16x8xbf16>
    tpu.vector_store %arg12[%c0_92, %c0_93, %c24_94], %46 {strides = array<i32>} : memref<16x16x72xbf16, #tpu.memory_space<vmem>>, vector<16x16x8xbf16>,
    %c1_95 = arith.constant 1 : index
    %c1_96 = arith.constant 1 : index
    %c0_97 = arith.constant 0 : index
    %48 = vector.load %arg11[%c1_95, %c1_96, %c0_97] : memref<18x18x8xbf16, #tpu.memory_space<vmem>>, vector<16x16x8xbf16>
    %c0_98 = arith.constant 0 : index
    %c0_99 = arith.constant 0 : index
    %c32_100 = arith.constant 32 : index
    %49 = vector.load %arg12[%c0_98, %c0_99, %c32_100] : memref<16x16x72xbf16, #tpu.memory_space<vmem>>, vector<16x16x8xbf16>
    tpu.vector_store %arg12[%c0_98, %c0_99, %c32_100], %48 {strides = array<i32>} : memref<16x16x72xbf16, #tpu.memory_space<vmem>>, vector<16x16x8xbf16>,
    %c1_101 = arith.constant 1 : index
    %c2_102 = arith.constant 2 : index
    %c0_103 = arith.constant 0 : index
    %50 = vector.load %arg11[%c1_101, %c2_102, %c0_103] : memref<18x18x8xbf16, #tpu.memory_space<vmem>>, vector<16x16x8xbf16>
    %c0_104 = arith.constant 0 : index
    %c0_105 = arith.constant 0 : index
    %c40 = arith.constant 40 : index
    %51 = vector.load %arg12[%c0_104, %c0_105, %c40] : memref<16x16x72xbf16, #tpu.memory_space<vmem>>, vector<16x16x8xbf16>
    tpu.vector_store %arg12[%c0_104, %c0_105, %c40], %50 {strides = array<i32>} : memref<16x16x72xbf16, #tpu.memory_space<vmem>>, vector<16x16x8xbf16>,
    %c2_106 = arith.constant 2 : index
    %c0_107 = arith.constant 0 : index
    %c0_108 = arith.constant 0 : index
    %52 = vector.load %arg11[%c2_106, %c0_107, %c0_108] : memref<18x18x8xbf16, #tpu.memory_space<vmem>>, vector<16x16x8xbf16>
    %c0_109 = arith.constant 0 : index
    %c0_110 = arith.constant 0 : index
    %c48 = arith.constant 48 : index
    %53 = vector.load %arg12[%c0_109, %c0_110, %c48] : memref<16x16x72xbf16, #tpu.memory_space<vmem>>, vector<16x16x8xbf16>
    tpu.vector_store %arg12[%c0_109, %c0_110, %c48], %52 {strides = array<i32>} : memref<16x16x72xbf16, #tpu.memory_space<vmem>>, vector<16x16x8xbf16>,
    %c2_111 = arith.constant 2 : index
    %c1_112 = arith.constant 1 : index
    %c0_113 = arith.constant 0 : index
    %54 = vector.load %arg11[%c2_111, %c1_112, %c0_113] : memref<18x18x8xbf16, #tpu.memory_space<vmem>>, vector<16x16x8xbf16>
    %c0_114 = arith.constant 0 : index
    %c0_115 = arith.constant 0 : index
    %c56 = arith.constant 56 : index
    %55 = vector.load %arg12[%c0_114, %c0_115, %c56] : memref<16x16x72xbf16, #tpu.memory_space<vmem>>, vector<16x16x8xbf16>
    tpu.vector_store %arg12[%c0_114, %c0_115, %c56], %54 {strides = array<i32>} : memref<16x16x72xbf16, #tpu.memory_space<vmem>>, vector<16x16x8xbf16>,
    %c2_116 = arith.constant 2 : index
    %c2_117 = arith.constant 2 : index
    %c0_118 = arith.constant 0 : index
    %56 = vector.load %arg11[%c2_116, %c2_117, %c0_118] : memref<18x18x8xbf16, #tpu.memory_space<vmem>>, vector<16x16x8xbf16>
    %c0_119 = arith.constant 0 : index
    %c0_120 = arith.constant 0 : index
    %c64 = arith.constant 64 : index
    %57 = vector.load %arg12[%c0_119, %c0_120, %c64] : memref<16x16x72xbf16, #tpu.memory_space<vmem>>, vector<16x16x8xbf16>
    tpu.vector_store %arg12[%c0_119, %c0_120, %c64], %56 {strides = array<i32>} : memref<16x16x72xbf16, #tpu.memory_space<vmem>>, vector<16x16x8xbf16>,
    %c0_121 = arith.constant 0 : index
    %c0_122 = arith.constant 0 : index
    %c0_123 = arith.constant 0 : index
    %58 = vector.load %arg12[%c0_121, %c0_122, %c0_123] : memref<16x16x72xbf16, #tpu.memory_space<vmem>>, vector<16x16x72xbf16>
    %c0_124 = arith.constant 0 : index
    %c0_125 = arith.constant 0 : index
    %59 = vector.load %arg5[%c0_124, %c0_125] : memref<72x8xbf16, #tpu.memory_space<vmem>>, vector<72x8xbf16>
    %cst_126 = arith.constant dense<0.000000e+00> : vector<16x16x8xf32>
    %60 = tpu.matmul %58, %59, %cst_126 {dimension_numbers = #tpu.dot_dimension_numbers<[2], [0], [0, 1], [1], [0, 0, 0, 1, 1, 1], [], []>} : vector<16x16x72xbf16>, vector<72x8xbf16>, vector<16x16x8xf32> -> vector<16x16x8xf32>
    %c0_127 = arith.constant 0 : index
    %c0_128 = arith.constant 0 : index
    %61 = vector.load %arg6[%c0_127, %c0_128] : memref<1x8xf32, #tpu.memory_space<vmem>>, vector<1x8xf32>
    %62 = vector.shape_cast %61 : vector<1x8xf32> to vector<1x1x8xf32>
    %63 = vector.broadcast %62 : vector<1x1x8xf32> to vector<16x16x8xf32>
    %64 = arith.mulf %60, %63 : vector<16x16x8xf32>
    %c0_129 = arith.constant 0 : index
    %c0_130 = arith.constant 0 : index
    %65 = vector.load %arg7[%c0_129, %c0_130] : memref<1x8xf32, #tpu.memory_space<vmem>>, vector<1x8xf32>
    %66 = vector.shape_cast %65 : vector<1x8xf32> to vector<1x1x8xf32>
    %67 = vector.broadcast %66 : vector<1x1x8xf32> to vector<16x16x8xf32>
    %68 = arith.addf %64, %67 : vector<16x16x8xf32>
    %cst_131 = arith.constant 0.000000e+00 : f32
    %69 = vector.broadcast %cst_131 : f32 to vector<16x16x8xf32>
    %70 = arith.maximumf %68, %69 : vector<16x16x8xf32>
    %71 = vector.shape_cast %70 : vector<16x16x8xf32> to vector<1x16x16x8xf32>
    %c0_132 = arith.constant 0 : index
    %c0_133 = arith.constant 0 : index
    %c0_134 = arith.constant 0 : index
    %c0_135 = arith.constant 0 : index
    %72 = vector.load %arg8[%c0_132, %c0_133, %c0_134, %c0_135] : memref<1x16x16x8xf32, #tpu.memory_space<vmem>>, vector<1x16x16x8xf32>
    tpu.vector_store %arg8[%c0_132, %c0_133, %c0_134, %c0_135], %71 {strides = array<i32>} : memref<1x16x16x8xf32, #tpu.memory_space<vmem>>, vector<1x16x16x8xf32>,
    return
  }
  func.func @transform_0(%arg0: i32) -> (i32, i32, i32, i32) {
    %c0_i32 = arith.constant 0 : i32
    %c0_i32_0 = arith.constant 0 : i32
    %c0_i32_1 = arith.constant 0 : i32
    %c0_i32_2 = arith.constant 0 : i32
    return %arg0, %c0_i32, %c0_i32_0, %c0_i32_1 : i32, i32, i32, i32
  }
  func.func @transform_1(%arg0: i32) -> (i32, i32) {
    %c0_i32 = arith.constant 0 : i32
    %c0_i32_0 = arith.constant 0 : i32
    %c0_i32_1 = arith.constant 0 : i32
    return %c0_i32, %c0_i32_0 : i32, i32
  }
  func.func @transform_2(%arg0: i32) -> (i32, i32) {
    %c0_i32 = arith.constant 0 : i32
    %c0_i32_0 = arith.constant 0 : i32
    %c0_i32_1 = arith.constant 0 : i32
    return %c0_i32, %c0_i32_0 : i32, i32
  }
  func.func @transform_3(%arg0: i32) -> (i32, i32) {
    %c0_i32 = arith.constant 0 : i32
    %c0_i32_0 = arith.constant 0 : i32
    %c0_i32_1 = arith.constant 0 : i32
    return %c0_i32, %c0_i32_0 : i32, i32
  }
  func.func @transform_4(%arg0: i32) -> (i32, i32) {
    %c0_i32 = arith.constant 0 : i32
    %c0_i32_0 = arith.constant 0 : i32
    %c0_i32_1 = arith.constant 0 : i32
    return %c0_i32, %c0_i32_0 : i32, i32
  }
  func.func @transform_5(%arg0: i32) -> (i32, i32) {
    %c0_i32 = arith.constant 0 : i32
    %c0_i32_0 = arith.constant 0 : i32
    %c0_i32_1 = arith.constant 0 : i32
    return %c0_i32, %c0_i32_0 : i32, i32
  }
  func.func @transform_6(%arg0: i32) -> (i32, i32) {
    %c0_i32 = arith.constant 0 : i32
    %c0_i32_0 = arith.constant 0 : i32
    %c0_i32_1 = arith.constant 0 : i32
    return %c0_i32, %c0_i32_0 : i32, i32
  }
  func.func @transform_7(%arg0: i32) -> (i32, i32, i32, i32) {
    %c0_i32 = arith.constant 0 : i32
    %c0_i32_0 = arith.constant 0 : i32
    %c0_i32_1 = arith.constant 0 : i32
    %c0_i32_2 = arith.constant 0 : i32
    return %arg0, %c0_i32, %c0_i32_0, %c0_i32_1 : i32, i32, i32, i32
  }
}

</mosaic_0001>

<bundles_post_ra>
// kernel: double_conv_forward.1
= control target key start
LH: loop header
LB: loop body
LE: loop exit
PB: predicated region body
PF: predicated region fallthrough
CT: control target
= control target key end

     0   :  { %s8919_s24 = smov 0   ;;  %s12339_s0 = inlined_call_operand.vmem [shape: bf16[2,16,16,4], index: 0, kind: input, shape index: {}]   ;;  %s12340_s1 = inlined_call_operand.vmem [shape: bf16[36,8], index: 1, kind: input, shape index: {}]   ;;  %s12341_s2 = inlined_call_operand.vmem [shape: f32[1,8], index: 2, kind: input, shape index: {}]   ;;  %s12342_s3 = inlined_call_operand.vmem [shape: f32[1,8], index: 3, kind: input, shape index: {}]   ;;  %s12343_s4 = inlined_call_operand.vmem [shape: bf16[72,8], index: 4, kind: input, shape index: {}]   ;;  %s12344_s5 = inlined_call_operand.vmem [shape: f32[1,8], index: 5, kind: input, shape index: {}]   ;;  %s12345_s6 = inlined_call_operand.vmem [shape: f32[1,8], index: 6, kind: input, shape index: {}]   ;;  %s12346_s7 = inlined_call_operand.vmem [shape: f32[2,16,16,8], index: 7, kind: output, shape index: {}]  }
   0x1 LB: > { %s8490_s25 = sadd.s32 4294967295, %s8864_s24   ;;  %p8494_p0 = scmp.ge.s32.totalorder %s8864_s24, 1  ;;  %s8864_s24 = sphi %s8919_s24, %s17_s24  }
   0x2   : > { %p237_p1 = scmp.lt.s32.totalorder %s8864_s24, 3 }
   0x4   : > { %p238_p2 = pnand %p8494_p0, %p237_p1 }
   0x5   : > { %p269_p3 = scmp.lt.s32.totalorder (!%p238_p2), %s8490_s25, 1  ;;  %s8867_s26 = smov (!%p238_p2), 4  }
   0x6   : > { %241 = sbr.rel (%p238_p2) target bundleno = 1983 (0x7bf), region = 48  ;;  %s8868_s8 = smov (!%p238_p2), 8  }
   0x7   : > { %s8869_s9 = smov (!%p238_p2), 12   ;;  %s8870_s10 = smov (!%p238_p2), 16  }
   0x8   : > { %s8871_s11 = smov (!%p238_p2), 20   ;;  %s8872_s12 = smov (!%p238_p2), 24  }
   0x9   : > { %s8873_s13 = smov (!%p238_p2), 28   ;;  %s8874_s14 = smov (!%p238_p2), 32  }
   0xa   : > { %s8878_s15 = smov (!%p238_p2), 64  }
   0xb   : > { %vm280_vm0 = vcmask 27648   ;;  %v8866_v0 = vmov 0   ;;  %vm921_vm1 = vsmask.f32 3328  ;;  %vm922_vm2 = vsmask.f32 7440 }
   0xc   : > { %281 = vst.msk [vmem:[#allocation2] sm:$0xf] %vm280_vm0, %v8866_v0  ;;  %vm8955_vm3 = vmor %vm921_vm1, %vm922_vm2  ;;  %s12362_s25 = smov (!%p269_p3, %s8490_s25), 1  ;;  %vm283_vm4 = vcmask 24576   ;;  %vm693_vm5 = vsmask.f32 7938 }
   0xd   : > { %282 = vst.msk [vmem:[#allocation2 + $0x4] sm:$0xf] %vm280_vm0, %v8866_v0  ;;  %s8781_s27 = sshll.u32 %s12362_s25, 7  ;;  %vm368_vm6 = vsmask.f32 256  ;;  %vm9068_vm8 = vmand %vm280_vm0, %vm693_vm5  ;;  %vm1533_vm11 = vcmask 1042432  }
   0xe   : > { %285 = vst.msk [vmem:[#allocation2 + $0xc] sm:$0xf] %vm280_vm0, %v8866_v0  ;;  %s8992_s30 = scalar_lea.vmem %s12339_s0, %s8781_s27  ;;  %vm369_vm7 = vsmask.f32 4368  ;;  %vm9183_vm10 = vmand %vm283_vm4, %vm368_vm6  ;;  %vm1534_vm12 = vcmask 1046532   ;;  %vm1404_vm14 = vcmask 60448  }
   0xf   : > { %286 = vst.msk [vmem:[#allocation2 + $0x10] sm:$0xf] %vm280_vm0, %v8866_v0  ;;  %v340_v14 = vld [vmem:[%s8992_s30 + $0x10] sm:$0xf]  ;;  %v341_v16 = vld [vmem:[%s8992_s30 + $0x14] sm:$0xf]  ;;  %vm9096_vm9 = vmor %vm368_vm6, %vm369_vm7 }
  0x10   : > { %288 = vst.msk [vmem:[#allocation2 + $0x18] sm:$0xf] %vm280_vm0, %v8866_v0  ;;  %v406_v17 = vshrl.u32 %v340_v14, 16  ;;  %v336_v18 = vld [vmem:[%s8992_s30] sm:$0xf]  ;;  %v414_v21 = vshrl.u32 %v341_v16, 16  ;;  %vm9586_vm13 = vmor %vm1533_vm11, %vm1534_vm12 }
  0x11   : > { %289 = vst.msk [vmem:[#allocation2 + $0x1c] sm:$0xf] %vm280_vm0, %v8866_v0  ;;  %v9012_v19 = vld [vmem:[%s8992_s30 + $0x18] sm:$0xf]  ;;  %v337_v22 = vld [vmem:[%s8992_s30 + $0x4] sm:$0xf] }
  0x12   : > { %291 = vst.msk [vmem:[#allocation2 + $0x24] sm:$0xf] %vm280_vm0, %v8866_v0  ;;  %v372_v23 = vshrl.u32 %v336_v18, 16  ;;  %v9021_v24 = vrot.slane %v406_v17, 7  ;;  %v423_v25 = vshrl.u32 %v9012_v19, 16  ;;  %v409_v27 = vshll.u32 %v340_v14, 16 }
  0x13   : > { %v873_v1 = vld [vmem:[#allocation2] sm:$0xf]  ;;  %292 = vst.msk [vmem:[#allocation2 + $0x28] sm:$0xf] %vm280_vm0, %v8866_v0  ;;  %v9027_v26 = vld [vmem:[%s8992_s30 + $0x1c] sm:$0xf] }
  0x14   : > { %v874_v2 = vld [vmem:[#allocation2 + $0x4] sm:$0xf]  ;;  %v925_v3 = vshrl.u32 %v873_v1, 16  ;;  %v928_v4 = vshll.u32 %v873_v1, 16  ;;  %294 = vst.msk [vmem:[#allocation2 + $0x30] sm:$0xf] %vm280_vm0, %v8866_v0  ;;  %v9057_v41 = vor.u32 %v409_v27, %v9021_v24 }
  0x15   : > { %v934_v5 = vshll.u32 %v874_v2, 16  ;;  %295 = vst.msk [vmem:[#allocation2 + $0x34] sm:$0xf] %vm280_vm0, %v8866_v0  ;;  %v938_v13 = vshrl.u32 %v874_v2, 16  ;;  %v412_v28 = vrot.slane %v9021_v24, 4  ;;  %v417_v29 = vshll.u32 %v341_v16, 16 }
  0x16   : > { %v927_v6 = vrot.slane %v925_v3, 4  ;;  %v930_v7 = vrot.slane %v928_v4, 5  ;;  %297 = vst.msk [vmem:[#allocation2 + $0x3c] sm:$0xf] %vm280_vm0, %v8866_v0  ;;  %v380_v30 = vshrl.u32 %v337_v22, 16  ;;  %v9036_v32 = vrot.slane %v414_v21, 7 }
  0x17   : > { %298 = vst.msk [vmem:[#allocation2 + $0x40] sm:$0xf] %vm280_vm0, %v8866_v0  ;;  %v936_v9 = vrot.slane %v934_v5, 5  ;;  %v940_v15 = vrot.slane %v938_v13, 4  ;;  %v374_v33 = vrot.slane %v372_v23, 7  ;;  %v375_v34 = vshll.u32 %v336_v18, 16 }
  0x18   : > { %v931_v8 = vor.u32 %v930_v7, %v927_v6  ;;  %300 = vst.msk [vmem:[#allocation2 + $0x48] sm:$0xf] %vm280_vm0, %v8866_v0  ;;  %v9040_v35 = vrot.slane %v423_v25, 7  ;;  %v431_v36 = vshrl.u32 %v9027_v26, 16  ;;  %v346_v37 = vld [vmem:[%s8992_s30 + $0x28] sm:$0xf]  ;;  %v419_v54 = vor.u32 %v417_v29, %v9036_v32 }
  0x19   : > { %301 = vst.msk [vmem:[#allocation2 + $0x4c] sm:$0xf] %vm280_vm0, %v8866_v0  ;;  %v941_v20 = vor.u32 %v940_v15, %v936_v9  ;;  %v9046_v38 = vld [vmem:[#allocation2 + $0x24] sm:$0xf]  ;;  %v9049_v39 = vld [vmem:[%s8992_s30 + $0x2c] sm:$0xf]  ;;  %v9087_v55 = vor.u32 %v375_v34, %v374_v33 }
  0x1a   : > { %v932_v11 = vrot.slane %v931_v8, 4  ;;  %303 = vst.msk [vmem:[#allocation2 + $0x54] sm:$0xf] %vm280_vm0, %v8866_v0  ;;  %v9052_v40 = vld [vmem:[%s8992_s30 + $0x8] sm:$0xf]  ;;  %v9059_v42 = vrot.slane %v380_v30, 7  ;;  %v712_v61 = vsel %vm9068_vm8, %v9057_v41, %v9046_v38 }
  0x1b   : > { %304 = vst.msk [vmem:[#allocation2 + $0x58] sm:$0xf] %vm280_vm0, %v8866_v0  ;;  %v9034_v31 = vrot.slane %v941_v20, 4  ;;  %v383_v43 = vshll.u32 %v337_v22, 16  ;;  %v9062_v44 = vld [vmem:[%s8992_s30 + $0xc] sm:$0xf] }
  0x1c   : > { %v937_v12 = vsel %vm8955_vm3, %v932_v11, %v936_v9  ;;  %306 = vst.msk [vmem:[#allocation2 + $0x60] sm:$0xf] %vm280_vm0, %v8866_v0  ;;  %v378_v46 = vrot.slane %v374_v33, 4  ;;  %v457_v47 = vshrl.u32 %v346_v37, 16  ;;  %v9073_v48 = vld [vmem:[%s8992_s30 + $0x30] sm:$0xf] }
  0x1d   : > { %1308 = vrot.lane.b32.xlu0 %v937_v12, %s8867_s26  ;;  %307 = vst.msk [vmem:[#allocation2 + $0x64] sm:$0xf] %vm280_vm0, %v8866_v0  ;;  %v9077_v49 = vld [vmem:[#allocation2 + $0xc] sm:$0xf]  ;;  %v9079_v50 = vrot.slane %v431_v36, 7  ;;  %v434_v51 = vshll.u32 %v9027_v26, 16  ;;  %v385_v62 = vor.u32 %v383_v43, %v9059_v42  ;;  %v420_v12 = vsel %vm9096_vm9, %v412_v28, %v419_v54 }
  0x1e   : > { %309 = vst.msk [vmem:[#allocation2 + $0x6c] sm:$0xf] %vm280_vm0, %v8866_v0  ;;  %v465_v52 = vshrl.u32 %v9049_v39, 16  ;;  %v389_v53 = vshrl.u32 %v9052_v40, 16  ;;  %v429_v56 = vrot.slane %v9040_v35, 4  ;;  %v397_v57 = vshrl.u32 %v9062_v44, 16 }
  0x1f   : > { %310 = vst.msk [vmem:[#allocation2 + $0x70] sm:$0xf] %vm280_vm0, %v8866_v0  ;;  %v349_v58 = vld [vmem:[%s8992_s30 + $0x34] sm:$0xf]  ;;  %v438_v63 = vrot.slane %v9079_v50, 4  ;;  %v474_v1 = vshrl.u32 %v9073_v48, 16  ;;  %v696_v13 = vsel %vm9068_vm8, %v9087_v55, %v9077_v49  ;;  %v9132_v16 = vsel %vm9096_vm9, %v378_v46, %v385_v62 }
  0x20   : > { %312 = vst.msk [vmem:[#allocation2 + $0x78] sm:$0xf] %vm280_vm0, %v8866_v0  ;;  %v459_v3 = vrot.slane %v457_v47, 7  ;;  %v460_v4 = vshll.u32 %v346_v37, 16  ;;  %v482_v5 = vshrl.u32 %v349_v58, 16  ;;  %v9111_v6 = vrot.slane %v465_v52, 7 }
  0x21   : > { %313 = vst.msk [vmem:[#allocation2 + $0x7c] sm:$0xf] %vm280_vm0, %v8866_v0  ;;  %v468_v7 = vshll.u32 %v9049_v39, 16  ;;  %v391_v8 = vrot.slane %v389_v53, 7  ;;  %v392_v9 = vshll.u32 %v9052_v40, 16  ;;  %v9123_v14 = vrot.slane %v397_v57, 7 }
  0x22   : > { %315 = vst.msk [vmem:[#allocation2 + $0x84] sm:$0xf] %vm280_vm0, %v8866_v0  ;;  %v9126_v15 = vld [vmem:[%s8992_s30 + $0x20] sm:$0xf]  ;;  %v436_v17 = vor.u32 %v434_v51, %v9079_v50  ;;  %v400_v18 = vshll.u32 %v9062_v44, 16  ;;  %v9136_v20 = vrot.slane %v474_v1, 7  ;;  %v9146_v23 = vor.u32 %v460_v4, %v459_v3 }
  0x23   : > { %316 = vst.msk [vmem:[#allocation2 + $0x88] sm:$0xf] %vm280_vm0, %v8866_v0  ;;  %v9139_v21 = vld [vmem:[%s8992_s30 + $0x24] sm:$0xf]  ;;  %v9148_v24 = vld [vmem:[#allocation2 + $0x48] sm:$0xf]  ;;  %v470_v28 = vor.u32 %v468_v7, %v9111_v6  ;;  %v9154_v29 = vor.u32 %v392_v9, %v391_v8 }
  0x24   : > { %318 = vst.msk [vmem:[#allocation2 + $0x90] sm:$0xf] %vm280_vm0, %v8866_v0  ;;  %v484_v25 = vrot.slane %v482_v5, 7  ;;  %v485_v26 = vshll.u32 %v349_v58, 16  ;;  %v463_v27 = vrot.slane %v459_v3, 4  ;;  %v387_v33 = vrot.slane %v9059_v42, 4 }
  0x25   : > { %319 = vst.msk [vmem:[#allocation2 + $0x94] sm:$0xf] %vm280_vm0, %v8866_v0  ;;  %v9156_v30 = vld [vmem:[#allocation2 + $0x18] sm:$0xf]  ;;  %v395_v34 = vrot.slane %v391_v8, 4  ;;  %v421_v36 = vrot.slane %v9036_v32, 4  ;;  %v437_v39 = vsel %vm9096_vm9, %v429_v56, %v436_v17  ;;  %v402_v44 = vor.u32 %v400_v18, %v9123_v14 }
  0x26   : > { %321 = vst.msk [vmem:[#allocation2 + $0x9c] sm:$0xf] %vm280_vm0, %v8866_v0  ;;  %v448_v37 = vshrl.u32 %v9139_v21, 16  ;;  %v480_v47 = vrot.slane %v9136_v20, 4  ;;  %v443_v42 = vshll.u32 %v9126_v15, 16  ;;  %v733_v32 = vsel %vm9068_vm8, %v9146_v23, %v9148_v24 }
  0x27   : > { %322 = vst.msk [vmem:[#allocation2 + $0xa0] sm:$0xf] %vm280_vm0, %v8866_v0  ;;  %v352_v49 = vld [vmem:[%s8992_s30 + $0x40] sm:$0xf]  ;;  %v487_v51 = vor.u32 %v485_v26, %v484_v25  ;;  %v489_v52 = vrot.slane %v484_v25, 4  ;;  %v471_v56 = vsel %vm9096_vm9, %v463_v27, %v470_v28  ;;  %v705_v57 = vsel %vm9068_vm8, %v9154_v29, %v9156_v30 }
  0x28   : > { %324 = vst.msk [vmem:[#allocation2 + $0xa8] sm:$0xf] %vm280_vm0, %v8866_v0  ;;  %v353_v53 = vld [vmem:[%s8992_s30 + $0x44] sm:$0xf]  ;;  %v508_v54 = vshrl.u32 %v352_v49, 16  ;;  %v9198_v1 = vrot.slane %v448_v37, 7  ;;  %v9204_v5 = vsel %vm9096_vm9, %v395_v34, %v402_v44 }
  0x29   : > { %325 = vst.msk [vmem:[#allocation2 + $0xac] sm:$0xf] %vm280_vm0, %v8866_v0  ;;  %v516_v62 = vshrl.u32 %v353_v53, 16  ;;  %v511_v4 = vshll.u32 %v352_v49, 16  ;;  %v519_v8 = vshll.u32 %v353_v53, 16  ;;  %v426_v38 = vshll.u32 %v9012_v19, 16 }
  0x2a   : > { %327 = vst.msk [vmem:[#allocation2 + $0xb4] sm:$0xf] %vm280_vm0, %v8866_v0  ;;  %v510_v3 = vrot.slane %v508_v54, 7  ;;  %v9226_v19 = vld [vmem:[%s8992_s30 + $0x48] sm:$0xf]  ;;  %v472_v30 = vrot.slane %v9111_v6, 4 }
  0x2b   : > { %328 = vst.msk [vmem:[#allocation2 + $0xb8] sm:$0xf] %vm280_vm0, %v8866_v0  ;;  %v9206_v7 = vrot.slane %v516_v62, 7  ;;  %v9229_v50 = vld [vmem:[%s8992_s30 + $0x4c] sm:$0xf]  ;;  %v9252_v27 = vor.u32 %v426_v38, %v9040_v35  ;;  %v455_v6 = vrot.slane %v9198_v1, 4 }
  0x2c   : > { %330 = vst.msk [vmem:[#allocation2 + $0xc0] sm:$0xf] %vm280_vm0, %v8866_v0  ;;  %v9240_v18 = vld [vmem:[#allocation2 + $0x6c] sm:$0xf]  ;;  %v9245_v24 = vor.u32 %v511_v4, %v510_v3  ;;  %v533_v25 = vshrl.u32 %v9229_v50, 16  ;;  %v514_v26 = vrot.slane %v510_v3, 4 }
  0x2d   : > { %331 = vst.msk [vmem:[#allocation2 + $0xc4] sm:$0xf] %vm280_vm0, %v8866_v0  ;;  %v9257_v29 = vld [vmem:[%s8992_s30 + $0x38] sm:$0xf]  ;;  %vm1744_vm15 = vcmask 93248   ;;  %vm2498_vm1 = vcmask 158848  }
  0x2e   : > { %333 = vst.msk [vmem:[#allocation2 + $0xcc] sm:$0xf] %vm280_vm0, %v8866_v0  ;;  %v491_v34 = vshrl.u32 %v9257_v29, 16  ;;  %vm2835_vm2 = vcmask 191648   ;;  %vm3590_vm7 = vcmask 257248   ;;  %vm4092_vm11 = vcmask 293888  }
  0x2f   : > { %334 = vst.msk [vmem:[#allocation2 + $0xd0] sm:$0xf] %vm280_vm0, %v8866_v0  ;;  %vm4338_vm12 = vcmask 60416  }
  0x30   : > { %284 = vst.msk [vmem:[#allocation2 + $0x8] sm:$0x1] %vm283_vm4, %v8866_v0 }
  0x31   : > { %287 = vst.msk [vmem:[#allocation2 + $0x14] sm:$0x1] %vm283_vm4, %v8866_v0 }
  0x32   : > { %290 = vst.msk [vmem:[#allocation2 + $0x20] sm:$0x1] %vm283_vm4, %v8866_v0 }
  0x33   : > { %293 = vst.msk [vmem:[#allocation2 + $0x2c] sm:$0x1] %vm283_vm4, %v8866_v0 }
  0x34   : > { %296 = vst.msk [vmem:[#allocation2 + $0x38] sm:$0x1] %vm283_vm4, %v8866_v0 }
  0x35   : > { %299 = vst.msk [vmem:[#allocation2 + $0x44] sm:$0x1] %vm283_vm4, %v8866_v0 }
  0x36   : > { %302 = vst.msk [vmem:[#allocation2 + $0x50] sm:$0x1] %vm283_vm4, %v8866_v0 }
  0x37   : > { %v875_v59 = vld [vmem:[#allocation2 + $0x8] sm:$0x1]  ;;  %305 = vst.msk [vmem:[#allocation2 + $0x5c] sm:$0x1] %vm283_vm4, %v8866_v0 }
  0x38   : > { %v944_v2 = vshll.u32 %v875_v59, 16  ;;  %308 = vst.msk [vmem:[#allocation2 + $0x68] sm:$0x1] %vm283_vm4, %v8866_v0  ;;  %v701_v43 = vld [vmem:[#allocation2 + $0x14] sm:$0x1] }
  0x39   : > { %311 = vst.msk [vmem:[#allocation2 + $0x74] sm:$0x1] %vm283_vm4, %v8866_v0 }
  0x3a   : > { %v946_v11 = vrot.slane %v944_v2, 5  ;;  %314 = vst.msk [vmem:[#allocation2 + $0x80] sm:$0x1] %vm283_vm4, %v8866_v0  ;;  %v715_v46 = vld [vmem:[#allocation2 + $0x2c] sm:$0x1]  ;;  %v451_v2 = vshll.u32 %v9139_v21, 16 }
  0x3b   : > { %317 = vst.msk [vmem:[#allocation2 + $0x8c] sm:$0x1] %vm283_vm4, %v8866_v0  ;;  %v722_v40 = vld [vmem:[#allocation2 + $0x38] sm:$0x1]  ;;  %v9217_v9 = vsel %vm9183_vm10, %v421_v36, %v715_v46  ;;  %v525_v21 = vshrl.u32 %v9226_v19, 16 }
  0x3c   : > { %v947_v22 = vsel %vm8955_vm3, %v9034_v31, %v946_v11  ;;  %320 = vst.msk [vmem:[#allocation2 + $0x98] sm:$0x1] %vm283_vm4, %v8866_v0  ;;  %v440_v31 = vshrl.u32 %v9126_v15, 16  ;;  %v723_v41 = vsel %vm9183_vm10, %v438_v63, %v722_v40  ;;  %v9221_v11 = vsel %vm9096_vm9, %v480_v47, %v487_v51  ;;  %v9223_v15 = vld [vmem:[#allocation2 + $0x3c] sm:$0xf] }
  0x3d   : > { %1310 = vrot.lane.b32.xlu0 %v947_v22, %s8867_s26  ;;  %323 = vst.msk [vmem:[#allocation2 + $0xa4] sm:$0x1] %vm283_vm4, %v8866_v0  ;;  %v453_v23 = vor.u32 %v451_v2, %v9198_v1  ;;  %v9254_v28 = vrot.slane %v525_v21, 7  ;;  %v494_v40 = vshll.u32 %v9257_v29, 16 }
  0x3e   : > { %326 = vst.msk [vmem:[#allocation2 + $0xb0] sm:$0x1] %vm283_vm4, %v8866_v0  ;;  %v743_v58 = vld [vmem:[#allocation2 + $0x5c] sm:$0x1]  ;;  %v442_v59 = vrot.slane %v440_v31, 7  ;;  %v9260_v31 = vrot.slane %v533_v25, 7 }
  0x3f   : > { %329 = vst.msk [vmem:[#allocation2 + $0xbc] sm:$0x1] %vm283_vm4, %v8866_v0  ;;  %v9235_v63 = vsel %vm9183_vm10, %v489_v52, %v743_v58 }
  0x40   : > { %332 = vst.msk [vmem:[#allocation2 + $0xc8] sm:$0x1] %vm283_vm4, %v8866_v0  ;;  %v9238_v17 = vor.u32 %v443_v42, %v442_v59  ;;  %v446_v22 = vrot.slane %v442_v59, 4  ;;  %v754_v42 = vsel %vm9068_vm8, %v9245_v24, %v9240_v18 }
  0x41   : > { %335 = vst.msk [vmem:[#allocation2 + $0xd4] sm:$0x1] %vm283_vm4, %v8866_v0  ;;  %vm3029_vm4 = vcmask 224448  }
  0x42   : > { %713 = vst [vmem:[#allocation2 + $0x24] sm:$0xf] %v712_v61  ;;  %v702_v61 = vsel %vm9183_vm10, %v387_v33, %v701_v43  ;;  %v536_v33 = vshll.u32 %v9229_v50, 16  ;;  %v726_v35 = vsel %vm9068_vm8, %v9238_v17, %v9223_v15  ;;  %v9277_v47 = vsel %vm9096_vm9, %v446_v22, %v453_v23 }
  0x43   : > { %714 = vst.msk [vmem:[#allocation2 + $0x28] sm:$0xf] %vm280_vm0, %v420_v12  ;;  %v708_v12 = vld [vmem:[#allocation2 + $0x20] sm:$0x1]  ;;  %v540_v50 = vrot.slane %v9260_v31, 4 }
  0x44   : > { %697 = vst [vmem:[#allocation2 + $0xc] sm:$0xf] %v696_v13  ;;  %v404_v13 = vrot.slane %v9123_v14, 4  ;;  %v521_v14 = vor.u32 %v519_v8, %v9206_v7 }
  0x45   : > { %698 = vst.msk [vmem:[#allocation2 + $0x10] sm:$0xf] %vm280_vm0, %v9132_v16  ;;  %v9247_v16 = vld [vmem:[#allocation2 + $0x30] sm:$0xf] }
  0x46   : > { %721 = vst.msk [vmem:[#allocation2 + $0x34] sm:$0xf] %vm280_vm0, %v437_v39  ;;  %v9266_v37 = vsel %vm9183_vm10, %v404_v13, %v708_v12  ;;  %v531_v39 = vrot.slane %v9254_v28, 4  ;;  %v9285_v52 = vsel %vm9096_vm9, %v514_v26, %v521_v14  ;;  %v719_v53 = vsel %vm9068_vm8, %v9252_v27, %v9247_v16 }
  0x47   : > { %724 = vst [vmem:[#allocation2 + $0x38] sm:$0x1] %v723_v41 }
  0x48   : > { %703 = vst [vmem:[#allocation2 + $0x14] sm:$0x1] %v702_v61 }
  0x49   : > { %v882_v36 = vld [vmem:[#allocation2 + $0x24] sm:$0xf]  ;;  %734 = vst [vmem:[#allocation2 + $0x48] sm:$0xf] %v733_v32 }
  0x4a   : > { %v883_v43 = vld [vmem:[#allocation2 + $0x28] sm:$0xf]  ;;  %v997_v44 = vshrl.u32 %v882_v36, 16  ;;  %v1000_v46 = vshll.u32 %v882_v36, 16  ;;  %735 = vst.msk [vmem:[#allocation2 + $0x4c] sm:$0xf] %vm280_vm0, %v471_v56 }
  0x4b   : > { %v1006_v49 = vshll.u32 %v883_v43, 16  ;;  %v1010_v32 = vshrl.u32 %v883_v43, 16  ;;  %v876_v51 = vld [vmem:[#allocation2 + $0xc] sm:$0xf]  ;;  %706 = vst [vmem:[#allocation2 + $0x18] sm:$0xf] %v705_v57 }
  0x4c   : > { %v999_v54 = vrot.slane %v997_v44, 4  ;;  %v1002_v56 = vrot.slane %v1000_v46, 5  ;;  %v877_v58 = vld [vmem:[#allocation2 + $0x10] sm:$0xf]  ;;  %v949_v59 = vshrl.u32 %v876_v51, 16  ;;  %v952_v62 = vshll.u32 %v876_v51, 16 }
  0x4d   : > { %v9291_v2 = vrot.slane %v1006_v49, 5  ;;  %v958_v3 = vshll.u32 %v877_v58, 16  ;;  %v962_v4 = vshrl.u32 %v877_v58, 16  ;;  %v886_v8 = vld [vmem:[#allocation2 + $0x34] sm:$0xf]  ;;  %v9293_v57 = vrot.slane %v1010_v32, 4 }
  0x4e   : > { %v1003_v38 = vor.u32 %v1002_v56, %v999_v54  ;;  %v951_v41 = vrot.slane %v949_v59, 4  ;;  %v954_v61 = vrot.slane %v952_v62, 5  ;;  %v887_v12 = vld [vmem:[#allocation2 + $0x38] sm:$0x1]  ;;  %v1030_v13 = vshll.u32 %v886_v8, 16 }
  0x4f   : > { %v960_v21 = vrot.slane %v958_v3, 5  ;;  %v964_v22 = vrot.slane %v962_v4, 4  ;;  %v1034_v23 = vshrl.u32 %v886_v8, 16  ;;  %v1040_v25 = vshll.u32 %v887_v12, 16  ;;  %v878_v26 = vld [vmem:[#allocation2 + $0x14] sm:$0x1] }
  0x50   : > { %v1004_v14 = vrot.slane %v1003_v38, 4  ;;  %v955_v36 = vor.u32 %v954_v61, %v951_v41  ;;  %v9295_v43 = vrot.slane %v1030_v13, 5  ;;  %v968_v44 = vshll.u32 %v878_v26, 16  ;;  %v891_v46 = vld [vmem:[#allocation2 + $0x48] sm:$0xf] }
  0x51   : > { %v1036_v49 = vrot.slane %v1034_v23, 4  ;;  %v1042_v51 = vrot.slane %v1040_v25, 5  ;;  %v965_v32 = vor.u32 %v964_v22, %v960_v21  ;;  %v892_v58 = vld [vmem:[#allocation2 + $0x4c] sm:$0xf]  ;;  %v1069_v54 = vshrl.u32 %v891_v46, 16 }
  0x52   : > { %v1009_v56 = vsel %vm8955_vm3, %v1004_v14, %v9291_v2  ;;  %v956_v59 = vrot.slane %v955_v36, 4  ;;  %v970_v62 = vrot.slane %v968_v44, 5  ;;  %v1072_v3 = vshll.u32 %v891_v46, 16  ;;  %707 = vst.msk [vmem:[#allocation2 + $0x1c] sm:$0xf] %vm280_vm0, %v9204_v5 }
  0x53   : > { %v736_v4 = vld [vmem:[#allocation2 + $0x50] sm:$0x1]  ;;  %1320 = vrot.lane.b32.xlu0 %v1009_v56, %s8867_s26  ;;  %v1037_v8 = vor.u32 %v1036_v49, %v9295_v43  ;;  %v966_v38 = vrot.slane %v965_v32, 4  ;;  %v1071_v41 = vrot.slane %v1069_v54, 4  ;;  %v1078_v61 = vshll.u32 %v892_v58, 16 }
  0x54   : > { %v879_v12 = vld [vmem:[#allocation2 + $0x18] sm:$0xf]  ;;  %v961_v13 = vsel %vm8955_vm3, %v956_v59, %v960_v21  ;;  %v1074_v22 = vrot.slane %v1072_v3, 5  ;;  %v1082_v23 = vshrl.u32 %v892_v58, 16  ;;  %717 = vst [vmem:[#allocation2 + $0x2c] sm:$0x1] %v9217_v9  ;;  %v538_v36 = vor.u32 %v536_v33, %v9260_v31 }
  0x55   : > { %v973_v25 = vshrl.u32 %v879_v12, 16  ;;  %1312 = vrot.lane.b32.xlu1 %v961_v13, %s8867_s26  ;;  %v1038_v5 = vrot.slane %v1037_v8, 4  ;;  %v9308_v26 = vrot.slane %v1078_v61, 5  ;;  %v976_v14 = vshll.u32 %v879_v12, 16  ;;  %742 = vst.msk [vmem:[#allocation2 + $0x58] sm:$0xf] %vm280_vm0, %v9221_v11 }
  0x56   : > { %v1075_v21 = vor.u32 %v1074_v22, %v1071_v41  ;;  %v1013_v46 = vor.u32 %v9293_v57, %v9291_v2  ;;  %745 = vst [vmem:[#allocation2 + $0x5c] sm:$0x1] %v9235_v63  ;;  %v1084_v9 = vrot.slane %v1082_v23, 4  ;;  %v9319_v49 = vld [vmem:[%s8992_s30 + $0x3c] sm:$0xf]  ;;  %v971_v32 = vsel %vm8955_vm3, %v966_v38, %v970_v62 }
  0x57   : > { %v975_v44 = vrot.slane %v973_v25, 4  ;;  %v978_v58 = vrot.slane %v976_v14, 5  ;;  %710 = vst [vmem:[#allocation2 + $0x20] sm:$0x1] %v9266_v37  ;;  %v737_v11 = vsel %vm9183_vm10, %v472_v30, %v736_v4  ;;  %v764_v33 = vld [vmem:[#allocation2 + $0x80] sm:$0x1]  ;;  %v1043_v63 = vsel %vm8955_vm3, %v1038_v5, %v1042_v51 }
  0x58   : > { %v1076_v2 = vrot.slane %v1075_v21, 4  ;;  %727 = vst [vmem:[#allocation2 + $0x3c] sm:$0xf] %v726_v35  ;;  %v1085_v37 = vor.u32 %v1084_v9, %v9308_v26  ;;  %v729_v57 = vld [vmem:[#allocation2 + $0x44] sm:$0x1]  ;;  %v539_v31 = vsel %vm9096_vm9, %v531_v39, %v538_v36  ;;  %v9346_v51 = vrot.slane %v491_v34, 7 }
  0x59   : > { %v880_v54 = vld [vmem:[#allocation2 + $0x1c] sm:$0xf]  ;;  %v979_v30 = vor.u32 %v978_v58, %v975_v44  ;;  %728 = vst.msk [vmem:[#allocation2 + $0x40] sm:$0xf] %vm280_vm0, %v9277_v47  ;;  %v499_v15 = vshrl.u32 %v9319_v49, 16  ;;  %v1014_v1 = vrot.slane %v1013_v46, 4  ;;  %v765_v59 = vsel %vm9183_vm10, %v540_v50, %v764_v33 }
  0x5a   : > { %v982_v17 = vshll.u32 %v880_v54, 16  ;;  %v986_v35 = vshrl.u32 %v880_v54, 16  ;;  %755 = vst [vmem:[#allocation2 + $0x6c] sm:$0xf] %v754_v42  ;;  %v9354_v47 = vrot.slane %v1085_v37, 4  ;;  %v1081_v34 = vsel %vm8955_vm3, %v1076_v2, %v9308_v26 }
  0x5b   : > { %1326 = vrot.lane.b32.xlu0 %v1043_v63, %s8867_s26  ;;  %v980_v39 = vrot.slane %v979_v30, 4  ;;  %v884_v56 = vld [vmem:[#allocation2 + $0x2c] sm:$0x1]  ;;  %756 = vst.msk [vmem:[#allocation2 + $0x70] sm:$0xf] %vm280_vm0, %v9285_v52  ;;  %v497_v62 = vrot.slane %v9346_v51, 4  ;;  %v730_v52 = vsel %vm9183_vm10, %v455_v6, %v729_v57  ;;  %v9378_v61 = vor.u32 %v494_v40, %v9346_v51 }
  0x5c   : > { %v984_v18 = vrot.slane %v982_v17, 5  ;;  %v988_v24 = vrot.slane %v986_v35, 4  ;;  %v1016_v42 = vshll.u32 %v884_v56, 16  ;;  %v895_v3 = vld [vmem:[#allocation2 + $0x58] sm:$0xf]  ;;  %v9365_v4 = vrot.slane %v499_v15, 7 }
  0x5d   : > { %1314 = vrot.lane.b32.xlu1 %v971_v32, %s8867_s26  ;;  %v896_v8 = vld [vmem:[#allocation2 + $0x5c] sm:$0x1]  ;;  %v1102_v38 = vshll.u32 %v895_v3, 16  ;;  %v1106_v41 = vshrl.u32 %v895_v3, 16  ;;  %720 = vst [vmem:[#allocation2 + $0x30] sm:$0xf] %v719_v53 }
  0x5e   : > { %v985_v12 = vsel %vm8955_vm3, %v980_v39, %v984_v18  ;;  %v1018_v13 = vrot.slane %v1016_v42, 5  ;;  %v1112_v22 = vshll.u32 %v896_v8, 16  ;;  %v881_v23 = vld [vmem:[#allocation2 + $0x20] sm:$0x1]  ;;  %v989_v25 = vor.u32 %v988_v24, %v984_v18  ;;  %738 = vst [vmem:[#allocation2 + $0x50] sm:$0x1] %v737_v11 }
  0x5f   : > { %1316 = vrot.lane.b32.xlu2 %v985_v12, %s8867_s26  ;;  %v9383_v16 = vrot.slane %v1102_v38, 5  ;;  %v1108_v27 = vrot.slane %v1106_v41, 4  ;;  %v992_v53 = vshll.u32 %v881_v23, 16  ;;  %v888_v5 = vld [vmem:[#allocation2 + $0x3c] sm:$0xf]  ;;  %v502_v26 = vshll.u32 %v9319_v49, 16 }
  0x60   : > { %v1019_v29 = vsel %vm8955_vm3, %v1014_v1, %v1018_v13  ;;  %v1114_v40 = vrot.slane %v1112_v22, 5  ;;  %v990_v14 = vrot.slane %v989_v25, 4  ;;  %v889_v36 = vld [vmem:[#allocation2 + $0x40] sm:$0xf]  ;;  %v1045_v21 = vshrl.u32 %v888_v5, 16 }
  0x61   : > { %v1109_v44 = vor.u32 %v1108_v27, %v9383_v16  ;;  %v994_v46 = vrot.slane %v992_v53, 5  ;;  %v1048_v9 = vshll.u32 %v888_v5, 16  ;;  %v1054_v32 = vshll.u32 %v889_v36, 16  ;;  %v900_v58 = vld [vmem:[#allocation2 + $0x6c] sm:$0xf] }
  0x62   : > { %v1047_v11 = vrot.slane %v1045_v21, 4  ;;  %v1058_v50 = vshrl.u32 %v889_v36, 16  ;;  %v9389_v33 = vld [vmem:[#allocation2 + $0x70] sm:$0xf]  ;;  %v1141_v63 = vshrl.u32 %v900_v58, 16  ;;  %v1144_v2 = vshll.u32 %v900_v58, 16 }
  0x63   : > { %1332 = vrot.lane.b32.xlu0 %v1081_v34, %s8867_s26  ;;  %v1110_v49 = vrot.slane %v1109_v44, 4  ;;  %v995_v37 = vsel %vm8955_vm3, %v990_v14, %v994_v46  ;;  %v1050_v6 = vrot.slane %v1048_v9, 5  ;;  %v1056_v57 = vrot.slane %v1054_v32, 5  ;;  %763 = vst.msk [vmem:[#allocation2 + $0x7c] sm:$0xf] %vm280_vm0, %v539_v31 }
  0x64   : > { %v1143_v54 = vrot.slane %v1141_v63, 4  ;;  %v1146_v30 = vrot.slane %v1144_v2, 5  ;;  %v1150_v15 = vshll.u32 %v9389_v33, 16  ;;  %v1154_v17 = vshrl.u32 %v9389_v33, 16  ;;  %v885_v35 = vld [vmem:[#allocation2 + $0x30] sm:$0xf] }
  0x65   : > { %1322 = vrot.lane.b32.xlu1 %v1019_v29, %s8867_s26  ;;  %v1051_v1 = vor.u32 %v1050_v6, %v1047_v11  ;;  %v1021_v39 = vshrl.u32 %v885_v35, 16  ;;  %v1024_v34 = vshll.u32 %v885_v35, 16  ;;  %v893_v56 = vld [vmem:[#allocation2 + $0x50] sm:$0x1]  ;;  %766 = vst [vmem:[#allocation2 + $0x80] sm:$0x1] %v765_v59  ;;  %v504_v41 = vor.u32 %v502_v26, %v9365_v4 }
  0x66   : > { %v1147_v18 = vor.u32 %v1146_v30, %v1143_v54  ;;  %v9398_v24 = vrot.slane %v1150_v15, 5  ;;  %v1088_v42 = vshll.u32 %v893_v56, 16  ;;  %731 = vst [vmem:[#allocation2 + $0x44] sm:$0x1] %v730_v52  ;;  %v1060_v31 = vrot.slane %v1058_v50, 4 }
  0x67   : > { %1318 = vrot.lane.b32.xlu2 %v995_v37, %s8867_s26  ;;  %v1052_v3 = vrot.slane %v1051_v1, 4  ;;  %v1023_v8 = vrot.slane %v1021_v39, 4  ;;  %v1026_v38 = vrot.slane %v1024_v34, 5  ;;  %v746_v12 = vld [vmem:[#allocation2 + $0x60] sm:$0xf]  ;;  %v1115_v13 = vsel %vm8955_vm3, %v1110_v49, %v1114_v40 }
  0x68   : > { %v1148_v59 = vrot.slane %v1147_v18, 4  ;;  %v1061_v22 = vor.u32 %v1060_v31, %v1056_v57  ;;  %v747_v23 = vsel %vm9068_vm8, %v9378_v61, %v746_v12  ;;  %v358_v52 = vld [vmem:[%s8992_s30 + $0x58] sm:$0xf]  ;;  %v9408_v27 = vrot.slane %v1088_v42, 5  ;;  %v359_v5 = vld [vmem:[%s8992_s30 + $0x5c] sm:$0xf] }
  0x69   : > { %v1027_v25 = vor.u32 %v1026_v38, %v1023_v8  ;;  %v505_v53 = vsel %vm9096_vm9, %v497_v62, %v504_v41  ;;  %748 = vst [vmem:[#allocation2 + $0x60] sm:$0xf] %v747_v23  ;;  %v559_v26 = vshrl.u32 %v358_v52, 16  ;;  %v1057_v29 = vsel %vm8955_vm3, %v1052_v3, %v1056_v57  ;;  %v774_v46 = vld [vmem:[#allocation2 + $0x90] sm:$0xf] }
  0x6a   : > { %v1153_v40 = vsel %vm8955_vm3, %v1148_v59, %v9398_v24  ;;  %v904_v61 = vld [vmem:[#allocation2 + $0x7c] sm:$0xf]  ;;  %v9420_v14 = vrot.slane %v1061_v22, 4  ;;  %749 = vst.msk [vmem:[#allocation2 + $0x64] sm:$0xf] %vm280_vm0, %v505_v53  ;;  %v562_v36 = vshll.u32 %v358_v52, 16  ;;  %v1091_v59 = vsel %vm8955_vm3, %v9354_v47, %v9408_v27 }
  0x6b   : > { %1338 = vrot.lane.b32.xlu0 %v1115_v13, %s8867_s26  ;;  %v1028_v51 = vrot.slane %v1027_v25, 4  ;;  %v1174_v62 = vshll.u32 %v904_v61, 16  ;;  %v1178_v21 = vshrl.u32 %v904_v61, 16  ;;  %v561_v44 = vrot.slane %v559_v26, 7  ;;  %v739_v50 = vld [vmem:[#allocation2 + $0x54] sm:$0xf] }
  0x6c   : > { %v905_v9 = vld [vmem:[#allocation2 + $0x80] sm:$0x1]  ;;  %v567_v32 = vshrl.u32 %v359_v5, 16  ;;  %v570_v58 = vshll.u32 %v359_v5, 16  ;;  %v477_v11 = vshll.u32 %v9073_v48, 16  ;;  %v523_v63 = vrot.slane %v9206_v7, 4 }
  0x6d   : > { %1328 = vrot.lane.b32.xlu1 %v1057_v29, %s8867_s26  ;;  %v1033_v2 = vsel %vm8955_vm3, %v1028_v51, %v9295_v43  ;;  %v9430_v49 = vrot.slane %v1174_v62, 5  ;;  %v1180_v37 = vrot.slane %v1178_v21, 4  ;;  %v1184_v6 = vshll.u32 %v905_v9, 16  ;;  %v890_v57 = vld [vmem:[#allocation2 + $0x44] sm:$0x1] }
  0x6e   : > { %v1064_v54 = vshll.u32 %v890_v57, 16  ;;  %v564_v30 = vor.u32 %v562_v36, %v561_v44  ;;  %v565_v15 = vrot.slane %v561_v44, 4  ;;  %v9432_v48 = vrot.slane %v567_v32, 7  ;;  %v757_v35 = vld [vmem:[#allocation2 + $0x74] sm:$0x1] }
  0x6f   : > { %1324 = vrot.lane.b32.xlu2 %v1033_v2, %s8867_s26  ;;  %v1181_v7 = vor.u32 %v1180_v37, %v9430_v49  ;;  %v9436_v1 = vrot.slane %v1184_v6, 5  ;;  %v479_v43 = vor.u32 %v477_v11, %v9136_v20  ;;  %v758_v39 = vsel %vm9183_vm10, %v523_v63, %v757_v35  ;;  %v9442_v34 = vld [vmem:[%s8992_s30 + $0x60] sm:$0xf]  ;;  %v361_v56 = vld [vmem:[%s8992_s30 + $0x64] sm:$0xf] }
  0x70   : > { %v1066_v18 = vrot.slane %v1064_v54, 5  ;;  %v897_v42 = vld [vmem:[#allocation2 + $0x60] sm:$0xf]  ;;  %v572_v31 = vor.u32 %v570_v58, %v9432_v48  ;;  %v775_v3 = vsel %vm9068_vm8, %v564_v30, %v774_v46  ;;  %759 = vst [vmem:[#allocation2 + $0x74] sm:$0x1] %v758_v39  ;;  %v1156_v8 = vrot.slane %v1154_v17, 4 }
  0x71   : > { %v1182_v38 = vrot.slane %v1181_v7, 4  ;;  %v898_v41 = vld [vmem:[#allocation2 + $0x64] sm:$0xf]  ;;  %v1117_v20 = vshrl.u32 %v897_v42, 16  ;;  %v1120_v12 = vshll.u32 %v897_v42, 16  ;;  %v740_v13 = vsel %vm9068_vm8, %v479_v43, %v739_v50 }
  0x72   : > { %v1126_v22 = vshll.u32 %v898_v41, 16  ;;  %v1130_v23 = vshrl.u32 %v898_v41, 16  ;;  %v573_v52 = vsel %vm9096_vm9, %v565_v15, %v572_v31  ;;  %776 = vst [vmem:[#allocation2 + $0x90] sm:$0xf] %v775_v3  ;;  %v1067_v17 = vsel %vm8955_vm3, %v9420_v14, %v1066_v18  ;;  %v750_v47 = vld [vmem:[#allocation2 + $0x68] sm:$0x1] }
  0x73   : > { %1344 = vrot.lane.b32.xlu0 %v1153_v40, %s8867_s26  ;;  %v1187_v33 = vsel %vm8955_vm3, %v1182_v38, %v9436_v1  ;;  %v1119_v25 = vrot.slane %v1117_v20, 4  ;;  %v1122_v53 = vrot.slane %v1120_v12, 5  ;;  %777 = vst.msk [vmem:[#allocation2 + $0x94] sm:$0xf] %vm280_vm0, %v573_v52  ;;  %v1157_v27 = vor.u32 %v1156_v8, %v9398_v24  ;;  %v356_v51 = vld [vmem:[%s8992_s30 + $0x50] sm:$0xf] }
  0x74   : > { %741 = vst [vmem:[#allocation2 + $0x54] sm:$0xf] %v740_v13  ;;  %v576_v5 = vshrl.u32 %v9442_v34, 16  ;;  %v584_v26 = vshrl.u32 %v361_v56, 16  ;;  %v587_v29 = vshll.u32 %v361_v56, 16  ;;  %v1128_v61 = vrot.slane %v1126_v22, 5 }
  0x75   : > { %1334 = vrot.lane.b32.xlu1 %v1091_v59, %s8867_s26  ;;  %v1123_v40 = vor.u32 %v1122_v53, %v1119_v25  ;;  %v506_v36 = vrot.slane %v9365_v4, 4  ;;  %v1132_v14 = vrot.slane %v1130_v23, 4  ;;  %v357_v44 = vld [vmem:[%s8992_s30 + $0x54] sm:$0xf]  ;;  %v542_v46 = vshrl.u32 %v356_v51, 16 }
  0x76   : > { %v9471_v62 = vrot.slane %v576_v5, 7  ;;  %v586_v21 = vrot.slane %v584_v26, 7  ;;  %v545_v9 = vshll.u32 %v356_v51, 16  ;;  %v785_v58 = vld [vmem:[#allocation2 + $0xa4] sm:$0x1]  ;;  %v550_v63 = vshrl.u32 %v357_v44, 16 }
  0x77   : > { %1330 = vrot.lane.b32.xlu2 %v1067_v17, %s8867_s26  ;;  %v1124_v24 = vrot.slane %v1123_v40, 4  ;;  %v902_v32 = vld [vmem:[#allocation2 + $0x74] sm:$0x1]  ;;  %v751_v11 = vsel %vm9183_vm10, %v506_v36, %v750_v47  ;;  %v1133_v50 = vor.u32 %v1132_v14, %v1128_v61  ;;  %v9477_v2 = vrot.slane %v1157_v27, 4  ;;  %v767_v35 = vld [vmem:[#allocation2 + $0x84] sm:$0xf] }
  0x78   : > { %v582_v4 = vrot.slane %v9471_v62, 4  ;;  %v589_v37 = vor.u32 %v587_v29, %v586_v21  ;;  %v591_v6 = vrot.slane %v586_v21, 4  ;;  %752 = vst [vmem:[#allocation2 + $0x68] sm:$0x1] %v751_v11  ;;  %v1160_v30 = vshll.u32 %v902_v32, 16 }
  0x79   : > { %v1129_v57 = vsel %vm8955_vm3, %v1124_v24, %v1128_v61  ;;  %v909_v54 = vld [vmem:[#allocation2 + $0x90] sm:$0xf]  ;;  %v544_v15 = vrot.slane %v542_v46, 7  ;;  %v9486_v56 = vrot.slane %v1133_v50, 4  ;;  %v9493_v8 = vrot.slane %v550_v63, 7 }
  0x7a   : > { %v9482_v7 = vld [vmem:[#allocation2 + $0x94] sm:$0xf]  ;;  %v1213_v1 = vshrl.u32 %v909_v54, 16  ;;  %v1216_v43 = vshll.u32 %v909_v54, 16  ;;  %v590_v39 = vsel %vm9096_vm9, %v582_v4, %v589_v37  ;;  %v786_v31 = vsel %vm9183_vm10, %v591_v6, %v785_v58  ;;  %v364_v52 = vld [vmem:[%s8992_s30 + $0x70] sm:$0xf] }
  0x7b   : > { %1350 = vrot.lane.b32.xlu0 %v1187_v33, %s8867_s26  ;;  %v1222_v18 = vshll.u32 %v9482_v7, 16  ;;  %v894_v42 = vld [vmem:[#allocation2 + $0x54] sm:$0xf]  ;;  %784 = vst.msk [vmem:[#allocation2 + $0xa0] sm:$0xf] %vm280_vm0, %v590_v39  ;;  %v547_v3 = vor.u32 %v545_v9, %v544_v15  ;;  %v1162_v59 = vrot.slane %v1160_v30, 5 }
  0x7c   : > { %v1215_v38 = vrot.slane %v1213_v1, 4  ;;  %v1218_v41 = vrot.slane %v1216_v43, 5  ;;  %v1093_v20 = vshrl.u32 %v894_v42, 16  ;;  %v1096_v12 = vshll.u32 %v894_v42, 16  ;;  %787 = vst [vmem:[#allocation2 + $0xa4] sm:$0x1] %v786_v31 }
  0x7d   : > { %1340 = vrot.lane.b32.xlu1 %v1129_v57, %s8867_s26  ;;  %v9496_v13 = vrot.slane %v1222_v18, 5  ;;  %v548_v22 = vrot.slane %v544_v15, 4  ;;  %v553_v23 = vshll.u32 %v357_v44, 16  ;;  %v768_v53 = vsel %vm9068_vm8, %v547_v3, %v767_v35  ;;  %v365_v47 = vld [vmem:[%s8992_s30 + $0x74] sm:$0xf] }
  0x7e   : > { %v1219_v33 = vor.u32 %v1218_v41, %v1215_v38  ;;  %v1095_v17 = vrot.slane %v1093_v20, 4  ;;  %v1098_v25 = vrot.slane %v1096_v12, 5  ;;  %769 = vst [vmem:[#allocation2 + $0x84] sm:$0xf] %v768_v53  ;;  %v610_v26 = vshrl.u32 %v364_v52, 16 }
  0x7f   : > { %v899_v27 = vld [vmem:[#allocation2 + $0x68] sm:$0x1]  ;;  %v555_v5 = vor.u32 %v553_v23, %v9493_v8  ;;  %v613_v29 = vshll.u32 %v364_v52, 16  ;;  %v618_v14 = vshrl.u32 %v365_v47, 16  ;;  %v1226_v51 = vshrl.u32 %v9482_v7, 16 }
  0x80   : > { %v1220_v40 = vrot.slane %v1219_v33, 4  ;;  %v1099_v61 = vor.u32 %v1098_v25, %v1095_v17  ;;  %v1136_v36 = vshll.u32 %v899_v27, 16  ;;  %v612_v44 = vrot.slane %v610_v26, 7  ;;  %v795_v46 = vld [vmem:[#allocation2 + $0xb4] sm:$0xf] }
  0x81   : > { %v556_v21 = vsel %vm9096_vm9, %v548_v22, %v555_v5  ;;  %v528_v9 = vshll.u32 %v9226_v19, 16  ;;  %v1163_v58 = vsel %vm8955_vm3, %v9477_v2, %v1162_v59  ;;  %v621_v50 = vshll.u32 %v365_v47, 16  ;;  %v760_v2 = vld [vmem:[#allocation2 + $0x78] sm:$0xf]  ;;  %v771_v22 = vld [vmem:[#allocation2 + $0x8c] sm:$0x1] }
  0x82   : > { %v1225_v24 = vsel %vm8955_vm3, %v1220_v40, %v9496_v13  ;;  %v1100_v32 = vrot.slane %v1099_v61, 4  ;;  %v913_v11 = vld [vmem:[#allocation2 + $0xa0] sm:$0xf]  ;;  %770 = vst.msk [vmem:[#allocation2 + $0x88] sm:$0xf] %vm280_vm0, %v556_v21  ;;  %v1138_v6 = vrot.slane %v1136_v36, 5  ;;  %v615_v19 = vor.u32 %v613_v29, %v612_v44 }
  0x83   : > { %1356 = vrot.lane.b32.xlu0 %v1225_v24, %s8867_s26  ;;  %v914_v63 = vld [vmem:[#allocation2 + $0xa4] sm:$0x1]  ;;  %v1246_v4 = vshll.u32 %v913_v11, 16  ;;  %v1250_v37 = vshrl.u32 %v913_v11, 16  ;;  %v616_v30 = vrot.slane %v612_v44, 4  ;;  %v9518_v15 = vrot.slane %v618_v14, 7 }
  0x84   : > { %v1105_v57 = vsel %vm8955_vm3, %v1100_v32, %v9383_v16  ;;  %v1256_v54 = vshll.u32 %v914_v63, 16  ;;  %v796_v1 = vsel %vm9068_vm8, %v615_v19, %v795_v46  ;;  %v530_v43 = vor.u32 %v528_v9, %v9254_v28  ;;  %v778_v39 = vld [vmem:[#allocation2 + $0x98] sm:$0x1]  ;;  %v362_v53 = vld [vmem:[%s8992_s30 + $0x68] sm:$0xf] }
  0x85   : > { %1336 = vrot.lane.b32.xlu2 %v1105_v57, %s8867_s26  ;;  %1346 = vrot.lane.b32.xlu1 %v1163_v58, %s8867_s26  ;;  %v9522_v35 = vrot.slane %v1246_v4, 5  ;;  %v1252_v7 = vrot.slane %v1250_v37, 4  ;;  %v906_v16 = vld [vmem:[#allocation2 + $0x84] sm:$0xf]  ;;  %v623_v42 = vor.u32 %v621_v50, %v9518_v15  ;;  %797 = vst [vmem:[#allocation2 + $0xb4] sm:$0xf] %v796_v1  ;;  %v1139_v17 = vsel %vm8955_vm3, %v9486_v56, %v1138_v6 }
  0x86   : > { %v1258_v18 = vrot.slane %v1256_v54, 5  ;;  %v574_v31 = vrot.slane %v9432_v48, 4  ;;  %v1189_v38 = vshrl.u32 %v906_v16, 16  ;;  %v1192_v41 = vshll.u32 %v906_v16, 16  ;;  %v363_v40 = vld [vmem:[%s8992_s30 + $0x6c] sm:$0xf] }
  0x87   : > { %v1253_v3 = vor.u32 %v1252_v7, %v9522_v35  ;;  %v761_v20 = vsel %vm9068_vm8, %v530_v43, %v760_v2  ;;  %v624_v12 = vsel %vm9096_vm9, %v616_v30, %v623_v42  ;;  %v1228_v59 = vrot.slane %v1226_v51, 4  ;;  %v788_v37 = vld [vmem:[#allocation2 + $0xa8] sm:$0xf]  ;;  %4343 = vst.msk [vmem:[#allocation4 + $0xc] sm:$0xf] %vm4338_vm12, %v8866_v0 }
  0x88   : > { %762 = vst [vmem:[#allocation2 + $0x78] sm:$0xf] %v761_v20  ;;  %v779_v28 = vsel %vm9183_vm10, %v574_v31, %v778_v39  ;;  %v1191_v52 = vrot.slane %v1189_v38, 4  ;;  %v1194_v33 = vrot.slane %v1192_v41, 5  ;;  %v557_v5 = vrot.slane %v9493_v8, 4 }
  0x89   : > { %v1254_v23 = vrot.slane %v1253_v3, 4  ;;  %v907_v48 = vld [vmem:[#allocation2 + $0x88] sm:$0xf]  ;;  %798 = vst.msk [vmem:[#allocation2 + $0xb8] sm:$0xf] %vm280_vm0, %v624_v12  ;;  %v1229_v29 = vor.u32 %v1228_v59, %v9496_v13  ;;  %v593_v14 = vshrl.u32 %v362_v53, 16 }
  0x8a   : > { %v1198_v25 = vshll.u32 %v907_v48, 16  ;;  %v1195_v27 = vor.u32 %v1194_v33, %v1191_v52  ;;  %780 = vst [vmem:[#allocation2 + $0x98] sm:$0x1] %v779_v28  ;;  %v772_v36 = vsel %vm9183_vm10, %v557_v5, %v771_v22  ;;  %v596_v51 = vshll.u32 %v362_v53, 16  ;;  %v9555_v13 = vld [vmem:[#allocation2 + $0x4] sm:$0xf] }
  0x8b   : > { %v1259_v47 = vsel %vm8955_vm3, %v1254_v23, %v1258_v18  ;;  %v1202_v21 = vshrl.u32 %v907_v48, 16  ;;  %773 = vst [vmem:[#allocation2 + $0x8c] sm:$0x1] %v772_v36  ;;  %v595_v24 = vrot.slane %v593_v14, 7  ;;  %v601_v32 = vshrl.u32 %v363_v40, 16 }
  0x8c   : > { %1362 = vrot.lane.b32.xlu0 %v1259_v47, %s8867_s26  ;;  %v9545_v26 = vrot.slane %v1198_v25, 5  ;;  %v1196_v56 = vrot.slane %v1195_v27, 4  ;;  %v918_v61 = vld [vmem:[#allocation2 + $0xb4] sm:$0xf]  ;;  %v604_v58 = vshll.u32 %v363_v40, 16  ;;  %v1230_v19 = vrot.slane %v1229_v29, 4 }
  0x8d   : > { %1342 = vrot.lane.b32.xlu2 %v1139_v17, %s8867_s26  ;;  %v1285_v44 = vshrl.u32 %v918_v61, 16  ;;  %v1288_v46 = vshll.u32 %v918_v61, 16  ;;  %v598_v57 = vor.u32 %v596_v51, %v595_v24  ;;  %v599_v54 = vrot.slane %v595_v24, 4  ;;  %v1439_v42 = vld [vmem:[#allocation2 + $0x8] sm:$0x1] }
  0x8e   : > { %v1201_v8 = vsel %vm8955_vm3, %v1196_v56, %v9545_v26  ;;  %v603_v30 = vrot.slane %v601_v32, 7  ;;  %v1204_v39 = vrot.slane %v1202_v21, 4  ;;  %v1538_v20 = vrot.slane %v9555_v13, 5  ;;  %v799_v48 = vld [vmem:[#allocation2 + $0xbc] sm:$0x1] }
  0x8f   : > { %v903_v9 = vld [vmem:[#allocation2 + $0x78] sm:$0xf]  ;;  %1352 = vrot.lane.b32.xlu1 %v1201_v8, %s8867_s26  ;;  %v1287_v11 = vrot.slane %v1285_v44, 4  ;;  %v1290_v50 = vrot.slane %v1288_v46, 5  ;;  %v789_v3 = vsel %vm9068_vm8, %v598_v57, %v788_v37  ;;  %v579_v23 = vshll.u32 %v9442_v34, 16 }
  0x90   : > { %v1165_v63 = vshrl.u32 %v903_v9, 16  ;;  %v1168_v4 = vshll.u32 %v903_v9, 16  ;;  %v919_v6 = vld [vmem:[#allocation2 + $0xb8] sm:$0xf]  ;;  %v606_v31 = vor.u32 %v604_v58, %v603_v30  ;;  %790 = vst [vmem:[#allocation2 + $0xa8] sm:$0xf] %v789_v3  ;;  %v1205_v33 = vor.u32 %v1204_v39, %v9545_v26 }
  0x91   : > { %v1291_v2 = vor.u32 %v1290_v50, %v1287_v11  ;;  %v1294_v7 = vshll.u32 %v919_v6, 16  ;;  %v911_v43 = vld [vmem:[#allocation2 + $0x98] sm:$0x1]  ;;  %v781_v17 = vld [vmem:[#allocation2 + $0x9c] sm:$0xf]  ;;  %v625_v25 = vrot.slane %v9518_v15, 4  ;;  %v581_v27 = vor.u32 %v579_v23, %v9471_v62  ;;  %v1309_v11 = vpop.permute.xlu0 %1308 }
  0x92   : > { %v1167_v1 = vrot.slane %v1165_v63, 4  ;;  %v1170_v18 = vrot.slane %v1168_v4, 5  ;;  %v1232_v16 = vshll.u32 %v911_v43, 16  ;;  %v908_v59 = vld [vmem:[#allocation2 + $0x8c] sm:$0x1]  ;;  %v607_v22 = vsel %vm9096_vm9, %v599_v54, %v606_v31 }
  0x93   : > { %v1292_v38 = vrot.slane %v1291_v2, 4  ;;  %v9560_v41 = vrot.slane %v1294_v7, 5  ;;  %791 = vst.msk [vmem:[#allocation2 + $0xac] sm:$0xf] %vm280_vm0, %v607_v22  ;;  %v1208_v34 = vshll.u32 %v908_v59, 16  ;;  %v1540_v5 = vrot.slane %v1538_v20, 4 }
  0x94   : > { %v1171_v12 = vor.u32 %v1170_v18, %v1167_v1  ;;  %v1234_v28 = vrot.slane %v1232_v16, 5  ;;  %v1541_v26 = vrot.slane %v1439_v42, 5  ;;  %v800_v29 = vsel %vm9183_vm10, %v625_v25, %v799_v48  ;;  %v792_v40 = vld [vmem:[#allocation2 + $0xb0] sm:$0x1]  ;;  %v1443_v44 = vld [vmem:[#allocation2 + $0x18] sm:$0xe] }
  0x95   : > { %v1297_v52 = vsel %vm8955_vm3, %v1292_v38, %v9560_v41  ;;  %v1298_v15 = vshrl.u32 %v919_v6, 16  ;;  %v782_v62 = vsel %vm9068_vm8, %v581_v27, %v781_v17  ;;  %801 = vst [vmem:[#allocation2 + $0xbc] sm:$0x1] %v800_v29  ;;  %v608_v36 = vrot.slane %v603_v30, 4  ;;  %v9597_v24 = vld [vmem:[#allocation2 + $0x1c] sm:$0xf] }
  0x96   : > { %1368 = vrot.lane.b32.xlu0 %v1297_v52, %s8867_s26  ;;  %v1172_v53 = vrot.slane %v1171_v12, 4  ;;  %v1235_v47 = vsel %vm8955_vm3, %v1230_v19, %v1234_v28  ;;  %783 = vst [vmem:[#allocation2 + $0x9c] sm:$0xf] %v782_v62  ;;  %v1206_v14 = vrot.slane %v1205_v33, 4  ;;  %v1210_v51 = vrot.slane %v1208_v34, 5 }
  0x97   : > { %1358 = vrot.lane.b32.xlu1 %v1235_v47, %s8867_s26  ;;  %v915_v21 = vld [vmem:[#allocation2 + $0xa8] sm:$0xf]  ;;  %v1542_v46 = vsel %vm9586_vm13, %v1540_v5, %v1541_v26  ;;  %v1300_v58 = vrot.slane %v1298_v15, 4  ;;  %v809_v6 = vld [vmem:[#allocation2] sm:$0xf]  ;;  %v8501_v57 = vrot.slane %v1443_v44, 9 }
  0x98   : > { %v1177_v56 = vsel %vm8955_vm3, %v1172_v53, %v9430_v49  ;;  %v793_v49 = vsel %vm9183_vm10, %v608_v36, %v792_v40  ;;  %v1261_v8 = vshrl.u32 %v915_v21, 16  ;;  %v1264_v9 = vshll.u32 %v915_v21, 16  ;;  %v9599_v37 = vld [vmem:[#allocation2 + $0x28] sm:$0xf]  ;;  %841 = vst.msk [vmem:[#allocation3] sm:$0xf] %vm280_vm0, %v809_v6 }
  0x99   : > { %1348 = vrot.lane.b32.xlu2 %v1177_v56, %s8867_s26  ;;  %794 = vst [vmem:[#allocation2 + $0xb0] sm:$0x1] %v793_v49  ;;  %v1211_v19 = vsel %vm8955_vm3, %v1206_v14, %v1210_v51  ;;  %v1552_v54 = vrot.slane %v9597_v24, 5  ;;  %v1301_v39 = vor.u32 %v1300_v58, %v9560_v41  ;;  %v1559_v38 = vrot.slane %v9599_v37, 5  ;;  %v1448_v22 = vld [vmem:[#allocation2 + $0x2c] sm:$0x1] }
  0x9a   : > { %v916_v32 = vld [vmem:[#allocation2 + $0xac] sm:$0xf]  ;;  %v1263_v50 = vrot.slane %v1261_v8, 4  ;;  %v1266_v63 = vrot.slane %v1264_v9, 5  ;;  %1405 = vst.msk [vmem:[#allocation3] sm:$0xf] %vm1404_vm14, %v1309_v11 }
  0x9b   : > { %v1270_v4 = vshll.u32 %v916_v32, 16  ;;  %v1274_v7 = vshrl.u32 %v916_v32, 16  ;;  %v1553_v3 = vsel %vm9586_vm13, %v8501_v57, %v1552_v54  ;;  %v810_v48 = vld [vmem:[#allocation2 + $0x4] sm:$0xf]  ;;  %v1302_v33 = vrot.slane %v1301_v39, 4 }
  0x9c   : > { %v1267_v30 = vor.u32 %v1266_v63, %v1263_v50  ;;  %v920_v1 = vld [vmem:[#allocation2 + $0xbc] sm:$0x1]  ;;  %842 = vst.msk [vmem:[#allocation3 + $0x4] sm:$0xf] %vm280_vm0, %v810_v48  ;;  %v813_v25 = vld [vmem:[#allocation2 + $0x18] sm:$0xf] }
  0x9d   : > { %v1272_v2 = vrot.slane %v1270_v4, 5  ;;  %v912_v43 = vld [vmem:[#allocation2 + $0x9c] sm:$0xf]  ;;  %v1304_v31 = vshll.u32 %v920_v1, 16  ;;  %v1276_v41 = vrot.slane %v1274_v7, 4  ;;  %v1562_v53 = vrot.slane %v1448_v22, 5 }
  0x9e   : > { %1650 = vrot.lane.b32.xlu0 %v1542_v46, %s8868_s8  ;;  %v1268_v18 = vrot.slane %v1267_v30, 4  ;;  %v1237_v16 = vshrl.u32 %v912_v43, 16  ;;  %v1240_v42 = vshll.u32 %v912_v43, 16  ;;  %845 = vst.msk [vmem:[#allocation3 + $0x10] sm:$0xf] %vm280_vm0, %v813_v25  ;;  %v1561_v34 = vrot.slane %v1559_v38, 4 }
  0x9f   : > { %v1306_v17 = vrot.slane %v1304_v31, 5  ;;  %v1277_v27 = vor.u32 %v1276_v41, %v1272_v2  ;;  %v1440_v40 = vld [vmem:[#allocation2 + $0xc] sm:$0xe]  ;;  %v1441_v15 = vld [vmem:[#allocation2 + $0x10] sm:$0xf]  ;;  %v1554_v43 = vrot.slane %v1552_v54, 4 }
  0xa0   : > { %v1273_v12 = vsel %vm8955_vm3, %v1268_v18, %v1272_v2  ;;  %v1239_v28 = vrot.slane %v1237_v16, 4  ;;  %v1242_v59 = vrot.slane %v1240_v42, 5  ;;  %v917_v23 = vld [vmem:[#allocation2 + $0xb0] sm:$0x1]  ;;  %v1563_v56 = vsel %vm9586_vm13, %v1561_v34, %v1562_v53  ;;  %v1452_v14 = vld [vmem:[#allocation2 + $0x3c] sm:$0xe] }
  0xa1   : > { %1354 = vrot.lane.b32.xlu2 %v1211_v19, %s8867_s26  ;;  %1364 = vrot.lane.b32.xlu1 %v1273_v12, %s8867_s26  ;;  %v1280_v5 = vshll.u32 %v917_v23, 16  ;;  %v1307_v29 = vsel %vm8955_vm3, %v1302_v33, %v1306_v17  ;;  %v1278_v62 = vrot.slane %v1277_v27, 4  ;;  %v9631_v51 = vld [vmem:[#allocation2 + $0x40] sm:$0xf]  ;;  %v815_v21 = vld [vmem:[#allocation2 + $0x24] sm:$0xf] }
  0xa2   : > { %v1243_v52 = vor.u32 %v1242_v59, %v1239_v28  ;;  %v814_v44 = vld [vmem:[#allocation2 + $0x1c] sm:$0xf]  ;;  %v1545_v49 = vrot.slane %v1441_v15, 5  ;;  %847 = vst.msk [vmem:[#allocation3 + $0x18] sm:$0xf] %vm280_vm0, %v815_v21  ;;  %v8504_v32 = vrot.slane %v1452_v14, 9 }
  0xa3   : > { %v1282_v36 = vrot.slane %v1280_v5, 5  ;;  %v811_v46 = vld [vmem:[#allocation2 + $0xc] sm:$0xf]  ;;  %846 = vst.msk [vmem:[#allocation3 + $0x14] sm:$0xf] %vm280_vm0, %v814_v44  ;;  %v1573_v58 = vrot.slane %v9631_v51, 5 }
  0xa4   : > { %v1244_v47 = vrot.slane %v1243_v52, 4  ;;  %v1437_v11 = vld [vmem:[#allocation2] sm:$0xe]  ;;  %v9640_v50 = vld [vmem:[#allocation2 + $0x4c] sm:$0xf]  ;;  %v1547_v12 = vrot.slane %v1545_v49, 4 }
  0xa5   : > { %v1283_v9 = vsel %vm8955_vm3, %v1278_v62, %v1282_v36  ;;  %843 = vst.msk [vmem:[#allocation3 + $0x8] sm:$0xf] %vm280_vm0, %v811_v46  ;;  %v1445_v4 = vld [vmem:[#allocation2 + $0x20] sm:$0x1]  ;;  %v1574_v6 = vsel %vm9586_vm13, %v8504_v32, %v1573_v58  ;;  %v8499_v19 = vrot.slane %v1437_v11, 9  ;;  %v1580_v30 = vrot.slane %v9640_v50, 5 }
  0xa6   : > { %1656 = vrot.lane.b32.xlu0 %v1553_v3, %s8868_s8  ;;  %v1249_v26 = vsel %vm8955_vm3, %v1244_v47, %v9522_v35  ;;  %v8500_v35 = vrot.slane %v1440_v40, 9  ;;  %v1457_v57 = vld [vmem:[#allocation2 + $0x50] sm:$0x1]  ;;  %v818_v2 = vld [vmem:[#allocation2 + $0x34] sm:$0xf]  ;;  %v1555_v39 = vrot.slane %v1445_v4, 5 }
  0xa7   : > { %v817_v7 = vld [vmem:[#allocation2 + $0x30] sm:$0xf]  ;;  %850 = vst.msk [vmem:[#allocation3 + $0x24] sm:$0xf] %vm280_vm0, %v818_v2  ;;  %v1539_v18 = vsel %vm9586_vm13, %v8499_v19, %v1538_v20  ;;  %v1582_v16 = vrot.slane %v1580_v30, 4  ;;  %v1583_v42 = vrot.slane %v1457_v57, 5 }
  0xa8   : > { %v1546_v63 = vsel %vm9586_vm13, %v8500_v35, %v1545_v49  ;;  %v812_v1 = vld [vmem:[#allocation2 + $0x10] sm:$0xf]  ;;  %849 = vst.msk [vmem:[#allocation3 + $0x20] sm:$0xf] %vm280_vm0, %v817_v7  ;;  %v1442_v24 = vld [vmem:[#allocation2 + $0x14] sm:$0x1]  ;;  %v1556_v31 = vsel %vm9586_vm13, %v1554_v43, %v1555_v39 }
  0xa9   : > { %1360 = vrot.lane.b32.xlu2 %v1249_v26, %s8867_s26  ;;  %1370 = vrot.lane.b32.xlu1 %v1307_v29, %s8867_s26  ;;  %844 = vst.msk [vmem:[#allocation3 + $0xc] sm:$0xf] %vm280_vm0, %v812_v1  ;;  %v1449_v3 = vld [vmem:[#allocation2 + $0x30] sm:$0xe]  ;;  %v1450_v13 = vld [vmem:[#allocation2 + $0x34] sm:$0xf]  ;;  %v1584_v20 = vsel %vm9586_vm13, %v1582_v16, %v1583_v42 }
  0xaa   : > { %v1548_v28 = vrot.slane %v1442_v24, 5  ;;  %v1461_v59 = vld [vmem:[#allocation2 + $0x60] sm:$0xe]  ;;  %v9670_v22 = vld [vmem:[#allocation2 + $0x64] sm:$0xf]  ;;  %v8503_v52 = vrot.slane %v1449_v3, 9 }
  0xab   : > { %v821_v41 = vld [vmem:[#allocation2 + $0x48] sm:$0xf]  ;;  %v820_v23 = vld [vmem:[#allocation2 + $0x40] sm:$0xf]  ;;  %v1566_v33 = vrot.slane %v1450_v13, 5  ;;  %v8507_v25 = vrot.slane %v1461_v59, 9 }
  0xac   : > { %v816_v48 = vld [vmem:[#allocation2 + $0x28] sm:$0xf]  ;;  %853 = vst.msk [vmem:[#allocation3 + $0x30] sm:$0xf] %vm280_vm0, %v821_v41  ;;  %v1549_v17 = vsel %vm9586_vm13, %v1547_v12, %v1548_v28  ;;  %v1594_v53 = vrot.slane %v9670_v22, 5  ;;  %v1575_v14 = vrot.slane %v1573_v58, 4 }
  0xad   : > { %852 = vst.msk [vmem:[#allocation3 + $0x2c] sm:$0xf] %vm280_vm0, %v820_v23  ;;  %v1446_v47 = vld [vmem:[#allocation2 + $0x24] sm:$0xe]  ;;  %v9680_v27 = vld [vmem:[#allocation2 + $0x70] sm:$0xf]  ;;  %v1567_v5 = vsel %vm9586_vm13, %v8503_v52, %v1566_v33 }
  0xae   : > { %1662 = vrot.lane.b32.xlu0 %v1563_v56, %s8868_s8  ;;  %848 = vst.msk [vmem:[#allocation3 + $0x1c] sm:$0xf] %vm280_vm0, %v816_v48  ;;  %v1454_v26 = vld [vmem:[#allocation2 + $0x44] sm:$0x1]  ;;  %v1595_v29 = vsel %vm9586_vm13, %v8507_v25, %v1594_v53  ;;  %v8502_v40 = vrot.slane %v1446_v47, 9  ;;  %v1601_v15 = vrot.slane %v9680_v27, 5 }
  0xaf   : > { %v1311_v8 = vpop.permute.xlu0 %1310  ;;  %v1466_v62 = vld [vmem:[#allocation2 + $0x74] sm:$0x1]  ;;  %v824_v36 = vld [vmem:[#allocation2 + $0x58] sm:$0xf]  ;;  %v1576_v21 = vrot.slane %v1454_v26, 5  ;;  %v1596_v52 = vrot.slane %v1594_v53, 4 }
  0xb0   : > { %1406 = vst.msk [vmem:[#allocation3 + $0x4] sm:$0xf] %vm1404_vm14, %v1311_v8  ;;  %v823_v44 = vld [vmem:[#allocation2 + $0x54] sm:$0xf]  ;;  %v1560_v49 = vsel %vm9586_vm13, %v8502_v40, %v1559_v38  ;;  %v1603_v51 = vrot.slane %v1601_v15, 4  ;;  %v1604_v46 = vrot.slane %v1466_v62, 5 }
  0xb1   : > { %1366 = vrot.lane.b32.xlu2 %v1283_v9, %s8867_s26  ;;  %1652 = vrot.lane.b32.xlu1 %v1546_v63, %s8868_s8  ;;  %856 = vst.msk [vmem:[#allocation3 + $0x3c] sm:$0xf] %vm280_vm0, %v824_v36  ;;  %v819_v8 = vld [vmem:[#allocation2 + $0x3c] sm:$0xf]  ;;  %v1451_v9 = vld [vmem:[#allocation2 + $0x38] sm:$0x1]  ;;  %v1577_v58 = vsel %vm9586_vm13, %v1575_v14, %v1576_v21 }
  0xb2   : > { %855 = vst.msk [vmem:[#allocation3 + $0x38] sm:$0xf] %vm280_vm0, %v823_v44  ;;  %v1458_v37 = vld [vmem:[#allocation2 + $0x54] sm:$0xe]  ;;  %v1459_v38 = vld [vmem:[#allocation2 + $0x58] sm:$0xf]  ;;  %v1605_v11 = vsel %vm9586_vm13, %v1603_v51, %v1604_v46 }
  0xb3   : > { %851 = vst.msk [vmem:[#allocation3 + $0x28] sm:$0xf] %vm280_vm0, %v819_v8  ;;  %v1568_v63 = vrot.slane %v1566_v33, 4  ;;  %v1569_v4 = vrot.slane %v1451_v9, 5  ;;  %v1470_v19 = vld [vmem:[#allocation2 + $0x84] sm:$0xe] }
  0xb4   : > { %v9713_v57 = vld [vmem:[#allocation2 + $0x88] sm:$0xf]  ;;  %v827_v2 = vld [vmem:[#allocation2 + $0x6c] sm:$0xf]  ;;  %v8506_v7 = vrot.slane %v1458_v37, 9  ;;  %v1587_v1 = vrot.slane %v1459_v38, 5 }
  0xb5   : > { %v826_v43 = vld [vmem:[#allocation2 + $0x64] sm:$0xf]  ;;  %859 = vst.msk [vmem:[#allocation3 + $0x48] sm:$0xf] %vm280_vm0, %v827_v2  ;;  %v8510_v16 = vrot.slane %v1470_v19, 9  ;;  %v1615_v42 = vrot.slane %v9713_v57, 5 }
  0xb6   : > { %1668 = vrot.lane.b32.xlu0 %v1574_v6, %s8868_s8  ;;  %v822_v24 = vld [vmem:[#allocation2 + $0x4c] sm:$0xf]  ;;  %v9722_v3 = vld [vmem:[#allocation2 + $0x94] sm:$0xf]  ;;  %858 = vst.msk [vmem:[#allocation3 + $0x44] sm:$0xf] %vm280_vm0, %v826_v43  ;;  %v1588_v13 = vsel %vm9586_vm13, %v8506_v7, %v1587_v1 }
  0xb7   : > { %854 = vst.msk [vmem:[#allocation3 + $0x34] sm:$0xf] %vm280_vm0, %v822_v24  ;;  %v1616_v12 = vsel %vm9586_vm13, %v8510_v16, %v1615_v42  ;;  %v1622_v59 = vrot.slane %v9722_v3, 5  ;;  %v1475_v23 = vld [vmem:[#allocation2 + $0x98] sm:$0x1]  ;;  %v1589_v40 = vrot.slane %v1587_v1, 4 }
  0xb8   : > { %v830_v48 = vld [vmem:[#allocation2 + $0x7c] sm:$0xf]  ;;  %v825_v47 = vld [vmem:[#allocation2 + $0x60] sm:$0xf]  ;;  %v1625_v53 = vrot.slane %v1475_v23, 5  ;;  %v1617_v43 = vrot.slane %v1615_v42, 4 }
  0xb9   : > { %v1317_v54 = vpop.permute.xlu2 %1316  ;;  %1648 = vrot.lane.b32.xlu2 %v1539_v18, %s8868_s8  ;;  %1658 = vrot.lane.b32.xlu1 %v1556_v31, %s8868_s8  ;;  %v1570_v18 = vsel %vm9586_vm13, %v1568_v63, %v1569_v4  ;;  %862 = vst.msk [vmem:[#allocation3 + $0x54] sm:$0xf] %vm280_vm0, %v830_v48  ;;  %v1624_v22 = vrot.slane %v1622_v59, 4  ;;  %v1467_v50 = vld [vmem:[#allocation2 + $0x78] sm:$0xe] }
  0xba   : > { %1409 = vst.msk [vmem:[#allocation3 + $0x10] sm:$0xf] %vm1404_vm14, %v1317_v54  ;;  %v1455_v54 = vld [vmem:[#allocation2 + $0x48] sm:$0xe]  ;;  %v9756_v14 = vld [vmem:[#allocation2 + $0xac] sm:$0xf] }
  0xbb   : > { %v8505_v28 = vrot.slane %v1455_v54, 9  ;;  %857 = vst.msk [vmem:[#allocation3 + $0x40] sm:$0xf] %vm280_vm0, %v825_v47  ;;  %v1479_v36 = vld [vmem:[#allocation2 + $0xa8] sm:$0xe]  ;;  %v8509_v44 = vrot.slane %v1467_v50, 9 }
  0xbc   : > { %v833_v21 = vld [vmem:[#allocation2 + $0x90] sm:$0xf]  ;;  %v832_v46 = vld [vmem:[#allocation2 + $0x88] sm:$0xf]  ;;  %v8513_v9 = vrot.slane %v1479_v36, 9 }
  0xbd   : > { %865 = vst.msk [vmem:[#allocation3 + $0x60] sm:$0xf] %vm280_vm0, %v833_v21  ;;  %v1464_v37 = vld [vmem:[#allocation2 + $0x6c] sm:$0xe]  ;;  %v9766_v38 = vld [vmem:[#allocation2 + $0xb8] sm:$0xf] }
  0xbe   : > { %1674 = vrot.lane.b32.xlu0 %v1584_v20, %s8868_s8  ;;  %v1463_v20 = vld [vmem:[#allocation2 + $0x68] sm:$0x1]  ;;  %864 = vst.msk [vmem:[#allocation3 + $0x5c] sm:$0xf] %vm280_vm0, %v832_v46  ;;  %v1472_v63 = vld [vmem:[#allocation2 + $0x8c] sm:$0x1] }
  0xbf   : > { %v1597_v33 = vrot.slane %v1463_v20, 5  ;;  %v1643_v19 = vrot.slane %v9766_v38, 5  ;;  %v1484_v7 = vld [vmem:[#allocation2 + $0xbc] sm:$0x1]  ;;  %v836_v1 = vld [vmem:[#allocation2 + $0xa0] sm:$0xf] }
  0xc0   : > { %868 = vst.msk [vmem:[#allocation3 + $0x6c] sm:$0xf] %vm280_vm0, %v836_v1  ;;  %v835_v24 = vld [vmem:[#allocation2 + $0x9c] sm:$0xf]  ;;  %v1646_v42 = vrot.slane %v1484_v7, 5 }
  0xc1   : > { %v1319_v34 = vpop.permute.xlu2 %1318  ;;  %1654 = vrot.lane.b32.xlu2 %v1549_v17, %s8868_s8  ;;  %1664 = vrot.lane.b32.xlu1 %v1567_v5, %s8868_s8  ;;  %v829_v17 = vld [vmem:[#allocation2 + $0x78] sm:$0xf]  ;;  %v1460_v5 = vld [vmem:[#allocation2 + $0x5c] sm:$0x1]  ;;  %v1598_v26 = vsel %vm9586_vm13, %v1596_v52, %v1597_v33  ;;  %v1645_v57 = vrot.slane %v1643_v19, 4 }
  0xc2   : > { %1410 = vst.msk [vmem:[#allocation3 + $0x14] sm:$0xf] %vm1404_vm14, %v1319_v34  ;;  %v1581_v34 = vsel %vm9586_vm13, %v8505_v28, %v1580_v30  ;;  %v1626_v30 = vsel %vm9586_vm13, %v1624_v22, %v1625_v53  ;;  %v1476_v27 = vld [vmem:[#allocation2 + $0x9c] sm:$0xe]  ;;  %v839_v48 = vld [vmem:[#allocation2 + $0xb4] sm:$0xf] }
  0xc3   : > { %861 = vst.msk [vmem:[#allocation3 + $0x50] sm:$0xf] %vm280_vm0, %v829_v17  ;;  %v8512_v52 = vrot.slane %v1476_v27, 9  ;;  %v838_v17 = vld [vmem:[#allocation2 + $0xac] sm:$0xf] }
  0xc4   : > { %867 = vst.msk [vmem:[#allocation3 + $0x68] sm:$0xf] %vm280_vm0, %v835_v24  ;;  %v834_v47 = vld [vmem:[#allocation2 + $0x94] sm:$0xf]  ;;  %v1473_v22 = vld [vmem:[#allocation2 + $0x90] sm:$0xe] }
  0xc5   : > { %v1321_v56 = vpop.permute.xlu0 %1320  ;;  %871 = vst.msk [vmem:[#allocation3 + $0x78] sm:$0xf] %vm280_vm0, %v839_v48  ;;  %v1779_v50 = vld [vmem:[#allocation2 + $0x18] sm:$0xf]  ;;  %v1788_v1 = vld [vmem:[#allocation2 + $0x4c] sm:$0xf] }
  0xc6   : > { %1411 = vst.msk [vmem:[#allocation3 + $0x18] sm:$0xf] %vm1404_vm14, %v1321_v56  ;;  %1680 = vrot.lane.b32.xlu0 %v1595_v29, %s8868_s8  ;;  %v1468_v29 = vld [vmem:[#allocation2 + $0x7c] sm:$0xf]  ;;  %v1590_v56 = vrot.slane %v1460_v5, 5 }
  0xc7   : > { %v1313_v35 = vpop.permute.xlu1 %1312  ;;  %870 = vst.msk [vmem:[#allocation3 + $0x74] sm:$0xf] %vm280_vm0, %v838_v17  ;;  %v1481_v5 = vld [vmem:[#allocation2 + $0xb0] sm:$0x1]  ;;  %v1784_v27 = vld [vmem:[#allocation2 + $0x34] sm:$0xf] }
  0xc8   : > { %1407 = vst.msk [vmem:[#allocation3 + $0x8] sm:$0xf] %vm1404_vm14, %v1313_v35  ;;  %v1608_v35 = vrot.slane %v1468_v29, 5  ;;  %v1591_v8 = vsel %vm9586_vm13, %v1589_v40, %v1590_v56  ;;  %v8511_v29 = vrot.slane %v1473_v22, 9  ;;  %v1639_v56 = vrot.slane %v1481_v5, 5 }
  0xc9   : > { %v1325_v32 = vpop.permute.xlu2 %1324  ;;  %1660 = vrot.lane.b32.xlu2 %v1560_v49, %s8868_s8  ;;  %1670 = vrot.lane.b32.xlu1 %v1577_v58, %s8868_s8  ;;  %v828_v58 = vld [vmem:[#allocation2 + $0x70] sm:$0xf]  ;;  %866 = vst.msk [vmem:[#allocation3 + $0x64] sm:$0xf] %vm280_vm0, %v834_v47  ;;  %v802_v5 = vld [vmem:[#allocation2 + $0xc0] sm:$0xf] }
  0xca   : > { %1413 = vst.msk [vmem:[#allocation3 + $0x20] sm:$0xf] %vm1404_vm14, %v1325_v32  ;;  %v1636_v32 = vrot.slane %v9756_v14, 5  ;;  %v1610_v28 = vrot.slane %v1608_v35, 4  ;;  %v1623_v21 = vsel %vm9586_vm13, %v8511_v29, %v1622_v59  ;;  %v1778_v38 = vld [vmem:[#allocation2 + $0x10] sm:$0xf] }
  0xcb   : > { %860 = vst.msk [vmem:[#allocation3 + $0x4c] sm:$0xf] %vm280_vm0, %v828_v58 }
  0xcc   : > { %v1637_v4 = vsel %vm9586_vm13, %v8513_v9, %v1636_v32  ;;  %v1638_v40 = vrot.slane %v1636_v32, 4  ;;  %v1482_v9 = vld [vmem:[#allocation2 + $0xb4] sm:$0xe]  ;;  %v1777_v32 = vld [vmem:[#allocation2 + $0xc] sm:$0xf] }
  0xcd   : > { %v1327_v6 = vpop.permute.xlu0 %1326  ;;  %4339 = vst.msk [vmem:[#allocation4] sm:$0xf] %vm4338_vm12, %v8866_v0 }
  0xce   : > { %1414 = vst.msk [vmem:[#allocation3 + $0x24] sm:$0xf] %vm1404_vm14, %v1327_v6  ;;  %1686 = vrot.lane.b32.xlu0 %v1605_v11, %s8868_s8  ;;  %v1609_v11 = vsel %vm9586_vm13, %v8509_v44, %v1608_v35  ;;  %v8508_v6 = vrot.slane %v1464_v37, 9  ;;  %v1478_v44 = vld [vmem:[#allocation2 + $0xa4] sm:$0x1]  ;;  %v1640_v14 = vsel %vm9586_vm13, %v1638_v40, %v1639_v56 }
  0xcf   : > { %v1315_v39 = vpop.permute.xlu1 %1314  ;;  %v1632_v46 = vrot.slane %v1478_v44, 5  ;;  %v1785_v37 = vld [vmem:[#allocation2 + $0x3c] sm:$0xf]  ;;  %v1970_v56 = vld [vmem:[#allocation2 + $0xc] sm:$0xf] }
  0xd0   : > { %1408 = vst.msk [vmem:[#allocation3 + $0xc] sm:$0xf] %vm1404_vm14, %v1315_v39  ;;  %v1618_v39 = vrot.slane %v1472_v63, 5  ;;  %v1602_v54 = vsel %vm9586_vm13, %v8508_v6, %v1601_v15  ;;  %v1647_v15 = vsel %vm9586_vm13, %v1645_v57, %v1646_v42  ;;  %v1786_v42 = vld [vmem:[#allocation2 + $0x40] sm:$0xf]  ;;  %v2019_v45 = vshrl.u32 %v1970_v56, 16 }
  0xd1   : > { %v1331_v31 = vpop.permute.xlu2 %1330  ;;  %1666 = vrot.lane.b32.xlu2 %v1570_v18, %s8868_s8  ;;  %1676 = vrot.lane.b32.xlu1 %v1588_v13, %s8868_s8  ;;  %v1469_v13 = vld [vmem:[#allocation2 + $0x80] sm:$0x1]  ;;  %4340 = vst.msk [vmem:[#allocation4 + $0x4] sm:$0xf] %vm4338_vm12, %v8866_v0 }
  0xd2   : > { %1416 = vst.msk [vmem:[#allocation3 + $0x2c] sm:$0xf] %vm1404_vm14, %v1331_v31  ;;  %v831_v31 = vld [vmem:[#allocation2 + $0x84] sm:$0xf]  ;;  %v1619_v20 = vsel %vm9586_vm13, %v1617_v43, %v1618_v39  ;;  %v1783_v39 = vld [vmem:[#allocation2 + $0x30] sm:$0xf] }
  0xd3   : > { %863 = vst.msk [vmem:[#allocation3 + $0x58] sm:$0xf] %vm280_vm0, %v831_v31  ;;  %v1794_v31 = vld [vmem:[#allocation2 + $0x70] sm:$0xf] }
  0xd4   : > { %4344 = vst.msk [vmem:[#allocation4 + $0x10] sm:$0xf] %vm4338_vm12, %v8866_v0 }
  0xd5   : > { %v1333_v41 = vpop.permute.xlu0 %1332  ;;  %4346 = vst.msk [vmem:[#allocation4 + $0x18] sm:$0xf] %vm4338_vm12, %v8866_v0 }
  0xd6   : > { %1417 = vst.msk [vmem:[#allocation3 + $0x30] sm:$0xf] %vm1404_vm14, %v1333_v41  ;;  %1692 = vrot.lane.b32.xlu0 %v1616_v12, %s8868_s8  ;;  %v1477_v12 = vld [vmem:[#allocation2 + $0xa0] sm:$0xf]  ;;  %v1611_v41 = vrot.slane %v1469_v13, 5 }
  0xd7   : > { %v1323_v25 = vpop.permute.xlu1 %1322  ;;  %v1629_v33 = vrot.slane %v1477_v12, 5  ;;  %4347 = vst.msk [vmem:[#allocation4 + $0x1c] sm:$0xf] %vm4338_vm12, %v8866_v0 }
  0xd8   : > { %1412 = vst.msk [vmem:[#allocation3 + $0x1c] sm:$0xf] %vm1404_vm14, %v1323_v25 }
  0xd9   : > { %1672 = vrot.lane.b32.xlu2 %v1581_v34, %s8868_s8  ;;  %1682 = vrot.lane.b32.xlu1 %v1598_v26, %s8868_s8  ;;  %v1612_v34 = vsel %vm9586_vm13, %v1610_v28, %v1611_v41  ;;  %v1630_v53 = vsel %vm9586_vm13, %v8512_v52, %v1629_v33  ;;  %v1797_v28 = vld [vmem:[#allocation2 + $0x84] sm:$0xf]  ;;  %4349 = vst.msk [vmem:[#allocation4 + $0x24] sm:$0xf] %vm4338_vm12, %v8866_v0 }
  0xda   : > { %4350 = vst.msk [vmem:[#allocation4 + $0x28] sm:$0xf] %vm4338_vm12, %v8866_v0 }
  0xdb   : > { %4352 = vst.msk [vmem:[#allocation4 + $0x30] sm:$0xf] %vm4338_vm12, %v8866_v0 }
  0xdc   : > { %4353 = vst.msk [vmem:[#allocation4 + $0x34] sm:$0xf] %vm4338_vm12, %v8866_v0 }
  0xdd   : > { %v1339_v62 = vpop.permute.xlu0 %1338  ;;  %4355 = vst.msk [vmem:[#allocation4 + $0x3c] sm:$0xf] %vm4338_vm12, %v8866_v0 }
  0xde   : > { %1420 = vst.msk [vmem:[#allocation3 + $0x3c] sm:$0xf] %vm1404_vm14, %v1339_v62  ;;  %1698 = vrot.lane.b32.xlu0 %v1626_v30, %s8868_s8  ;;  %v837_v62 = vld [vmem:[#allocation2 + $0xa8] sm:$0xf] }
  0xdf   : > { %v1337_v49 = vpop.permute.xlu2 %1336  ;;  %v1329_v51 = vpop.permute.xlu1 %1328  ;;  %869 = vst.msk [vmem:[#allocation3 + $0x70] sm:$0xf] %vm280_vm0, %v837_v62  ;;  %v1795_v62 = vld [vmem:[#allocation2 + $0x78] sm:$0xf] }
  0xe0   : > { %1419 = vst.msk [vmem:[#allocation3 + $0x38] sm:$0xf] %vm1404_vm14, %v1337_v49  ;;  %v1782_v49 = vld [vmem:[#allocation2 + $0x28] sm:$0xf] }
  0xe1   : > { %1415 = vst.msk [vmem:[#allocation3 + $0x28] sm:$0xf] %vm1404_vm14, %v1329_v51  ;;  %1678 = vrot.lane.b32.xlu2 %v1591_v8, %s8868_s8  ;;  %1688 = vrot.lane.b32.xlu1 %v1609_v11, %s8868_s8  ;;  %v1631_v51 = vrot.slane %v1629_v33, 4  ;;  %v840_v8 = vld [vmem:[#allocation2 + $0xb8] sm:$0xf]  ;;  %v8514_v11 = vrot.slane %v1482_v9, 9 }
  0xe2   : > { %872 = vst.msk [vmem:[#allocation3 + $0x7c] sm:$0xf] %vm280_vm0, %v840_v8  ;;  %v1787_v33 = vld [vmem:[#allocation2 + $0x48] sm:$0xf]  ;;  %v1974_v8 = vld [vmem:[#allocation2 + $0x1c] sm:$0xf] }
  0xe3   : > { %v1633_v59 = vsel %vm9586_vm13, %v1631_v51, %v1632_v46  ;;  %v2021_v46 = vrot.slane %v2019_v45, 4  ;;  %v9882_v9 = vld [vmem:[#allocation2 + $0x10] sm:$0xf]  ;;  %4356 = vst.msk [vmem:[#allocation4 + $0x40] sm:$0xf] %vm4338_vm12, %v8866_v0 }
  0xe4   : > { %4358 = vst.msk [vmem:[#allocation4 + $0x48] sm:$0xf] %vm4338_vm12, %v8866_v0 }
  0xe5   : > { %v1345_v2 = vpop.permute.xlu0 %1344  ;;  %4359 = vst.msk [vmem:[#allocation4 + $0x4c] sm:$0xf] %vm4338_vm12, %v8866_v0 }
  0xe6   : > { %1423 = vst.msk [vmem:[#allocation3 + $0x48] sm:$0xf] %vm1404_vm14, %v1345_v2  ;;  %1704 = vrot.lane.b32.xlu0 %v1637_v4, %s8868_s8  ;;  %v1644_v4 = vsel %vm9586_vm13, %v8514_v11, %v1643_v19  ;;  %v1780_v2 = vld [vmem:[#allocation2 + $0x1c] sm:$0xf] }
  0xe7   : > { %v1343_v18 = vpop.permute.xlu2 %1342  ;;  %v1335_v16 = vpop.permute.xlu1 %1334  ;;  %4361 = vst.msk [vmem:[#allocation4 + $0x54] sm:$0xf] %vm4338_vm12, %v8866_v0 }
  0xe8   : > { %1422 = vst.msk [vmem:[#allocation3 + $0x44] sm:$0xf] %vm1404_vm14, %v1343_v18  ;;  %v1791_v18 = vld [vmem:[#allocation2 + $0x60] sm:$0xf] }
  0xe9   : > { %1418 = vst.msk [vmem:[#allocation3 + $0x34] sm:$0xf] %vm1404_vm14, %v1335_v16  ;;  %1684 = vrot.lane.b32.xlu2 %v1602_v54, %s8868_s8  ;;  %1694 = vrot.lane.b32.xlu1 %v1619_v20, %s8868_s8  ;;  %v1781_v54 = vld [vmem:[#allocation2 + $0x24] sm:$0xf] }
  0xea   : > { %4362 = vst.msk [vmem:[#allocation4 + $0x58] sm:$0xf] %vm4338_vm12, %v8866_v0 }
  0xeb   : > { %4364 = vst.msk [vmem:[#allocation4 + $0x60] sm:$0xf] %vm4338_vm12, %v8866_v0 }
  0xec   : > { %4365 = vst.msk [vmem:[#allocation4 + $0x64] sm:$0xf] %vm4338_vm12, %v8866_v0 }
  0xed   : > { %v1351_v23 = vpop.permute.xlu0 %1350  ;;  %4367 = vst.msk [vmem:[#allocation4 + $0x6c] sm:$0xf] %vm4338_vm12, %v8866_v0 }
  0xee   : > { %1426 = vst.msk [vmem:[#allocation3 + $0x54] sm:$0xf] %vm1404_vm14, %v1351_v23  ;;  %1710 = vrot.lane.b32.xlu0 %v1647_v15, %s8868_s8  ;;  %v1789_v15 = vld [vmem:[#allocation2 + $0x54] sm:$0xf]  ;;  %v366_v23 = vld [vmem:[%s8992_s30 + $0x78] sm:$0xf] }
  0xef   : > { %v1341_v25 = vpop.permute.xlu1 %1340  ;;  %v627_v48 = vshrl.u32 %v366_v23, 16  ;;  %v630_v47 = vshll.u32 %v366_v23, 16  ;;  %4368 = vst.msk [vmem:[#allocation4 + $0x70] sm:$0xf] %vm4338_vm12, %v8866_v0 }
  0xf0   : > { %1421 = vst.msk [vmem:[#allocation3 + $0x40] sm:$0xf] %vm1404_vm14, %v1341_v25 }
  0xf1   : > { %1690 = vrot.lane.b32.xlu2 %v1612_v34, %s8868_s8  ;;  %1700 = vrot.lane.b32.xlu1 %v1630_v53, %s8868_s8  ;;  %v629_v17 = vrot.slane %v627_v48, 7  ;;  %v1792_v34 = vld [vmem:[#allocation2 + $0x64] sm:$0xf]  ;;  %v1800_v53 = vld [vmem:[#allocation2 + $0x94] sm:$0xf] }
  0xf2   : > { %v1799_v48 = vld [vmem:[#allocation2 + $0x90] sm:$0xf]  ;;  %4370 = vst.msk [vmem:[#allocation4 + $0x78] sm:$0xf] %vm4338_vm12, %v8866_v0 }
  0xf3   : > { %v1349_v26 = vpop.permute.xlu2 %1348  ;;  %v632_v22 = vor.u32 %v630_v47, %v629_v17  ;;  %v633_v11 = vrot.slane %v629_v17, 4  ;;  %v1983_v47 = vld [vmem:[#allocation2 + $0x40] sm:$0xf]  ;;  %4371 = vst.msk [vmem:[#allocation4 + $0x7c] sm:$0xf] %vm4338_vm12, %v8866_v0 }
  0xf4   : > { %1425 = vst.msk [vmem:[#allocation3 + $0x50] sm:$0xf] %vm1404_vm14, %v1349_v26 }
  0xf5   : > { %v1357_v30 = vpop.permute.xlu0 %1356  ;;  %4373 = vst.msk [vmem:[#allocation4 + $0x84] sm:$0xf] %vm4338_vm12, %v8866_v0 }
  0xf6   : > { %1429 = vst.msk [vmem:[#allocation3 + $0x60] sm:$0xf] %vm1404_vm14, %v1357_v30  ;;  %1845 = vrot.lane.b32.xlu0 %v1779_v50, %s8869_s9  ;;  %v803_v50 = vsel %vm9068_vm8, %v632_v22, %v802_v5  ;;  %v1790_v30 = vld [vmem:[#allocation2 + $0x58] sm:$0xf]  ;;  %v9911_v22 = vld [vmem:[#allocation2 + $0x34] sm:$0xf] }
  0xf7   : > { %v1347_v36 = vpop.permute.xlu1 %1346  ;;  %804 = vst [vmem:[#allocation2 + $0xc0] sm:$0xf] %v803_v50  ;;  %v1804_v5 = vld [vmem:[#allocation2 + $0xac] sm:$0xf]  ;;  %v2128_v50 = vshrl.u32 %v1983_v47, 16  ;;  %vm4141_vm8 = vcmask 1041408  }
  0xf8   : > { %1424 = vst.msk [vmem:[#allocation3 + $0x4c] sm:$0xf] %vm1404_vm14, %v1347_v36  ;;  %v1803_v36 = vld [vmem:[#allocation2 + $0xa8] sm:$0xf] }
  0xf9   : > { %1696 = vrot.lane.b32.xlu2 %v1623_v21, %s8868_s8  ;;  %1706 = vrot.lane.b32.xlu1 %v1640_v14, %s8868_s8  ;;  %v2022_v21 = vshll.u32 %v1970_v56, 16  ;;  %v367_v14 = vld [vmem:[%s8992_s30 + $0x7c] sm:$0xf]  ;;  %4374 = vst.msk [vmem:[#allocation4 + $0x88] sm:$0xf] %vm4338_vm12, %v8866_v0 }
  0xfa   : > { %v635_v51 = vshrl.u32 %v367_v14, 16  ;;  %4376 = vst.msk [vmem:[#allocation4 + $0x90] sm:$0xf] %vm4338_vm12, %v8866_v0 }
  0xfb   : > { %v1355_v35 = vpop.permute.xlu2 %1354  ;;  %4377 = vst.msk [vmem:[#allocation4 + $0x94] sm:$0xf] %vm4338_vm12, %v8866_v0 }
  0xfc   : > { %1428 = vst.msk [vmem:[#allocation3 + $0x5c] sm:$0xf] %vm1404_vm14, %v1355_v35 }
  0xfd   : > { %4379 = vst.msk [vmem:[#allocation4 + $0x9c] sm:$0xf] %vm4338_vm12, %v8866_v0 }
  0xfe   : > { %v1363_v3 = vpop.permute.xlu0 %1362  ;;  %1851 = vrot.lane.b32.xlu0 %v1782_v49, %s8869_s9  ;;  %v1793_v49 = vld [vmem:[#allocation2 + $0x6c] sm:$0xf]  ;;  %4380 = vst.msk [vmem:[#allocation4 + $0xa0] sm:$0xf] %vm4338_vm12, %v8866_v0 }
  0xff   : > { %1432 = vst.msk [vmem:[#allocation3 + $0x6c] sm:$0xf] %vm1404_vm14, %v1363_v3  ;;  %v2024_v3 = vrot.slane %v2022_v21, 5  ;;  %v1802_v21 = vld [vmem:[#allocation2 + $0xa0] sm:$0xf] }
 0x100   : > { %4382 = vst.msk [vmem:[#allocation4 + $0xa8] sm:$0xf] %vm4338_vm12, %v8866_v0 }
 0x101   : > { %v1353_v58 = vpop.permute.xlu1 %1352  ;;  %1702 = vrot.lane.b32.xlu2 %v1633_v59, %s8868_s8  ;;  %1841 = vrot.lane.b32.xlu1 %v1777_v32, %s8869_s9  ;;  %v9884_v32 = vrot.slane %v635_v51, 7  ;;  %4383 = vst.msk [vmem:[#allocation4 + $0xac] sm:$0xf] %vm4338_vm12, %v8866_v0 }
 0x102   : > { %1427 = vst.msk [vmem:[#allocation3 + $0x58] sm:$0xf] %vm1404_vm14, %v1353_v58  ;;  %v638_v58 = vshll.u32 %v367_v14, 16 }
 0x103   : > { %v1361_v63 = vpop.permute.xlu2 %1360  ;;  %4385 = vst.msk [vmem:[#allocation4 + $0xb4] sm:$0xf] %vm4338_vm12, %v8866_v0 }
 0x104   : > { %1431 = vst.msk [vmem:[#allocation3 + $0x68] sm:$0xf] %vm1404_vm14, %v1361_v63  ;;  %v2052_v63 = vshll.u32 %v1974_v8, 16 }
 0x105   : > { %4386 = vst.msk [vmem:[#allocation4 + $0xb8] sm:$0xf] %vm4338_vm12, %v8866_v0 }
 0x106   : > { %1857 = vrot.lane.b32.xlu0 %v1785_v37, %s8869_s9  ;;  %v1798_v37 = vld [vmem:[#allocation2 + $0x88] sm:$0xf]  ;;  %4388 = vst.msk [vmem:[#allocation4 + $0xc0] sm:$0xf] %vm4338_vm12, %v8866_v0 }
 0x107   : > { %4389 = vst.msk [vmem:[#allocation4 + $0xc4] sm:$0xf] %vm4338_vm12, %v8866_v0 }
 0x108   : > { %v1369_v6 = vpop.permute.xlu0 %1368  ;;  %4391 = vst.msk [vmem:[#allocation4 + $0xcc] sm:$0xf] %vm4338_vm12, %v8866_v0 }
 0x109   : > { %1435 = vst.msk [vmem:[#allocation3 + $0x78] sm:$0xf] %vm1404_vm14, %v1369_v6  ;;  %v1359_v7 = vpop.permute.xlu1 %1358  ;;  %1708 = vrot.lane.b32.xlu2 %v1644_v4, %s8868_s8  ;;  %1847 = vrot.lane.b32.xlu1 %v1780_v2, %s8869_s9  ;;  %v2056_v4 = vshrl.u32 %v1974_v8, 16  ;;  %v640_v6 = vor.u32 %v638_v58, %v9884_v32  ;;  %v1806_v2 = vld [vmem:[#allocation2 + $0xb8] sm:$0xf] }
 0x10a   : > { %1430 = vst.msk [vmem:[#allocation3 + $0x64] sm:$0xf] %vm1404_vm14, %v1359_v7  ;;  %v2025_v7 = vor.u32 %v2024_v3, %v2021_v46  ;;  %v1984_v46 = vld [vmem:[#allocation2 + $0x44] sm:$0x1]  ;;  %v1807_v58 = vld [vmem:[#allocation2 + $0xc0] sm:$0xf] }
 0x10b   : > { %v1367_v43 = vpop.permute.xlu2 %1366  ;;  %4392 = vst.msk [vmem:[#allocation4 + $0xd0] sm:$0xf] %vm4338_vm12, %v8866_v0 }
 0x10c   : > { %1434 = vst.msk [vmem:[#allocation3 + $0x74] sm:$0xf] %vm1404_vm14, %v1367_v43 }
 0x10e   : > { %1863 = vrot.lane.b32.xlu0 %v1788_v1, %s8869_s9  ;;  %v2028_v1 = vshll.u32 %v9882_v9, 16 }
 0x110   : > { %v1651_v19 = vpop.permute.xlu0 %1650 }
 0x111   : > { %1746 = vst.msk [vmem:[#allocation3 + $0x4] sm:$0xf] %vm1744_vm15, %v1651_v19  ;;  %1843 = vrot.lane.b32.xlu2 %v1778_v38, %s8869_s9  ;;  %1853 = vrot.lane.b32.xlu1 %v1783_v39, %s8869_s9  ;;  %v641_v38 = vsel %vm9096_vm9, %v633_v11, %v640_v6  ;;  %v1796_v39 = vld [vmem:[#allocation2 + $0x7c] sm:$0xf] }
 0x112   : > { %805 = vst.msk [vmem:[#allocation2 + $0xc4] sm:$0xf] %vm280_vm0, %v641_v38  ;;  %vm1937_vm0 = vcmask 126048  }
 0x113   : > { %v1649_v16 = vpop.permute.xlu2 %1648  ;;  %v1365_v24 = vpop.permute.xlu1 %1364 }
 0x114   : > { %1745 = vst.msk [vmem:[#allocation3] sm:$0xf] %vm1744_vm15, %v1649_v16  ;;  %v2058_v16 = vrot.slane %v2056_v4, 4  ;;  %v2134_v4 = vshll.u32 %v1984_v46, 16 }
 0x115   : > { %1433 = vst.msk [vmem:[#allocation3 + $0x70] sm:$0xf] %vm1404_vm14, %v1365_v24  ;;  %v2026_v24 = vrot.slane %v2025_v7, 4 }
 0x116   : > { %1869 = vrot.lane.b32.xlu0 %v1791_v18, %s8869_s9  ;;  %v9895_v18 = vrot.slane %v2052_v63, 5 }
 0x118   : > { %v1657_v57 = vpop.permute.xlu0 %1656 }
 0x119   : > { %1749 = vst.msk [vmem:[#allocation3 + $0x10] sm:$0xf] %vm1744_vm15, %v1657_v57  ;;  %1849 = vrot.lane.b32.xlu2 %v1781_v54, %s8869_s9  ;;  %1859 = vrot.lane.b32.xlu1 %v1786_v42, %s8869_s9  ;;  %v9899_v54 = vrot.slane %v2028_v1, 5  ;;  %v1975_v57 = vld [vmem:[#allocation2 + $0x20] sm:$0x1] }
 0x11b   : > { %v1655_v13 = vpop.permute.xlu2 %1654  ;;  %v1371_v20 = vpop.permute.xlu1 %1370 }
 0x11c   : > { %1748 = vst.msk [vmem:[#allocation3 + $0xc] sm:$0xf] %vm1744_vm15, %v1655_v13  ;;  %v1801_v13 = vld [vmem:[#allocation2 + $0x9c] sm:$0xf] }
 0x11d   : > { %1436 = vst.msk [vmem:[#allocation3 + $0x7c] sm:$0xf] %vm1404_vm14, %v1371_v20  ;;  %v2059_v20 = vor.u32 %v2058_v16, %v9895_v18  ;;  %vm4341_vm14 = vcmask 57344  }
 0x11e   : > { %1875 = vrot.lane.b32.xlu0 %v1794_v31, %s8869_s9  ;;  %v1979_v31 = vld [vmem:[#allocation2 + $0x30] sm:$0xf]  ;;  %4345 = vst.msk [vmem:[#allocation4 + $0x14] sm:$0x1] %vm4341_vm14, %v8866_v0 }
 0x11f   : > { %4342 = vst.msk [vmem:[#allocation4 + $0x8] sm:$0x1] %vm4341_vm14, %v8866_v0 }
 0x120   : > { %v1663_v12 = vpop.permute.xlu0 %1662  ;;  %4348 = vst.msk [vmem:[#allocation4 + $0x20] sm:$0x1] %vm4341_vm14, %v8866_v0 }
 0x121   : > { %1752 = vst.msk [vmem:[#allocation3 + $0x1c] sm:$0xf] %vm1744_vm15, %v1663_v12  ;;  %1855 = vrot.lane.b32.xlu2 %v1784_v27, %s8869_s9  ;;  %1865 = vrot.lane.b32.xlu1 %v1789_v15, %s8869_s9  ;;  %v2062_v27 = vshll.u32 %v1975_v57, 16  ;;  %v2031_v12 = vsel %vm8955_vm3, %v2026_v24, %v9899_v54  ;;  %v2091_v15 = vshrl.u32 %v1979_v31, 16  ;;  %v1977_v24 = vld [vmem:[#allocation2 + $0x28] sm:$0xf] }
 0x122   : > { %v1805_v57 = vld [vmem:[#allocation2 + $0xb4] sm:$0xf]  ;;  %4351 = vst.msk [vmem:[#allocation4 + $0x2c] sm:$0x1] %vm4341_vm14, %v8866_v0 }
 0x123   : > { %v1661_v41 = vpop.permute.xlu2 %1660  ;;  %v1653_v52 = vpop.permute.xlu1 %1652  ;;  %v2093_v17 = vrot.slane %v2091_v15, 4  ;;  %4354 = vst.msk [vmem:[#allocation4 + $0x38] sm:$0x1] %vm4341_vm14, %v8866_v0 }
 0x124   : > { %1751 = vst.msk [vmem:[#allocation3 + $0x18] sm:$0xf] %vm1744_vm15, %v1661_v41 }
 0x125   : > { %1747 = vst.msk [vmem:[#allocation3 + $0x8] sm:$0xf] %vm1744_vm15, %v1653_v52  ;;  %v2060_v52 = vrot.slane %v2059_v20, 4 }
 0x126   : > { %1881 = vrot.lane.b32.xlu0 %v1797_v28, %s8869_s9  ;;  %v2094_v28 = vshll.u32 %v1979_v31, 16  ;;  %v2136_v31 = vrot.slane %v2134_v4, 5  ;;  %v1978_v4 = vld [vmem:[#allocation2 + $0x2c] sm:$0x1]  ;;  %4357 = vst.msk [vmem:[#allocation4 + $0x44] sm:$0x1] %vm4341_vm14, %v8866_v0 }
 0x127   : > { %4360 = vst.msk [vmem:[#allocation4 + $0x50] sm:$0x1] %vm4341_vm14, %v8866_v0 }
 0x128   : > { %v1669_v25 = vpop.permute.xlu0 %1668  ;;  %4363 = vst.msk [vmem:[#allocation4 + $0x5c] sm:$0x1] %vm4341_vm14, %v8866_v0 }
 0x129   : > { %1755 = vst.msk [vmem:[#allocation3 + $0x28] sm:$0xf] %vm1744_vm15, %v1669_v25  ;;  %1861 = vrot.lane.b32.xlu2 %v1787_v33, %s8869_s9  ;;  %1871 = vrot.lane.b32.xlu1 %v1792_v34, %s8869_s9  ;;  %v2064_v33 = vrot.slane %v2062_v27, 5  ;;  %v2096_v25 = vrot.slane %v2094_v28, 5  ;;  %v2104_v28 = vshrl.u32 %v9911_v22, 16 }
 0x12a   : > { %4366 = vst.msk [vmem:[#allocation4 + $0x68] sm:$0x1] %vm4341_vm14, %v8866_v0 }
 0x12b   : > { %v1667_v26 = vpop.permute.xlu2 %1666  ;;  %v1659_v29 = vpop.permute.xlu1 %1658  ;;  %4369 = vst.msk [vmem:[#allocation4 + $0x74] sm:$0x1] %vm4341_vm14, %v8866_v0 }
 0x12c   : > { %1754 = vst.msk [vmem:[#allocation3 + $0x24] sm:$0xf] %vm1744_vm15, %v1667_v26  ;;  %v2124_v26 = vshll.u32 %v1983_v47, 16 }
 0x12d   : > { %1750 = vst.msk [vmem:[#allocation3 + $0x14] sm:$0xf] %vm1744_vm15, %v1659_v29  ;;  %v2065_v29 = vsel %vm8955_vm3, %v2060_v52, %v2064_v33  ;;  %v9939_v52 = vld [vmem:[#allocation2 + $0x58] sm:$0xf] }
 0x12e   : > { %1887 = vrot.lane.b32.xlu0 %v1800_v53, %s8869_s9  ;;  %v2032_v53 = vshrl.u32 %v9882_v9, 16  ;;  %v9922_v14 = vrot.slane %v2124_v26, 5  ;;  %v1988_v9 = vld [vmem:[#allocation2 + $0x54] sm:$0xf]  ;;  %v1981_v26 = vld [vmem:[#allocation2 + $0x38] sm:$0x1] }
 0x12f   : > { %v2166_v7 = vshll.u32 %v1988_v9, 16  ;;  %4372 = vst.msk [vmem:[#allocation4 + $0x80] sm:$0x1] %vm4341_vm14, %v8866_v0 }
 0x130   : > { %v1675_v40 = vpop.permute.xlu0 %1674  ;;  %4375 = vst.msk [vmem:[#allocation4 + $0x8c] sm:$0x1] %vm4341_vm14, %v8866_v0 }
 0x131   : > { %1758 = vst.msk [vmem:[#allocation3 + $0x34] sm:$0xf] %vm1744_vm15, %v1675_v40  ;;  %1867 = vrot.lane.b32.xlu2 %v1790_v30, %s8869_s9  ;;  %1877 = vrot.lane.b32.xlu1 %v1795_v62, %s8869_s9  ;;  %v2097_v30 = vor.u32 %v2096_v25, %v2093_v17  ;;  %v2100_v40 = vshll.u32 %v9911_v22, 16  ;;  %v2034_v62 = vrot.slane %v2032_v53, 4  ;;  %v2168_v15 = vrot.slane %v2166_v7, 5 }
 0x132   : > { %4378 = vst.msk [vmem:[#allocation4 + $0x98] sm:$0x1] %vm4341_vm14, %v8866_v0 }
 0x133   : > { %v1673_v44 = vpop.permute.xlu2 %1672  ;;  %v1665_v35 = vpop.permute.xlu1 %1664  ;;  %v9925_v51 = vrot.slane %v2100_v40, 5  ;;  %v2080_v40 = vshrl.u32 %v1977_v24, 16  ;;  %4381 = vst.msk [vmem:[#allocation4 + $0xa4] sm:$0x1] %vm4341_vm14, %v8866_v0 }
 0x134   : > { %1757 = vst.msk [vmem:[#allocation3 + $0x30] sm:$0xf] %vm1744_vm15, %v1673_v44  ;;  %v1972_v44 = vld [vmem:[#allocation2 + $0x14] sm:$0x1] }
 0x135   : > { %1753 = vst.msk [vmem:[#allocation3 + $0x20] sm:$0xf] %vm1744_vm15, %v1665_v35  ;;  %v2130_v35 = vrot.slane %v2128_v50, 4  ;;  %v2038_v11 = vshll.u32 %v1972_v44, 16  ;;  %v1808_v44 = vld [vmem:[#allocation2 + $0xc4] sm:$0xf] }
 0x136   : > { %1893 = vrot.lane.b32.xlu0 %v1803_v36, %s8869_s9  ;;  %v1976_v36 = vld [vmem:[#allocation2 + $0x24] sm:$0xf]  ;;  %4384 = vst.msk [vmem:[#allocation4 + $0xb0] sm:$0x1] %vm4341_vm14, %v8866_v0 }
 0x137   : > { %v2067_v8 = vshrl.u32 %v1976_v36, 16  ;;  %v2131_v63 = vor.u32 %v2130_v35, %v9922_v14  ;;  %v2040_v16 = vrot.slane %v2038_v11, 5  ;;  %v2110_v35 = vshll.u32 %v1981_v26, 16  ;;  %4387 = vst.msk [vmem:[#allocation4 + $0xbc] sm:$0x1] %vm4341_vm14, %v8866_v0 }
 0x138   : > { %v1681_v59 = vpop.permute.xlu0 %1680  ;;  %4390 = vst.msk [vmem:[#allocation4 + $0xc8] sm:$0x1] %vm4341_vm14, %v8866_v0 }
 0x139   : > { %1761 = vst.msk [vmem:[#allocation3 + $0x40] sm:$0xf] %vm1744_vm15, %v1681_v59  ;;  %1873 = vrot.lane.b32.xlu2 %v1793_v49, %s8869_s9  ;;  %1883 = vrot.lane.b32.xlu1 %v1798_v37, %s8869_s9  ;;  %v2098_v49 = vrot.slane %v2097_v30, 4  ;;  %v2070_v59 = vshll.u32 %v1976_v36, 16  ;;  %v2035_v37 = vor.u32 %v2034_v62, %v9899_v54 }
 0x13a   : > { %4393 = vst.msk [vmem:[#allocation4 + $0xd4] sm:$0x1] %vm4341_vm14, %v8866_v0 }
 0x13b   : > { %v1679_v43 = vpop.permute.xlu2 %1678  ;;  %v1671_v19 = vpop.permute.xlu1 %1670  ;;  %v2103_v6 = vsel %vm8955_vm3, %v2098_v49, %v9925_v51  ;;  %v2072_v38 = vrot.slane %v2070_v59, 5  ;;  %v1993_v49 = vld [vmem:[#allocation2 + $0x68] sm:$0x1]  ;;  %v1997_v59 = vld [vmem:[#allocation2 + $0x78] sm:$0xf] }
 0x13c   : > { %1760 = vst.msk [vmem:[#allocation3 + $0x3c] sm:$0xf] %vm1744_vm15, %v1679_v43  ;;  %v2069_v43 = vrot.slane %v2067_v8, 4 }
 0x13d   : > { %1756 = vst.msk [vmem:[#allocation3 + $0x2c] sm:$0xf] %vm1744_vm15, %v1671_v19  ;;  %v1973_v19 = vld [vmem:[#allocation2 + $0x18] sm:$0xf] }
 0x13e   : > { %1899 = vrot.lane.b32.xlu0 %v1806_v2, %s8869_s9  ;;  %v2163_v2 = vshrl.u32 %v1988_v9, 16  ;;  %v2043_v20 = vshrl.u32 %v1973_v19, 16  ;;  %v2046_v27 = vshll.u32 %v1973_v19, 16  ;;  %v2112_v19 = vrot.slane %v2110_v35, 5 }
 0x140   : > { %v1687_v42 = vpop.permute.xlu0 %1686  ;;  %v2048_v53 = vrot.slane %v2046_v27, 5 }
 0x141   : > { %1764 = vst.msk [vmem:[#allocation3 + $0x4c] sm:$0xf] %vm1744_vm15, %v1687_v42  ;;  %1879 = vrot.lane.b32.xlu2 %v1796_v39, %s8869_s9  ;;  %1889 = vrot.lane.b32.xlu1 %v1801_v13, %s8869_s9  ;;  %v2036_v39 = vrot.slane %v2035_v37, 4  ;;  %v2132_v42 = vrot.slane %v2131_v63, 4  ;;  %v1992_v13 = vld [vmem:[#allocation2 + $0x64] sm:$0xf] }
 0x142   : > { %v2196_v17 = vshll.u32 %v1992_v13, 16  ;;  %v2200_v25 = vshrl.u32 %v1992_v13, 16  ;;  %v2082_v37 = vrot.slane %v2080_v40, 4 }
 0x143   : > { %v1685_v41 = vpop.permute.xlu2 %1684  ;;  %v1677_v23 = vpop.permute.xlu1 %1676  ;;  %v2041_v33 = vsel %vm8955_vm3, %v2036_v39, %v2040_v16  ;;  %v2137_v47 = vsel %vm8955_vm3, %v2132_v42, %v2136_v31  ;;  %v1982_v39 = vld [vmem:[#allocation2 + $0x3c] sm:$0xf]  ;;  %v9966_v42 = vld [vmem:[#allocation2 + $0x4c] sm:$0xf] }
 0x144   : > { %1763 = vst.msk [vmem:[#allocation3 + $0x48] sm:$0xf] %vm1744_vm15, %v1685_v41  ;;  %v9950_v62 = vrot.slane %v2196_v17, 5  ;;  %v2202_v36 = vrot.slane %v2200_v25, 4  ;;  %v2001_v17 = vld [vmem:[#allocation2 + $0x88] sm:$0xf] }
 0x145   : > { %1759 = vst.msk [vmem:[#allocation3 + $0x38] sm:$0xf] %vm1744_vm15, %v1677_v23  ;;  %v2073_v23 = vor.u32 %v2072_v38, %v2069_v43  ;;  %v2238_v43 = vshll.u32 %v1997_v59, 16  ;;  %v2176_v25 = vshrl.u32 %v9939_v52, 16  ;;  %v2152_v35 = vshrl.u32 %v9966_v42, 16 }
 0x146   : > { %2402 = vrot.lane.b32.xlu0 %v2031_v12, %s8870_s10  ;;  %v2165_v12 = vrot.slane %v2163_v2, 4  ;;  %v2206_v2 = vshll.u32 %v1993_v49, 16  ;;  %v1990_v49 = vld [vmem:[#allocation2 + $0x5c] sm:$0x1] }
 0x148   : > { %v1693_v34 = vpop.permute.xlu0 %1692  ;;  %v2169_v22 = vor.u32 %v2168_v15, %v2165_v12  ;;  %v2208_v13 = vrot.slane %v2206_v2, 5  ;;  %v2115_v15 = vshrl.u32 %v1982_v39, 16 }
 0x149   : > { %1767 = vst.msk [vmem:[#allocation3 + $0x58] sm:$0xf] %vm1744_vm15, %v1693_v34  ;;  %1885 = vrot.lane.b32.xlu2 %v1799_v48, %s8869_s9  ;;  %1895 = vrot.lane.b32.xlu1 %v1804_v5, %s8869_s9  ;;  %v2076_v48 = vshll.u32 %v1977_v24, 16  ;;  %v2045_v34 = vrot.slane %v2043_v20, 4  ;;  %v2172_v5 = vshll.u32 %v9939_v52, 16 }
 0x14a   : > { %v2117_v40 = vrot.slane %v2115_v15, 4  ;;  %v10009_v15 = vld [vmem:[#allocation2 + $0x70] sm:$0xf] }
 0x14b   : > { %v1691_v56 = vpop.permute.xlu2 %1690  ;;  %v1683_v45 = vpop.permute.xlu1 %1682  ;;  %v2078_v30 = vrot.slane %v2076_v48, 5  ;;  %v2049_v46 = vor.u32 %v2048_v53, %v2045_v34  ;;  %v9954_v8 = vrot.slane %v2172_v5, 5  ;;  %v2148_v34 = vshll.u32 %v9966_v42, 16 }
 0x14c   : > { %1766 = vst.msk [vmem:[#allocation3 + $0x54] sm:$0xf] %vm1744_vm15, %v1691_v56  ;;  %v2106_v56 = vrot.slane %v2104_v28, 4  ;;  %v2118_v28 = vshll.u32 %v1982_v39, 16 }
 0x14d   : > { %1762 = vst.msk [vmem:[#allocation3 + $0x44] sm:$0xf] %vm1744_vm15, %v1683_v45  ;;  %v1985_v45 = vld [vmem:[#allocation2 + $0x48] sm:$0xf]  ;;  %v2050_v38 = vrot.slane %v2049_v46, 4 }
 0x14e   : > { %2408 = vrot.lane.b32.xlu0 %v2065_v29, %s8870_s10  ;;  %v2074_v29 = vrot.slane %v2073_v23, 4  ;;  %v2139_v11 = vshrl.u32 %v1985_v45, 16  ;;  %v2142_v7 = vshll.u32 %v1985_v45, 16  ;;  %v2240_v23 = vrot.slane %v2238_v43, 5 }
 0x14f   : > { %v2055_v48 = vsel %vm8955_vm3, %v2050_v38, %v9895_v18  ;;  %v9986_v45 = vrot.slane %v2148_v34, 5  ;;  %v1987_v38 = vld [vmem:[#allocation2 + $0x50] sm:$0x1] }
 0x150   : > { %v1699_v3 = vpop.permute.xlu0 %1698  ;;  %v2079_v63 = vsel %vm8955_vm3, %v2074_v29, %v2078_v30  ;;  %v2141_v20 = vrot.slane %v2139_v11, 4  ;;  %v2144_v27 = vrot.slane %v2142_v7, 5  ;;  %v2272_v29 = vshrl.u32 %v2001_v17, 16 }
 0x151   : > { %1770 = vst.msk [vmem:[#allocation3 + $0x64] sm:$0xf] %vm1744_vm15, %v1699_v3  ;;  %1891 = vrot.lane.b32.xlu2 %v1802_v21, %s8869_s9  ;;  %1901 = vrot.lane.b32.xlu1 %v1807_v58, %s8869_s9  ;;  %v2170_v3 = vrot.slane %v2169_v22, 4  ;;  %v2107_v58 = vor.u32 %v2106_v56, %v9925_v51  ;;  %v2120_v56 = vrot.slane %v2118_v28, 5 }
 0x152   : > { %v2145_v5 = vor.u32 %v2144_v27, %v2141_v20 }
 0x153   : > { %v1697_v1 = vpop.permute.xlu2 %1696  ;;  %v1689_v54 = vpop.permute.xlu1 %1688  ;;  %v2175_v51 = vsel %vm8955_vm3, %v2170_v3, %v9954_v8  ;;  %v2108_v24 = vrot.slane %v2107_v58, 4  ;;  %v2274_v58 = vrot.slane %v2272_v29, 4 }
 0x154   : > { %1769 = vst.msk [vmem:[#allocation3 + $0x60] sm:$0xf] %vm1744_vm15, %v1697_v1  ;;  %v2235_v1 = vshrl.u32 %v1997_v59, 16 }
 0x155   : > { %1765 = vst.msk [vmem:[#allocation3 + $0x50] sm:$0xf] %vm1744_vm15, %v1689_v54  ;;  %v2083_v54 = vor.u32 %v2082_v37, %v2078_v30  ;;  %v2113_v53 = vsel %vm8955_vm3, %v2108_v24, %v2112_v19  ;;  %v1994_v37 = vld [vmem:[#allocation2 + $0x6c] sm:$0xf]  ;;  %v1991_v24 = vld [vmem:[#allocation2 + $0x60] sm:$0xf] }
 0x156   : > { %2414 = vrot.lane.b32.xlu0 %v2103_v6, %s8870_s10  ;;  %v2203_v6 = vor.u32 %v2202_v36, %v9950_v62  ;;  %v2214_v19 = vshll.u32 %v1994_v37, 16 }
 0x157   : > { %v2084_v22 = vrot.slane %v2083_v54, 4 }
 0x158   : > { %v1705_v41 = vpop.permute.xlu0 %1704  ;;  %v2204_v31 = vrot.slane %v2203_v6, 4  ;;  %v2006_v6 = vld [vmem:[#allocation2 + $0x9c] sm:$0xf] }
 0x159   : > { %1773 = vst.msk [vmem:[#allocation3 + $0x70] sm:$0xf] %vm1744_vm15, %v1705_v41  ;;  %1897 = vrot.lane.b32.xlu2 %v1805_v57, %s8869_s9  ;;  %2404 = vrot.lane.b32.xlu1 %v2041_v33, %s8870_s10  ;;  %v2086_v57 = vshll.u32 %v1978_v4, 16  ;;  %v2237_v41 = vrot.slane %v2235_v1, 4  ;;  %v9974_v33 = vld [vmem:[#allocation2 + $0x7c] sm:$0xf] }
 0x15a   : > { %v2244_v18 = vshll.u32 %v9974_v33, 16  ;;  %v2209_v52 = vsel %vm8955_vm3, %v2204_v31, %v2208_v13  ;;  %v2002_v4 = vld [vmem:[#allocation2 + $0x8c] sm:$0x1]  ;;  %v2182_v1 = vshll.u32 %v1990_v49, 16  ;;  %v2307_v54 = vshrl.u32 %v2006_v6, 16 }
 0x15b   : > { %v1703_v50 = vpop.permute.xlu2 %1702  ;;  %v1695_v21 = vpop.permute.xlu1 %1694  ;;  %v2241_v26 = vor.u32 %v2240_v23, %v2237_v41  ;;  %v2088_v30 = vrot.slane %v2086_v57, 5  ;;  %v2310_v57 = vshll.u32 %v2006_v6, 16  ;;  %v2154_v31 = vrot.slane %v2152_v35, 4  ;;  %v2003_v6 = vld [vmem:[#allocation2 + $0x90] sm:$0xf] }
 0x15c   : > { %1772 = vst.msk [vmem:[#allocation3 + $0x6c] sm:$0xf] %vm1744_vm15, %v1703_v50  ;;  %v2268_v50 = vshll.u32 %v2001_v17, 16  ;;  %v9991_v59 = vrot.slane %v2244_v18, 5  ;;  %v2184_v27 = vrot.slane %v2182_v1, 5  ;;  %v2216_v41 = vrot.slane %v2214_v19, 5 }
 0x15d   : > { %1768 = vst.msk [vmem:[#allocation3 + $0x5c] sm:$0xf] %vm1744_vm15, %v1695_v21  ;;  %v2178_v21 = vrot.slane %v2176_v25, 4  ;;  %v2242_v3 = vrot.slane %v2241_v26, 4  ;;  %v2089_v11 = vsel %vm8955_vm3, %v2084_v22, %v2088_v30  ;;  %v2187_v23 = vshrl.u32 %v1991_v24, 16 }
 0x15e   : > { %2420 = vrot.lane.b32.xlu0 %v2137_v47, %s8870_s10  ;;  %v2309_v34 = vrot.slane %v2307_v54, 4  ;;  %v10018_v26 = vld [vmem:[#allocation2 + $0xa0] sm:$0xf]  ;;  %v2010_v18 = vld [vmem:[#allocation2 + $0xac] sm:$0xf]  ;;  %v2220_v30 = vshll.u32 %v10009_v15, 16 }
 0x15f   : > { %v2179_v7 = vor.u32 %v2178_v21, %v9954_v8  ;;  %v2247_v8 = vsel %vm8955_vm3, %v2242_v3, %v9991_v59  ;;  %v2340_v21 = vshll.u32 %v2010_v18, 16  ;;  %v2011_v19 = vld [vmem:[#allocation2 + $0xb0] sm:$0x1]  ;;  %v2286_v54 = vshll.u32 %v2003_v6, 16 }
 0x160   : > { %v1711_v9 = vpop.permute.xlu0 %1710 }
 0x161   : > { %1776 = vst.msk [vmem:[#allocation3 + $0x7c] sm:$0xf] %vm1744_vm15, %v1711_v9  ;;  %1903 = vrot.lane.b32.xlu2 %v1808_v44, %s8869_s9  ;;  %2410 = vrot.lane.b32.xlu1 %v2079_v63, %s8870_s10  ;;  %v2146_v44 = vrot.slane %v2145_v5, 4  ;;  %v9993_v9 = vrot.slane %v2268_v50, 5  ;;  %v2121_v63 = vor.u32 %v2120_v56, %v2117_v40  ;;  %v2180_v20 = vrot.slane %v2179_v7, 4  ;;  %s8782_s9 = sshll.u32 %s12362_s25, 8 }
 0x162   : > { %v2155_v5 = vor.u32 %v2154_v31, %v9986_v45  ;;  %v2248_v50 = vshrl.u32 %v9974_v33, 16  ;;  %v2189_v56 = vrot.slane %v2187_v23, 4 }
 0x163   : > { %v1709_v16 = vpop.permute.xlu2 %1708  ;;  %v1701_v12 = vpop.permute.xlu1 %1700  ;;  %v2151_v43 = vsel %vm8955_vm3, %v2146_v44, %v9986_v45  ;;  %v2275_v39 = vor.u32 %v2274_v58, %v9993_v9  ;;  %v2122_v42 = vrot.slane %v2121_v63, 4  ;;  %v2316_v45 = vshll.u32 %v10018_v26, 16 }
 0x164   : > { %1775 = vst.msk [vmem:[#allocation3 + $0x78] sm:$0xf] %vm1744_vm15, %v1709_v16  ;;  %v2278_v16 = vshll.u32 %v2002_v4, 16  ;;  %v2344_v44 = vshrl.u32 %v2010_v18, 16  ;;  %v2156_v35 = vrot.slane %v2155_v5, 4  ;;  %v10031_v58 = vrot.slane %v2220_v30, 5 }
 0x165   : > { %1771 = vst.msk [vmem:[#allocation3 + $0x68] sm:$0xf] %vm1744_vm15, %v1701_v12  ;;  %v2158_v12 = vshll.u32 %v1987_v38, 16  ;;  %v2276_v25 = vrot.slane %v2275_v39, 4  ;;  %v2127_v22 = vsel %vm8955_vm3, %v2122_v42, %v9922_v14  ;;  %v2250_v4 = vrot.slane %v2248_v50, 4 }
 0x166   : > { %2426 = vrot.lane.b32.xlu0 %v2175_v51, %s8870_s10  ;;  %v2211_v51 = vshrl.u32 %v1994_v37, 16  ;;  %v2224_v37 = vshrl.u32 %v10009_v15, 16  ;;  %v10036_v1 = vrot.slane %v2316_v45, 5  ;;  %v2346_v38 = vrot.slane %v2344_v44, 4  ;;  %v806_v39 = vld [vmem:[#allocation2 + $0xc8] sm:$0x1] }
 0x167   : > { %v2160_v33 = vrot.slane %v2158_v12, 5  ;;  %v2350_v15 = vshll.u32 %v2011_v19, 16  ;;  %v2320_v44 = vshrl.u32 %v10018_v26, 16 }
 0x168   : > { %v1846_v47 = vpop.permute.xlu0 %1845  ;;  %v2213_v28 = vrot.slane %v2211_v51, 4  ;;  %v2226_v12 = vrot.slane %v2224_v37, 4 }
 0x169   : > { %1940 = vst.msk [vmem:[#allocation3 + $0x8] sm:$0xf] %vm1937_vm0, %v1846_v47  ;;  %2406 = vrot.lane.b32.xlu2 %v2055_v48, %s8870_s10  ;;  %2416 = vrot.lane.b32.xlu1 %v2113_v53, %s8870_s10  ;;  %v2190_v48 = vshll.u32 %v1991_v24, 16  ;;  %v2280_v47 = vrot.slane %v2278_v16, 5  ;;  %v2312_v53 = vrot.slane %v2310_v57, 5  ;;  %v2161_v51 = vsel %vm8955_vm3, %v2156_v35, %v2160_v33 }
 0x16a   : > { %v2217_v40 = vor.u32 %v2216_v41, %v2213_v28  ;;  %v2283_v24 = vshrl.u32 %v2003_v6, 16  ;;  %v2015_v57 = vld [vmem:[#allocation2 + $0xc0] sm:$0xf]  ;;  %v2000_v41 = vld [vmem:[#allocation2 + $0x84] sm:$0xf]  ;;  %v2227_v18 = vor.u32 %v2226_v12, %v10031_v58  ;;  %v2322_v6 = vrot.slane %v2320_v44, 4 }
 0x16b   : > { %v1844_v36 = vpop.permute.xlu2 %1843  ;;  %v1707_v46 = vpop.permute.xlu1 %1706  ;;  %v2313_v14 = vor.u32 %v2312_v53, %v2309_v34  ;;  %v2281_v49 = vsel %vm8955_vm3, %v2276_v25, %v2280_v47  ;;  %v2379_v23 = vshrl.u32 %v2015_v57, 16  ;;  %v2288_v25 = vrot.slane %v2286_v54, 5 }
 0x16c   : > { %1939 = vst.msk [vmem:[#allocation3 + $0x4] sm:$0xf] %vm1937_vm0, %v1844_v36  ;;  %v2192_v36 = vrot.slane %v2190_v48, 5  ;;  %v2382_v48 = vshll.u32 %v2015_v57, 16  ;;  %v2262_v30 = vshll.u32 %v2000_v41, 16  ;;  %v2228_v33 = vrot.slane %v2227_v18, 4 }
 0x16d   : > { %1774 = vst.msk [vmem:[#allocation3 + $0x74] sm:$0xf] %vm1744_vm15, %v1707_v46  ;;  %v642_v46 = vrot.slane %v9884_v32, 4  ;;  %v2314_v7 = vrot.slane %v2313_v14, 4  ;;  %v1999_v32 = vld [vmem:[#allocation2 + $0x80] sm:$0x1]  ;;  %vm10897_vm15 = vmand %vm4338_vm12, %vm693_vm5 }
 0x16e   : > { %2432 = vrot.lane.b32.xlu0 %v2209_v52, %s8870_s10  ;;  %v2185_v52 = vsel %vm8955_vm3, %v2180_v20, %v2184_v27  ;;  %v2193_v63 = vor.u32 %v2192_v36, %v2189_v56  ;;  %v2254_v20 = vshll.u32 %v1999_v32, 16  ;;  %v1996_v27 = vld [vmem:[#allocation2 + $0x74] sm:$0x1]  ;;  %v2381_v56 = vrot.slane %v2379_v23, 4  ;;  %v2008_v32 = vld [vmem:[#allocation2 + $0xa4] sm:$0x1]  ;;  %vm10920_vm5 = vmand %vm4341_vm14, %vm368_vm6 }
 0x16f   : > { %v807_v42 = vsel %vm9183_vm10, %v642_v46, %v806_v39  ;;  %v2319_v55 = vsel %vm8955_vm3, %v2314_v7, %v10036_v1  ;;  %v2230_v50 = vshll.u32 %v1996_v27, 16  ;;  %v2384_v36 = vrot.slane %v2382_v48, 5  ;;  %v10083_v57 = vld [vmem:[#allocation2 + $0x10] sm:$0xf]  ;;  %v2533_v23 = vld [vmem:[#allocation2 + $0x14] sm:$0x1] }
 0x170   : > { %v1852_v2 = vpop.permute.xlu0 %1851  ;;  %v2194_v31 = vrot.slane %v2193_v63, 4  ;;  %808 = vst [vmem:[#allocation2 + $0xc8] sm:$0x1] %v807_v42  ;;  %v2256_v53 = vrot.slane %v2254_v20, 5  ;;  %v2264_v46 = vrot.slane %v2262_v30, 5  ;;  %v2323_v42 = vor.u32 %v2322_v6, %v10036_v1 }
 0x171   : > { %1943 = vst.msk [vmem:[#allocation3 + $0x14] sm:$0xf] %vm1937_vm0, %v1852_v2  ;;  %2412 = vrot.lane.b32.xlu2 %v2089_v11, %s8870_s10  ;;  %2422 = vrot.lane.b32.xlu1 %v2151_v43, %s8870_s10  ;;  %v2218_v11 = vrot.slane %v2217_v40, 4  ;;  %v10038_v43 = vrot.slane %v2340_v21, 5  ;;  %v2352_v40 = vrot.slane %v2350_v15, 5  ;;  %v2385_v37 = vor.u32 %v2384_v36, %v2381_v56 }
 0x172   : > { %v2199_v47 = vsel %vm8955_vm3, %v2194_v31, %v9950_v62  ;;  %v10063_v21 = vld [vmem:[#allocation2 + $0xc4] sm:$0xf]  ;;  %v2629_v15 = vrot.slane %v10083_v57, 5  ;;  %v2324_v1 = vrot.slane %v2323_v42, 4  ;;  %vm3927_vm10 = vcmask 290048  }
 0x173   : > { %v1850_v13 = vpop.permute.xlu2 %1849  ;;  %v1842_v17 = vpop.permute.xlu1 %1841  ;;  %v2347_v28 = vor.u32 %v2346_v38, %v10038_v43  ;;  %v2012_v38 = vld [vmem:[#allocation2 + $0xb4] sm:$0xf]  ;;  %v2386_v39 = vrot.slane %v2385_v37, 4  ;;  %vm5455_vm6 = vcmask 126016  }
 0x174   : > { %1942 = vst.msk [vmem:[#allocation3 + $0x10] sm:$0xf] %vm1937_vm0, %v1850_v13  ;;  %v2251_v13 = vor.u32 %v2250_v4, %v9991_v59  ;;  %v2285_v59 = vrot.slane %v2283_v24, 4  ;;  %v2355_v31 = vshrl.u32 %v2012_v38, 16 }
 0x175   : > { %1938 = vst.msk [vmem:[#allocation3] sm:$0xf] %vm1937_vm0, %v1842_v17 }
 0x176   : > { %2438 = vrot.lane.b32.xlu0 %v2247_v8, %s8870_s10  ;;  %v2223_v8 = vsel %vm8955_vm3, %v2218_v11, %v10031_v58  ;;  %v2252_v34 = vrot.slane %v2251_v13, 4  ;;  %v2289_v45 = vor.u32 %v2288_v25, %v2285_v59  ;;  %v2388_v11 = vshll.u32 %v10063_v21, 16 }
 0x177   : > { %v2358_v13 = vshll.u32 %v2012_v38, 16 }
 0x178   : > { %v1858_v29 = vpop.permute.xlu0 %1857  ;;  %v2257_v35 = vsel %vm8955_vm3, %v2252_v34, %v2256_v53  ;;  %v2290_v63 = vrot.slane %v2289_v45, 4  ;;  %v2013_v34 = vld [vmem:[#allocation2 + $0xb8] sm:$0xf] }
 0x179   : > { %1946 = vst.msk [vmem:[#allocation3 + $0x20] sm:$0xf] %vm1937_vm0, %v1858_v29  ;;  %2418 = vrot.lane.b32.xlu2 %v2127_v22, %s8870_s10  ;;  %2428 = vrot.lane.b32.xlu1 %v2185_v52, %s8870_s10  ;;  %v2004_v22 = vld [vmem:[#allocation2 + $0x94] sm:$0xf]  ;;  %v2259_v29 = vshrl.u32 %v2000_v41, 16  ;;  %v2348_v52 = vrot.slane %v2347_v28, 4 }
 0x17a   : > { %v2292_v62 = vshll.u32 %v2004_v22, 16  ;;  %v2296_v19 = vshrl.u32 %v2004_v22, 16  ;;  %v2005_v41 = vld [vmem:[#allocation2 + $0x98] sm:$0x1]  ;;  %v2360_v59 = vrot.slane %v2358_v13, 5  ;;  %v2364_v56 = vshll.u32 %v2013_v34, 16 }
 0x17b   : > { %v1856_v3 = vpop.permute.xlu2 %1855  ;;  %v1848_v2 = vpop.permute.xlu1 %1847  ;;  %v2353_v58 = vsel %vm8955_vm3, %v2348_v52, %v2352_v40  ;;  %v2302_v18 = vshll.u32 %v2005_v41, 16  ;;  %v2392_v52 = vshrl.u32 %v10063_v21, 16  ;;  %v2537_v21 = vld [vmem:[#allocation2 + $0x24] sm:$0xe] }
 0x17c   : > { %1945 = vst.msk [vmem:[#allocation3 + $0x1c] sm:$0xf] %vm1937_vm0, %v1856_v3  ;;  %v2232_v3 = vrot.slane %v2230_v50, 5  ;;  %v2294_v4 = vrot.slane %v2292_v62, 5  ;;  %v2298_v12 = vrot.slane %v2296_v19, 4  ;;  %v2631_v50 = vrot.slane %v2629_v15, 4 }
 0x17d   : > { %1941 = vst.msk [vmem:[#allocation3 + $0xc] sm:$0xf] %vm1937_vm0, %v1848_v2  ;;  %v2304_v62 = vrot.slane %v2302_v18, 5 }
 0x17e   : > { %2444 = vrot.lane.b32.xlu0 %v2281_v49, %s8870_s10  ;;  %v2261_v49 = vrot.slane %v2259_v29, 4  ;;  %v2295_v24 = vsel %vm8955_vm3, %v2290_v63, %v2294_v4  ;;  %v2632_v29 = vrot.slane %v2533_v23, 5  ;;  %v2368_v63 = vshrl.u32 %v2013_v34, 16  ;;  %v2546_v34 = vld [vmem:[#allocation2 + $0x48] sm:$0xe] }
 0x180   : > { %v1864_v16 = vpop.permute.xlu0 %1863  ;;  %v2265_v7 = vor.u32 %v2264_v46, %v2261_v49  ;;  %v2633_v44 = vsel %vm9586_vm13, %v2631_v50, %v2632_v29  ;;  %v2366_v46 = vrot.slane %v2364_v56, 5  ;;  %v8520_v29 = vrot.slane %v2546_v34, 9  ;;  %v2545_v34 = vld [vmem:[#allocation2 + $0x44] sm:$0x1] }
 0x181   : > { %1949 = vst.msk [vmem:[#allocation3 + $0x2c] sm:$0xf] %vm1937_vm0, %v1864_v16  ;;  %2424 = vrot.lane.b32.xlu2 %v2161_v51, %s8870_s10  ;;  %2434 = vrot.lane.b32.xlu1 %v2223_v8, %s8870_s10  ;;  %v2233_v51 = vsel %vm8955_vm3, %v2228_v33, %v2232_v3  ;;  %v10079_v16 = vrot.slane %v2388_v11, 5  ;;  %v2326_v8 = vshll.u32 %v2008_v32, 16  ;;  %v10109_v33 = vld [vmem:[#allocation2 + $0x28] sm:$0xf] }
 0x182   : > { %v2266_v20 = vrot.slane %v2265_v7, 4  ;;  %v2394_v3 = vrot.slane %v2392_v52, 4  ;;  %v2017_v11 = vld [vmem:[#allocation2 + $0xc8] sm:$0x1]  ;;  %v2643_v6 = vrot.slane %v10109_v33, 5 }
 0x183   : > { %v1862_v17 = vpop.permute.xlu2 %1861  ;;  %v1854_v5 = vpop.permute.xlu1 %1853  ;;  %v2391_v27 = vsel %vm8955_vm3, %v2386_v39, %v10079_v16  ;;  %v2328_v48 = vrot.slane %v2326_v8, 5  ;;  %v10117_v7 = vld [vmem:[#allocation2 + $0x34] sm:$0xf]  ;;  %v2014_v8 = vld [vmem:[#allocation2 + $0xbc] sm:$0x1] }
 0x184   : > { %1948 = vst.msk [vmem:[#allocation3 + $0x28] sm:$0xf] %vm1937_vm0, %v1862_v17  ;;  %v2357_v17 = vrot.slane %v2355_v31, 4  ;;  %v2395_v38 = vor.u32 %v2394_v3, %v10079_v16  ;;  %v2542_v31 = vld [vmem:[#allocation2 + $0x38] sm:$0x1] }
 0x185   : > { %1944 = vst.msk [vmem:[#allocation3 + $0x18] sm:$0xf] %vm1937_vm0, %v1854_v5  ;;  %v2299_v5 = vor.u32 %v2298_v12, %v2294_v4  ;;  %v2329_v40 = vsel %vm8955_vm3, %v2324_v1, %v2328_v48  ;;  %v8517_v4 = vrot.slane %v2537_v21, 9  ;;  %v2653_v41 = vrot.slane %v2542_v31, 5  ;;  %v2534_v48 = vld [vmem:[#allocation2 + $0x18] sm:$0xe] }
 0x186   : > { %2450 = vrot.lane.b32.xlu0 %v2319_v55, %s8870_s10  ;;  %v2009_v55 = vld [vmem:[#allocation2 + $0xa8] sm:$0xf]  ;;  %v2396_v16 = vrot.slane %v2395_v38, 4  ;;  %v2645_v21 = vrot.slane %v2643_v6, 4  ;;  %v10181_v38 = vld [vmem:[#allocation2 + $0x70] sm:$0xf] }
 0x187   : > { %v2331_v53 = vshrl.u32 %v2009_v55, 16  ;;  %v2334_v22 = vshll.u32 %v2009_v55, 16  ;;  %v2300_v45 = vrot.slane %v2299_v5, 4  ;;  %v2644_v39 = vsel %vm9586_vm13, %v8517_v4, %v2643_v6  ;;  %v2544_v4 = vld [vmem:[#allocation2 + $0x40] sm:$0xf] }
 0x188   : > { %v1870_v14 = vpop.permute.xlu0 %1869  ;;  %v2374_v55 = vshll.u32 %v2014_v8, 16  ;;  %v2685_v8 = vrot.slane %v10181_v38, 5 }
 0x189   : > { %1952 = vst.msk [vmem:[#allocation3 + $0x38] sm:$0xf] %vm1937_vm0, %v1870_v14  ;;  %2430 = vrot.lane.b32.xlu2 %v2199_v47, %s8870_s10  ;;  %2440 = vrot.lane.b32.xlu1 %v2257_v35, %s8870_s10  ;;  %v2271_v47 = vsel %vm8955_vm3, %v2266_v20, %v9993_v9  ;;  %v2361_v9 = vor.u32 %v2360_v59, %v2357_v17  ;;  %v2333_v36 = vrot.slane %v2331_v53, 4  ;;  %v2336_v14 = vrot.slane %v2334_v22, 5  ;;  %v10145_v53 = vld [vmem:[#allocation2 + $0x4c] sm:$0xf] }
 0x18a   : > { %v2376_v59 = vrot.slane %v2374_v55, 5  ;;  %v8516_v22 = vrot.slane %v2534_v48, 9 }
 0x18b   : > { %v1868_v26 = vpop.permute.xlu2 %1867  ;;  %v1860_v2 = vpop.permute.xlu1 %1859  ;;  %v2362_v49 = vrot.slane %v2361_v9, 4  ;;  %v2337_v37 = vor.u32 %v2336_v14, %v2333_v36  ;;  %v10153_v9 = vld [vmem:[#allocation2 + $0x58] sm:$0xf]  ;;  %v2539_v36 = vld [vmem:[#allocation2 + $0x2c] sm:$0x1] }
 0x18c   : > { %1951 = vst.msk [vmem:[#allocation3 + $0x34] sm:$0xf] %vm1937_vm0, %v1868_v26  ;;  %v2305_v26 = vsel %vm8955_vm3, %v2300_v45, %v2304_v62  ;;  %v2671_v62 = vrot.slane %v10153_v9, 5 }
 0x18d   : > { %1947 = vst.msk [vmem:[#allocation3 + $0x24] sm:$0xf] %vm1937_vm0, %v1860_v2  ;;  %v2367_v32 = vsel %vm8955_vm3, %v2362_v49, %v2366_v46  ;;  %v2338_v19 = vrot.slane %v2337_v37, 4  ;;  %v2646_v49 = vrot.slane %v2539_v36, 5 }
 0x18e   : > { %2456 = vrot.lane.b32.xlu0 %v2353_v58, %s8870_s10 }
 0x18f   : > { %v2647_v33 = vsel %vm9586_vm13, %v2645_v21, %v2646_v49  ;;  %v10223_v21 = vld [vmem:[#allocation2 + $0xa0] sm:$0xf] }
 0x190   : > { %v1876_v54 = vpop.permute.xlu0 %1875 }
 0x191   : > { %1955 = vst.msk [vmem:[#allocation3 + $0x44] sm:$0xf] %vm1937_vm0, %v1876_v54  ;;  %2436 = vrot.lane.b32.xlu2 %v2233_v51, %s8870_s10  ;;  %2446 = vrot.lane.b32.xlu1 %v2295_v24, %s8870_s10  ;;  %v2398_v51 = vshll.u32 %v2017_v11, 16  ;;  %v2370_v24 = vrot.slane %v2368_v63, 4  ;;  %v2650_v54 = vrot.slane %v10117_v7, 5  ;;  %v2660_v7 = vrot.slane %v2545_v34, 5 }
 0x192   : > { %v2543_v63 = vld [vmem:[#allocation2 + $0x3c] sm:$0xe]  ;;  %v2578_v34 = vld [vmem:[#allocation2 + $0xc8] sm:$0x1] }
 0x193   : > { %v1874_v28 = vpop.permute.xlu2 %1873  ;;  %v1866_v25 = vpop.permute.xlu1 %1865  ;;  %v2400_v13 = vrot.slane %v2398_v51, 5  ;;  %v2371_v12 = vor.u32 %v2370_v24, %v2366_v46  ;;  %v8519_v51 = vrot.slane %v2543_v63, 9 }
 0x194   : > { %1954 = vst.msk [vmem:[#allocation3 + $0x40] sm:$0xf] %vm1937_vm0, %v1874_v28  ;;  %v2652_v28 = vrot.slane %v2650_v54, 4 }
 0x195   : > { %1950 = vst.msk [vmem:[#allocation3 + $0x30] sm:$0xf] %vm1937_vm0, %v1866_v25  ;;  %v2401_v1 = vsel %vm8955_vm3, %v2396_v16, %v2400_v13  ;;  %v2372_v17 = vrot.slane %v2371_v12, 4  ;;  %v2540_v16 = vld [vmem:[#allocation2 + $0x30] sm:$0xe] }
 0x196   : > { %2462 = vrot.lane.b32.xlu0 %v2391_v27, %s8870_s10  ;;  %v2343_v27 = vsel %vm8955_vm3, %v2338_v19, %v10038_v43  ;;  %v2535_v43 = vld [vmem:[#allocation2 + $0x1c] sm:$0xf]  ;;  %v2654_v25 = vsel %vm9586_vm13, %v2652_v28, %v2653_v41  ;;  %v2657_v19 = vrot.slane %v2544_v4, 5  ;;  %v8518_v12 = vrot.slane %v2540_v16, 9 }
 0x197   : > { %v2636_v5 = vrot.slane %v2535_v43, 5  ;;  %v2377_v50 = vsel %vm8955_vm3, %v2372_v17, %v2376_v59  ;;  %v10189_v13 = vld [vmem:[#allocation2 + $0x7c] sm:$0xf] }
 0x198   : > { %v1882_v30 = vpop.permute.xlu0 %1881  ;;  %v2692_v28 = vrot.slane %v10189_v13, 5  ;;  %v2651_v17 = vsel %vm9586_vm13, %v8518_v12, %v2650_v54 }
 0x199   : > { %1958 = vst.msk [vmem:[#allocation3 + $0x50] sm:$0xf] %vm1937_vm0, %v1882_v30  ;;  %2442 = vrot.lane.b32.xlu2 %v2271_v47, %s8870_s10  ;;  %2452 = vrot.lane.b32.xlu1 %v2329_v40, %s8870_s10  ;;  %v2664_v30 = vrot.slane %v10145_v53, 5  ;;  %v2531_v40 = vld [vmem:[#allocation2 + $0xc] sm:$0xe]  ;;  %v2637_v56 = vsel %vm9586_vm13, %v8516_v22, %v2636_v5  ;;  %v2638_v6 = vrot.slane %v2636_v5, 4 }
 0x19a   : > { %v8515_v14 = vrot.slane %v2531_v40, 9  ;;  %v2694_v59 = vrot.slane %v2692_v28, 4  ;;  %v2552_v22 = vld [vmem:[#allocation2 + $0x60] sm:$0xe]  ;;  %v2553_v5 = vld [vmem:[#allocation2 + $0x64] sm:$0xf] }
 0x19b   : > { %v1880_v35 = vpop.permute.xlu2 %1879  ;;  %v1872_v58 = vpop.permute.xlu1 %1871  ;;  %v2665_v45 = vsel %vm9586_vm13, %v8520_v29, %v2664_v30  ;;  %v2564_v29 = vld [vmem:[#allocation2 + $0x90] sm:$0xe]  ;;  %v2678_v40 = vrot.slane %v2553_v5, 5 }
 0x19c   : > { %1957 = vst.msk [vmem:[#allocation3 + $0x4c] sm:$0xf] %vm1937_vm0, %v1880_v35  ;;  %v2551_v35 = vld [vmem:[#allocation2 + $0x5c] sm:$0x1]  ;;  %v2630_v3 = vsel %vm9586_vm13, %v8515_v14, %v2629_v15  ;;  %v8526_v14 = vrot.slane %v2564_v29, 9 }
 0x19d   : > { %1953 = vst.msk [vmem:[#allocation3 + $0x3c] sm:$0xf] %vm1937_vm0, %v1872_v58  ;;  %v2673_v58 = vrot.slane %v2671_v62, 4  ;;  %v2674_v37 = vrot.slane %v2551_v35, 5  ;;  %v2549_v35 = vld [vmem:[#allocation2 + $0x54] sm:$0xe] }
 0x19e   : > { %2741 = vrot.lane.b32.xlu0 %v2633_v44, %s8871_s11  ;;  %v2563_v29 = vld [vmem:[#allocation2 + $0x8c] sm:$0x1] }
 0x19f   : > { %v2675_v15 = vsel %vm9586_vm13, %v2673_v58, %v2674_v37  ;;  %v2713_v37 = vrot.slane %v10223_v21, 5  ;;  %v2702_v13 = vrot.slane %v2563_v29, 5  ;;  %v2889_v29 = vld [vmem:[#allocation2 + $0x90] sm:$0xf] }
 0x1a0   : > { %v1888_v2 = vpop.permute.xlu0 %1887 }
 0x1a1   : > { %1961 = vst.msk [vmem:[#allocation3 + $0x5c] sm:$0xf] %vm1937_vm0, %v1888_v2  ;;  %2448 = vrot.lane.b32.xlu2 %v2305_v26, %s8870_s10  ;;  %2458 = vrot.lane.b32.xlu1 %v2367_v32, %s8870_s10  ;;  %v2536_v26 = vld [vmem:[#allocation2 + $0x20] sm:$0x1]  ;;  %v2555_v32 = vld [vmem:[#allocation2 + $0x6c] sm:$0xe] }
 0x1a2   : > { %v2639_v57 = vrot.slane %v2536_v26, 5  ;;  %v2569_v26 = vld [vmem:[#allocation2 + $0xa4] sm:$0x1] }
 0x1a3   : > { %v1886_v42 = vpop.permute.xlu2 %1885  ;;  %v1878_v20 = vpop.permute.xlu1 %1877 }
 0x1a4   : > { %1960 = vst.msk [vmem:[#allocation3 + $0x58] sm:$0xf] %vm1937_vm0, %v1886_v42  ;;  %v2640_v24 = vsel %vm9586_vm13, %v2638_v6, %v2639_v57  ;;  %v8523_v42 = vrot.slane %v2555_v32, 9  ;;  %v2715_v57 = vrot.slane %v2713_v37, 4  ;;  %v2554_v32 = vld [vmem:[#allocation2 + $0x68] sm:$0x1] }
 0x1a5   : > { %1956 = vst.msk [vmem:[#allocation3 + $0x48] sm:$0xf] %vm1937_vm0, %v1878_v20  ;;  %v2658_v20 = vsel %vm9586_vm13, %v8519_v51, %v2657_v19  ;;  %v2561_v51 = vld [vmem:[#allocation2 + $0x84] sm:$0xe]  ;;  %v2681_v9 = vrot.slane %v2554_v32, 5 }
 0x1a6   : > { %2747 = vrot.lane.b32.xlu0 %v2644_v39, %s8871_s11  ;;  %v2686_v55 = vsel %vm9586_vm13, %v8523_v42, %v2685_v8  ;;  %v2573_v42 = vld [vmem:[#allocation2 + $0xb4] sm:$0xe] }
 0x1a7   : > { %v8529_v12 = vrot.slane %v2573_v42, 9 }
 0x1a8   : > { %v1894_v23 = vpop.permute.xlu0 %1893 }
 0x1a9   : > { %1964 = vst.msk [vmem:[#allocation3 + $0x68] sm:$0xf] %vm1937_vm0, %v1894_v23  ;;  %2454 = vrot.lane.b32.xlu2 %v2343_v27, %s8870_s10  ;;  %2464 = vrot.lane.b32.xlu1 %v2401_v1, %s8870_s10  ;;  %v2548_v27 = vld [vmem:[#allocation2 + $0x50] sm:$0x1]  ;;  %v2560_v23 = vld [vmem:[#allocation2 + $0x80] sm:$0x1] }
 0x1aa   : > { %v2666_v1 = vrot.slane %v2664_v30, 4  ;;  %v2667_v48 = vrot.slane %v2548_v27, 5  ;;  %v10215_v30 = vld [vmem:[#allocation2 + $0x94] sm:$0xf] }
 0x1ab   : > { %v1892_v47 = vpop.permute.xlu2 %1891  ;;  %v1884_v18 = vpop.permute.xlu1 %1883 }
 0x1ac   : > { %1963 = vst.msk [vmem:[#allocation3 + $0x64] sm:$0xf] %vm1937_vm0, %v1892_v47  ;;  %v2668_v53 = vsel %vm9586_vm13, %v2666_v1, %v2667_v48  ;;  %v10254_v1 = vld [vmem:[#allocation2 + $0xc4] sm:$0xf] }
 0x1ad   : > { %1959 = vst.msk [vmem:[#allocation3 + $0x54] sm:$0xf] %vm1937_vm0, %v1884_v18  ;;  %v2659_v18 = vrot.slane %v2657_v19, 4  ;;  %v2562_v19 = vld [vmem:[#allocation2 + $0x88] sm:$0xf] }
 0x1ae   : > { %2753 = vrot.lane.b32.xlu0 %v2654_v25, %s8871_s11  ;;  %v2695_v25 = vrot.slane %v2560_v23, 5  ;;  %v2699_v16 = vrot.slane %v2562_v19, 5  ;;  %v2558_v23 = vld [vmem:[#allocation2 + $0x78] sm:$0xe]  ;;  %v2874_v19 = vld [vmem:[#allocation2 + $0x34] sm:$0xf] }
 0x1af   : > { %v2661_v36 = vsel %vm9586_vm13, %v2659_v18, %v2660_v7 }
 0x1b0   : > { %v1900_v52 = vpop.permute.xlu0 %1899  ;;  %v2696_v54 = vsel %vm9586_vm13, %v2694_v59, %v2695_v25  ;;  %v2734_v25 = vrot.slane %v10254_v1, 5  ;;  %v2870_v1 = vld [vmem:[#allocation2 + $0x1c] sm:$0xf] }
 0x1b1   : > { %1967 = vst.msk [vmem:[#allocation3 + $0x74] sm:$0xf] %vm1937_vm0, %v1900_v52  ;;  %2460 = vrot.lane.b32.xlu2 %v2377_v50, %s8870_s10  ;;  %2743 = vrot.lane.b32.xlu1 %v2637_v56, %s8871_s11  ;;  %v8522_v52 = vrot.slane %v2552_v22, 9 }
 0x1b2   : > { %v2736_v7 = vrot.slane %v2734_v25, 4 }
 0x1b3   : > { %v1898_v44 = vpop.permute.xlu2 %1897  ;;  %v1890_v46 = vpop.permute.xlu1 %1889  ;;  %v2679_v49 = vsel %vm9586_vm13, %v8522_v52, %v2678_v40  ;;  %v2570_v52 = vld [vmem:[#allocation2 + $0xa8] sm:$0xe] }
 0x1b4   : > { %1966 = vst.msk [vmem:[#allocation3 + $0x70] sm:$0xf] %vm1937_vm0, %v1898_v44 }
 0x1b5   : > { %1962 = vst.msk [vmem:[#allocation3 + $0x60] sm:$0xf] %vm1937_vm0, %v1890_v46  ;;  %v2557_v46 = vld [vmem:[#allocation2 + $0x74] sm:$0x1] }
 0x1b6   : > { %2759 = vrot.lane.b32.xlu0 %v2665_v45, %s8871_s11  ;;  %v2706_v45 = vrot.slane %v10215_v30, 5  ;;  %v2688_v63 = vrot.slane %v2557_v46, 5  ;;  %v2567_v46 = vld [vmem:[#allocation2 + $0x9c] sm:$0xe] }
 0x1b8   : > { %v2403_v11 = vpop.permute.xlu0 %2402  ;;  %v2707_v58 = vsel %vm9586_vm13, %v8526_v14, %v2706_v45  ;;  %v8528_v14 = vrot.slane %v2570_v52, 9 }
 0x1b9   : > { %2499 = vst.msk [vmem:[#allocation3] sm:$0xf] %vm2498_vm1, %v2403_v11  ;;  %2739 = vrot.lane.b32.xlu2 %v2630_v3, %s8871_s11  ;;  %2749 = vrot.lane.b32.xlu1 %v2647_v33, %s8871_s11  ;;  %v8521_v3 = vrot.slane %v2549_v35, 9  ;;  %v2687_v33 = vrot.slane %v2685_v8, 4  ;;  %v2574_v8 = vld [vmem:[#allocation2 + $0xb8] sm:$0xf] }
 0x1bb   : > { %v1904_v2 = vpop.permute.xlu2 %1903  ;;  %v1896_v39 = vpop.permute.xlu1 %1895  ;;  %v2672_v6 = vsel %vm9586_vm13, %v8521_v3, %v2671_v62  ;;  %v2689_v38 = vsel %vm9586_vm13, %v2687_v33, %v2688_v63 }
 0x1bc   : > { %1969 = vst.msk [vmem:[#allocation3 + $0x7c] sm:$0xf] %vm1937_vm0, %v1904_v2 }
 0x1bd   : > { %1965 = vst.msk [vmem:[#allocation3 + $0x6c] sm:$0xf] %vm1937_vm0, %v1896_v39  ;;  %v2680_v39 = vrot.slane %v2678_v40, 4  ;;  %v2571_v40 = vld [vmem:[#allocation2 + $0xac] sm:$0xf] }
 0x1be   : > { %2765 = vrot.lane.b32.xlu0 %v2675_v15, %s8871_s11  ;;  %v2716_v15 = vrot.slane %v2569_v26, 5  ;;  %v2871_v26 = vld [vmem:[#allocation2 + $0x24] sm:$0xf] }
 0x1bf   : > { %v2682_v27 = vsel %vm9586_vm13, %v2680_v39, %v2681_v9 }
 0x1c0   : > { %v2409_v31 = vpop.permute.xlu0 %2408  ;;  %v2717_v62 = vsel %vm9586_vm13, %v2715_v57, %v2716_v15 }
 0x1c1   : > { %2502 = vst.msk [vmem:[#allocation3 + $0xc] sm:$0xf] %vm2498_vm1, %v2409_v31  ;;  %2745 = vrot.lane.b32.xlu2 %v2640_v24, %s8871_s11  ;;  %2755 = vrot.lane.b32.xlu1 %v2658_v20, %s8871_s11  ;;  %v8525_v31 = vrot.slane %v2561_v51, 9 }
 0x1c3   : > { %v2407_v41 = vpop.permute.xlu2 %2406  ;;  %v1902_v43 = vpop.permute.xlu1 %1901  ;;  %v2700_v48 = vsel %vm9586_vm13, %v8525_v31, %v2699_v16 }
 0x1c4   : > { %2501 = vst.msk [vmem:[#allocation3 + $0x8] sm:$0xf] %vm2498_vm1, %v2407_v41 }
 0x1c5   : > { %1968 = vst.msk [vmem:[#allocation3 + $0x78] sm:$0xf] %vm1937_vm0, %v1902_v43  ;;  %v2566_v43 = vld [vmem:[#allocation2 + $0x98] sm:$0x1]  ;;  %vm5792_vm0 = vcmask 191616  }
 0x1c6   : > { %2771 = vrot.lane.b32.xlu0 %v2686_v55, %s8871_s11  ;;  %v2727_v55 = vrot.slane %v2574_v8, 5  ;;  %v2709_v22 = vrot.slane %v2566_v43, 5  ;;  %v2877_v8 = vld [vmem:[#allocation2 + $0x48] sm:$0xf]  ;;  %v2875_v43 = vld [vmem:[#allocation2 + $0x3c] sm:$0xf] }
 0x1c8   : > { %v2415_v47 = vpop.permute.xlu0 %2414  ;;  %v2728_v59 = vsel %vm9586_vm13, %v8529_v12, %v2727_v55  ;;  %v2729_v63 = vrot.slane %v2727_v55, 4  ;;  %v2872_v12 = vld [vmem:[#allocation2 + $0x28] sm:$0xf]  ;;  %v2880_v55 = vld [vmem:[#allocation2 + $0x58] sm:$0xf] }
 0x1c9   : > { %2505 = vst.msk [vmem:[#allocation3 + $0x18] sm:$0xf] %vm2498_vm1, %v2415_v47  ;;  %2751 = vrot.lane.b32.xlu2 %v2651_v17, %s8871_s11  ;;  %2761 = vrot.lane.b32.xlu1 %v2668_v53, %s8871_s11  ;;  %v8524_v17 = vrot.slane %v2558_v23, 9  ;;  %v2708_v53 = vrot.slane %v2706_v45, 4  ;;  %v2720_v45 = vrot.slane %v2571_v40, 5 }
 0x1ca   : > { %v2879_v40 = vld [vmem:[#allocation2 + $0x54] sm:$0xf] }
 0x1cb   : > { %v2413_v50 = vpop.permute.xlu2 %2412  ;;  %v2405_v56 = vpop.permute.xlu1 %2404  ;;  %v2693_v18 = vsel %vm9586_vm13, %v8524_v17, %v2692_v28  ;;  %v2710_v30 = vsel %vm9586_vm13, %v2708_v53, %v2709_v22  ;;  %v2721_v3 = vsel %vm9586_vm13, %v8528_v14, %v2720_v45  ;;  %v2883_v17 = vld [vmem:[#allocation2 + $0x6c] sm:$0xf]  ;;  %v2886_v22 = vld [vmem:[#allocation2 + $0x7c] sm:$0xf] }
 0x1cc   : > { %2504 = vst.msk [vmem:[#allocation3 + $0x14] sm:$0xf] %vm2498_vm1, %v2413_v50  ;;  %v2878_v53 = vld [vmem:[#allocation2 + $0x4c] sm:$0xf] }
 0x1cd   : > { %2500 = vst.msk [vmem:[#allocation3 + $0x4] sm:$0xf] %vm2498_vm1, %v2405_v56  ;;  %v2701_v56 = vrot.slane %v2699_v16, 4 }
 0x1ce   : > { %2777 = vrot.lane.b32.xlu0 %v2696_v54, %s8871_s11  ;;  %v2737_v54 = vrot.slane %v2578_v34, 5 }
 0x1cf   : > { %v2703_v35 = vsel %vm9586_vm13, %v2701_v56, %v2702_v13  ;;  %v2884_v13 = vld [vmem:[#allocation2 + $0x70] sm:$0xf] }
 0x1d0   : > { %v2421_v44 = vpop.permute.xlu0 %2420  ;;  %v2738_v28 = vsel %vm9586_vm13, %v2736_v7, %v2737_v54  ;;  %v2876_v7 = vld [vmem:[#allocation2 + $0x40] sm:$0xf] }
 0x1d1   : > { %2508 = vst.msk [vmem:[#allocation3 + $0x24] sm:$0xf] %vm2498_vm1, %v2421_v44  ;;  %2757 = vrot.lane.b32.xlu2 %v2661_v36, %s8871_s11  ;;  %2767 = vrot.lane.b32.xlu1 %v2679_v49, %s8871_s11 }
 0x1d3   : > { %v2419_v11 = vpop.permute.xlu2 %2418  ;;  %v2411_v4 = vpop.permute.xlu1 %2410 }
 0x1d4   : > { %2507 = vst.msk [vmem:[#allocation3 + $0x20] sm:$0xf] %vm2498_vm1, %v2419_v11  ;;  %v8527_v11 = vrot.slane %v2567_v46, 9 }
 0x1d5   : > { %2503 = vst.msk [vmem:[#allocation3 + $0x10] sm:$0xf] %vm2498_vm1, %v2411_v4 }
 0x1d6   : > { %2783 = vrot.lane.b32.xlu0 %v2707_v58, %s8871_s11  ;;  %v2575_v58 = vld [vmem:[#allocation2 + $0xbc] sm:$0x1]  ;;  %v2714_v57 = vsel %vm9586_vm13, %v8527_v11, %v2713_v37 }
 0x1d7   : > { %v2730_v4 = vrot.slane %v2575_v58, 5  ;;  %v2895_v58 = vld [vmem:[#allocation2 + $0xb4] sm:$0xf] }
 0x1d8   : > { %v2427_v2 = vpop.permute.xlu0 %2426 }
 0x1d9   : > { %2511 = vst.msk [vmem:[#allocation3 + $0x30] sm:$0xf] %vm2498_vm1, %v2427_v2  ;;  %2763 = vrot.lane.b32.xlu2 %v2672_v6, %s8871_s11  ;;  %2773 = vrot.lane.b32.xlu1 %v2689_v38, %s8871_s11  ;;  %v2572_v2 = vld [vmem:[#allocation2 + $0xb0] sm:$0x1]  ;;  %v2731_v32 = vsel %vm9586_vm13, %v2729_v63, %v2730_v4  ;;  %v2722_v38 = vrot.slane %v2720_v45, 4 }
 0x1da   : > { %v2723_v51 = vrot.slane %v2572_v2, 5  ;;  %v2882_v45 = vld [vmem:[#allocation2 + $0x64] sm:$0xf]  ;;  %v2885_v4 = vld [vmem:[#allocation2 + $0x78] sm:$0xf] }
 0x1db   : > { %v2425_v24 = vpop.permute.xlu2 %2424  ;;  %v2417_v20 = vpop.permute.xlu1 %2416  ;;  %v2890_v2 = vld [vmem:[#allocation2 + $0x94] sm:$0xf] }
 0x1dc   : > { %2510 = vst.msk [vmem:[#allocation3 + $0x2c] sm:$0xf] %vm2498_vm1, %v2425_v24  ;;  %v2724_v37 = vsel %vm9586_vm13, %v2722_v38, %v2723_v51  ;;  %v2869_v24 = vld [vmem:[#allocation2 + $0x18] sm:$0xf]  ;;  %v2898_v51 = vld [vmem:[#allocation2 + $0xc4] sm:$0xf] }
 0x1dd   : > { %2506 = vst.msk [vmem:[#allocation3 + $0x1c] sm:$0xf] %vm2498_vm1, %v2417_v20 }
 0x1de   : > { %2789 = vrot.lane.b32.xlu0 %v2717_v62, %s8871_s11  ;;  %v2576_v62 = vld [vmem:[#allocation2 + $0xc0] sm:$0xe] }
 0x1df   : > { %v8530_v42 = vrot.slane %v2576_v62, 9 }
 0x1e0   : > { %v2433_v41 = vpop.permute.xlu0 %2432 }
 0x1e1   : > { %2514 = vst.msk [vmem:[#allocation3 + $0x3c] sm:$0xf] %vm2498_vm1, %v2433_v41  ;;  %2769 = vrot.lane.b32.xlu2 %v2682_v27, %s8871_s11  ;;  %2779 = vrot.lane.b32.xlu1 %v2700_v48, %s8871_s11  ;;  %v2735_v20 = vsel %vm9586_vm13, %v8530_v42, %v2734_v25 }
 0x1e3   : > { %v2431_v47 = vpop.permute.xlu2 %2430  ;;  %v2423_v5 = vpop.permute.xlu1 %2422 }
 0x1e4   : > { %2513 = vst.msk [vmem:[#allocation3 + $0x38] sm:$0xf] %vm2498_vm1, %v2431_v47  ;;  %v2873_v47 = vld [vmem:[#allocation2 + $0x30] sm:$0xf] }
 0x1e5   : > { %2509 = vst.msk [vmem:[#allocation3 + $0x28] sm:$0xf] %vm2498_vm1, %v2423_v5 }
 0x1e6   : > { %2795 = vrot.lane.b32.xlu0 %v2728_v59, %s8871_s11 }
 0x1e8   : > { %v2439_v50 = vpop.permute.xlu0 %2438 }
 0x1e9   : > { %2517 = vst.msk [vmem:[#allocation3 + $0x48] sm:$0xf] %vm2498_vm1, %v2439_v50  ;;  %2775 = vrot.lane.b32.xlu2 %v2693_v18, %s8871_s11  ;;  %2785 = vrot.lane.b32.xlu1 %v2710_v30, %s8871_s11  ;;  %v2881_v50 = vld [vmem:[#allocation2 + $0x60] sm:$0xf] }
 0x1eb   : > { %v2437_v36 = vpop.permute.xlu2 %2436  ;;  %v2429_v44 = vpop.permute.xlu1 %2428 }
 0x1ec   : > { %2516 = vst.msk [vmem:[#allocation3 + $0x44] sm:$0xf] %vm2498_vm1, %v2437_v36 }
 0x1ed   : > { %2512 = vst.msk [vmem:[#allocation3 + $0x34] sm:$0xf] %vm2498_vm1, %v2429_v44  ;;  %v3062_v44 = vld [vmem:[#allocation2 + $0x18] sm:$0xf] }
 0x1ee   : > { %2801 = vrot.lane.b32.xlu0 %v2738_v28, %s8871_s11  ;;  %v2892_v28 = vld [vmem:[#allocation2 + $0xa0] sm:$0xf]  ;;  %v3111_v46 = vshrl.u32 %v3062_v44, 16 }
 0x1f0   : > { %v2445_v49 = vpop.permute.xlu0 %2444 }
 0x1f1   : > { %2520 = vst.msk [vmem:[#allocation3 + $0x54] sm:$0xf] %vm2498_vm1, %v2445_v49  ;;  %2781 = vrot.lane.b32.xlu2 %v2703_v35, %s8871_s11  ;;  %2791 = vrot.lane.b32.xlu1 %v2721_v3, %s8871_s11  ;;  %v2887_v49 = vld [vmem:[#allocation2 + $0x84] sm:$0xf]  ;;  %v3114_v3 = vshll.u32 %v3062_v44, 16 }
 0x1f2   : > { %v3076_v44 = vld [vmem:[#allocation2 + $0x50] sm:$0x1] }
 0x1f3   : > { %v2443_v33 = vpop.permute.xlu2 %2442  ;;  %v2435_v6 = vpop.permute.xlu1 %2434  ;;  %v3116_v63 = vrot.slane %v3114_v3, 5  ;;  %v3080_v3 = vld [vmem:[#allocation2 + $0x60] sm:$0xf] }
 0x1f4   : > { %2519 = vst.msk [vmem:[#allocation3 + $0x50] sm:$0xf] %vm2498_vm1, %v2443_v33  ;;  %v3113_v33 = vrot.slane %v3111_v46, 4 }
 0x1f5   : > { %2515 = vst.msk [vmem:[#allocation3 + $0x40] sm:$0xf] %vm2498_vm1, %v2435_v6  ;;  %v3063_v6 = vld [vmem:[#allocation2 + $0x1c] sm:$0xf] }
 0x1f6   : > { %2937 = vrot.lane.b32.xlu0 %v2871_v26, %s8872_s12  ;;  %v3120_v38 = vshll.u32 %v3063_v6, 16 }
 0x1f8   : > { %v2451_v15 = vpop.permute.xlu0 %2450  ;;  %v10358_v62 = vrot.slane %v3120_v38, 5  ;;  %v3065_v38 = vld [vmem:[#allocation2 + $0x24] sm:$0xf] }
 0x1f9   : > { %2523 = vst.msk [vmem:[#allocation3 + $0x60] sm:$0xf] %vm2498_vm1, %v2451_v15  ;;  %2787 = vrot.lane.b32.xlu2 %v2714_v57, %s8871_s11  ;;  %2797 = vrot.lane.b32.xlu1 %v2731_v32, %s8871_s11  ;;  %v3066_v15 = vld [vmem:[#allocation2 + $0x28] sm:$0xf]  ;;  %v3117_v32 = vor.u32 %v3116_v63, %v3113_v33 }
 0x1fb   : > { %v2449_v39 = vpop.permute.xlu2 %2448  ;;  %v2441_v21 = vpop.permute.xlu1 %2440 }
 0x1fc   : > { %2522 = vst.msk [vmem:[#allocation3 + $0x5c] sm:$0xf] %vm2498_vm1, %v2449_v39  ;;  %v3148_v39 = vshrl.u32 %v3066_v15, 16 }
 0x1fd   : > { %2518 = vst.msk [vmem:[#allocation3 + $0x4c] sm:$0xf] %vm2498_vm1, %v2441_v21 }
 0x1fe   : > { %2943 = vrot.lane.b32.xlu0 %v2874_v19, %s8872_s12  ;;  %v3144_v19 = vshll.u32 %v3066_v15, 16  ;;  %v3255_v15 = vshrl.u32 %v3080_v3, 16 }
 0x200   : > { %v2457_v9 = vpop.permute.xlu0 %2456  ;;  %v10361_v42 = vrot.slane %v3144_v19, 5 }
 0x201   : > { %2526 = vst.msk [vmem:[#allocation3 + $0x6c] sm:$0xf] %vm2498_vm1, %v2457_v9  ;;  %2793 = vrot.lane.b32.xlu2 %v2724_v37, %s8871_s11  ;;  %2933 = vrot.lane.b32.xlu1 %v2869_v24, %s8872_s12  ;;  %v3118_v9 = vrot.slane %v3117_v32, 4  ;;  %v2888_v24 = vld [vmem:[#allocation2 + $0x88] sm:$0xf] }
 0x203   : > { %v2455_v31 = vpop.permute.xlu2 %2454  ;;  %v2447_v16 = vpop.permute.xlu1 %2446 }
 0x204   : > { %2525 = vst.msk [vmem:[#allocation3 + $0x68] sm:$0xf] %vm2498_vm1, %v2455_v31 }
 0x205   : > { %2521 = vst.msk [vmem:[#allocation3 + $0x58] sm:$0xf] %vm2498_vm1, %v2447_v16  ;;  %v3067_v16 = vld [vmem:[#allocation2 + $0x2c] sm:$0x1] }
 0x206   : > { %2949 = vrot.lane.b32.xlu0 %v2877_v8, %s8872_s12  ;;  %v3150_v8 = vrot.slane %v3148_v39, 4 }
 0x208   : > { %v2463_v27 = vpop.permute.xlu0 %2462 }
 0x209   : > { %2529 = vst.msk [vmem:[#allocation3 + $0x78] sm:$0xf] %vm2498_vm1, %v2463_v27  ;;  %2799 = vrot.lane.b32.xlu2 %v2735_v20, %s8871_s11  ;;  %2939 = vrot.lane.b32.xlu1 %v2872_v12, %s8872_s12  ;;  %v3071_v20 = vld [vmem:[#allocation2 + $0x3c] sm:$0xf]  ;;  %v2893_v27 = vld [vmem:[#allocation2 + $0xa8] sm:$0xf]  ;;  %v3123_v12 = vsel %vm8955_vm3, %v3118_v9, %v10358_v62 }
 0x20b   : > { %v2461_v41 = vpop.permute.xlu2 %2460  ;;  %v2453_v23 = vpop.permute.xlu1 %2452 }
 0x20c   : > { %2528 = vst.msk [vmem:[#allocation3 + $0x74] sm:$0xf] %vm2498_vm1, %v2461_v41  ;;  %v3154_v41 = vshll.u32 %v3067_v16, 16  ;;  %v3135_v16 = vshrl.u32 %v3065_v38, 16 }
 0x20d   : > { %2524 = vst.msk [vmem:[#allocation3 + $0x64] sm:$0xf] %vm2498_vm1, %v2453_v23  ;;  %v3183_v23 = vshrl.u32 %v3071_v20, 16 }
 0x20e   : > { %2955 = vrot.lane.b32.xlu0 %v2880_v55, %s8872_s12  ;;  %v3151_v55 = vor.u32 %v3150_v8, %v10361_v42 }
 0x210   : > { %v2742_v48 = vpop.permute.xlu0 %2741 }
 0x211   : > { %2837 = vst.msk [vmem:[#allocation3 + $0x4] sm:$0xf] %vm2835_vm2, %v2742_v48  ;;  %2935 = vrot.lane.b32.xlu2 %v2870_v1, %s8872_s12  ;;  %2945 = vrot.lane.b32.xlu1 %v2875_v43, %s8872_s12  ;;  %v3186_v1 = vshll.u32 %v3071_v20, 16  ;;  %v3138_v20 = vshll.u32 %v3065_v38, 16 }
 0x213   : > { %v2740_v59 = vpop.permute.xlu2 %2739  ;;  %v2459_v25 = vpop.permute.xlu1 %2458 }
 0x214   : > { %2836 = vst.msk [vmem:[#allocation3] sm:$0xf] %vm2835_vm2, %v2740_v59  ;;  %v3075_v59 = vld [vmem:[#allocation2 + $0x4c] sm:$0xf] }
 0x215   : > { %2527 = vst.msk [vmem:[#allocation3 + $0x70] sm:$0xf] %vm2498_vm1, %v2459_v25  ;;  %v3152_v25 = vrot.slane %v3151_v55, 4  ;;  %v10399_v55 = vld [vmem:[#allocation2 + $0x64] sm:$0xf] }
 0x216   : > { %2961 = vrot.lane.b32.xlu0 %v2883_v17, %s8872_s12  ;;  %v2891_v17 = vld [vmem:[#allocation2 + $0x9c] sm:$0xf] }
 0x218   : > { %v2748_v34 = vpop.permute.xlu0 %2747 }
 0x219   : > { %2840 = vst.msk [vmem:[#allocation3 + $0x10] sm:$0xf] %vm2835_vm2, %v2748_v34  ;;  %2941 = vrot.lane.b32.xlu2 %v2873_v47, %s8872_s12  ;;  %2951 = vrot.lane.b32.xlu1 %v2878_v53, %s8872_s12  ;;  %v3156_v47 = vrot.slane %v3154_v41, 5  ;;  %v3185_v34 = vrot.slane %v3183_v23, 4  ;;  %v3188_v53 = vrot.slane %v3186_v1, 5 }
 0x21a   : > { %v3084_v41 = vld [vmem:[#allocation2 + $0x70] sm:$0xf] }
 0x21b   : > { %v2746_v5 = vpop.permute.xlu2 %2745  ;;  %v2465_v18 = vpop.permute.xlu1 %2464 }
 0x21c   : > { %2839 = vst.msk [vmem:[#allocation3 + $0xc] sm:$0xf] %vm2835_vm2, %v2746_v5 }
 0x21d   : > { %2530 = vst.msk [vmem:[#allocation3 + $0x7c] sm:$0xf] %vm2498_vm1, %v2465_v18  ;;  %v10373_v18 = vld [vmem:[#allocation2 + $0x40] sm:$0xf]  ;;  %vm6546_vm1 = vcmask 322816  }
 0x21e   : > { %2967 = vrot.lane.b32.xlu0 %v2886_v22, %s8872_s12  ;;  %v3124_v22 = vshrl.u32 %v3063_v6, 16  ;;  %v3196_v23 = vshrl.u32 %v10373_v18, 16 }
 0x220   : > { %v2754_v54 = vpop.permute.xlu0 %2753 }
 0x221   : > { %2843 = vst.msk [vmem:[#allocation3 + $0x1c] sm:$0xf] %vm2835_vm2, %v2754_v54  ;;  %2947 = vrot.lane.b32.xlu2 %v2876_v7, %s8872_s12  ;;  %2957 = vrot.lane.b32.xlu1 %v2881_v50, %s8872_s12  ;;  %v2896_v7 = vld [vmem:[#allocation2 + $0xb8] sm:$0xf]  ;;  %v3216_v54 = vshll.u32 %v3075_v59, 16  ;;  %v3220_v50 = vshrl.u32 %v3075_v59, 16 }
 0x223   : > { %v2752_v30 = vpop.permute.xlu2 %2751  ;;  %v2744_v52 = vpop.permute.xlu1 %2743 }
 0x224   : > { %2842 = vst.msk [vmem:[#allocation3 + $0x18] sm:$0xf] %vm2835_vm2, %v2752_v30  ;;  %v3189_v30 = vor.u32 %v3188_v53, %v3185_v34  ;;  %v3292_v34 = vshrl.u32 %v3084_v41, 16 }
 0x225   : > { %2838 = vst.msk [vmem:[#allocation3 + $0x8] sm:$0xf] %vm2835_vm2, %v2744_v52  ;;  %v3192_v52 = vshll.u32 %v10373_v18, 16 }
 0x226   : > { %2973 = vrot.lane.b32.xlu0 %v2889_v29, %s8872_s12  ;;  %v3157_v29 = vsel %vm8955_vm3, %v3152_v25, %v3156_v47  ;;  %v3264_v25 = vshll.u32 %v10399_v55, 16  ;;  %v3288_v47 = vshll.u32 %v3084_v41, 16 }
 0x227   : > { %v10386_v46 = vrot.slane %v3192_v52, 5  ;;  %v3073_v52 = vld [vmem:[#allocation2 + $0x44] sm:$0x1] }
 0x228   : > { %v2760_v56 = vpop.permute.xlu0 %2759 }
 0x229   : > { %2846 = vst.msk [vmem:[#allocation3 + $0x28] sm:$0xf] %vm2835_vm2, %v2760_v56  ;;  %2953 = vrot.lane.b32.xlu2 %v2879_v40, %s8872_s12  ;;  %2963 = vrot.lane.b32.xlu1 %v2884_v13, %s8872_s12  ;;  %v3126_v56 = vrot.slane %v3124_v22, 4  ;;  %v3064_v13 = vld [vmem:[#allocation2 + $0x20] sm:$0x1]  ;;  %v3137_v22 = vrot.slane %v3135_v16, 4 }
 0x22a   : > { %v3130_v33 = vshll.u32 %v3064_v13, 16  ;;  %v10412_v13 = vrot.slane %v3264_v25, 5 }
 0x22b   : > { %v2758_v36 = vpop.permute.xlu2 %2757  ;;  %v2750_v14 = vpop.permute.xlu1 %2749 }
 0x22c   : > { %2845 = vst.msk [vmem:[#allocation3 + $0x24] sm:$0xf] %vm2835_vm2, %v2758_v36  ;;  %v3222_v36 = vrot.slane %v3220_v50, 4  ;;  %v3132_v39 = vrot.slane %v3130_v33, 5  ;;  %v2900_v50 = vld [vmem:[#allocation2 + $0xd0] sm:$0xf] }
 0x22d   : > { %2841 = vst.msk [vmem:[#allocation3 + $0x14] sm:$0xf] %vm2835_vm2, %v2750_v14 }
 0x22e   : > { %2979 = vrot.lane.b32.xlu0 %v2892_v28, %s8872_s12  ;;  %v10382_v28 = vrot.slane %v3216_v54, 5  ;;  %v3198_v54 = vrot.slane %v3196_v23, 4 }
 0x230   : > { %v2766_v35 = vpop.permute.xlu0 %2765  ;;  %v3223_v63 = vor.u32 %v3222_v36, %v10382_v28  ;;  %v10414_v36 = vrot.slane %v3288_v47, 5 }
 0x231   : > { %2849 = vst.msk [vmem:[#allocation3 + $0x34] sm:$0xf] %vm2835_vm2, %v2766_v35  ;;  %2959 = vrot.lane.b32.xlu2 %v2882_v45, %s8872_s12  ;;  %2969 = vrot.lane.b32.xlu1 %v2887_v49, %s8872_s12  ;;  %v2894_v45 = vld [vmem:[#allocation2 + $0xac] sm:$0xf]  ;;  %v3068_v35 = vld [vmem:[#allocation2 + $0x30] sm:$0xf] }
 0x232   : > { %v3190_v49 = vrot.slane %v3189_v30, 4  ;;  %v3159_v6 = vshrl.u32 %v3068_v35, 16 }
 0x233   : > { %v2764_v11 = vpop.permute.xlu2 %2763  ;;  %v2756_v26 = vpop.permute.xlu1 %2755 }
 0x234   : > { %2848 = vst.msk [vmem:[#allocation3 + $0x30] sm:$0xf] %vm2835_vm2, %v2764_v11  ;;  %v3195_v32 = vsel %vm8955_vm3, %v3190_v49, %v10386_v46  ;;  %v3089_v49 = vld [vmem:[#allocation2 + $0x84] sm:$0xf] }
 0x235   : > { %2844 = vst.msk [vmem:[#allocation3 + $0x20] sm:$0xf] %vm2835_vm2, %v2756_v26  ;;  %v3127_v26 = vor.u32 %v3126_v56, %v10358_v62  ;;  %v3161_v62 = vrot.slane %v3159_v6, 4  ;;  %v3070_v6 = vld [vmem:[#allocation2 + $0x38] sm:$0x1] }
 0x236   : > { %2985 = vrot.lane.b32.xlu0 %v2895_v58, %s8872_s12  ;;  %v2899_v58 = vld [vmem:[#allocation2 + $0xcc] sm:$0xf] }
 0x237   : > { %v3128_v19 = vrot.slane %v3127_v26, 4 }
 0x238   : > { %v2772_v57 = vpop.permute.xlu0 %2771 }
 0x239   : > { %2852 = vst.msk [vmem:[#allocation3 + $0x40] sm:$0xf] %vm2835_vm2, %v2772_v57  ;;  %2965 = vrot.lane.b32.xlu2 %v2885_v4, %s8872_s12  ;;  %2975 = vrot.lane.b32.xlu1 %v2890_v2, %s8872_s12  ;;  %v3226_v4 = vshll.u32 %v3076_v44, 16  ;;  %v3162_v57 = vshll.u32 %v3068_v35, 16  ;;  %v3258_v2 = vshll.u32 %v3080_v3, 16 }
 0x23a   : > { %v3085_v35 = vld [vmem:[#allocation2 + $0x74] sm:$0x1] }
 0x23b   : > { %v2770_v21 = vpop.permute.xlu2 %2769  ;;  %v2762_v37 = vpop.permute.xlu1 %2761  ;;  %v3228_v9 = vrot.slane %v3226_v4, 5 }
 0x23c   : > { %2851 = vst.msk [vmem:[#allocation3 + $0x3c] sm:$0xf] %vm2835_vm2, %v2770_v21  ;;  %v3069_v21 = vld [vmem:[#allocation2 + $0x34] sm:$0xf] }
 0x23d   : > { %2847 = vst.msk [vmem:[#allocation3 + $0x2c] sm:$0xf] %vm2835_vm2, %v2762_v37  ;;  %v3224_v37 = vrot.slane %v3223_v63, 4  ;;  %v3172_v30 = vshrl.u32 %v3069_v21, 16 }
 0x23e   : > { %2991 = vrot.lane.b32.xlu0 %v2898_v51, %s8872_s12 }
 0x23f   : > { %v3229_v53 = vsel %vm8955_vm3, %v3224_v37, %v3228_v9  ;;  %v3174_v33 = vrot.slane %v3172_v30, 4  ;;  %v3178_v9 = vshll.u32 %v3070_v6, 16 }
 0x240   : > { %v2778_v31 = vpop.permute.xlu0 %2777 }
 0x241   : > { %2855 = vst.msk [vmem:[#allocation3 + $0x4c] sm:$0xf] %vm2835_vm2, %v2778_v31  ;;  %2971 = vrot.lane.b32.xlu2 %v2888_v24, %s8872_s12  ;;  %2981 = vrot.lane.b32.xlu1 %v2893_v27, %s8872_s12  ;;  %v3164_v24 = vrot.slane %v3162_v57, 5  ;;  %v2897_v31 = vld [vmem:[#allocation2 + $0xc0] sm:$0xf]  ;;  %v3257_v27 = vrot.slane %v3255_v15, 4 }
 0x242   : > { %v3298_v15 = vshll.u32 %v3085_v35, 16 }
 0x243   : > { %v2776_v48 = vpop.permute.xlu2 %2775  ;;  %v2768_v43 = vpop.permute.xlu1 %2767 }
 0x244   : > { %2854 = vst.msk [vmem:[#allocation3 + $0x48] sm:$0xf] %vm2835_vm2, %v2776_v48  ;;  %v3168_v48 = vshll.u32 %v3069_v21, 16  ;;  %v3074_v21 = vld [vmem:[#allocation2 + $0x48] sm:$0xf]  ;;  %v3300_v16 = vrot.slane %v3298_v15, 5 }
 0x245   : > { %2850 = vst.msk [vmem:[#allocation3 + $0x38] sm:$0xf] %vm2835_vm2, %v2768_v43  ;;  %v3133_v43 = vsel %vm8955_vm3, %v3128_v19, %v3132_v39  ;;  %v3207_v23 = vshrl.u32 %v3074_v21, 16 }
 0x246   : > { %3494 = vrot.lane.b32.xlu0 %v3123_v12, %s8873_s13  ;;  %v3260_v12 = vrot.slane %v3258_v2, 5  ;;  %v3327_v2 = vshrl.u32 %v3089_v49, 16 }
 0x248   : > { %v2784_v5 = vpop.permute.xlu0 %2783  ;;  %v3261_v59 = vor.u32 %v3260_v12, %v3257_v27  ;;  %v3329_v27 = vrot.slane %v3327_v2, 4 }
 0x249   : > { %2858 = vst.msk [vmem:[#allocation3 + $0x58] sm:$0xf] %vm2835_vm2, %v2784_v5  ;;  %2977 = vrot.lane.b32.xlu2 %v2891_v17, %s8872_s12  ;;  %2987 = vrot.lane.b32.xlu1 %v2896_v7, %s8872_s12  ;;  %v3165_v17 = vor.u32 %v3164_v24, %v3161_v62  ;;  %v3140_v5 = vrot.slane %v3138_v20, 5  ;;  %v3170_v7 = vrot.slane %v3168_v48, 5  ;;  %v3078_v20 = vld [vmem:[#allocation2 + $0x58] sm:$0xf] }
 0x24a   : > { %v3262_v56 = vrot.slane %v3261_v59, 4  ;;  %v10433_v48 = vld [vmem:[#allocation2 + $0x88] sm:$0xf]  ;;  %v3093_v59 = vld [vmem:[#allocation2 + $0x94] sm:$0xf] }
 0x24b   : > { %v2782_v40 = vpop.permute.xlu2 %2781  ;;  %v2774_v14 = vpop.permute.xlu1 %2773  ;;  %v3141_v44 = vor.u32 %v3140_v5, %v3137_v22  ;;  %v3175_v37 = vor.u32 %v3174_v33, %v3170_v7  ;;  %v3180_v22 = vrot.slane %v3178_v9, 5  ;;  %v3098_v33 = vld [vmem:[#allocation2 + $0xa8] sm:$0xf] }
 0x24c   : > { %2857 = vst.msk [vmem:[#allocation3 + $0x54] sm:$0xf] %vm2835_vm2, %v2782_v40 }
 0x24d   : > { %2853 = vst.msk [vmem:[#allocation3 + $0x44] sm:$0xf] %vm2835_vm2, %v2774_v14  ;;  %v3294_v14 = vrot.slane %v3292_v34, 4  ;;  %v3142_v38 = vrot.slane %v3141_v44, 4  ;;  %v3176_v47 = vrot.slane %v3175_v37, 4 }
 0x24e   : > { %3500 = vrot.lane.b32.xlu0 %v3157_v29, %s8873_s13  ;;  %v3166_v29 = vrot.slane %v3165_v17, 4 }
 0x24f   : > { %v3295_v57 = vor.u32 %v3294_v14, %v10414_v36  ;;  %v3147_v41 = vsel %vm8955_vm3, %v3142_v38, %v10361_v42 }
 0x250   : > { %v2790_v11 = vpop.permute.xlu0 %2789  ;;  %v3171_v26 = vsel %vm8955_vm3, %v3166_v29, %v3170_v7 }
 0x251   : > { %2861 = vst.msk [vmem:[#allocation3 + $0x64] sm:$0xf] %vm2835_vm2, %v2790_v11  ;;  %2983 = vrot.lane.b32.xlu2 %v2894_v45, %s8872_s12  ;;  %2993 = vrot.lane.b32.xlu1 %v2899_v58, %s8872_s12  ;;  %v3077_v45 = vld [vmem:[#allocation2 + $0x54] sm:$0xf]  ;;  %v3199_v58 = vor.u32 %v3198_v54, %v10386_v46  ;;  %v3202_v11 = vshll.u32 %v3073_v52, 16  ;;  %v3267_v46 = vsel %vm8955_vm3, %v3262_v56, %v10412_v13  ;;  %v3360_v54 = vshll.u32 %v3093_v59, 16 }
 0x252   : > { %v3231_v63 = vshrl.u32 %v3077_v45, 16  ;;  %v3234_v4 = vshll.u32 %v3077_v45, 16  ;;  %v3082_v56 = vld [vmem:[#allocation2 + $0x68] sm:$0x1]  ;;  %v3244_v45 = vshrl.u32 %v3078_v20, 16 }
 0x253   : > { %v2788_v51 = vpop.permute.xlu2 %2787  ;;  %v2780_v8 = vpop.permute.xlu1 %2779  ;;  %v3200_v19 = vrot.slane %v3199_v58, 4  ;;  %v3204_v39 = vrot.slane %v3202_v11, 5  ;;  %v10453_v11 = vrot.slane %v3360_v54, 5  ;;  %v3274_v6 = vshll.u32 %v3082_v56, 16 }
 0x254   : > { %2860 = vst.msk [vmem:[#allocation3 + $0x60] sm:$0xf] %vm2835_vm2, %v2788_v51  ;;  %v3233_v62 = vrot.slane %v3231_v63, 4  ;;  %v3236_v24 = vrot.slane %v3234_v4, 5  ;;  %v3246_v38 = vrot.slane %v3244_v45, 4 }
 0x255   : > { %2856 = vst.msk [vmem:[#allocation3 + $0x50] sm:$0xf] %vm2835_vm2, %v2780_v8  ;;  %v3205_v25 = vsel %vm8955_vm3, %v3200_v19, %v3204_v39  ;;  %v3402_v19 = vshll.u32 %v3098_v33, 16 }
 0x256   : > { %3506 = vrot.lane.b32.xlu0 %v3195_v32, %s8873_s13  ;;  %v3330_v32 = vshll.u32 %v3089_v49, 16  ;;  %v3237_v34 = vor.u32 %v3236_v24, %v3233_v62  ;;  %v3086_v49 = vld [vmem:[#allocation2 + $0x78] sm:$0xf] }
 0x257   : > { %v3303_v2 = vshrl.u32 %v3086_v49, 16 }
 0x258   : > { %v2796_v1 = vpop.permute.xlu0 %2795  ;;  %v3332_v12 = vrot.slane %v3330_v32, 5  ;;  %v3238_v52 = vrot.slane %v3237_v34, 4  ;;  %v3306_v32 = vshll.u32 %v3086_v49, 16  ;;  %v10475_v34 = vld [vmem:[#allocation2 + $0xac] sm:$0xf] }
 0x259   : > { %2864 = vst.msk [vmem:[#allocation3 + $0x70] sm:$0xf] %vm2835_vm2, %v2796_v1  ;;  %2989 = vrot.lane.b32.xlu2 %v2897_v31, %s8872_s12  ;;  %3496 = vrot.lane.b32.xlu1 %v3133_v43, %s8873_s13  ;;  %v3296_v31 = vrot.slane %v3295_v57, 4  ;;  %v3210_v1 = vshll.u32 %v3074_v21, 16  ;;  %v3268_v43 = vshrl.u32 %v10399_v55, 16  ;;  %v3209_v55 = vrot.slane %v3207_v23, 4 }
 0x25a   : > { %v3333_v5 = vor.u32 %v3332_v12, %v3329_v27  ;;  %v3094_v57 = vld [vmem:[#allocation2 + $0x98] sm:$0x1]  ;;  %v3079_v21 = vld [vmem:[#allocation2 + $0x5c] sm:$0x1] }
 0x25b   : > { %v2794_v18 = vpop.permute.xlu2 %2793  ;;  %v2786_v40 = vpop.permute.xlu1 %2785  ;;  %v3301_v42 = vsel %vm8955_vm3, %v3296_v31, %v3300_v16  ;;  %v3212_v7 = vrot.slane %v3210_v1, 5  ;;  %v3270_v30 = vrot.slane %v3268_v43, 4  ;;  %v3370_v9 = vshll.u32 %v3094_v57, 16  ;;  %v10466_v31 = vld [vmem:[#allocation2 + $0x7c] sm:$0xf] }
 0x25c   : > { %2863 = vst.msk [vmem:[#allocation3 + $0x6c] sm:$0xf] %vm2835_vm2, %v2794_v18  ;;  %v3336_v18 = vshll.u32 %v10433_v48, 16  ;;  %v3334_v44 = vrot.slane %v3333_v5, 4  ;;  %v3305_v16 = vrot.slane %v3303_v2, 4  ;;  %v3250_v1 = vshll.u32 %v3079_v21, 16 }
 0x25d   : > { %2859 = vst.msk [vmem:[#allocation3 + $0x5c] sm:$0xf] %vm2835_vm2, %v2786_v40  ;;  %v3213_v58 = vor.u32 %v3212_v7, %v3209_v55  ;;  %v3271_v4 = vor.u32 %v3270_v30, %v10412_v13  ;;  %v3102_v5 = vld [vmem:[#allocation2 + $0xb8] sm:$0xf] }
 0x25e   : > { %3512 = vrot.lane.b32.xlu0 %v3229_v53, %s8873_s13  ;;  %v3240_v53 = vshll.u32 %v3078_v20, 16  ;;  %v10448_v35 = vrot.slane %v3336_v18, 5  ;;  %v3308_v20 = vrot.slane %v3306_v32, 5  ;;  %v3252_v30 = vrot.slane %v3250_v1, 5  ;;  %v3103_v32 = vld [vmem:[#allocation2 + $0xbc] sm:$0x1] }
 0x25f   : > { %v3214_v39 = vrot.slane %v3213_v58, 4  ;;  %v3272_v24 = vrot.slane %v3271_v4, 4  ;;  %v3091_v4 = vld [vmem:[#allocation2 + $0x8c] sm:$0x1] }
 0x260   : > { %v2802_v3 = vpop.permute.xlu0 %2801  ;;  %v10445_v40 = vrot.slane %v3240_v53, 5  ;;  %v3339_v13 = vsel %vm8955_vm3, %v3334_v44, %v10448_v35  ;;  %v3340_v53 = vshrl.u32 %v10433_v48, 16  ;;  %v3309_v55 = vor.u32 %v3308_v20, %v3305_v16 }
 0x261   : > { %2867 = vst.msk [vmem:[#allocation3 + $0x7c] sm:$0xf] %vm2835_vm2, %v2802_v3  ;;  %2995 = vrot.lane.b32.xlu2 %v2900_v50, %s8872_s12  ;;  %3502 = vrot.lane.b32.xlu1 %v3171_v26, %s8873_s13  ;;  %v3364_v50 = vshrl.u32 %v3093_v59, 16  ;;  %v3181_v3 = vsel %vm8955_vm3, %v3176_v47, %v3180_v22  ;;  %v3219_v59 = vsel %vm8955_vm3, %v3214_v39, %v10382_v28  ;;  %v3372_v47 = vrot.slane %v3370_v9, 5  ;;  %v3088_v9 = vld [vmem:[#allocation2 + $0x80] sm:$0x1] }
 0x262   : > { %v3243_v15 = vsel %vm8955_vm3, %v3238_v52, %v10445_v40  ;;  %v3247_v23 = vor.u32 %v3246_v38, %v10445_v40  ;;  %v3432_v52 = vshll.u32 %v3102_v5, 16  ;;  %v3436_v40 = vshrl.u32 %v3102_v5, 16 }
 0x263   : > { %v2800_v51 = vpop.permute.xlu2 %2799  ;;  %v2792_v8 = vpop.permute.xlu1 %2791  ;;  %v3366_v26 = vrot.slane %v3364_v50, 4  ;;  %v3310_v45 = vrot.slane %v3309_v55, 4  ;;  %v3342_v49 = vrot.slane %v3340_v53, 4  ;;  %v3346_v21 = vshll.u32 %v3091_v4, 16 }
 0x264   : > { %2866 = vst.msk [vmem:[#allocation3 + $0x78] sm:$0xf] %vm2835_vm2, %v2800_v51  ;;  %v3399_v51 = vshrl.u32 %v3098_v33, 16  ;;  %v3248_v28 = vrot.slane %v3247_v23, 4  ;;  %v10497_v57 = vrot.slane %v3432_v52, 5 }
 0x265   : > { %2862 = vst.msk [vmem:[#allocation3 + $0x68] sm:$0xf] %vm2835_vm2, %v2792_v8  ;;  %v3367_v37 = vor.u32 %v3366_v26, %v10453_v11  ;;  %v3276_v8 = vrot.slane %v3274_v6, 5  ;;  %v3316_v26 = vshrl.u32 %v10466_v31, 16  ;;  %v3348_v1 = vrot.slane %v3346_v21, 5 }
 0x266   : > { %3518 = vrot.lane.b32.xlu0 %v3267_v46, %s8873_s13  ;;  %v3083_v46 = vld [vmem:[#allocation2 + $0x6c] sm:$0xf]  ;;  %v3401_v43 = vrot.slane %v3399_v51, 4  ;;  %v3253_v6 = vsel %vm8955_vm3, %v3248_v28, %v3252_v30  ;;  %v3412_v28 = vshrl.u32 %v10475_v34, 16 }
 0x267   : > { %v3279_v27 = vshrl.u32 %v3083_v46, 16  ;;  %v3282_v12 = vshll.u32 %v3083_v46, 16  ;;  %v3277_v18 = vsel %vm8955_vm3, %v3272_v24, %v3276_v8  ;;  %v3107_v51 = vld [vmem:[#allocation2 + $0xcc] sm:$0xf]  ;;  %v3442_v8 = vshll.u32 %v3103_v32, 16 }
 0x268   : > { %v2938_v17 = vpop.permute.xlu0 %2937  ;;  %v3471_v16 = vshrl.u32 %v3107_v51, 16  ;;  %v3474_v20 = vshll.u32 %v3107_v51, 16 }
 0x269   : > { %3032 = vst.msk [vmem:[#allocation3 + $0x8] sm:$0xf] %vm3029_vm4, %v2938_v17  ;;  %3498 = vrot.lane.b32.xlu2 %v3147_v41, %s8873_s13  ;;  %3508 = vrot.lane.b32.xlu1 %v3205_v25, %s8873_s13  ;;  %v3404_v17 = vrot.slane %v3402_v19, 5  ;;  %v3368_v25 = vrot.slane %v3367_v37, 4  ;;  %v3281_v7 = vrot.slane %v3279_v27, 4  ;;  %v3284_v54 = vrot.slane %v3282_v12, 5 }
 0x26a   : > { %v3473_v5 = vrot.slane %v3471_v16, 4  ;;  %v3625_v16 = vld [vmem:[#allocation2 + $0x20] sm:$0x1] }
 0x26b   : > { %v2936_v29 = vpop.permute.xlu2 %2935  ;;  %v2798_v14 = vpop.permute.xlu1 %2797  ;;  %v3405_v50 = vor.u32 %v3404_v17, %v3401_v43  ;;  %v3373_v48 = vsel %vm8955_vm3, %v3368_v25, %v3372_v47  ;;  %v3285_v44 = vor.u32 %v3284_v54, %v3281_v7  ;;  %v3096_v43 = vld [vmem:[#allocation2 + $0xa0] sm:$0xf]  ;;  %v3322_v25 = vshll.u32 %v3088_v9, 16  ;;  %v10517_v54 = vld [vmem:[#allocation2 + $0xd0] sm:$0xf] }
 0x26c   : > { %3031 = vst.msk [vmem:[#allocation3 + $0x4] sm:$0xf] %vm3029_vm4, %v2936_v29  ;;  %v3408_v29 = vshll.u32 %v10475_v34, 16 }
 0x26d   : > { %2865 = vst.msk [vmem:[#allocation3 + $0x74] sm:$0xf] %vm2835_vm2, %v2798_v14  ;;  %v3406_v33 = vrot.slane %v3405_v50, 4  ;;  %v3286_v39 = vrot.slane %v3285_v44, 4  ;;  %v3324_v52 = vrot.slane %v3322_v25, 5  ;;  %vm6883_vm2 = vcmask 388416  }
 0x26e   : > { %3524 = vrot.lane.b32.xlu0 %v3301_v42, %s8873_s13  ;;  %v3312_v42 = vshll.u32 %v10466_v31, 16  ;;  %v3092_v31 = vld [vmem:[#allocation2 + $0x90] sm:$0xf] }
 0x26f   : > { %v3351_v47 = vshrl.u32 %v3092_v31, 16  ;;  %v3354_v53 = vshll.u32 %v3092_v31, 16  ;;  %v3097_v31 = vld [vmem:[#allocation2 + $0xa4] sm:$0x1] }
 0x270   : > { %v2944_v63 = vpop.permute.xlu0 %2943  ;;  %v10487_v14 = vrot.slane %v3312_v42, 5  ;;  %v3444_v42 = vrot.slane %v3442_v8, 5 }
 0x271   : > { %3035 = vst.msk [vmem:[#allocation3 + $0x14] sm:$0xf] %vm3029_vm4, %v2944_v63  ;;  %3504 = vrot.lane.b32.xlu2 %v3181_v3, %s8873_s13  ;;  %3514 = vrot.lane.b32.xlu1 %v3243_v15, %s8873_s13  ;;  %v3095_v3 = vld [vmem:[#allocation2 + $0x9c] sm:$0xf]  ;;  %v10492_v63 = vrot.slane %v3408_v29, 5  ;;  %v3438_v15 = vrot.slane %v3436_v40, 4 }
 0x272   : > { %v3375_v38 = vshrl.u32 %v3095_v3, 16  ;;  %v3378_v46 = vshll.u32 %v3095_v3, 16  ;;  %v3315_v19 = vsel %vm8955_vm3, %v3310_v45, %v10487_v14  ;;  %v3353_v30 = vrot.slane %v3351_v47, 4 }
 0x273   : > { %v2942_v62 = vpop.permute.xlu2 %2941  ;;  %v2934_v41 = vpop.permute.xlu1 %2933  ;;  %v3411_v37 = vsel %vm8955_vm3, %v3406_v33, %v10492_v63  ;;  %v3439_v24 = vor.u32 %v3438_v15, %v10497_v57  ;;  %v3104_v33 = vld [vmem:[#allocation2 + $0xc0] sm:$0xf]  ;;  %v3724_v47 = vrot.slane %v3625_v16, 5 }
 0x274   : > { %3034 = vst.msk [vmem:[#allocation3 + $0x10] sm:$0xf] %vm3029_vm4, %v2942_v62  ;;  %v3318_v62 = vrot.slane %v3316_v26, 4  ;;  %v3377_v12 = vrot.slane %v3375_v38, 4  ;;  %v3100_v26 = vld [vmem:[#allocation2 + $0xb0] sm:$0x1] }
 0x275   : > { %3030 = vst.msk [vmem:[#allocation3] sm:$0xf] %vm3029_vm4, %v2934_v41  ;;  %v3291_v41 = vsel %vm8955_vm3, %v3286_v39, %v10414_v36  ;;  %v3384_v36 = vshll.u32 %v3096_v43, 16  ;;  %v3447_v39 = vshrl.u32 %v3104_v33, 16 }
 0x276   : > { %3530 = vrot.lane.b32.xlu0 %v3339_v13, %s8873_s13  ;;  %v3343_v13 = vor.u32 %v3342_v49, %v10448_v35  ;;  %v3380_v35 = vrot.slane %v3378_v46, 5  ;;  %v3414_v49 = vrot.slane %v3412_v28, 4  ;;  %v10537_v46 = vld [vmem:[#allocation2 + $0x1c] sm:$0xf] }
 0x277   : > { %v3386_v44 = vrot.slane %v3384_v36, 5 }
 0x278   : > { %v2950_v22 = vpop.permute.xlu0 %2949  ;;  %v3344_v23 = vrot.slane %v3343_v13, 4  ;;  %v3381_v7 = vor.u32 %v3380_v35, %v3377_v12  ;;  %v3415_v51 = vor.u32 %v3414_v49, %v10492_v63  ;;  %v3450_v13 = vshll.u32 %v3104_v33, 16 }
 0x279   : > { %3038 = vst.msk [vmem:[#allocation3 + $0x20] sm:$0xf] %vm3029_vm4, %v2950_v22  ;;  %3510 = vrot.lane.b32.xlu2 %v3219_v59, %s8873_s13  ;;  %3520 = vrot.lane.b32.xlu1 %v3277_v18, %s8873_s13  ;;  %v3319_v59 = vor.u32 %v3318_v62, %v10487_v14  ;;  %v3440_v22 = vrot.slane %v3439_v24, 4  ;;  %v3476_v18 = vrot.slane %v3474_v20, 5  ;;  %v3480_v14 = vshll.u32 %v10517_v54, 16 }
 0x27a   : > { %v3349_v50 = vsel %vm8955_vm3, %v3344_v23, %v3348_v1  ;;  %v3382_v45 = vrot.slane %v3381_v7, 4  ;;  %v3721_v62 = vrot.slane %v10537_v46, 5  ;;  %v3101_v24 = vld [vmem:[#allocation2 + $0xb4] sm:$0xf]  ;;  %v3416_v63 = vrot.slane %v3415_v51, 4 }
 0x27b   : > { %v2948_v56 = vpop.permute.xlu2 %2947  ;;  %v2940_v58 = vpop.permute.xlu1 %2939  ;;  %v3320_v29 = vrot.slane %v3319_v59, 4  ;;  %v3445_v40 = vsel %vm8955_vm3, %v3440_v22, %v3444_v42  ;;  %v3452_v12 = vrot.slane %v3450_v13, 5  ;;  %v3105_v23 = vld [vmem:[#allocation2 + $0xc4] sm:$0xf]  ;;  %v3423_v1 = vshrl.u32 %v3101_v24, 16 }
 0x27c   : > { %3037 = vst.msk [vmem:[#allocation3 + $0x1c] sm:$0xf] %vm3029_vm4, %v2948_v56  ;;  %v3477_v56 = vor.u32 %v3476_v18, %v3473_v5  ;;  %v3387_v32 = vsel %vm8955_vm3, %v3382_v45, %v3386_v44  ;;  %v3394_v59 = vshll.u32 %v3097_v31, 16  ;;  %v3723_v25 = vrot.slane %v3721_v62, 4 }
 0x27d   : > { %3033 = vst.msk [vmem:[#allocation3 + $0xc] sm:$0xf] %vm3029_vm4, %v2940_v58  ;;  %v3325_v4 = vsel %vm8955_vm3, %v3320_v29, %v3324_v52  ;;  %v3484_v22 = vshrl.u32 %v10517_v54, 16  ;;  %v3456_v5 = vshll.u32 %v3105_v23, 16  ;;  %v3425_v18 = vrot.slane %v3423_v1, 4 }
 0x27e   : > { %3536 = vrot.lane.b32.xlu0 %v3373_v48, %s8873_s13  ;;  %v3356_v48 = vrot.slane %v3354_v53, 5  ;;  %v3478_v15 = vrot.slane %v3477_v56, 4  ;;  %v3396_v36 = vrot.slane %v3394_v59, 5  ;;  %v3725_v28 = vsel %vm9586_vm13, %v3723_v25, %v3724_v47  ;;  %v3629_v54 = vld [vmem:[#allocation2 + $0x30] sm:$0xe] }
 0x27f   : > { %v10563_v29 = vld [vmem:[#allocation2 + $0x34] sm:$0xf]  ;;  %v3486_v52 = vrot.slane %v3484_v22, 4  ;;  %v3460_v45 = vshrl.u32 %v3105_v23, 16  ;;  %v10599_v1 = vld [vmem:[#allocation2 + $0x58] sm:$0xf] }
 0x280   : > { %v2956_v2 = vpop.permute.xlu0 %2955  ;;  %v3357_v58 = vor.u32 %v3356_v48, %v3353_v30  ;;  %v3458_v48 = vrot.slane %v3456_v5, 5  ;;  %v3735_v49 = vrot.slane %v10563_v29, 5  ;;  %v3638_v23 = vld [vmem:[#allocation2 + $0x54] sm:$0xe] }
 0x281   : > { %3041 = vst.msk [vmem:[#allocation3 + $0x2c] sm:$0xf] %vm3029_vm4, %v2956_v2  ;;  %3516 = vrot.lane.b32.xlu2 %v3253_v6, %s8873_s13  ;;  %3526 = vrot.lane.b32.xlu1 %v3315_v19, %s8873_s13  ;;  %v3388_v6 = vshrl.u32 %v3096_v43, 16  ;;  %v10533_v2 = vrot.slane %v3480_v14, 5  ;;  %v3418_v19 = vshll.u32 %v3100_v26, 16  ;;  %v3426_v43 = vshll.u32 %v3101_v24, 16 }
 0x282   : > { %v3358_v21 = vrot.slane %v3357_v58, 4  ;;  %v3109_v14 = vld [vmem:[#allocation2 + $0xd4] sm:$0x1]  ;;  %v10571_v58 = vld [vmem:[#allocation2 + $0x40] sm:$0xf]  ;;  %v8536_v47 = vrot.slane %v3638_v23, 9 }
 0x283   : > { %v2954_v27 = vpop.permute.xlu2 %2953  ;;  %v2946_v17 = vpop.permute.xlu1 %2945  ;;  %v3390_v9 = vrot.slane %v3388_v6, 4  ;;  %v3420_v20 = vrot.slane %v3418_v19, 5  ;;  %v3487_v33 = vor.u32 %v3486_v52, %v10533_v2  ;;  %v3106_v19 = vld [vmem:[#allocation2 + $0xc8] sm:$0x1]  ;;  %v3637_v23 = vld [vmem:[#allocation2 + $0x50] sm:$0x1] }
 0x284   : > { %3040 = vst.msk [vmem:[#allocation3 + $0x28] sm:$0xf] %vm3029_vm4, %v2954_v27  ;;  %v3449_v27 = vrot.slane %v3447_v39, 4  ;;  %v3634_v39 = vld [vmem:[#allocation2 + $0x44] sm:$0x1]  ;;  %v3466_v24 = vshll.u32 %v3106_v19, 16 }
 0x285   : > { %3036 = vst.msk [vmem:[#allocation3 + $0x18] sm:$0xf] %vm3029_vm4, %v2946_v17  ;;  %v3391_v17 = vor.u32 %v3390_v9, %v3386_v44  ;;  %v3421_v42 = vsel %vm8955_vm3, %v3416_v63, %v3420_v20  ;;  %v8533_v44 = vrot.slane %v3629_v54, 9  ;;  %v3745_v31 = vrot.slane %v3634_v39, 5  ;;  %v3626_v20 = vld [vmem:[#allocation2 + $0x24] sm:$0xe] }
 0x286   : > { %3542 = vrot.lane.b32.xlu0 %v3411_v37, %s8873_s13  ;;  %v3483_v37 = vsel %vm8955_vm3, %v3478_v15, %v10533_v2  ;;  %v3462_v15 = vrot.slane %v3460_v45, 4  ;;  %v3488_v2 = vrot.slane %v3487_v33, 4  ;;  %v3737_v54 = vrot.slane %v3735_v49, 4  ;;  %v3635_v45 = vld [vmem:[#allocation2 + $0x48] sm:$0xe] }
 0x287   : > { %v3392_v7 = vrot.slane %v3391_v17, 4  ;;  %v3648_v33 = vld [vmem:[#allocation2 + $0x7c] sm:$0xf] }
 0x288   : > { %v2962_v55 = vpop.permute.xlu0 %2961  ;;  %v3463_v9 = vor.u32 %v3462_v15, %v3458_v48  ;;  %v3777_v19 = vrot.slane %v3648_v33, 5 }
 0x289   : > { %3044 = vst.msk [vmem:[#allocation3 + $0x38] sm:$0xf] %vm3029_vm4, %v2962_v55  ;;  %3522 = vrot.lane.b32.xlu2 %v3291_v41, %s8873_s13  ;;  %3532 = vrot.lane.b32.xlu1 %v3349_v50, %s8873_s13  ;;  %v3363_v41 = vsel %vm8955_vm3, %v3358_v21, %v10453_v11  ;;  %v3453_v11 = vor.u32 %v3452_v12, %v3449_v27  ;;  %v3428_v55 = vrot.slane %v3426_v43, 5  ;;  %v3468_v12 = vrot.slane %v3466_v24, 5 }
 0x28a   : > { %v3464_v27 = vrot.slane %v3463_v9, 4  ;;  %v8532_v43 = vrot.slane %v3626_v20, 9 }
 0x28b   : > { %v2960_v34 = vpop.permute.xlu2 %2959  ;;  %v2952_v3 = vpop.permute.xlu1 %2951  ;;  %v3454_v30 = vrot.slane %v3453_v11, 4  ;;  %v3429_v56 = vor.u32 %v3428_v55, %v3425_v18  ;;  %v10607_v11 = vld [vmem:[#allocation2 + $0x64] sm:$0xf]  ;;  %v3631_v18 = vld [vmem:[#allocation2 + $0x38] sm:$0x1] }
 0x28c   : > { %3043 = vst.msk [vmem:[#allocation3 + $0x34] sm:$0xf] %vm3029_vm4, %v2960_v34  ;;  %v3397_v34 = vsel %vm8955_vm3, %v3392_v7, %v3396_v36  ;;  %v3469_v25 = vsel %vm8955_vm3, %v3464_v27, %v3468_v12  ;;  %v3763_v36 = vrot.slane %v10607_v11, 5  ;;  %v3657_v11 = vld [vmem:[#allocation2 + $0xa0] sm:$0xf] }
 0x28d   : > { %3039 = vst.msk [vmem:[#allocation3 + $0x24] sm:$0xf] %vm3029_vm4, %v2952_v3  ;;  %v3459_v26 = vsel %vm8955_vm3, %v3454_v30, %v3458_v48  ;;  %v3430_v6 = vrot.slane %v3429_v56, 4  ;;  %v3738_v30 = vrot.slane %v3631_v18, 5  ;;  %v3641_v18 = vld [vmem:[#allocation2 + $0x60] sm:$0xe] }
 0x28e   : > { %3548 = vrot.lane.b32.xlu0 %v3445_v40, %s8873_s13 }
 0x28f   : > { %v3739_v29 = vsel %vm9586_vm13, %v3737_v54, %v3738_v30  ;;  %v3779_v54 = vrot.slane %v3777_v19, 4 }
 0x290   : > { %v2968_v38 = vpop.permute.xlu0 %2967 }
 0x291   : > { %3047 = vst.msk [vmem:[#allocation3 + $0x44] sm:$0xf] %vm3029_vm4, %v2968_v38  ;;  %3528 = vrot.lane.b32.xlu2 %v3325_v4, %s8873_s13  ;;  %3538 = vrot.lane.b32.xlu1 %v3387_v32, %s8873_s13  ;;  %v3490_v4 = vshll.u32 %v3109_v14, 16  ;;  %v3736_v32 = vsel %vm9586_vm13, %v8533_v44, %v3735_v49  ;;  %v3742_v38 = vrot.slane %v10571_v58, 5  ;;  %v3636_v44 = vld [vmem:[#allocation2 + $0x4c] sm:$0xf] }
 0x292   : > { %v3752_v58 = vrot.slane %v3637_v23, 5 }
 0x293   : > { %v2966_v8 = vpop.permute.xlu2 %2965  ;;  %v2958_v35 = vpop.permute.xlu1 %2957  ;;  %v3492_v13 = vrot.slane %v3490_v4, 5  ;;  %v8535_v4 = vrot.slane %v3635_v45, 9 }
 0x294   : > { %3046 = vst.msk [vmem:[#allocation3 + $0x40] sm:$0xf] %vm3029_vm4, %v2966_v8  ;;  %v3744_v8 = vrot.slane %v3742_v38, 4 }
 0x295   : > { %3042 = vst.msk [vmem:[#allocation3 + $0x30] sm:$0xf] %vm3029_vm4, %v2958_v35  ;;  %v3493_v63 = vsel %vm8955_vm3, %v3488_v2, %v3492_v13  ;;  %v3632_v2 = vld [vmem:[#allocation2 + $0x3c] sm:$0xe]  ;;  %v10640_v13 = vld [vmem:[#allocation2 + $0x88] sm:$0xf] }
 0x296   : > { %3554 = vrot.lane.b32.xlu0 %v3483_v37, %s8873_s13  ;;  %v3435_v37 = vsel %vm8955_vm3, %v3430_v6, %v10497_v57  ;;  %v3627_v57 = vld [vmem:[#allocation2 + $0x28] sm:$0xf]  ;;  %v3746_v35 = vsel %vm9586_vm13, %v3744_v8, %v3745_v31  ;;  %v3749_v6 = vrot.slane %v3636_v44, 5  ;;  %v8534_v9 = vrot.slane %v3632_v2, 9 }
 0x297   : > { %v3728_v17 = vrot.slane %v3627_v57, 5  ;;  %v3784_v8 = vrot.slane %v10640_v13, 5 }
 0x298   : > { %v2974_v53 = vpop.permute.xlu0 %2973  ;;  %v3743_v27 = vsel %vm9586_vm13, %v8534_v9, %v3742_v38 }
 0x299   : > { %3050 = vst.msk [vmem:[#allocation3 + $0x50] sm:$0xf] %vm3029_vm4, %v2974_v53  ;;  %3534 = vrot.lane.b32.xlu2 %v3363_v41, %s8873_s13  ;;  %3544 = vrot.lane.b32.xlu1 %v3421_v42, %s8873_s13  ;;  %v3756_v53 = vrot.slane %v10599_v1, 5  ;;  %v3623_v42 = vld [vmem:[#allocation2 + $0x18] sm:$0xe]  ;;  %v3729_v5 = vsel %vm9586_vm13, %v8532_v43, %v3728_v17  ;;  %v3730_v49 = vrot.slane %v3728_v17, 4 }
 0x29a   : > { %v8531_v55 = vrot.slane %v3623_v42, 9  ;;  %v3786_v12 = vrot.slane %v3784_v8, 4  ;;  %v3644_v43 = vld [vmem:[#allocation2 + $0x6c] sm:$0xe]  ;;  %v3645_v17 = vld [vmem:[#allocation2 + $0x70] sm:$0xf] }
 0x29b   : > { %v2972_v50 = vpop.permute.xlu2 %2971  ;;  %v2964_v40 = vpop.permute.xlu1 %2963  ;;  %v3757_v7 = vsel %vm9586_vm13, %v8536_v47, %v3756_v53  ;;  %v8538_v47 = vrot.slane %v3644_v43, 9  ;;  %v3996_v43 = vld [vmem:[%s12340_s1 + $0x10] sm:$0x3] }
 0x29c   : > { %3049 = vst.msk [vmem:[#allocation3 + $0x4c] sm:$0xf] %vm3029_vm4, %v2972_v50  ;;  %v3643_v50 = vld [vmem:[#allocation2 + $0x68] sm:$0x1]  ;;  %v3722_v52 = vsel %vm9586_vm13, %v8531_v55, %v3721_v62 }
 0x29d   : > { %3045 = vst.msk [vmem:[#allocation3 + $0x3c] sm:$0xf] %vm3029_vm4, %v2964_v40  ;;  %v3765_v40 = vrot.slane %v3763_v36, 4  ;;  %v3766_v56 = vrot.slane %v3643_v50, 5 }
 0x29e   : > { %3833 = vrot.lane.b32.xlu0 %v3725_v28, %s8874_s14 }
 0x29f   : > { %v3767_v62 = vsel %vm9586_vm13, %v3765_v40, %v3766_v56  ;;  %v3646_v56 = vld [vmem:[#allocation2 + $0x74] sm:$0x1] }
 0x2a0   : > { %v2980_v3 = vpop.permute.xlu0 %2979  ;;  %v3773_v44 = vrot.slane %v3646_v56, 5  ;;  %v3659_v56 = vld [vmem:[#allocation2 + $0xa8] sm:$0xe] }
 0x2a1   : > { %3053 = vst.msk [vmem:[#allocation3 + $0x5c] sm:$0xf] %vm3029_vm4, %v2980_v3  ;;  %3540 = vrot.lane.b32.xlu2 %v3397_v34, %s8873_s13  ;;  %3550 = vrot.lane.b32.xlu1 %v3459_v26, %s8873_s13  ;;  %v3628_v34 = vld [vmem:[#allocation2 + $0x2c] sm:$0x1]  ;;  %v3647_v26 = vld [vmem:[#allocation2 + $0x78] sm:$0xe] }
 0x2a2   : > { %v3731_v46 = vrot.slane %v3628_v34, 5  ;;  %v3653_v34 = vld [vmem:[#allocation2 + $0x90] sm:$0xe] }
 0x2a3   : > { %v2978_v51 = vpop.permute.xlu2 %2977  ;;  %v2970_v21 = vpop.permute.xlu1 %2969 }
 0x2a4   : > { %3052 = vst.msk [vmem:[#allocation3 + $0x58] sm:$0xf] %vm3029_vm4, %v2978_v51  ;;  %v8539_v51 = vrot.slane %v3647_v26, 9 }
 0x2a5   : > { %3048 = vst.msk [vmem:[#allocation3 + $0x48] sm:$0xf] %vm3029_vm4, %v2970_v21  ;;  %v3750_v21 = vsel %vm9586_vm13, %v8535_v4, %v3749_v6  ;;  %v3798_v4 = vrot.slane %v3657_v11, 5 }
 0x2a6   : > { %3839 = vrot.lane.b32.xlu0 %v3736_v32, %s8874_s14  ;;  %v3732_v32 = vsel %vm9586_vm13, %v3730_v49, %v3731_v46  ;;  %v3778_v24 = vsel %vm9586_vm13, %v8539_v51, %v3777_v19  ;;  %v3658_v19 = vld [vmem:[#allocation2 + $0xa4] sm:$0x1] }
 0x2a8   : > { %v2986_v16 = vpop.permute.xlu0 %2985 }
 0x2a9   : > { %3056 = vst.msk [vmem:[#allocation3 + $0x68] sm:$0xf] %vm3029_vm4, %v2986_v16  ;;  %3546 = vrot.lane.b32.xlu2 %v3435_v37, %s8873_s13  ;;  %3556 = vrot.lane.b32.xlu1 %v3493_v63, %s8873_s13  ;;  %v3640_v37 = vld [vmem:[#allocation2 + $0x5c] sm:$0x1]  ;;  %v3652_v16 = vld [vmem:[#allocation2 + $0x8c] sm:$0x1] }
 0x2aa   : > { %v3758_v63 = vrot.slane %v3756_v53, 4  ;;  %v3759_v20 = vrot.slane %v3640_v37, 5  ;;  %v3770_v53 = vrot.slane %v3645_v17, 5  ;;  %v3801_v37 = vrot.slane %v3658_v19, 5 }
 0x2ab   : > { %v2984_v41 = vpop.permute.xlu2 %2983  ;;  %v2976_v59 = vpop.permute.xlu1 %2975 }
 0x2ac   : > { %3055 = vst.msk [vmem:[#allocation3 + $0x64] sm:$0xf] %vm3029_vm4, %v2984_v41  ;;  %v3760_v1 = vsel %vm9586_vm13, %v3758_v63, %v3759_v20  ;;  %v3771_v55 = vsel %vm9586_vm13, %v8538_v47, %v3770_v53  ;;  %v3772_v45 = vrot.slane %v3770_v53, 4 }
 0x2ad   : > { %3051 = vst.msk [vmem:[#allocation3 + $0x54] sm:$0xf] %vm3029_vm4, %v2976_v59  ;;  %v3751_v59 = vrot.slane %v3749_v6, 4 }
 0x2ae   : > { %3845 = vrot.lane.b32.xlu0 %v3746_v35, %s8874_s14  ;;  %v3787_v35 = vrot.slane %v3652_v16, 5  ;;  %v3774_v26 = vsel %vm9586_vm13, %v3772_v45, %v3773_v44  ;;  %v3655_v16 = vld [vmem:[#allocation2 + $0x98] sm:$0x1]  ;;  %v3666_v44 = vld [vmem:[#allocation2 + $0xc4] sm:$0xf] }
 0x2af   : > { %v3753_v42 = vsel %vm9586_vm13, %v3751_v59, %v3752_v58  ;;  %v4086_v59 = vunpack.c.l.b16 %v3996_v43 }
 0x2b0   : > { %v2992_v22 = vpop.permute.xlu0 %2991  ;;  %v3788_v38 = vsel %vm9586_vm13, %v3786_v12, %v3787_v35  ;;  %v3660_v12 = vld [vmem:[#allocation2 + $0xac] sm:$0xf] }
 0x2b1   : > { %3059 = vst.msk [vmem:[#allocation3 + $0x74] sm:$0xf] %vm3029_vm4, %v2992_v22  ;;  %3552 = vrot.lane.b32.xlu2 %v3469_v25, %s8873_s13  ;;  %3835 = vrot.lane.b32.xlu1 %v3729_v5, %s8874_s14  ;;  %v3805_v13 = vrot.slane %v3660_v12, 5  ;;  %s8876_s13 = smov 56  }
 0x2b3   : > { %v2990_v28 = vpop.permute.xlu2 %2989  ;;  %v2982_v48 = vpop.permute.xlu1 %2981  ;;  %v3807_v23 = vrot.slane %v3805_v13, 4 }
 0x2b4   : > { %3058 = vst.msk [vmem:[#allocation3 + $0x70] sm:$0xf] %vm3029_vm4, %v2990_v28  ;;  %v8537_v28 = vrot.slane %v3641_v18, 9 }
 0x2b5   : > { %3054 = vst.msk [vmem:[#allocation3 + $0x60] sm:$0xf] %vm3029_vm4, %v2982_v48 }
 0x2b6   : > { %3851 = vrot.lane.b32.xlu0 %v3757_v7, %s8874_s14  ;;  %v3649_v7 = vld [vmem:[#allocation2 + $0x80] sm:$0x1] }
 0x2b7   : > { %v3780_v30 = vrot.slane %v3649_v7, 5  ;;  %v3662_v7 = vld [vmem:[#allocation2 + $0xb4] sm:$0xe] }
 0x2b8   : > { %v3495_v14 = vpop.permute.xlu0 %3494 }
 0x2b9   : > { %3591 = vst.msk [vmem:[#allocation3] sm:$0xf] %vm3590_vm7, %v3495_v14  ;;  %3831 = vrot.lane.b32.xlu2 %v3722_v52, %s8874_s14  ;;  %3841 = vrot.lane.b32.xlu1 %v3739_v29, %s8874_s14  ;;  %v3764_v52 = vsel %vm9586_vm13, %v8537_v28, %v3763_v36  ;;  %v3781_v14 = vsel %vm9586_vm13, %v3779_v54, %v3780_v30  ;;  %v3654_v29 = vld [vmem:[#allocation2 + $0x94] sm:$0xf]  ;;  %v8541_v36 = vrot.slane %v3653_v34, 9 }
 0x2ba   : > { %v3791_v46 = vrot.slane %v3654_v29, 5  ;;  %v3663_v28 = vld [vmem:[#allocation2 + $0xb8] sm:$0xf] }
 0x2bb   : > { %v2996_v3 = vpop.permute.xlu2 %2995  ;;  %v2988_v15 = vpop.permute.xlu1 %2987  ;;  %v3812_v54 = vrot.slane %v3663_v28, 5 }
 0x2bc   : > { %3061 = vst.msk [vmem:[#allocation3 + $0x7c] sm:$0xf] %vm3029_vm4, %v2996_v3  ;;  %v3656_v3 = vld [vmem:[#allocation2 + $0x9c] sm:$0xe]  ;;  %v3793_v20 = vrot.slane %v3791_v46, 4 }
 0x2bd   : > { %3057 = vst.msk [vmem:[#allocation3 + $0x6c] sm:$0xf] %vm3029_vm4, %v2988_v15  ;;  %v8542_v33 = vrot.slane %v3656_v3, 9  ;;  %v3650_v15 = vld [vmem:[#allocation2 + $0x84] sm:$0xe] }
 0x2be   : > { %3857 = vrot.lane.b32.xlu0 %v3767_v62, %s8874_s14 }
 0x2bf   : > { %v3799_v51 = vsel %vm9586_vm13, %v8542_v33, %v3798_v4 }
 0x2c0   : > { %v3501_v39 = vpop.permute.xlu0 %3500 }
 0x2c1   : > { %3594 = vst.msk [vmem:[#allocation3 + $0xc] sm:$0xf] %vm3590_vm7, %v3501_v39  ;;  %3837 = vrot.lane.b32.xlu2 %v3732_v32, %s8874_s14  ;;  %3847 = vrot.lane.b32.xlu1 %v3750_v21, %s8874_s14  ;;  %v3792_v32 = vsel %vm9586_vm13, %v8541_v36, %v3791_v46  ;;  %v8540_v39 = vrot.slane %v3650_v15, 9  ;;  %v3800_v21 = vrot.slane %v3798_v4, 4  ;;  %v3665_v36 = vld [vmem:[#allocation2 + $0xc0] sm:$0xe] }
 0x2c2   : > { %v3667_v46 = vld [vmem:[#allocation2 + $0xc8] sm:$0x1]  ;;  %v3664_v4 = vld [vmem:[#allocation2 + $0xbc] sm:$0x1] }
 0x2c3   : > { %v3499_v31 = vpop.permute.xlu2 %3498  ;;  %v2994_v57 = vpop.permute.xlu1 %2993  ;;  %v3802_v63 = vsel %vm9586_vm13, %v3800_v21, %v3801_v37 }
 0x2c4   : > { %3593 = vst.msk [vmem:[#allocation3 + $0x8] sm:$0xf] %vm3590_vm7, %v3499_v31 }
 0x2c5   : > { %3060 = vst.msk [vmem:[#allocation3 + $0x78] sm:$0xf] %vm3029_vm4, %v2994_v57  ;;  %v3794_v57 = vrot.slane %v3655_v16, 5  ;;  %vm8205_vm4 = vcmask 1043456  }
 0x2c6   : > { %3863 = vrot.lane.b32.xlu0 %v3778_v24, %s8874_s14  ;;  %v3785_v24 = vsel %vm9586_vm13, %v8540_v39, %v3784_v8  ;;  %v3661_v8 = vld [vmem:[#allocation2 + $0xb0] sm:$0x1] }
 0x2c8   : > { %v3507_v41 = vpop.permute.xlu0 %3506 }
 0x2c9   : > { %3597 = vst.msk [vmem:[#allocation3 + $0x18] sm:$0xf] %vm3590_vm7, %v3507_v41  ;;  %3843 = vrot.lane.b32.xlu2 %v3743_v27, %s8874_s14  ;;  %3853 = vrot.lane.b32.xlu1 %v3760_v1, %s8874_s14  ;;  %v3795_v41 = vsel %vm9586_vm13, %v3793_v20, %v3794_v57  ;;  %v3808_v1 = vrot.slane %v3661_v8, 5 }
 0x2cb   : > { %v3505_v25 = vpop.permute.xlu2 %3504  ;;  %v3497_v22 = vpop.permute.xlu1 %3496  ;;  %v3809_v58 = vsel %vm9586_vm13, %v3807_v23, %v3808_v1 }
 0x2cc   : > { %3596 = vst.msk [vmem:[#allocation3 + $0x14] sm:$0xf] %vm3590_vm7, %v3505_v25 }
 0x2cd   : > { %3592 = vst.msk [vmem:[#allocation3 + $0x4] sm:$0xf] %vm3590_vm7, %v3497_v22  ;;  %v8800_v22 = vld [vmem:[%s12340_s1 + $0x8] sm:$0xff] }
 0x2ce   : > { %3869 = vrot.lane.b32.xlu0 %v3788_v38, %s8874_s14  ;;  %v4089_v38 = vpack.c.b16 %v4086_v59, %v4086_v59 }
 0x2d0   : > { %v3513_v5 = vpop.permute.xlu0 %3512  ;;  %v4143_v47 = vsel %vm4141_vm8, %v4089_v38, 0  ;;  %vm7638_vm8 = vcmask 519616  }
 0x2d1   : > { %3600 = vst.msk [vmem:[#allocation3 + $0x24] sm:$0xf] %vm3590_vm7, %v3513_v5  ;;  %3849 = vrot.lane.b32.xlu2 %v3753_v42, %s8874_s14  ;;  %3859 = vrot.lane.b32.xlu1 %v3771_v55, %s8874_s14  ;;  %v8799_v5 = vld [vmem:[%s12340_s1] sm:$0xff] }
 0x2d2   : > { %4150 = vmatpush.bf16.msra.mxu0 %v4143_v47  ;;  %8821 = vmatpush.bf16.msra.mxu3 %v4143_v47 }
 0x2d3   : > { %v3511_v50 = vpop.permute.xlu2 %3510  ;;  %v3503_v48 = vpop.permute.xlu1 %3502 }
 0x2d4   : > { %3599 = vst.msk [vmem:[#allocation3 + $0x20] sm:$0xf] %vm3590_vm7, %v3511_v50  ;;  %v8544_v50 = vrot.slane %v3662_v7, 9 }
 0x2d5   : > { %3595 = vst.msk [vmem:[#allocation3 + $0x10] sm:$0xf] %vm3590_vm7, %v3503_v48 }
 0x2d6   : > { %3875 = vrot.lane.b32.xlu0 %v3799_v51, %s8874_s14  ;;  %4151 = vmatpush.bf16.msra.mxu0 %v8800_v22  ;;  %v3813_v48 = vsel %vm9586_vm13, %v8544_v50, %v3812_v54  ;;  %v3815_v51 = vrot.slane %v3664_v4, 5  ;;  %v10855_v4 = vld [vmem:[%s12342_s3] ss:$0 sm:$0xff] }
 0x2d7   : > { %8822 = vmatpush.bf16.msra.mxu3 %v8800_v22 }
 0x2d8   : > { %v3519_v40 = vpop.permute.xlu0 %3518 }
 0x2d9   : > { %3603 = vst.msk [vmem:[#allocation3 + $0x30] sm:$0xf] %vm3590_vm7, %v3519_v40  ;;  %3855 = vrot.lane.b32.xlu2 %v3764_v52, %s8874_s14  ;;  %3865 = vrot.lane.b32.xlu1 %v3781_v14, %s8874_s14  ;;  %v8543_v14 = vrot.slane %v3659_v56, 9 }
 0x2da   : > { %4152 = vmatpush.bf16.msra.mxu0 %v8799_v5 }
 0x2db   : > { %v3517_v49 = vpop.permute.xlu2 %3516  ;;  %v3509_v62 = vpop.permute.xlu1 %3508  ;;  %8823 = vmatpush.bf16.msra.mxu3 %v8799_v5  ;;  %v3806_v29 = vsel %vm9586_vm13, %v8543_v14, %v3805_v13 }
 0x2dc   : > { %3602 = vst.msk [vmem:[#allocation3 + $0x2c] sm:$0xf] %vm3590_vm7, %v3517_v49  ;;  %v3819_v49 = vrot.slane %v3666_v44, 5 }
 0x2dd   : > { %3598 = vst.msk [vmem:[#allocation3 + $0x1c] sm:$0xf] %vm3590_vm7, %v3509_v62  ;;  %v8545_v62 = vrot.slane %v3665_v36, 9  ;;  %v3670_v36 = vld [vmem:[#allocation2 + $0xd4] sm:$0x1] }
 0x2de   : > { %3881 = vrot.lane.b32.xlu0 %v3809_v58, %s8874_s14  ;;  %v3821_v3 = vrot.slane %v3819_v49, 4 }
 0x2df   : > { %v3820_v15 = vsel %vm9586_vm13, %v8545_v62, %v3819_v49  ;;  %v3829_v62 = vrot.slane %v3670_v36, 5 }
 0x2e0   : > { %v3525_v6 = vpop.permute.xlu0 %3524 }
 0x2e1   : > { %3606 = vst.msk [vmem:[#allocation3 + $0x3c] sm:$0xf] %vm3590_vm7, %v3525_v6  ;;  %3861 = vrot.lane.b32.xlu2 %v3774_v26, %s8874_s14  ;;  %3871 = vrot.lane.b32.xlu1 %v3792_v32, %s8874_s14  ;;  %v3822_v26 = vrot.slane %v3667_v46, 5  ;;  %v3814_v6 = vrot.slane %v3812_v54, 4 }
 0x2e3   : > { %v3523_v2 = vpop.permute.xlu2 %3522  ;;  %v3515_v9 = vpop.permute.xlu1 %3514  ;;  %v3823_v32 = vsel %vm9586_vm13, %v3821_v3, %v3822_v26  ;;  %v3816_v19 = vsel %vm9586_vm13, %v3814_v6, %v3815_v51 }
 0x2e4   : > { %3605 = vst.msk [vmem:[#allocation3 + $0x38] sm:$0xf] %vm3590_vm7, %v3523_v2 }
 0x2e5   : > { %3601 = vst.msk [vmem:[#allocation3 + $0x28] sm:$0xf] %vm3590_vm7, %v3515_v9 }
 0x2e6   : > { %3887 = vrot.lane.b32.xlu0 %v3820_v15, %s8874_s14 }
 0x2e8   : > { %v3531_v31 = vpop.permute.xlu0 %3530 }
 0x2e9   : > { %3609 = vst.msk [vmem:[#allocation3 + $0x48] sm:$0xf] %vm3590_vm7, %v3531_v31  ;;  %3867 = vrot.lane.b32.xlu2 %v3785_v24, %s8874_s14  ;;  %3877 = vrot.lane.b32.xlu1 %v3802_v63, %s8874_s14 }
 0x2eb   : > { %v3529_v27 = vpop.permute.xlu2 %3528  ;;  %v3521_v35 = vpop.permute.xlu1 %3520 }
 0x2ec   : > { %3608 = vst.msk [vmem:[#allocation3 + $0x44] sm:$0xf] %vm3590_vm7, %v3529_v27 }
 0x2ed   : > { %3604 = vst.msk [vmem:[#allocation3 + $0x34] sm:$0xf] %vm3590_vm7, %v3521_v35 }
 0x2f0   : > { %v3537_v17 = vpop.permute.xlu0 %3536 }
 0x2f1   : > { %3612 = vst.msk [vmem:[#allocation3 + $0x54] sm:$0xf] %vm3590_vm7, %v3537_v17  ;;  %3873 = vrot.lane.b32.xlu2 %v3795_v41, %s8874_s14  ;;  %3883 = vrot.lane.b32.xlu1 %v3813_v48, %s8874_s14 }
 0x2f3   : > { %v3535_v25 = vpop.permute.xlu2 %3534  ;;  %v3527_v53 = vpop.permute.xlu1 %3526 }
 0x2f4   : > { %3611 = vst.msk [vmem:[#allocation3 + $0x50] sm:$0xf] %vm3590_vm7, %v3535_v25 }
 0x2f5   : > { %3607 = vst.msk [vmem:[#allocation3 + $0x40] sm:$0xf] %vm3590_vm7, %v3527_v53 }
 0x2f8   : > { %v3543_v42 = vpop.permute.xlu0 %3542 }
 0x2f9   : > { %3615 = vst.msk [vmem:[#allocation3 + $0x60] sm:$0xf] %vm3590_vm7, %v3543_v42  ;;  %3879 = vrot.lane.b32.xlu2 %v3806_v29, %s8874_s14  ;;  %3889 = vrot.lane.b32.xlu1 %v3823_v32, %s8874_s14  ;;  %v4927_v29 = vld [vmem:[#allocation4] sm:$0xf] }
 0x2fa   : > { %v4976_v44 = vshrl.u32 %v4927_v29, 16  ;;  %v4979_v49 = vshll.u32 %v4927_v29, 16 }
 0x2fb   : > { %v3541_v18 = vpop.permute.xlu2 %3540  ;;  %v3533_v55 = vpop.permute.xlu1 %3532 }
 0x2fc   : > { %3614 = vst.msk [vmem:[#allocation3 + $0x5c] sm:$0xf] %vm3590_vm7, %v3541_v18  ;;  %v4978_v3 = vrot.slane %v4976_v44, 4  ;;  %v4981_v26 = vrot.slane %v4979_v49, 5 }
 0x2fd   : > { %3610 = vst.msk [vmem:[#allocation3 + $0x4c] sm:$0xf] %vm3590_vm7, %v3533_v55 }
 0x2fe   : > { %v4982_v15 = vor.u32 %v4981_v26, %v4978_v3 }
 0x300   : > { %v3549_v30 = vpop.permute.xlu0 %3548 }
 0x301   : > { %3618 = vst.msk [vmem:[#allocation3 + $0x6c] sm:$0xf] %vm3590_vm7, %v3549_v30  ;;  %3885 = vrot.lane.b32.xlu2 %v3816_v19, %s8874_s14 }
 0x303   : > { %v3547_v52 = vpop.permute.xlu2 %3546  ;;  %v3539_v40 = vpop.permute.xlu1 %3538 }
 0x304   : > { %3617 = vst.msk [vmem:[#allocation3 + $0x68] sm:$0xf] %vm3590_vm7, %v3547_v52 }
 0x305   : > { %3613 = vst.msk [vmem:[#allocation3 + $0x58] sm:$0xf] %vm3590_vm7, %v3539_v40 }
 0x308   : > { %v3555_v34 = vpop.permute.xlu0 %3554 }
 0x309   : > { %3621 = vst.msk [vmem:[#allocation3 + $0x78] sm:$0xf] %vm3590_vm7, %v3555_v34  ;;  %v3669_v34 = vld [vmem:[#allocation2 + $0xd0] sm:$0xf] }
 0x30b   : > { %v3553_v45 = vpop.permute.xlu2 %3552  ;;  %v3545_v11 = vpop.permute.xlu1 %3544 }
 0x30c   : > { %3620 = vst.msk [vmem:[#allocation3 + $0x74] sm:$0xf] %vm3590_vm7, %v3553_v45  ;;  %v3826_v45 = vrot.slane %v3669_v34, 5 }
 0x30d   : > { %3616 = vst.msk [vmem:[#allocation3 + $0x64] sm:$0xf] %vm3590_vm7, %v3545_v11  ;;  %v10844_v11 = vld [vmem:[%s12341_s2] ss:$0 sm:$0xff] }
 0x30e   : > { %v3828_v46 = vrot.slane %v3826_v45, 4 }
 0x310   : > { %v3834_v33 = vpop.permute.xlu0 %3833  ;;  %v3830_v6 = vsel %vm9586_vm13, %v3828_v46, %v3829_v62 }
 0x311   : > { %3929 = vst.msk [vmem:[#allocation3 + $0x4] sm:$0xf] %vm3927_vm10, %v3834_v33  ;;  %v4928_v33 = vld [vmem:[#allocation4 + $0x4] sm:$0xf]  ;;  %3893 = vrot.lane.b32.xlu0 %v3830_v6, %s8874_s14 }
 0x312   : > { %v4985_v32 = vshll.u32 %v4928_v33, 16 }
 0x313   : > { %v3832_v39 = vpop.permute.xlu2 %3831  ;;  %v3551_v2 = vpop.permute.xlu1 %3550 }
 0x314   : > { %3928 = vst.msk [vmem:[#allocation3] sm:$0xf] %vm3927_vm10, %v3832_v39  ;;  %v4983_v39 = vrot.slane %v4982_v15, 4 }
 0x315   : > { %3619 = vst.msk [vmem:[#allocation3 + $0x70] sm:$0xf] %vm3590_vm7, %v3551_v2  ;;  %v4987_v2 = vrot.slane %v4985_v32, 5 }
 0x318   : > { %v3840_v21 = vpop.permute.xlu0 %3839 }
 0x319   : > { %3932 = vst.msk [vmem:[#allocation3 + $0x10] sm:$0xf] %vm3927_vm10, %v3840_v21 }
 0x31b   : > { %v8783_v37 = vld [vmem:[#allocation3] sm:$0xff]  ;;  %v3838_v9 = vpop.permute.xlu2 %3837  ;;  %v3557_v24 = vpop.permute.xlu1 %3556 }
 0x31c   : > { %3931 = vst.msk [vmem:[#allocation3 + $0xc] sm:$0xf] %vm3927_vm10, %v3838_v9  ;;  %8619 = vmatmul.msk.bf16.vlgmr.msra.gmra.mxu0 %vm4092_vm11, %v8783_v37  ;;  %v4988_v9 = vsel %vm8955_vm3, %v4983_v39, %v4987_v2 }
 0x31d   : > { %3622 = vst.msk [vmem:[#allocation3 + $0x7c] sm:$0xf] %vm3590_vm7, %v3557_v24  ;;  %5359 = vrot.lane.b32.xlu1 %v4988_v9, %s8868_s8  ;;  %v3668_v24 = vld [vmem:[#allocation2 + $0xcc] sm:$0xe]  ;;  %vm7077_vm7 = vcmask 454016  }
 0x320   : > { %v3846_v31 = vpop.permute.xlu0 %3845 }
 0x321   : > { %3935 = vst.msk [vmem:[#allocation3 + $0x1c] sm:$0xf] %vm3927_vm10, %v3846_v31 }
 0x323   : > { %v3844_v16 = vpop.permute.xlu2 %3843  ;;  %v3836_v63 = vpop.permute.xlu1 %3835 }
 0x324   : > { %3934 = vst.msk [vmem:[#allocation3 + $0x18] sm:$0xf] %vm3927_vm10, %v3844_v16  ;;  %v8546_v16 = vrot.slane %v3668_v24, 9 }
 0x325   : > { %3930 = vst.msk [vmem:[#allocation3 + $0x8] sm:$0xf] %vm3927_vm10, %v3836_v63 }
 0x328   : > { %v3852_v20 = vpop.permute.xlu0 %3851 }
 0x329   : > { %3938 = vst.msk [vmem:[#allocation3 + $0x28] sm:$0xf] %vm3927_vm10, %v3852_v20 }
 0x32b   : > { %v3850_v57 = vpop.permute.xlu2 %3849  ;;  %v3842_v12 = vpop.permute.xlu1 %3841  ;;  %v8786_v47 = vld [vmem:[#allocation3 + $0x18] sm:$0xff] }
 0x32c   : > { %3937 = vst.msk [vmem:[#allocation3 + $0x24] sm:$0xf] %vm3927_vm10, %v3850_v57  ;;  %v8784_v27 = vld [vmem:[#allocation3 + $0x8] sm:$0xff]  ;;  %v4989_v57 = vshrl.u32 %v4928_v33, 16 }
 0x32d   : > { %3933 = vst.msk [vmem:[#allocation3 + $0x14] sm:$0xf] %vm3927_vm10, %v3842_v12  ;;  %8620 = vmatmul.msk.bf16.gmra.mxu0 %vm4092_vm11, %v8784_v27  ;;  %v3827_v27 = vsel %vm9586_vm13, %v8546_v16, %v3826_v45 }
 0x32e   : > { %3891 = vrot.lane.b32.xlu2 %v3827_v27, %s8874_s14 }
 0x330   : > { %v3858_v13 = vpop.permute.xlu0 %3857 }
 0x331   : > { %3941 = vst.msk [vmem:[#allocation3 + $0x34] sm:$0xf] %vm3927_vm10, %v3858_v13 }
 0x333   : > { %v3856_v35 = vpop.permute.xlu2 %3855  ;;  %v3848_v8 = vpop.permute.xlu1 %3847 }
 0x334   : > { %3940 = vst.msk [vmem:[#allocation3 + $0x30] sm:$0xf] %vm3927_vm10, %v3856_v35  ;;  %v8785_v23 = vld [vmem:[#allocation3 + $0x10] sm:$0xff] }
 0x335   : > { %3936 = vst.msk [vmem:[#allocation3 + $0x20] sm:$0xf] %vm3927_vm10, %v3848_v8 }
 0x338   : > { %v3864_v41 = vpop.permute.xlu0 %3863 }
 0x339   : > { %3944 = vst.msk [vmem:[#allocation3 + $0x40] sm:$0xf] %vm3927_vm10, %v3864_v41 }
 0x33b   : > { %v3862_v1 = vpop.permute.xlu2 %3861  ;;  %v3854_v43 = vpop.permute.xlu1 %3853  ;;  %v8789_v40 = vld [vmem:[#allocation3 + $0x30] sm:$0xff] }
 0x33c   : > { %3943 = vst.msk [vmem:[#allocation3 + $0x3c] sm:$0xf] %vm3927_vm10, %v3862_v1  ;;  %v8787_v5 = vld [vmem:[#allocation3 + $0x20] sm:$0xff] }
 0x33d   : > { %3939 = vst.msk [vmem:[#allocation3 + $0x2c] sm:$0xf] %vm3927_vm10, %v3854_v43  ;;  %8621 = vmatmul.msk.bf16.gmra.mxu0 %vm4092_vm11, %v8785_v23  ;;  %v4991_v43 = vrot.slane %v4989_v57, 4 }
 0x340   : > { %v3870_v17 = vpop.permute.xlu0 %3869 }
 0x341   : > { %3947 = vst.msk [vmem:[#allocation3 + $0x4c] sm:$0xf] %vm3927_vm10, %v3870_v17 }
 0x343   : > { %v3868_v59 = vpop.permute.xlu2 %3867  ;;  %v3860_v58 = vpop.permute.xlu1 %3859 }
 0x344   : > { %3946 = vst.msk [vmem:[#allocation3 + $0x48] sm:$0xf] %vm3927_vm10, %v3868_v59  ;;  %v8788_v54 = vld [vmem:[#allocation3 + $0x28] sm:$0xff] }
 0x345   : > { %3942 = vst.msk [vmem:[#allocation3 + $0x38] sm:$0xf] %vm3927_vm10, %v3860_v58  ;;  %v4749_v59 = vld [vmem:[#allocation4 + $0xc] sm:$0xf] }
 0x348   : > { %v3876_v22 = vpop.permute.xlu0 %3875 }
 0x349   : > { %3950 = vst.msk [vmem:[#allocation3 + $0x58] sm:$0xf] %vm3927_vm10, %v3876_v22 }
 0x34b   : > { %v8792_v38 = vld [vmem:[#allocation3 + $0x48] sm:$0xff]  ;;  %v3874_v25 = vpop.permute.xlu2 %3873  ;;  %v3866_v53 = vpop.permute.xlu1 %3865 }
 0x34c   : > { %3949 = vst.msk [vmem:[#allocation3 + $0x54] sm:$0xf] %vm3927_vm10, %v3874_v25  ;;  %8628 = vmatmul.msk.bf16.vlgmr.msra.gmra.mxu3 %vm4092_vm11, %v8792_v38  ;;  %v8790_v14 = vld [vmem:[#allocation3 + $0x38] sm:$0xff] }
 0x34d   : > { %3945 = vst.msk [vmem:[#allocation3 + $0x44] sm:$0xf] %vm3927_vm10, %v3866_v53  ;;  %8622 = vmatmul.msk.bf16.gmra.mxu0 %vm4092_vm11, %v8786_v47  ;;  %v4992_v53 = vor.u32 %v4991_v43, %v4987_v2 }
 0x350   : > { %v3882_v28 = vpop.permute.xlu0 %3881 }
 0x351   : > { %3953 = vst.msk [vmem:[#allocation3 + $0x64] sm:$0xf] %vm3927_vm10, %v3882_v28 }
 0x353   : > { %v3872_v42 = vpop.permute.xlu1 %3871  ;;  %v3880_v7 = vpop.permute.xlu2 %3879 }
 0x354   : > { %3948 = vst.msk [vmem:[#allocation3 + $0x50] sm:$0xf] %vm3927_vm10, %v3872_v42  ;;  %v8791_v37 = vld [vmem:[#allocation3 + $0x40] sm:$0xff] }
 0x355   : > { %3952 = vst.msk [vmem:[#allocation3 + $0x60] sm:$0xf] %vm3927_vm10, %v3880_v7 }
 0x358   : > { %v3888_v20 = vpop.permute.xlu0 %3887 }
 0x359   : > { %3956 = vst.msk [vmem:[#allocation3 + $0x70] sm:$0xf] %vm3927_vm10, %v3888_v20 }
 0x35b   : > { %v8793_v18 = vld [vmem:[#allocation3 + $0x50] sm:$0xff]  ;;  %v3878_v55 = vpop.permute.xlu1 %3877  ;;  %v3886_v30 = vpop.permute.xlu2 %3885 }
 0x35c   : > { %3951 = vst.msk [vmem:[#allocation3 + $0x5c] sm:$0xf] %vm3927_vm10, %v3878_v55  ;;  %8629 = vmatmul.msk.bf16.gmra.mxu3 %vm4092_vm11, %v8793_v18  ;;  %v8795_v52 = vld [vmem:[#allocation3 + $0x60] sm:$0xff] }
 0x35d   : > { %8623 = vmatmul.msk.bf16.gmra.mxu0 %vm4092_vm11, %v8787_v5  ;;  %3955 = vst.msk [vmem:[#allocation3 + $0x6c] sm:$0xf] %vm3927_vm10, %v3886_v30  ;;  %v4755_v30 = vld [vmem:[#allocation4 + $0x14] sm:$0x1] }
 0x363   : > { %v8794_v50 = vld [vmem:[#allocation3 + $0x58] sm:$0xff]  ;;  %v3884_v48 = vpop.permute.xlu1 %3883 }
 0x364   : > { %3954 = vst.msk [vmem:[#allocation3 + $0x68] sm:$0xf] %vm3927_vm10, %v3884_v48  ;;  %v4929_v48 = vld [vmem:[#allocation4 + $0x8] sm:$0x1] }
 0x36b   : > { %v8796_v56 = vld [vmem:[#allocation3 + $0x68] sm:$0xff]  ;;  %v3890_v12 = vpop.permute.xlu1 %3889 }
 0x36c   : > { %8630 = vmatmul.msk.bf16.gmra.mxu3 %vm4092_vm11, %v8794_v50  ;;  %3957 = vst.msk [vmem:[#allocation3 + $0x74] sm:$0xf] %vm3927_vm10, %v3890_v12  ;;  %v4993_v50 = vrot.slane %v4992_v53, 4 }
 0x36d   : > { %8624 = vmatmul.msk.bf16.gmra.mxu0 %vm4092_vm11, %v8788_v54 }
 0x373   : > { %v8797_v18 = vld [vmem:[#allocation3 + $0x70] sm:$0xff] }
 0x37c   : > { %8631 = vmatmul.msk.bf16.gmra.mxu3 %vm4092_vm11, %v8795_v52 }
 0x37d   : > { %8625 = vmatmul.msk.bf16.gmra.mxu0 %vm4092_vm11, %v8789_v40 }
 0x38c   : > { %8632 = vmatmul.msk.bf16.gmra.mxu3 %vm4092_vm11, %v8796_v56 }
 0x38d   : > { %8626 = vmatmul.msk.bf16.gmra.mxu0 %vm4092_vm11, %v8790_v14  ;;  %v4995_v14 = vshll.u32 %v4929_v48, 16 }
 0x38f   : > { %v4997_v49 = vrot.slane %v4995_v14, 5 }
 0x391   : > { %v4998_v3 = vsel %vm8955_vm3, %v4993_v50, %v4997_v49 }
 0x392   : > { %5361 = vrot.lane.b32.xlu2 %v4998_v3, %s8868_s8 }
 0x399   : > { %v4154_v51 = vpop.f32.mrf.mxu0 }
 0x39a   : > { %v4238_v19 = vmul.f32 %v10844_v11, %v4154_v51 }
 0x39c   : > { %v4274_v21 = vadd.f32 %v10855_v4, %v4238_v19  ;;  %8633 = vmatmul.msk.bf16.gmra.mxu3 %vm4092_vm11, %v8797_v18 }
 0x39d   : > { %8627 = vmatmul.msk.bf16.gmra.mxu0 %vm4092_vm11, %v8791_v37 }
 0x39e   : > { %v4306_v31 = vmax.f32 %v4274_v21, 0.0  ;;  %v4758_v21 = vld [vmem:[#allocation4 + $0x18] sm:$0xf] }
 0x3a0   : > { %v4394_v63 = vpack.c.bf16 %v4306_v31, %v4306_v31 }
 0x3a1   : > { %v4156_v13 = vpop.f32.mrf.mxu0 }
 0x3a2   : > { %v4427_v35 = vshrl.u32 %v4394_v63, 16  ;;  %v4239_v8 = vmul.f32 %v10844_v11, %v4156_v13  ;;  %v4430_v23 = vshll.u32 %v4394_v63, 16 }
 0x3a4   : > { %v4429_v41 = vrot.slane %v4427_v35, 7  ;;  %v4275_v1 = vadd.f32 %v10855_v4, %v4239_v8 }
 0x3a6   : > { %v4432_v58 = vor.u32 %v4430_v23, %v4429_v41  ;;  %v4307_v38 = vmax.f32 %v4275_v1, 0.0  ;;  %v4433_v42 = vrot.slane %v4429_v41, 4 }
 0x3a8   : > { %v4750_v25 = vsel %vm10897_vm15, %v4432_v58, %v4749_v59  ;;  %v4395_v47 = vpack.c.bf16 %v4307_v38, %v4307_v38 }
 0x3a9   : > { %4751 = vst [vmem:[#allocation4 + $0xc] sm:$0xf] %v4750_v25 }
 0x3aa   : > { %v4435_v22 = vshrl.u32 %v4395_v47, 16  ;;  %v4159_v5 = vpop.f32.mrf.mxu0  ;;  %v4438_v7 = vshll.u32 %v4395_v47, 16  ;;  %v4762_v47 = vld [vmem:[#allocation4 + $0x20] sm:$0x1] }
 0x3ab   : > { %v4240_v28 = vmul.f32 %v10844_v11, %v4159_v5 }
 0x3ac   : > { %v4437_v55 = vrot.slane %v4435_v22, 7 }
 0x3ad   : > { %v4276_v56 = vadd.f32 %v10855_v4, %v4240_v28 }
 0x3ae   : > { %v4440_v52 = vor.u32 %v4438_v7, %v4437_v55  ;;  %v4442_v40 = vrot.slane %v4437_v55, 4 }
 0x3af   : > { %v4308_v45 = vmax.f32 %v4276_v56, 0.0 }
 0x3b0   : > { %v4441_v34 = vsel %vm9096_vm9, %v4433_v42, %v4440_v52  ;;  %v4756_v29 = vsel %vm10920_vm5, %v4442_v40, %v4755_v30  ;;  %v4930_v44 = vld [vmem:[#allocation4 + $0xc] sm:$0xf] }
 0x3b1   : > { %4752 = vst.msk [vmem:[#allocation4 + $0x10] sm:$0xf] %vm4338_vm12, %v4441_v34  ;;  %v5000_v36 = vshrl.u32 %v4930_v44, 16  ;;  %v5003_v46 = vshll.u32 %v4930_v44, 16  ;;  %v4396_v62 = vpack.c.bf16 %v4308_v45, %v4308_v45  ;;  %v4865_v37 = vld [vmem:[#allocation4 + $0xc] sm:$0xf] }
 0x3b2   : > { %4757 = vst [vmem:[#allocation4 + $0x14] sm:$0x1] %v4756_v29  ;;  %v4161_v26 = vpop.f32.mrf.mxu0 }
 0x3b3   : > { %v5002_v33 = vrot.slane %v5000_v36, 4  ;;  %v5005_v6 = vrot.slane %v5003_v46, 5  ;;  %v4444_v15 = vshrl.u32 %v4396_v62, 16  ;;  %v4241_v32 = vmul.f32 %v10844_v11, %v4161_v26  ;;  %4897 = vst.msk [vmem:[#allocation5 + $0x8] sm:$0xf] %vm4338_vm12, %v4865_v37 }
 0x3b4   : > { %v4447_v19 = vshll.u32 %v4396_v62, 16  ;;  %v4765_v62 = vld [vmem:[#allocation4 + $0x24] sm:$0xf] }
 0x3b5   : > { %v4446_v51 = vrot.slane %v4444_v15, 7  ;;  %v4277_v39 = vadd.f32 %v10855_v4, %v4241_v32  ;;  %v5006_v2 = vor.u32 %v5005_v6, %v5002_v33 }
 0x3b7   : > { %v4449_v9 = vor.u32 %v4447_v19, %v4446_v51  ;;  %v4309_v24 = vmax.f32 %v4277_v39, 0.0  ;;  %v5007_v12 = vrot.slane %v5006_v2, 4  ;;  %v4450_v42 = vrot.slane %v4446_v51, 4 }
 0x3b8   : > { %v4931_v31 = vld [vmem:[#allocation4 + $0x10] sm:$0xf] }
 0x3b9   : > { %v5009_v16 = vshll.u32 %v4931_v31, 16  ;;  %v5013_v63 = vshrl.u32 %v4931_v31, 16  ;;  %v4932_v20 = vld [vmem:[#allocation4 + $0x14] sm:$0x1]  ;;  %v4759_v57 = vsel %vm10897_vm15, %v4449_v9, %v4758_v21  ;;  %v4397_v27 = vpack.c.bf16 %v4309_v24, %v4309_v24  ;;  %v4866_v23 = vld [vmem:[#allocation4 + $0x10] sm:$0xf] }
 0x3ba   : > { %v5019_v13 = vshll.u32 %v4932_v20, 16  ;;  %4760 = vst [vmem:[#allocation4 + $0x18] sm:$0xf] %v4759_v57  ;;  %v4164_v35 = vpop.f32.mrf.mxu0 }
 0x3bb   : > { %v5011_v8 = vrot.slane %v5009_v16, 5  ;;  %v5015_v41 = vrot.slane %v5013_v63, 4  ;;  %v4452_v1 = vshrl.u32 %v4397_v27, 16  ;;  %v4242_v43 = vmul.f32 %v10844_v11, %v4164_v35  ;;  %4898 = vst.msk [vmem:[#allocation5 + $0xc] sm:$0xf] %vm4338_vm12, %v4866_v23 }
 0x3bc   : > { %v4455_v38 = vshll.u32 %v4397_v27, 16  ;;  %v5021_v22 = vrot.slane %v5019_v13, 5  ;;  %v4769_v13 = vld [vmem:[#allocation4 + $0x2c] sm:$0x1] }
 0x3bd   : > { %v5012_v0 = vsel %vm8955_vm3, %v5007_v12, %v5011_v8  ;;  %v5016_v59 = vor.u32 %v5015_v41, %v5011_v8  ;;  %v4454_v58 = vrot.slane %v4452_v1, 7  ;;  %v4278_v25 = vadd.f32 %v10855_v4, %v4242_v43 }
 0x3be   : > { %5363 = vrot.lane.b32.xlu0 %v5012_v0, %s8868_s8 }
 0x3bf   : > { %v5017_v53 = vrot.slane %v5016_v59, 4  ;;  %v4457_v5 = vor.u32 %v4455_v38, %v4454_v58  ;;  %v4459_v18 = vrot.slane %v4454_v58, 4  ;;  %v4310_v55 = vmax.f32 %v4278_v25, 0.0 }
 0x3c1   : > { %v5022_v7 = vsel %vm8955_vm3, %v5017_v53, %v5021_v22  ;;  %v4458_v28 = vsel %vm9096_vm9, %v4450_v42, %v4457_v5  ;;  %v4763_v50 = vsel %vm10920_vm5, %v4459_v18, %v4762_v47  ;;  %v4398_v30 = vpack.c.bf16 %v4310_v55, %v4310_v55  ;;  %v4933_v48 = vld [vmem:[#allocation4 + $0x18] sm:$0xf] }
 0x3c2   : > { %5365 = vrot.lane.b32.xlu1 %v5022_v7, %s8868_s8  ;;  %v4867_v52 = vld [vmem:[#allocation4 + $0x18] sm:$0xf]  ;;  %4761 = vst.msk [vmem:[#allocation4 + $0x1c] sm:$0xf] %vm4338_vm12, %v4458_v28  ;;  %v4166_v40 = vpop.f32.mrf.mxu0  ;;  %v5024_v56 = vshrl.u32 %v4933_v48, 16  ;;  %v5027_v14 = vshll.u32 %v4933_v48, 16 }
 0x3c3   : > { %4764 = vst [vmem:[#allocation4 + $0x20] sm:$0x1] %v4763_v50  ;;  %v4461_v34 = vshrl.u32 %v4398_v30, 16  ;;  %v4243_v29 = vmul.f32 %v10844_v11, %v4166_v40  ;;  %v4464_v36 = vshll.u32 %v4398_v30, 16 }
 0x3c4   : > { %v5026_v45 = vrot.slane %v5024_v56, 4  ;;  %v5029_v44 = vrot.slane %v5027_v14, 5  ;;  %4899 = vst.msk [vmem:[#allocation5 + $0x10] sm:$0xf] %vm4338_vm12, %v4867_v52 }
 0x3c5   : > { %v4463_v49 = vrot.slane %v4461_v34, 7  ;;  %v4279_v46 = vadd.f32 %v10855_v4, %v4243_v29  ;;  %v4772_v29 = vld [vmem:[#allocation4 + $0x30] sm:$0xf] }
 0x3c6   : > { %v5030_v33 = vor.u32 %v5029_v44, %v5026_v45 }
 0x3c7   : > { %v4466_v3 = vor.u32 %v4464_v36, %v4463_v49  ;;  %v4311_v26 = vmax.f32 %v4279_v46, 0.0  ;;  %v4467_v12 = vrot.slane %v4463_v49, 4 }
 0x3c8   : > { %v5031_v24 = vrot.slane %v5030_v33, 4 }
 0x3c9   : > { %v4766_v6 = vsel %vm10897_vm15, %v4466_v3, %v4765_v62  ;;  %v4399_v15 = vpack.c.bf16 %v4311_v26, %v4311_v26  ;;  %v4934_v32 = vld [vmem:[#allocation4 + $0x1c] sm:$0xf]  ;;  %v4814_v3 = vld [vmem:[#allocation4 + $0x78] sm:$0xf] }
 0x3ca   : > { %v4868_v51 = vld [vmem:[#allocation4 + $0x1c] sm:$0xf]  ;;  %4767 = vst [vmem:[#allocation4 + $0x24] sm:$0xf] %v4766_v6  ;;  %v4169_v19 = vpop.f32.mrf.mxu0  ;;  %v5033_v39 = vshll.u32 %v4934_v32, 16  ;;  %v5037_v2 = vshrl.u32 %v4934_v32, 16 }
 0x3cb   : > { %v4935_v21 = vld [vmem:[#allocation4 + $0x20] sm:$0x1]  ;;  %v4469_v37 = vshrl.u32 %v4399_v15, 16  ;;  %v4244_v9 = vmul.f32 %v10844_v11, %v4169_v19  ;;  %4900 = vst.msk [vmem:[#allocation5 + $0x14] sm:$0xf] %vm4338_vm12, %v4868_v51  ;;  %v4472_v57 = vshll.u32 %v4399_v15, 16 }
 0x3cc   : > { %v5035_v31 = vrot.slane %v5033_v39, 5  ;;  %v5039_v16 = vrot.slane %v5037_v2, 4  ;;  %v5043_v63 = vshll.u32 %v4935_v21, 16 }
 0x3cd   : > { %v4471_v20 = vrot.slane %v4469_v37, 7  ;;  %v4280_v27 = vadd.f32 %v10855_v4, %v4244_v9 }
 0x3ce   : > { %v5036_v35 = vsel %vm8955_vm3, %v5031_v24, %v5035_v31  ;;  %v5040_v8 = vor.u32 %v5039_v16, %v5035_v31  ;;  %v5045_v58 = vrot.slane %v5043_v63, 5 }
 0x3cf   : > { %v4199_v41 = vpop.f32.mrf.mxu3  ;;  %v4474_v23 = vor.u32 %v4472_v57, %v4471_v20  ;;  %v4476_v1 = vrot.slane %v4471_v20, 4  ;;  %v4312_v43 = vmax.f32 %v4280_v27, 0.0  ;;  %5367 = vrot.lane.b32.xlu2 %v5036_v35, %s8868_s8 }
 0x3d0   : > { %v4256_v0 = vmul.f32 %v10844_v11, %v4199_v41  ;;  %v5041_v59 = vrot.slane %v5040_v8, 4 }
 0x3d1   : > { %v4475_v38 = vsel %vm9096_vm9, %v4467_v12, %v4474_v23  ;;  %v4770_v25 = vsel %vm10920_vm5, %v4476_v1, %v4769_v13  ;;  %v4400_v47 = vpack.c.bf16 %v4312_v43, %v4312_v43  ;;  %v4936_v22 = vld [vmem:[#allocation4 + $0x24] sm:$0xf]  ;;  %v4776_v23 = vld [vmem:[#allocation4 + $0x38] sm:$0x1] }
 0x3d2   : > { %v4292_v53 = vadd.f32 %v10855_v4, %v4256_v0  ;;  %v4869_v42 = vld [vmem:[#allocation4 + $0x24] sm:$0xf]  ;;  %4768 = vst.msk [vmem:[#allocation4 + $0x28] sm:$0xf] %vm4338_vm12, %v4475_v38  ;;  %v4171_v5 = vpop.f32.mrf.mxu0  ;;  %v5046_v18 = vsel %vm8955_vm3, %v5041_v59, %v5045_v58  ;;  %v5048_v55 = vshrl.u32 %v4936_v22, 16  ;;  %v5051_v7 = vshll.u32 %v4936_v22, 16 }
 0x3d3   : > { %4771 = vst [vmem:[#allocation4 + $0x2c] sm:$0x1] %v4770_v25  ;;  %v4478_v28 = vshrl.u32 %v4400_v47, 16  ;;  %v4245_v50 = vmul.f32 %v10844_v11, %v4171_v5  ;;  %5369 = vrot.lane.b32.xlu0 %v5046_v18, %s8868_s8  ;;  %v4481_v56 = vshll.u32 %v4400_v47, 16 }
 0x3d4   : > { %v4324_v30 = vmax.f32 %v4292_v53, 0.0  ;;  %v5050_v48 = vrot.slane %v5048_v55, 4  ;;  %v5053_v52 = vrot.slane %v5051_v7, 5  ;;  %4901 = vst.msk [vmem:[#allocation5 + $0x18] sm:$0xf] %vm4338_vm12, %v4869_v42 }
 0x3d5   : > { %v4480_v40 = vrot.slane %v4478_v28, 7  ;;  %v4281_v14 = vadd.f32 %v10855_v4, %v4245_v50 }
 0x3d6   : > { %v4412_v34 = vpack.c.bf16 %v4324_v30, %v4324_v30  ;;  %v5054_v46 = vor.u32 %v5053_v52, %v5050_v48 }
 0x3d7   : > { %v4201_v45 = vpop.f32.mrf.mxu3  ;;  %v4483_v44 = vor.u32 %v4481_v56, %v4480_v40  ;;  %v4313_v49 = vmax.f32 %v4281_v14, 0.0  ;;  %v4484_v41 = vrot.slane %v4480_v40, 4 }
 0x3d8   : > { %v4580_v36 = vshrl.u32 %v4412_v34, 16  ;;  %v4583_v62 = vshll.u32 %v4412_v34, 16  ;;  %v4257_v26 = vmul.f32 %v10844_v11, %v4201_v45  ;;  %v5055_v16 = vrot.slane %v5054_v46, 4 }
 0x3d9   : > { %v4773_v33 = vsel %vm10897_vm15, %v4483_v44, %v4772_v29  ;;  %v4401_v6 = vpack.c.bf16 %v4313_v49, %v4313_v49  ;;  %v4937_v32 = vld [vmem:[#allocation4 + $0x28] sm:$0xf] }
 0x3da   : > { %v11002_v15 = vrot.slane %v4580_v36, 7  ;;  %v4870_v51 = vld [vmem:[#allocation4 + $0x28] sm:$0xf]  ;;  %4774 = vst [vmem:[#allocation4 + $0x30] sm:$0xf] %v4773_v33  ;;  %v4174_v19 = vpop.f32.mrf.mxu0  ;;  %v5057_v39 = vshll.u32 %v4937_v32, 16  ;;  %v4293_v37 = vadd.f32 %v10855_v4, %v4257_v26 }
 0x3db   : > { %v5061_v2 = vshrl.u32 %v4937_v32, 16  ;;  %v4938_v21 = vld [vmem:[#allocation4 + $0x2c] sm:$0x1]  ;;  %v4486_v9 = vshrl.u32 %v4401_v6, 16  ;;  %v4246_v24 = vmul.f32 %v10844_v11, %v4174_v19  ;;  %4902 = vst.msk [vmem:[#allocation5 + $0x1c] sm:$0xf] %vm4338_vm12, %v4870_v51 }
 0x3dc   : > { %v4585_v31 = vor.u32 %v4583_v62, %v11002_v15  ;;  %v4489_v63 = vshll.u32 %v4401_v6, 16  ;;  %v5059_v20 = vrot.slane %v5057_v39, 5  ;;  %v5067_v27 = vshll.u32 %v4938_v21, 16  ;;  %v4818_v26 = vld [vmem:[#allocation4 + $0x80] sm:$0x1] }
 0x3dd   : > { %v5063_v57 = vrot.slane %v5061_v2, 4  ;;  %v4488_v12 = vrot.slane %v4486_v9, 7  ;;  %v4282_v13 = vadd.f32 %v10855_v4, %v4246_v24  ;;  %v4325_v8 = vmax.f32 %v4293_v37, 0.0  ;;  %v4779_v33 = vld [vmem:[#allocation4 + $0x3c] sm:$0xf] }
 0x3de   : > { %v4815_v35 = vsel %vm10897_vm15, %v4585_v31, %v4814_v3  ;;  %v5060_v1 = vsel %vm8955_vm3, %v5055_v16, %v5059_v20  ;;  %v5069_v47 = vrot.slane %v5067_v27, 5  ;;  %v4586_v56 = vrot.slane %v11002_v15, 4 }
 0x3df   : > { %4816 = vst [vmem:[#allocation4 + $0x78] sm:$0xf] %v4815_v35  ;;  %v5064_v43 = vor.u32 %v5063_v57, %v5059_v20  ;;  %v4491_v0 = vor.u32 %v4489_v63, %v4488_v12  ;;  %v4493_v59 = vrot.slane %v4488_v12, 4  ;;  %v4314_v58 = vmax.f32 %v4282_v13, 0.0  ;;  %5371 = vrot.lane.b32.xlu1 %v5060_v1, %s8868_s8  ;;  %v4204_v53 = vpop.f32.mrf.mxu3  ;;  %v4821_v1 = vld [vmem:[#allocation4 + $0x84] sm:$0xf] }
 0x3e0   : > { %v4413_v38 = vpack.c.bf16 %v4325_v8, %v4325_v8  ;;  %v4258_v48 = vmul.f32 %v10844_v11, %v4204_v53 }
 0x3e1   : > { %v5065_v25 = vrot.slane %v5064_v43, 4  ;;  %v4492_v22 = vsel %vm9096_vm9, %v4484_v41, %v4491_v0  ;;  %v4777_v42 = vsel %vm10920_vm5, %v4493_v59, %v4776_v23  ;;  %v4402_v5 = vpack.c.bf16 %v4314_v58, %v4314_v58  ;;  %v4939_v55 = vld [vmem:[#allocation4 + $0x30] sm:$0xf] }
 0x3e2   : > { %v4588_v18 = vshrl.u32 %v4413_v38, 16  ;;  %v4871_v7 = vld [vmem:[#allocation4 + $0x30] sm:$0xf]  ;;  %4775 = vst.msk [vmem:[#allocation4 + $0x34] sm:$0xf] %vm4338_vm12, %v4492_v22  ;;  %v4176_v28 = vpop.f32.mrf.mxu0  ;;  %v4591_v30 = vshll.u32 %v4413_v38, 16  ;;  %v4294_v45 = vadd.f32 %v10855_v4, %v4258_v48 }
 0x3e3   : > { %v5070_v50 = vsel %vm8955_vm3, %v5065_v25, %v5069_v47  ;;  %v5072_v52 = vshrl.u32 %v4939_v55, 16  ;;  %4778 = vst [vmem:[#allocation4 + $0x38] sm:$0x1] %v4777_v42  ;;  %v4495_v40 = vshrl.u32 %v4402_v5, 16  ;;  %v4247_v14 = vmul.f32 %v10844_v11, %v4176_v28  ;;  %v4783_v42 = vld [vmem:[#allocation4 + $0x44] sm:$0x1] }
 0x3e4   : > { %5373 = vrot.lane.b32.xlu2 %v5070_v50, %s8868_s8  ;;  %v4590_v34 = vrot.slane %v4588_v18, 7  ;;  %v4498_v29 = vshll.u32 %v4402_v5, 16  ;;  %v5075_v49 = vshll.u32 %v4939_v55, 16  ;;  %4903 = vst.msk [vmem:[#allocation5 + $0x20] sm:$0xf] %vm4338_vm12, %v4871_v7  ;;  %v4326_v6 = vmax.f32 %v4294_v45, 0.0 }
 0x3e5   : > { %v5074_v44 = vrot.slane %v5072_v52, 4  ;;  %v4497_v36 = vrot.slane %v4495_v40, 7  ;;  %v4283_v46 = vadd.f32 %v10855_v4, %v4247_v14 }
 0x3e6   : > { %v4593_v62 = vor.u32 %v4591_v30, %v4590_v34  ;;  %v4595_v3 = vrot.slane %v4590_v34, 4  ;;  %v5077_v15 = vrot.slane %v5075_v49, 5  ;;  %v4414_v2 = vpack.c.bf16 %v4326_v6, %v4326_v6 }
 0x3e7   : > { %v4500_v32 = vor.u32 %v4498_v29, %v4497_v36  ;;  %v4315_v51 = vmax.f32 %v4283_v46, 0.0  ;;  %v4206_v37 = vpop.f32.mrf.mxu3  ;;  %v4501_v22 = vrot.slane %v4497_v36, 4 }
 0x3e8   : > { %v4594_v19 = vsel %vm9096_vm9, %v4586_v56, %v4593_v62  ;;  %v4819_v39 = vsel %vm10920_vm5, %v4595_v3, %v4818_v26  ;;  %v5078_v21 = vor.u32 %v5077_v15, %v5074_v44  ;;  %v4259_v16 = vmul.f32 %v10844_v11, %v4206_v37 }
 0x3e9   : > { %4817 = vst.msk [vmem:[#allocation4 + $0x7c] sm:$0xf] %vm4338_vm12, %v4594_v19  ;;  %v4780_v9 = vsel %vm10897_vm15, %v4500_v32, %v4779_v33  ;;  %v4403_v24 = vpack.c.bf16 %v4315_v51, %v4315_v51  ;;  %v4940_v31 = vld [vmem:[#allocation4 + $0x34] sm:$0xf]  ;;  %v4597_v20 = vshrl.u32 %v4414_v2, 16  ;;  %v4600_v57 = vshll.u32 %v4414_v2, 16 }
 0x3ea   : > { %4820 = vst [vmem:[#allocation4 + $0x80] sm:$0x1] %v4819_v39  ;;  %v4179_v63 = vpop.f32.mrf.mxu0  ;;  %v5081_v27 = vshll.u32 %v4940_v31, 16  ;;  %v5079_v35 = vrot.slane %v5078_v21, 4  ;;  %v5085_v8 = vshrl.u32 %v4940_v31, 16  ;;  %v4295_v59 = vadd.f32 %v10855_v4, %v4259_v16 }
 0x3eb   : > { %4781 = vst [vmem:[#allocation4 + $0x3c] sm:$0xf] %v4780_v9  ;;  %v4503_v12 = vshrl.u32 %v4403_v24, 16  ;;  %v4248_v13 = vmul.f32 %v10844_v11, %v4179_v63  ;;  %v4941_v41 = vld [vmem:[#allocation4 + $0x38] sm:$0x1]  ;;  %v11037_v23 = vrot.slane %v4597_v20, 7 }
 0x3ec   : > { %v5083_v43 = vrot.slane %v5081_v27, 5  ;;  %v5091_v0 = vshll.u32 %v4941_v41, 16  ;;  %v4506_v38 = vshll.u32 %v4403_v24, 16  ;;  %v5087_v47 = vrot.slane %v5085_v8, 4  ;;  %v4872_v53 = vld [vmem:[#allocation4 + $0x34] sm:$0xf] }
 0x3ed   : > { %v4505_v58 = vrot.slane %v4503_v12, 7  ;;  %v4284_v25 = vadd.f32 %v10855_v4, %v4248_v13  ;;  %v4602_v5 = vor.u32 %v4600_v57, %v11037_v23  ;;  %4904 = vst.msk [vmem:[#allocation5 + $0x24] sm:$0xf] %vm4338_vm12, %v4872_v53  ;;  %v4327_v52 = vmax.f32 %v4295_v59, 0.0  ;;  %v4786_v9 = vld [vmem:[#allocation4 + $0x48] sm:$0xf] }
 0x3ee   : > { %v5084_v18 = vsel %vm8955_vm3, %v5079_v35, %v5083_v43  ;;  %v5088_v50 = vor.u32 %v5087_v47, %v5083_v43  ;;  %v5093_v48 = vrot.slane %v5091_v0, 5  ;;  %v4603_v24 = vrot.slane %v11037_v23, 4  ;;  %v4825_v57 = vld [vmem:[#allocation4 + $0x8c] sm:$0x1] }
 0x3ef   : > { %v4508_v55 = vor.u32 %v4506_v38, %v4505_v58  ;;  %v4510_v7 = vrot.slane %v4505_v58, 4  ;;  %v4316_v28 = vmax.f32 %v4284_v25, 0.0  ;;  %5375 = vrot.lane.b32.xlu0 %v5084_v18, %s8868_s8  ;;  %v4822_v30 = vsel %vm10897_vm15, %v4602_v5, %v4821_v1  ;;  %v4209_v40 = vpop.f32.mrf.mxu3 }
 0x3f0   : > { %4823 = vst [vmem:[#allocation4 + $0x84] sm:$0xf] %v4822_v30  ;;  %v5089_v29 = vrot.slane %v5088_v50, 4  ;;  %v4415_v49 = vpack.c.bf16 %v4327_v52, %v4327_v52  ;;  %v4260_v36 = vmul.f32 %v10844_v11, %v4209_v40  ;;  %v3892_v30 = vpop.permute.xlu2 %3891  ;;  %v5844_v60 = vld [vmem:[#allocation4 + $0x7c] sm:$0xf] }
 0x3f1   : > { %v4509_v56 = vsel %vm9096_vm9, %v4501_v22, %v4508_v55  ;;  %v4784_v14 = vsel %vm10920_vm5, %v4510_v7, %v4783_v42  ;;  %v4404_v34 = vpack.c.bf16 %v4316_v28, %v4316_v28  ;;  %v4828_v42 = vld [vmem:[#allocation4 + $0x90] sm:$0xf]  ;;  %3958 = vst.msk [vmem:[#allocation3 + $0x78] sm:$0xf] %vm3927_vm10, %v3892_v30 }
 0x3f2   : > { %v4942_v45 = vld [vmem:[#allocation4 + $0x3c] sm:$0xf]  ;;  %4782 = vst.msk [vmem:[#allocation4 + $0x40] sm:$0xf] %vm4338_vm12, %v4509_v56  ;;  %v4181_v44 = vpop.f32.mrf.mxu0  ;;  %v5094_v33 = vsel %vm8955_vm3, %v5089_v29, %v5093_v48  ;;  %v4605_v6 = vshrl.u32 %v4415_v49, 16  ;;  %v4608_v15 = vshll.u32 %v4415_v49, 16  ;;  %v4296_v32 = vadd.f32 %v10855_v4, %v4260_v36 }
 0x3f3   : > { %v5096_v46 = vshrl.u32 %v4942_v45, 16  ;;  %v5099_v62 = vshll.u32 %v4942_v45, 16  ;;  %4785 = vst [vmem:[#allocation4 + $0x44] sm:$0x1] %v4784_v14  ;;  %v4512_v3 = vshrl.u32 %v4404_v34, 16  ;;  %v4249_v26 = vmul.f32 %v10844_v11, %v4181_v44  ;;  %5377 = vrot.lane.b32.xlu1 %v5094_v33, %s8868_s8 }
 0x3f4   : > { %v4873_v19 = vld [vmem:[#allocation4 + $0x3c] sm:$0xf]  ;;  %v4515_v2 = vshll.u32 %v4404_v34, 16  ;;  %v4607_v31 = vrot.slane %v4605_v6, 7  ;;  %v4328_v16 = vmax.f32 %v4296_v32, 0.0 }
 0x3f5   : > { %v5098_v51 = vrot.slane %v5096_v46, 4  ;;  %v4514_v39 = vrot.slane %v4512_v3, 7  ;;  %v4285_v21 = vadd.f32 %v10855_v4, %v4249_v26  ;;  %v5101_v37 = vrot.slane %v5099_v62, 5  ;;  %4905 = vst.msk [vmem:[#allocation5 + $0x28] sm:$0xf] %vm4338_vm12, %v4873_v19 }
 0x3f6   : > { %v4610_v12 = vor.u32 %v4608_v15, %v4607_v31  ;;  %v4612_v13 = vrot.slane %v4607_v31, 4  ;;  %v4416_v35 = vpack.c.bf16 %v4328_v16, %v4328_v16  ;;  %v4790_v34 = vld [vmem:[#allocation4 + $0x50] sm:$0x1] }
 0x3f7   : > { %v4517_v63 = vor.u32 %v4515_v2, %v4514_v39  ;;  %v4317_v20 = vmax.f32 %v4285_v21, 0.0  ;;  %v5102_v27 = vor.u32 %v5101_v37, %v5098_v51  ;;  %v4211_v8 = vpop.f32.mrf.mxu3  ;;  %v4518_v14 = vrot.slane %v4514_v39, 4 }
 0x3f8   : > { %v4261_v0 = vmul.f32 %v10844_v11, %v4211_v8  ;;  %v4611_v23 = vsel %vm9096_vm9, %v4603_v24, %v4610_v12  ;;  %v4826_v59 = vsel %vm10920_vm5, %v4612_v13, %v4825_v57  ;;  %v4614_v38 = vshrl.u32 %v4416_v35, 16 }
 0x3f9   : > { %v4787_v41 = vsel %vm10897_vm15, %v4517_v63, %v4786_v9  ;;  %v4405_v1 = vpack.c.bf16 %v4317_v20, %v4317_v20  ;;  %v4943_v43 = vld [vmem:[#allocation4 + $0x40] sm:$0xf]  ;;  %v4617_v25 = vshll.u32 %v4416_v35, 16  ;;  %4824 = vst.msk [vmem:[#allocation4 + $0x88] sm:$0xf] %vm4338_vm12, %v4611_v23  ;;  %v5103_v5 = vrot.slane %v5102_v27, 4 }
 0x3fa   : > { %4788 = vst [vmem:[#allocation4 + $0x48] sm:$0xf] %v4787_v41  ;;  %v4184_v58 = vpop.f32.mrf.mxu0  ;;  %v4944_v47 = vld [vmem:[#allocation4 + $0x44] sm:$0x1]  ;;  %v5105_v18 = vshll.u32 %v4943_v43, 16  ;;  %v11071_v55 = vrot.slane %v4614_v38, 7  ;;  %v4297_v50 = vadd.f32 %v10855_v4, %v4261_v0 }
 0x3fb   : > { %v4520_v53 = vshrl.u32 %v4405_v1, 16  ;;  %v4250_v22 = vmul.f32 %v10844_v11, %v4184_v58  ;;  %4827 = vst [vmem:[#allocation4 + $0x8c] sm:$0x1] %v4826_v59  ;;  %v5109_v7 = vshrl.u32 %v4943_v43, 16  ;;  %v5115_v28 = vshll.u32 %v4944_v47, 16 }
 0x3fc   : > { %v4523_v52 = vshll.u32 %v4405_v1, 16  ;;  %v5107_v56 = vrot.slane %v5105_v18, 5  ;;  %v4619_v29 = vor.u32 %v4617_v25, %v11071_v55  ;;  %v4329_v33 = vmax.f32 %v4297_v50, 0.0  ;;  %v4793_v43 = vld [vmem:[#allocation4 + $0x54] sm:$0xf] }
 0x3fd   : > { %v4522_v48 = vrot.slane %v4520_v53, 7  ;;  %v4286_v40 = vadd.f32 %v10855_v4, %v4250_v22  ;;  %v5111_v45 = vrot.slane %v5109_v7, 4  ;;  %v5117_v26 = vrot.slane %v5115_v28, 5  ;;  %v4832_v38 = vld [vmem:[#allocation4 + $0x98] sm:$0x1] }
 0x3fe   : > { %v5108_v46 = vsel %vm8955_vm3, %v5103_v5, %v5107_v56  ;;  %v4829_v62 = vsel %vm10897_vm15, %v4619_v29, %v4828_v42  ;;  %v4417_v37 = vpack.c.bf16 %v4329_v33, %v4329_v33  ;;  %v4620_v0 = vrot.slane %v11071_v55, 4 }
 0x3ff   : > { %v4525_v44 = vor.u32 %v4523_v52, %v4522_v48  ;;  %v4527_v49 = vrot.slane %v4522_v48, 4  ;;  %v4318_v36 = vmax.f32 %v4286_v40, 0.0  ;;  %5379 = vrot.lane.b32.xlu2 %v5108_v46, %s8868_s8  ;;  %v5112_v3 = vor.u32 %v5111_v45, %v5107_v56  ;;  %v4214_v6 = vpop.f32.mrf.mxu3  ;;  %4830 = vst [vmem:[#allocation4 + $0x90] sm:$0xf] %v4829_v62  ;;  %v4835_v52 = vld [vmem:[#allocation4 + $0x9c] sm:$0xf] }
 0x400   : > { %v4262_v19 = vmul.f32 %v10844_v11, %v4214_v6  ;;  %v4622_v27 = vshrl.u32 %v4417_v37, 16  ;;  %v4625_v12 = vshll.u32 %v4417_v37, 16  ;;  %v4864_v6 = vld [vmem:[#allocation4 + $0x4] sm:$0xf] }
 0x401   : > { %v4526_v15 = vsel %vm9096_vm9, %v4518_v14, %v4525_v44  ;;  %v4791_v32 = vsel %vm10920_vm5, %v4527_v49, %v4790_v34  ;;  %v4406_v51 = vpack.c.bf16 %v4318_v36, %v4318_v36  ;;  %v4945_v39 = vld [vmem:[#allocation4 + $0x48] sm:$0xf]  ;;  %v5113_v21 = vrot.slane %v5112_v3, 4  ;;  %4896 = vst.msk [vmem:[#allocation5 + $0x4] sm:$0xf] %vm4338_vm12, %v4864_v6 }
 0x402   : > { %4789 = vst.msk [vmem:[#allocation4 + $0x4c] sm:$0xf] %vm4338_vm12, %v4526_v15  ;;  %v4186_v2 = vpop.f32.mrf.mxu0  ;;  %v5120_v9 = vshrl.u32 %v4945_v39, 16  ;;  %v5123_v24 = vshll.u32 %v4945_v39, 16  ;;  %v4298_v20 = vadd.f32 %v10855_v4, %v4262_v19  ;;  %v4624_v23 = vrot.slane %v4622_v27, 7 }
 0x403   : > { %4792 = vst [vmem:[#allocation4 + $0x50] sm:$0x1] %v4791_v32  ;;  %v4529_v31 = vshrl.u32 %v4406_v51, 16  ;;  %v4532_v16 = vshll.u32 %v4406_v51, 16  ;;  %v4251_v63 = vmul.f32 %v10844_v11, %v4186_v2  ;;  %v5118_v57 = vsel %vm8955_vm3, %v5113_v21, %v5117_v26  ;;  %v4797_v32 = vld [vmem:[#allocation4 + $0x5c] sm:$0x1]  ;;  %v3894_v2 = vpop.permute.xlu0 %3893 }
 0x404   : > { %v5122_v13 = vrot.slane %v5120_v9, 4  ;;  %5381 = vrot.lane.b32.xlu0 %v5118_v57, %s8868_s8  ;;  %v4330_v41 = vmax.f32 %v4298_v20, 0.0  ;;  %v5125_v1 = vrot.slane %v5123_v24, 5  ;;  %v4627_v47 = vor.u32 %v4625_v12, %v4624_v23  ;;  %3959 = vst.msk [vmem:[#allocation3 + $0x7c] sm:$0xf] %vm3927_vm10, %v3894_v2 }
 0x405   : > { %v11092_v35 = vrot.slane %v4529_v31, 7  ;;  %v4287_v8 = vadd.f32 %v10855_v4, %v4251_v63  ;;  %v4629_v53 = vrot.slane %v4624_v23, 4  ;;  %v11127_v12 = vld [vmem:[%s12341_s2] ss:$0 sm:$0xff]  ;;  %vm7975_vm10 = vcmask 585216  }
 0x406   : > { %v4418_v25 = vpack.c.bf16 %v4330_v41, %v4330_v41  ;;  %v5126_v22 = vor.u32 %v5125_v1, %v5122_v13  ;;  %v4628_v55 = vsel %vm9096_vm9, %v4620_v0, %v4627_v47  ;;  %v11139_v47 = vld [vmem:[#allocation4 + $0x78] sm:$0xf] }
 0x407   : > { %v4534_v59 = vor.u32 %v4532_v16, %v11092_v35  ;;  %v4319_v58 = vmax.f32 %v4287_v8, 0.0  ;;  %v4216_v42 = vpop.f32.mrf.mxu3  ;;  %v4833_v30 = vsel %vm10920_vm5, %v4629_v53, %v4832_v38  ;;  %4831 = vst.msk [vmem:[#allocation4 + $0x94] sm:$0xf] %vm4338_vm12, %v4628_v55  ;;  %v4535_v15 = vrot.slane %v11092_v35, 4  ;;  %v11136_v38 = vld [vmem:[%s12342_s3] ss:$0 sm:$0xff] }
 0x408   : > { %v4631_v7 = vshrl.u32 %v4418_v25, 16  ;;  %v4634_v28 = vshll.u32 %v4418_v25, 16  ;;  %v5127_v45 = vrot.slane %v5126_v22, 4  ;;  %4834 = vst [vmem:[#allocation4 + $0x98] sm:$0x1] %v4833_v30  ;;  %v4263_v46 = vmul.f32 %v10844_v11, %v4216_v42 }
 0x409   : > { %v4794_v5 = vsel %vm10897_vm15, %v4534_v59, %v4793_v43  ;;  %v4407_v18 = vpack.c.bf16 %v4319_v58, %v4319_v58  ;;  %v4946_v50 = vld [vmem:[#allocation4 + $0x4c] sm:$0xf]  ;;  %v4863_v30 = vld [vmem:[#allocation4] sm:$0xf] }
 0x40a   : > { %4795 = vst [vmem:[#allocation4 + $0x54] sm:$0xf] %v4794_v5  ;;  %v4189_v48 = vpop.f32.mrf.mxu0  ;;  %v5129_v40 = vshll.u32 %v4946_v50, 16  ;;  %v4947_v56 = vld [vmem:[#allocation4 + $0x50] sm:$0x1]  ;;  %v11106_v29 = vrot.slane %v4631_v7, 7  ;;  %v4299_v39 = vadd.f32 %v10855_v4, %v4263_v46 }
 0x40b   : > { %v4537_v14 = vshrl.u32 %v4407_v18, 16  ;;  %v4252_v34 = vmul.f32 %v10844_v11, %v4189_v48  ;;  %v5133_v49 = vshrl.u32 %v4946_v50, 16  ;;  %v5139_v36 = vshll.u32 %v4947_v56, 16  ;;  %v4800_v48 = vld [vmem:[#allocation4 + $0x60] sm:$0xf]  ;;  %v5360_v56 = vpop.permute.xlu1 %5359 }
 0x40c   : > { %v5131_v44 = vrot.slane %v5129_v40, 5  ;;  %v4540_v3 = vshll.u32 %v4407_v18, 16  ;;  %v4636_v33 = vor.u32 %v4634_v28, %v11106_v29  ;;  %v4331_v16 = vmax.f32 %v4299_v39, 0.0  ;;  %v4876_v18 = vld [vmem:[#allocation4 + $0x4c] sm:$0xf] }
 0x40d   : > { %v4539_v62 = vrot.slane %v4537_v14, 7  ;;  %v4288_v26 = vadd.f32 %v10855_v4, %v4252_v34  ;;  %v5135_v19 = vrot.slane %v5133_v49, 4  ;;  %v5141_v31 = vrot.slane %v5139_v36, 5  ;;  %v5362_v4 = vpop.permute.xlu2 %5361  ;;  %4895 = vst.msk [vmem:[#allocation5] sm:$0xf] %vm4338_vm12, %v4863_v30 }
 0x40e   : > { %v5132_v51 = vsel %vm8955_vm3, %v5127_v45, %v5131_v44  ;;  %v4836_v9 = vsel %vm10897_vm15, %v4636_v33, %v4835_v52  ;;  %5457 = vst.msk [vmem:[#allocation5 + $0x4] sm:$0xf] %vm5455_vm6, %v5362_v4  ;;  %v4419_v1 = vpack.c.bf16 %v4331_v16, %v4331_v16  ;;  %v4637_v52 = vrot.slane %v11106_v29, 4  ;;  %v4839_v45 = vld [vmem:[#allocation4 + $0xa4] sm:$0x1] }
 0x40f   : > { %v4542_v11 = vor.u32 %v4540_v3, %v4539_v62  ;;  %v4544_v21 = vrot.slane %v4539_v62, 4  ;;  %v4320_v37 = vmax.f32 %v4288_v26, 0.0  ;;  %5383 = vrot.lane.b32.xlu1 %v5132_v51, %s8868_s8  ;;  %4837 = vst [vmem:[#allocation4 + $0x9c] sm:$0xf] %v4836_v9  ;;  %v5136_v24 = vor.u32 %v5135_v19, %v5131_v44  ;;  %v4219_v63 = vpop.f32.mrf.mxu3  ;;  %v4842_v39 = vld [vmem:[#allocation4 + $0xa8] sm:$0xf] }
 0x410   : > { %v4264_v13 = vmul.f32 %v11127_v12, %v4219_v63  ;;  %v4639_v22 = vshrl.u32 %v4419_v1, 16  ;;  %v4642_v42 = vshll.u32 %v4419_v1, 16  ;;  %5456 = vst.msk [vmem:[#allocation5] sm:$0xf] %vm5455_vm6, %v5360_v56  ;;  %v5216_v62 = vshrl.u32 %v11139_v47, 16 }
 0x411   : > { %v4543_v20 = vsel %vm9096_vm9, %v4535_v15, %v4542_v11  ;;  %v4798_v57 = vsel %vm10920_vm5, %v4544_v21, %v4797_v32  ;;  %v4408_v27 = vpack.c.bf16 %v4320_v37, %v4320_v37  ;;  %v4948_v35 = vld [vmem:[#allocation4 + $0x54] sm:$0xf]  ;;  %v5137_v41 = vrot.slane %v5136_v24, 4  ;;  %4908 = vst.msk [vmem:[#allocation5 + $0x34] sm:$0xf] %vm4338_vm12, %v4876_v18 }
 0x412   : > { %4796 = vst.msk [vmem:[#allocation4 + $0x58] sm:$0xf] %vm4338_vm12, %v4543_v20  ;;  %v4191_v8 = vpop.f32.mrf.mxu0  ;;  %v5144_v43 = vshrl.u32 %v4948_v35, 16  ;;  %v5147_v0 = vshll.u32 %v4948_v35, 16  ;;  %v4300_v25 = vadd.f32 %v11136_v38, %v4264_v13  ;;  %v4641_v40 = vrot.slane %v4639_v22, 7 }
 0x413   : > { %4799 = vst [vmem:[#allocation4 + $0x5c] sm:$0x1] %v4798_v57  ;;  %v4546_v23 = vshrl.u32 %v4408_v27, 16  ;;  %v4549_v59 = vshll.u32 %v4408_v27, 16  ;;  %v4253_v58 = vmul.f32 %v11127_v12, %v4191_v8  ;;  %v5142_v53 = vsel %vm8955_vm3, %v5137_v41, %v5141_v31  ;;  %v4804_v41 = vld [vmem:[#allocation4 + $0x68] sm:$0x1] }
 0x414   : > { %v5146_v5 = vrot.slane %v5144_v43, 4  ;;  %5385 = vrot.lane.b32.xlu2 %v5142_v53, %s8868_s8  ;;  %v4332_v50 = vmax.f32 %v4300_v25, 0.0  ;;  %v5149_v55 = vrot.slane %v5147_v0, 5  ;;  %v4644_v49 = vor.u32 %v4642_v42, %v4641_v40 }
 0x415   : > { %v11143_v7 = vrot.slane %v4546_v23, 7  ;;  %v4289_v28 = vadd.f32 %v11136_v38, %v4253_v58  ;;  %v4646_v36 = vrot.slane %v4641_v40, 4  ;;  %v5219_v21 = vshll.u32 %v11139_v47, 16 }
 0x416   : > { %v4420_v44 = vpack.c.bf16 %v4332_v50, %v4332_v50  ;;  %v5150_v46 = vor.u32 %v5149_v55, %v5146_v5  ;;  %v4645_v32 = vsel %vm9096_vm9, %v4637_v52, %v4644_v49  ;;  %v5218_v56 = vrot.slane %v5216_v62, 4 }
 0x417   : > { %v4551_v14 = vor.u32 %v4549_v59, %v11143_v7  ;;  %v4321_v34 = vmax.f32 %v4289_v28, 0.0  ;;  %v4221_v15 = vpop.f32.mrf.mxu3  ;;  %v4840_v51 = vsel %vm10920_vm5, %v4646_v36, %v4839_v45  ;;  %4838 = vst.msk [vmem:[#allocation4 + $0xa0] sm:$0xf] %vm4338_vm12, %v4645_v32  ;;  %v4552_v8 = vrot.slane %v11143_v7, 4  ;;  %v4846_v32 = vld [vmem:[#allocation4 + $0xb0] sm:$0x1] }
 0x418   : > { %v4648_v26 = vshrl.u32 %v4420_v44, 16  ;;  %v4651_v33 = vshll.u32 %v4420_v44, 16  ;;  %v5151_v31 = vrot.slane %v5150_v46, 4  ;;  %4841 = vst [vmem:[#allocation4 + $0xa4] sm:$0x1] %v4840_v51  ;;  %v4265_v20 = vmul.f32 %v11127_v12, %v4221_v15 }
 0x419   : > { %v4801_v29 = vsel %vm10897_vm15, %v4551_v14, %v4800_v48  ;;  %v4409_v3 = vpack.c.bf16 %v4321_v34, %v4321_v34  ;;  %v4949_v6 = vld [vmem:[#allocation4 + $0x58] sm:$0xf]  ;;  %v5221_v14 = vrot.slane %v5219_v21, 5 }
 0x41a   : > { %4802 = vst [vmem:[#allocation4 + $0x60] sm:$0xf] %v4801_v29  ;;  %v4194_v19 = vpop.f32.mrf.mxu0  ;;  %v5153_v2 = vshll.u32 %v4949_v6, 16  ;;  %v4950_v11 = vld [vmem:[#allocation4 + $0x5c] sm:$0x1]  ;;  %v11162_v24 = vrot.slane %v4648_v26, 7  ;;  %v4301_v0 = vadd.f32 %v11136_v38, %v4265_v20 }
 0x41b   : > { %v4554_v37 = vshrl.u32 %v4409_v3, 16  ;;  %v4254_v9 = vmul.f32 %v11127_v12, %v4194_v19  ;;  %v4557_v16 = vshll.u32 %v4409_v3, 16  ;;  %v5157_v4 = vshrl.u32 %v4949_v6, 16  ;;  %v4807_v26 = vld [vmem:[#allocation4 + $0x6c] sm:$0xf] }
 0x41c   : > { %v5155_v63 = vrot.slane %v5153_v2, 5  ;;  %v4653_v13 = vor.u32 %v4651_v33, %v11162_v24  ;;  %v5163_v35 = vshll.u32 %v4950_v11, 16  ;;  %v4333_v53 = vmax.f32 %v4301_v0, 0.0  ;;  %v4958_v2 = vld [vmem:[#allocation4 + $0x7c] sm:$0xf] }
 0x41d   : > { %v4556_v57 = vrot.slane %v4554_v37, 7  ;;  %v4290_v27 = vadd.f32 %v11136_v38, %v4254_v9  ;;  %v5159_v43 = vrot.slane %v5157_v4, 4  ;;  %v4654_v33 = vrot.slane %v11162_v24, 4 }
 0x41e   : > { %v5156_v1 = vsel %vm8955_vm3, %v5151_v31, %v5155_v63  ;;  %v4843_v25 = vsel %vm10897_vm15, %v4653_v13, %v4842_v39  ;;  %v5165_v18 = vrot.slane %v5163_v35, 5  ;;  %v4421_v55 = vpack.c.bf16 %v4333_v53, %v4333_v53  ;;  %v4961_v31 = vld [vmem:[#allocation4 + $0x88] sm:$0xf] }
 0x41f   : > { %v4559_v23 = vor.u32 %v4557_v16, %v4556_v57  ;;  %v4561_v59 = vrot.slane %v4556_v57, 4  ;;  %v4322_v58 = vmax.f32 %v4290_v27, 0.0  ;;  %5387 = vrot.lane.b32.xlu0 %v5156_v1, %s8868_s8  ;;  %4844 = vst [vmem:[#allocation4 + $0xa8] sm:$0xf] %v4843_v25  ;;  %v5160_v47 = vor.u32 %v5159_v43, %v5155_v63  ;;  %v4811_v25 = vld [vmem:[#allocation4 + $0x74] sm:$0x1] }
 0x420   : > { %v4656_v45 = vshrl.u32 %v4421_v55, 16  ;;  %v4659_v44 = vshll.u32 %v4421_v55, 16  ;;  %v5222_v9 = vor.u32 %v5221_v14, %v5218_v56  ;;  %v5225_v13 = vshll.u32 %v4958_v2, 16 }
 0x421   : > { %v4560_v22 = vsel %vm9096_vm9, %v4552_v8, %v4559_v23  ;;  %v4805_v42 = vsel %vm10920_vm5, %v4561_v59, %v4804_v41  ;;  %v4410_v5 = vpack.c.bf16 %v4322_v58, %v4322_v58  ;;  %v4951_v7 = vld [vmem:[#allocation4 + $0x60] sm:$0xf]  ;;  %v5161_v50 = vrot.slane %v5160_v47, 4 }
 0x422   : > { %4803 = vst.msk [vmem:[#allocation4 + $0x64] sm:$0xf] %vm4338_vm12, %v4560_v22  ;;  %v4196_v28 = vpop.f32.mrf.mxu0  ;;  %v5168_v30 = vshrl.u32 %v4951_v7, 16  ;;  %v5171_v48 = vshll.u32 %v4951_v7, 16  ;;  %v4658_v6 = vrot.slane %v4656_v45, 7  ;;  %v5229_v35 = vshrl.u32 %v4958_v2, 16  ;;  %v4224_v7 = vpop.f32.mrf.mxu3 }
 0x423   : > { %4806 = vst [vmem:[#allocation4 + $0x68] sm:$0x1] %v4805_v42  ;;  %v4563_v52 = vshrl.u32 %v4410_v5, 16  ;;  %v4255_v40 = vmul.f32 %v11127_v12, %v4196_v28  ;;  %v5166_v34 = vsel %vm8955_vm3, %v5161_v50, %v5165_v18  ;;  %v4566_v46 = vshll.u32 %v4410_v5, 16 }
 0x424   : > { %v5170_v49 = vrot.slane %v5168_v30, 4  ;;  %5389 = vrot.lane.b32.xlu1 %v5166_v34, %s8868_s8  ;;  %v5173_v3 = vrot.slane %v5171_v48, 5  ;;  %v4661_v51 = vor.u32 %v4659_v44, %v4658_v6  ;;  %v4663_v19 = vrot.slane %v4658_v6, 4 }
 0x425   : > { %v4565_v36 = vrot.slane %v4563_v52, 7  ;;  %v4291_v29 = vadd.f32 %v11136_v38, %v4255_v40  ;;  %v5249_v59 = vshll.u32 %v4961_v31, 16  ;;  %v5253_v58 = vshrl.u32 %v4961_v31, 16 }
 0x426   : > { %v5174_v39 = vor.u32 %v5173_v3, %v5170_v49  ;;  %v4662_v16 = vsel %vm9096_vm9, %v4654_v33, %v4661_v51  ;;  %v4847_v24 = vsel %vm10920_vm5, %v4663_v19, %v4846_v32  ;;  %v5223_v22 = vrot.slane %v5222_v9, 4  ;;  %v4960_v33 = vld [vmem:[#allocation4 + $0x84] sm:$0xf] }
 0x427   : > { %v4568_v15 = vor.u32 %v4566_v46, %v4565_v36  ;;  %v4323_v62 = vmax.f32 %v4291_v29, 0.0  ;;  %4845 = vst.msk [vmem:[#allocation4 + $0xac] sm:$0xf] %vm4338_vm12, %v4662_v16  ;;  %v4569_v42 = vrot.slane %v4565_v36, 4  ;;  %v11196_v50 = vrot.slane %v5225_v13, 5 }
 0x428   : > { %4848 = vst [vmem:[#allocation4 + $0xb0] sm:$0x1] %v4847_v24  ;;  %v5175_v8 = vrot.slane %v5174_v39, 4  ;;  %v4266_v55 = vmul.f32 %v11127_v12, %v4224_v7  ;;  %v11200_v52 = vrot.slane %v5229_v35, 4  ;;  %v11206_v34 = vrot.slane %v5249_v59, 5 }
 0x429   : > { %v4808_v11 = vsel %vm10897_vm15, %v4568_v15, %v4807_v26  ;;  %v4411_v21 = vpack.c.bf16 %v4323_v62, %v4323_v62  ;;  %v4952_v37 = vld [vmem:[#allocation4 + $0x64] sm:$0xf]  ;;  %v5368_v63 = vpop.permute.xlu2 %5367  ;;  %v5255_v45 = vrot.slane %v5253_v58, 4  ;;  %v4959_v29 = vld [vmem:[#allocation4 + $0x80] sm:$0x1]  ;;  %v5240_v9 = vshrl.u32 %v4960_v33, 16 }
 0x42a   : > { %4809 = vst [vmem:[#allocation4 + $0x6c] sm:$0xf] %v4808_v11  ;;  %v5177_v4 = vshll.u32 %v4952_v37, 16  ;;  %v5181_v20 = vshrl.u32 %v4952_v37, 16  ;;  %v4953_v57 = vld [vmem:[#allocation4 + $0x68] sm:$0x1]  ;;  %v4302_v44 = vadd.f32 %v11136_v38, %v4266_v55  ;;  %v4226_v2 = vpop.f32.mrf.mxu3  ;;  %v5228_v11 = vsel %vm8955_vm3, %v5223_v22, %v11196_v50 }
 0x42b   : > { %v4571_v27 = vshrl.u32 %v4411_v21, 16  ;;  %v5187_v43 = vshll.u32 %v4953_v57, 16  ;;  %v4574_v23 = vshll.u32 %v4411_v21, 16  ;;  %5460 = vst.msk [vmem:[#allocation5 + $0x10] sm:$0xf] %vm5455_vm6, %v5368_v63  ;;  %v5256_v32 = vor.u32 %v5255_v45, %v11206_v34 }
 0x42c   : > { %v5179_v41 = vrot.slane %v5177_v4, 5  ;;  %v5183_v1 = vrot.slane %v5181_v20, 4  ;;  %v4962_v26 = vld [vmem:[#allocation4 + $0x8c] sm:$0x1]  ;;  %v4334_v6 = vmax.f32 %v4302_v44, 0.0  ;;  %v5235_v19 = vshll.u32 %v4959_v29, 16 }
 0x42d   : > { %v4573_v0 = vrot.slane %v4571_v27, 7  ;;  %v5189_v48 = vrot.slane %v5187_v43, 5  ;;  %v4966_v39 = vld [vmem:[#allocation4 + $0x9c] sm:$0xf]  ;;  %v5259_v21 = vshll.u32 %v4962_v26, 16  ;;  %v5232_v37 = vor.u32 %v11200_v52, %v11196_v50 }
 0x42e   : > { %v5180_v47 = vsel %vm8955_vm3, %v5175_v8, %v5179_v41  ;;  %v5184_v53 = vor.u32 %v5183_v1, %v5179_v41  ;;  %v4422_v51 = vpack.c.bf16 %v4334_v6, %v4334_v6  ;;  %v4267_v24 = vmul.f32 %v11127_v12, %v4226_v2  ;;  %v4963_v4 = vld [vmem:[#allocation4 + $0x90] sm:$0xf]  ;;  %v4970_v52 = vld [vmem:[#allocation4 + $0xac] sm:$0xf]  ;;  %v8798_v44 = vld [vmem:[#allocation3 + $0x78] sm:$0xff] }
 0x42f   : > { %v4576_v5 = vor.u32 %v4574_v23, %v4573_v0  ;;  %v4578_v18 = vrot.slane %v4573_v0, 4  ;;  %5391 = vrot.lane.b32.xlu2 %v5180_v47, %s8868_s8  ;;  %v5257_v57 = vrot.slane %v5256_v32, 4  ;;  %v5288_v27 = vshrl.u32 %v4966_v39, 16  ;;  %v4849_v23 = vld [vmem:[#allocation4 + $0xb4] sm:$0xf]  ;;  %8634 = vmatmul.msk.bf16.gmra.mxu3 %vm4092_vm11, %v8798_v44 }
 0x430   : > { %v5364_v28 = vpop.permute.xlu0 %5363  ;;  %v5185_v30 = vrot.slane %v5184_v53, 4  ;;  %v4665_v31 = vshrl.u32 %v4422_v51, 16  ;;  %v4668_v16 = vshll.u32 %v4422_v51, 16  ;;  %v5291_v13 = vshll.u32 %v4966_v39, 16  ;;  %v4967_v6 = vld [vmem:[#allocation4 + $0xa0] sm:$0xf] }
 0x431   : > { %5458 = vst.msk [vmem:[#allocation5 + $0x8] sm:$0xf] %vm5455_vm6, %v5364_v28  ;;  %v4577_v40 = vsel %vm9096_vm9, %v4569_v42, %v4576_v5  ;;  %v4812_v56 = vsel %vm10920_vm5, %v4578_v18, %v4811_v25  ;;  %v4954_v14 = vld [vmem:[#allocation4 + $0x6c] sm:$0xf]  ;;  %v5243_v35 = vshll.u32 %v4960_v33, 16  ;;  %v4303_v41 = vadd.f32 %v11136_v38, %v4267_v24 }
 0x432   : > { %4810 = vst.msk [vmem:[#allocation4 + $0x70] sm:$0xf] %vm4338_vm12, %v4577_v40  ;;  %v5190_v49 = vsel %vm8955_vm3, %v5185_v30, %v5189_v48  ;;  %v5192_v36 = vshrl.u32 %v4954_v14, 16  ;;  %v5195_v46 = vshll.u32 %v4954_v14, 16  ;;  %v11221_v8 = vrot.slane %v4665_v31, 7 }
 0x433   : > { %4813 = vst [vmem:[#allocation4 + $0x74] sm:$0x1] %v4812_v56  ;;  %5393 = vrot.lane.b32.xlu0 %v5190_v49, %s8868_s8  ;;  %v5261_v59 = vrot.slane %v5259_v21, 5  ;;  %v5242_v58 = vrot.slane %v5240_v9, 4  ;;  %v5264_v12 = vshrl.u32 %v4963_v4, 16  ;;  %v5267_v25 = vshll.u32 %v4963_v4, 16 }
 0x434   : > { %v5366_v3 = vpop.permute.xlu1 %5365  ;;  %v5194_v15 = vrot.slane %v5192_v36, 4  ;;  %v5197_v62 = vrot.slane %v5195_v46, 5  ;;  %v4670_v47 = vor.u32 %v4668_v16, %v11221_v8  ;;  %v4335_v53 = vmax.f32 %v4303_v41, 0.0  ;;  %v4964_v46 = vld [vmem:[#allocation4 + $0x94] sm:$0xf] }
 0x435   : > { %5459 = vst.msk [vmem:[#allocation5 + $0xc] sm:$0xf] %vm5455_vm6, %v5366_v3  ;;  %v5290_v28 = vrot.slane %v5288_v27, 4  ;;  %v5245_v38 = vrot.slane %v5243_v35, 5  ;;  %v5293_v48 = vrot.slane %v5291_v13, 5  ;;  %v5262_v40 = vsel %vm8955_vm3, %v5257_v57, %v5261_v59 }
 0x436   : > { %v5198_v63 = vor.u32 %v5197_v62, %v5194_v15  ;;  %v4850_v50 = vsel %vm10897_vm15, %v4670_v47, %v4849_v23  ;;  %v4423_v55 = vpack.c.bf16 %v4335_v53, %v4335_v53  ;;  %v5233_v14 = vrot.slane %v5232_v37, 4  ;;  %v5840_v54 = vld [vmem:[#allocation4 + $0x64] sm:$0xf] }
 0x437   : > { %4851 = vst [vmem:[#allocation4 + $0xb4] sm:$0xf] %v4850_v50  ;;  %v5237_v45 = vrot.slane %v5235_v19, 5  ;;  %v5266_v29 = vrot.slane %v5264_v12, 4  ;;  %v5269_v3 = vrot.slane %v5267_v25, 5  ;;  %v5321_v15 = vshll.u32 %v4970_v52, 16 }
 0x438   : > { %v5199_v22 = vrot.slane %v5198_v63, 4  ;;  %v4673_v49 = vshrl.u32 %v4423_v55, 16  ;;  %v4676_v36 = vshll.u32 %v4423_v55, 16  ;;  %v5325_v62 = vshrl.u32 %v4970_v52, 16 }
 0x439   : > { %v4955_v20 = vld [vmem:[#allocation4 + $0x70] sm:$0xf]  ;;  %v4671_v32 = vrot.slane %v11221_v8, 4  ;;  %v5294_v39 = vor.u32 %v5293_v48, %v5290_v28  ;;  %v5246_v2 = vor.u32 %v5245_v38, %v5242_v58  ;;  %v5273_v21 = vshll.u32 %v4964_v46, 16  ;;  %v4969_v58 = vld [vmem:[#allocation4 + $0xa8] sm:$0xf] }
 0x43a   : > { %v5201_v1 = vshll.u32 %v4955_v20, 16  ;;  %v5205_v43 = vshrl.u32 %v4955_v20, 16  ;;  %v4956_v0 = vld [vmem:[#allocation4 + $0x74] sm:$0x1]  ;;  %v4675_v51 = vrot.slane %v4673_v49, 7  ;;  %v5277_v37 = vshrl.u32 %v4964_v46, 16 }
 0x43b   : > { %5399 = vrot.lane.b32.xlu0 %v5228_v11, %s8868_s8  ;;  %v5211_v7 = vshll.u32 %v4956_v0, 16  ;;  %v4853_v11 = vld [vmem:[#allocation4 + $0xbc] sm:$0x1]  ;;  %v5238_v16 = vsel %vm8955_vm3, %v5233_v14, %v5237_v45  ;;  %v5297_v24 = vshll.u32 %v4967_v6, 16  ;;  %v5301_v4 = vshrl.u32 %v4967_v6, 16 }
 0x43c   : > { %v5203_v42 = vrot.slane %v5201_v1, 5  ;;  %v5207_v18 = vrot.slane %v5205_v43, 4  ;;  %v4678_v9 = vor.u32 %v4676_v36, %v4675_v51  ;;  %v4680_v31 = vrot.slane %v4675_v51, 4  ;;  %v4971_v1 = vld [vmem:[#allocation4 + $0xb0] sm:$0x1] }
 0x43d   : > { %v5213_v33 = vrot.slane %v5211_v7, 5  ;;  %v5270_v20 = vor.u32 %v5269_v3, %v5266_v29  ;;  %v11242_v57 = vrot.slane %v5321_v15, 5  ;;  %v5327_v27 = vrot.slane %v5325_v62, 4  ;;  %v4965_v0 = vld [vmem:[#allocation4 + $0x98] sm:$0x1] }
 0x43e   : > { %v5374_v5 = vpop.permute.xlu2 %5373  ;;  %v5204_v30 = vsel %vm8955_vm3, %v5199_v22, %v5203_v42  ;;  %v5208_v56 = vor.u32 %v5207_v18, %v5203_v42  ;;  %v4679_v13 = vsel %vm9096_vm9, %v4671_v32, %v4678_v9  ;;  %v4854_v35 = vsel %vm10920_vm5, %v4680_v31, %v4853_v11  ;;  %v4968_v42 = vld [vmem:[#allocation4 + $0xa4] sm:$0x1]  ;;  %v4972_v50 = vld [vmem:[#allocation4 + $0xb4] sm:$0xf]  ;;  %v5488_v3 = vld [vmem:[#allocation4] sm:$0xe] }
 0x43f   : > { %5463 = vst.msk [vmem:[#allocation5 + $0x1c] sm:$0xf] %vm5455_vm6, %v5374_v5  ;;  %5395 = vrot.lane.b32.xlu1 %v5204_v30, %s8868_s8  ;;  %v5295_v8 = vrot.slane %v5294_v39, 4  ;;  %v5247_v41 = vrot.slane %v5246_v2, 4  ;;  %v5275_v43 = vrot.slane %v5273_v21, 5  ;;  %v5279_v23 = vrot.slane %v5277_v37, 4 }
 0x440   : > { %v5209_v26 = vrot.slane %v5208_v56, 4  ;;  %4852 = vst.msk [vmem:[#allocation4 + $0xb8] sm:$0xf] %vm4338_vm12, %v4679_v13  ;;  %v5299_v59 = vrot.slane %v5297_v24, 5  ;;  %v5271_v12 = vrot.slane %v5270_v20, 4  ;;  %v5328_v25 = vor.u32 %v5327_v27, %v11242_v57 }
 0x441   : > { %4855 = vst [vmem:[#allocation4 + $0xbc] sm:$0x1] %v4854_v35  ;;  %v5331_v47 = vshll.u32 %v4971_v1, 16  ;;  %v5252_v22 = vsel %vm8955_vm3, %v5247_v41, %v11206_v34  ;;  %v5303_v5 = vrot.slane %v5301_v4, 4  ;;  %v5280_v18 = vor.u32 %v5279_v23, %v5275_v43  ;;  %v4874_v11 = vld [vmem:[#allocation4 + $0x40] sm:$0xf] }
 0x442   : > { %v5214_v19 = vsel %vm8955_vm3, %v5209_v26, %v5213_v33  ;;  %v5300_v53 = vsel %vm8955_vm3, %v5295_v8, %v5299_v59  ;;  %v5283_v7 = vshll.u32 %v4965_v0, 16  ;;  %v5312_v28 = vshrl.u32 %v4969_v58, 16  ;;  %v5489_v26 = vld [vmem:[#allocation4 + $0x4] sm:$0xf]  ;;  %4906 = vst.msk [vmem:[#allocation5 + $0x2c] sm:$0xf] %vm4338_vm12, %v4874_v11 }
 0x443   : > { %5405 = vrot.lane.b32.xlu0 %v5262_v40, %s8868_s8  ;;  %5397 = vrot.lane.b32.xlu2 %v5214_v19, %s8868_s8  ;;  %v5315_v38 = vshll.u32 %v4969_v58, 16  ;;  %v5276_v55 = vsel %vm8955_vm3, %v5271_v12, %v5275_v43  ;;  %v5329_v30 = vrot.slane %v5328_v25, 4  ;;  %v5333_v48 = vrot.slane %v5331_v47, 5  ;;  %v5492_v31 = vld [vmem:[#allocation4 + $0x10] sm:$0xf] }
 0x444   : > { %v5304_v52 = vor.u32 %v5303_v5, %v5299_v59  ;;  %v5307_v40 = vshll.u32 %v4968_v42, 16  ;;  %v5336_v56 = vshrl.u32 %v4972_v50, 16  ;;  %v5339_v34 = vshll.u32 %v4972_v50, 16  ;;  %v4883_v41 = vld [vmem:[#allocation4 + $0x78] sm:$0xf] }
 0x445   : > { %v5370_v63 = vpop.permute.xlu0 %5369  ;;  %v5281_v14 = vrot.slane %v5280_v18, 4  ;;  %v5285_v45 = vrot.slane %v5283_v7, 5  ;;  %v5314_v44 = vrot.slane %v5312_v28, 4  ;;  %v5317_v49 = vrot.slane %v5315_v38, 5  ;;  %v4875_v0 = vld [vmem:[#allocation4 + $0x48] sm:$0xf] }
 0x446   : > { %5461 = vst.msk [vmem:[#allocation5 + $0x14] sm:$0xf] %vm5455_vm6, %v5370_v63  ;;  %v5334_v29 = vsel %vm8955_vm3, %v5329_v30, %v5333_v48  ;;  %v5305_v33 = vrot.slane %v5304_v52, 4  ;;  %v5309_v6 = vrot.slane %v5307_v40, 5  ;;  %v5338_v15 = vrot.slane %v5336_v56, 4 }
 0x447   : > { %5401 = vrot.lane.b32.xlu1 %v5238_v16, %s8868_s8  ;;  %v4973_v36 = vld [vmem:[#allocation4 + $0xb8] sm:$0xf]  ;;  %v5341_v62 = vrot.slane %v5339_v34, 5  ;;  %v5286_v32 = vsel %vm8955_vm3, %v5281_v14, %v5285_v45  ;;  %v5318_v51 = vor.u32 %v5317_v49, %v5314_v44  ;;  %v8635_v19 = vrot.slane %v5488_v3, 9  ;;  %v4884_v23 = vld [vmem:[#allocation4 + $0x7c] sm:$0xf] }
 0x448   : > { %v5345_v39 = vshll.u32 %v4973_v36, 16  ;;  %v5349_v2 = vshrl.u32 %v4973_v36, 16  ;;  %v5586_v21 = vrot.slane %v5489_v26, 5  ;;  %v5310_v37 = vsel %vm8955_vm3, %v5305_v33, %v5309_v6  ;;  %v4974_v63 = vld [vmem:[#allocation4 + $0xbc] sm:$0x1] }
 0x449   : > { %v5342_v9 = vor.u32 %v5341_v62, %v5338_v15  ;;  %v5319_v16 = vrot.slane %v5318_v51, 4  ;;  %v5593_v35 = vrot.slane %v5492_v31, 5  ;;  %v5355_v8 = vshll.u32 %v4974_v63, 16  ;;  %4907 = vst.msk [vmem:[#allocation5 + $0x30] sm:$0xf] %vm4338_vm12, %v4875_v0 }
 0x44a   : > { %v5347_v24 = vrot.slane %v5345_v39, 5  ;;  %v5351_v4 = vrot.slane %v5349_v2, 4  ;;  %v5587_v20 = vsel %vm9586_vm13, %v8635_v19, %v5586_v21  ;;  %v5493_v59 = vld [vmem:[#allocation4 + $0x14] sm:$0x1]  ;;  %v5490_v58 = vld [vmem:[#allocation4 + $0x8] sm:$0x1] }
 0x44b   : > { %5411 = vrot.lane.b32.xlu0 %v5300_v53, %s8868_s8  ;;  %5403 = vrot.lane.b32.xlu2 %v5252_v22, %s8868_s8  ;;  %v5343_v13 = vrot.slane %v5342_v9, 4  ;;  %v5324_v1 = vsel %vm8955_vm3, %v5319_v16, %v11242_v57  ;;  %4915 = vst.msk [vmem:[#allocation5 + $0x50] sm:$0xf] %vm4338_vm12, %v4883_v41  ;;  %v5595_v25 = vrot.slane %v5593_v35, 4  ;;  %v5357_v47 = vrot.slane %v5355_v8, 5 }
 0x44c   : > { %v5352_v43 = vor.u32 %v5351_v4, %v5347_v24  ;;  %4916 = vst.msk [vmem:[#allocation5 + $0x54] sm:$0xf] %vm4338_vm12, %v4884_v23  ;;  %v5596_v53 = vrot.slane %v5493_v59, 5  ;;  %v5588_v22 = vrot.slane %v5586_v21, 4  ;;  %v5589_v42 = vrot.slane %v5490_v58, 5 }
 0x44d   : > { %v5348_v12 = vsel %vm8955_vm3, %v5343_v13, %v5347_v24  ;;  %v5498_v28 = vld [vmem:[#allocation4 + $0x28] sm:$0xf]  ;;  %v5497_v50 = vld [vmem:[#allocation4 + $0x24] sm:$0xe]  ;;  %v5491_v48 = vld [vmem:[#allocation4 + $0xc] sm:$0xe] }
 0x44e   : > { %v5353_v57 = vrot.slane %v5352_v43, 4  ;;  %v5597_v18 = vsel %vm9586_vm13, %v5595_v25, %v5596_v53  ;;  %v5590_v38 = vsel %vm9586_vm13, %v5588_v22, %v5589_v42  ;;  %v5607_v30 = vrot.slane %v5498_v28, 5  ;;  %v5495_v52 = vld [vmem:[#allocation4 + $0x1c] sm:$0xf]  ;;  %v5501_v40 = vld [vmem:[#allocation4 + $0x34] sm:$0xf] }
 0x44f   : > { %5407 = vrot.lane.b32.xlu1 %v5276_v55, %s8868_s8  ;;  %v4879_v56 = vld [vmem:[#allocation4 + $0x60] sm:$0xf]  ;;  %v8638_v34 = vrot.slane %v5497_v50, 9  ;;  %v8636_v14 = vrot.slane %v5491_v48, 9  ;;  %v5494_v45 = vld [vmem:[#allocation4 + $0x18] sm:$0xe] }
 0x450   : > { %v5358_v7 = vsel %vm8955_vm3, %v5353_v57, %v5357_v47  ;;  %4911 = vst.msk [vmem:[#allocation5 + $0x40] sm:$0xf] %vm4338_vm12, %v4879_v56  ;;  %v5600_v49 = vrot.slane %v5495_v52, 5  ;;  %v5614_v36 = vrot.slane %v5501_v40, 5  ;;  %v4885_v3 = vld [vmem:[#allocation4 + $0x84] sm:$0xf] }
 0x451   : > { %v5372_v46 = vpop.permute.xlu1 %5371  ;;  %v5608_v44 = vsel %vm9586_vm13, %v8638_v34, %v5607_v30  ;;  %v8637_v26 = vrot.slane %v5494_v45, 9  ;;  %v5502_v33 = vld [vmem:[#allocation4 + $0x38] sm:$0x1]  ;;  %v5496_v6 = vld [vmem:[#allocation4 + $0x20] sm:$0x1]  ;;  %vm8156_vm11 = vcmask 588800  }
 0x452   : > { %5462 = vst.msk [vmem:[#allocation5 + $0x18] sm:$0xf] %vm5455_vm6, %v5372_v46  ;;  %v5594_v46 = vsel %vm9586_vm13, %v8636_v14, %v5593_v35  ;;  %v5616_v62 = vrot.slane %v5614_v36, 4  ;;  %v5602_v39 = vrot.slane %v5600_v49, 4  ;;  %v5617_v2 = vrot.slane %v5502_v33, 5 }
 0x453   : > { %5417 = vrot.lane.b32.xlu0 %v5334_v29, %s8868_s8  ;;  %5409 = vrot.lane.b32.xlu2 %v5286_v32, %s8868_s8  ;;  %v4877_v29 = vld [vmem:[#allocation4 + $0x54] sm:$0xf]  ;;  %v5601_v15 = vsel %vm9586_vm13, %v8637_v26, %v5600_v49  ;;  %4917 = vst.msk [vmem:[#allocation5 + $0x58] sm:$0xf] %vm4338_vm12, %v4885_v3  ;;  %v4886_v32 = vld [vmem:[#allocation4 + $0x88] sm:$0xf] }
 0x454   : > { %4909 = vst.msk [vmem:[#allocation5 + $0x38] sm:$0xf] %vm4338_vm12, %v4877_v29  ;;  %v5603_v11 = vrot.slane %v5496_v6, 5  ;;  %v5499_v19 = vld [vmem:[#allocation4 + $0x2c] sm:$0x1]  ;;  %v5618_v21 = vsel %vm9586_vm13, %v5616_v62, %v5617_v2 }
 0x455   : > { %4918 = vst.msk [vmem:[#allocation5 + $0x5c] sm:$0xf] %vm4338_vm12, %v4886_v32  ;;  %v5507_v31 = vld [vmem:[#allocation4 + $0x4c] sm:$0xf]  ;;  %v4878_v16 = vld [vmem:[#allocation4 + $0x58] sm:$0xf] }
 0x456   : > { %v5604_v9 = vsel %vm9586_vm13, %v5602_v39, %v5603_v11  ;;  %v5610_v24 = vrot.slane %v5499_v19, 5  ;;  %4910 = vst.msk [vmem:[#allocation5 + $0x3c] sm:$0xf] %vm4338_vm12, %v4878_v16  ;;  %v5506_v63 = vld [vmem:[#allocation4 + $0x48] sm:$0xe] }
 0x457   : > { %5413 = vrot.lane.b32.xlu1 %v5310_v37, %s8868_s8  ;;  %v5609_v37 = vrot.slane %v5607_v30, 4  ;;  %v5504_v35 = vld [vmem:[#allocation4 + $0x40] sm:$0xf]  ;;  %v5510_v8 = vld [vmem:[#allocation4 + $0x58] sm:$0xf]  ;;  %v8641_v41 = vrot.slane %v5506_v63, 9 }
 0x458   : > { %v5503_v43 = vld [vmem:[#allocation4 + $0x3c] sm:$0xe]  ;;  %v5621_v23 = vrot.slane %v5504_v35, 5  ;;  %v5635_v59 = vrot.slane %v5510_v8, 5  ;;  %v4888_v58 = vld [vmem:[#allocation4 + $0x94] sm:$0xf] }
 0x459   : > { %v5380_v27 = vpop.permute.xlu2 %5379  ;;  %v5611_v4 = vsel %vm9586_vm13, %v5609_v37, %v5610_v24  ;;  %4920 = vst.msk [vmem:[#allocation5 + $0x64] sm:$0xf] %vm4338_vm12, %v4888_v58  ;;  %v8640_v57 = vrot.slane %v5503_v43, 9  ;;  %v5511_v47 = vld [vmem:[#allocation4 + $0x5c] sm:$0x1] }
 0x45a   : > { %5466 = vst.msk [vmem:[#allocation5 + $0x28] sm:$0xf] %vm5455_vm6, %v5380_v27  ;;  %v5500_v27 = vld [vmem:[#allocation4 + $0x30] sm:$0xe]  ;;  %v5637_v22 = vrot.slane %v5635_v59, 4 }
 0x45b   : > { %5696 = vrot.lane.b32.xlu0 %v5587_v20, %s8870_s10  ;;  %5415 = vrot.lane.b32.xlu2 %v5324_v1, %s8868_s8  ;;  %v5628_v20 = vrot.slane %v5507_v31, 5  ;;  %v8639_v1 = vrot.slane %v5500_v27, 9  ;;  %v5622_v53 = vsel %vm9586_vm13, %v8640_v57, %v5621_v23  ;;  %v5505_v42 = vld [vmem:[#allocation4 + $0x44] sm:$0x1]  ;;  %v5508_v50 = vld [vmem:[#allocation4 + $0x50] sm:$0x1] }
 0x45c   : > { %v5516_v52 = vld [vmem:[#allocation4 + $0x70] sm:$0xf]  ;;  %v4880_v40 = vld [vmem:[#allocation4 + $0x64] sm:$0xf]  ;;  %v5631_v56 = vrot.slane %v5508_v50, 5 }
 0x45d   : > { %v5629_v0 = vsel %vm9586_vm13, %v8641_v41, %v5628_v20  ;;  %v5615_v25 = vsel %vm9586_vm13, %v8639_v1, %v5614_v36  ;;  %v5630_v30 = vrot.slane %v5628_v20, 4  ;;  %4912 = vst.msk [vmem:[#allocation5 + $0x44] sm:$0xf] %vm4338_vm12, %v4880_v40  ;;  %v5515_v34 = vld [vmem:[#allocation4 + $0x6c] sm:$0xe]  ;;  %v5649_v45 = vrot.slane %v5516_v52, 5 }
 0x45e   : > { %v5513_v49 = vld [vmem:[#allocation4 + $0x64] sm:$0xf]  ;;  %v5519_v36 = vld [vmem:[#allocation4 + $0x7c] sm:$0xf]  ;;  %v5512_v26 = vld [vmem:[#allocation4 + $0x60] sm:$0xe] }
 0x45f   : > { %5419 = vrot.lane.b32.xlu1 %v5348_v12, %s8868_s8  ;;  %v4887_v12 = vld [vmem:[#allocation4 + $0x90] sm:$0xf]  ;;  %v5632_v14 = vsel %vm9586_vm13, %v5630_v30, %v5631_v56  ;;  %v4889_v33 = vld [vmem:[#allocation4 + $0x9c] sm:$0xf]  ;;  %v5656_v62 = vrot.slane %v5519_v36, 5  ;;  %v8643_v11 = vrot.slane %v5512_v26, 9 }
 0x460   : > { %4919 = vst.msk [vmem:[#allocation5 + $0x60] sm:$0xf] %vm4338_vm12, %v4887_v12  ;;  %v4890_v32 = vld [vmem:[#allocation4 + $0xa0] sm:$0xf]  ;;  %v4881_v2 = vld [vmem:[#allocation4 + $0x6c] sm:$0xf] }
 0x461   : > { %v5376_v5 = vpop.permute.xlu0 %5375  ;;  %v5520_v39 = vld [vmem:[#allocation4 + $0x80] sm:$0x1]  ;;  %4921 = vst.msk [vmem:[#allocation5 + $0x68] sm:$0xf] %vm4338_vm12, %v4889_v33  ;;  %v5517_v63 = vld [vmem:[#allocation4 + $0x74] sm:$0x1] }
 0x462   : > { %5464 = vst.msk [vmem:[#allocation5 + $0x20] sm:$0xf] %vm5455_vm6, %v5376_v5  ;;  %v4882_v5 = vld [vmem:[#allocation4 + $0x70] sm:$0xf]  ;;  %v5659_v37 = vrot.slane %v5520_v39, 5  ;;  %v5651_v20 = vrot.slane %v5649_v45, 4 }
 0x463   : > { %5702 = vrot.lane.b32.xlu0 %v5597_v18, %s8870_s10  ;;  %5421 = vrot.lane.b32.xlu2 %v5358_v7, %s8868_s8  ;;  %v5623_v18 = vrot.slane %v5621_v23, 4  ;;  %4914 = vst.msk [vmem:[#allocation5 + $0x4c] sm:$0xf] %vm4338_vm12, %v4882_v5  ;;  %v5638_v7 = vrot.slane %v5511_v47, 5  ;;  %v5518_v27 = vld [vmem:[#allocation4 + $0x78] sm:$0xe] }
 0x464   : > { %4913 = vst.msk [vmem:[#allocation5 + $0x48] sm:$0xf] %vm4338_vm12, %v4881_v2  ;;  %v5524_v35 = vld [vmem:[#allocation4 + $0x90] sm:$0xe]  ;;  %v5525_v8 = vld [vmem:[#allocation4 + $0x94] sm:$0xf] }
 0x465   : > { %v5378_v55 = vpop.permute.xlu1 %5377  ;;  %4922 = vst.msk [vmem:[#allocation5 + $0x6c] sm:$0xf] %vm4338_vm12, %v4890_v32  ;;  %v5652_v41 = vrot.slane %v5517_v63, 5  ;;  %v8645_v1 = vrot.slane %v5518_v27, 9  ;;  %v5670_v23 = vrot.slane %v5525_v8, 5 }
 0x466   : > { %5465 = vst.msk [vmem:[#allocation5 + $0x24] sm:$0xf] %vm5455_vm6, %v5378_v55  ;;  %v5639_v55 = vsel %vm9586_vm13, %v5637_v22, %v5638_v7  ;;  %v4891_v58 = vld [vmem:[#allocation4 + $0xa8] sm:$0xf]  ;;  %v5528_v57 = vld [vmem:[#allocation4 + $0xa0] sm:$0xf] }
 0x467   : > { %5698 = vrot.lane.b32.xlu1 %v5590_v38, %s8870_s10  ;;  %v5624_v38 = vrot.slane %v5505_v42, 5  ;;  %v5653_v43 = vsel %vm9586_vm13, %v5651_v20, %v5652_v41  ;;  %4923 = vst.msk [vmem:[#allocation5 + $0x70] sm:$0xf] %vm4338_vm12, %v4891_v58  ;;  %v4892_v47 = vld [vmem:[#allocation4 + $0xac] sm:$0xf]  ;;  %v5677_v5 = vrot.slane %v5528_v57, 5 }
 0x468   : > { %4924 = vst.msk [vmem:[#allocation5 + $0x74] sm:$0xf] %vm4338_vm12, %v4892_v47  ;;  %v5529_v7 = vld [vmem:[#allocation4 + $0xa4] sm:$0x1]  ;;  %v5526_v56 = vld [vmem:[#allocation4 + $0x98] sm:$0x1] }
 0x469   : > { %v5625_v48 = vsel %vm9586_vm13, %v5623_v18, %v5624_v38  ;;  %v5657_v18 = vsel %vm9586_vm13, %v8645_v1, %v5656_v62  ;;  %v5680_v30 = vrot.slane %v5529_v7, 5  ;;  %v5534_v36 = vld [vmem:[#allocation4 + $0xb8] sm:$0xf]  ;;  %v5531_v32 = vld [vmem:[#allocation4 + $0xac] sm:$0xf] }
 0x46a   : > { %v5535_v63 = vld [vmem:[#allocation4 + $0xbc] sm:$0x1]  ;;  %v5826_v20 = vld [vmem:[#allocation4 + $0x10] sm:$0xf]  ;;  %v5832_v57 = vld [vmem:[#allocation4 + $0x34] sm:$0xf] }
 0x46b   : > { %5708 = vrot.lane.b32.xlu0 %v5608_v44, %s8870_s10  ;;  %5700 = vrot.lane.b32.xlu2 %v5594_v46, %s8870_s10  ;;  %v5509_v44 = vld [vmem:[#allocation4 + $0x54] sm:$0xe]  ;;  %v8644_v46 = vrot.slane %v5515_v34, 9  ;;  %v5828_v47 = vld [vmem:[#allocation4 + $0x1c] sm:$0xf] }
 0x46c   : > { %v8642_v3 = vrot.slane %v5509_v44, 9  ;;  %v5830_v7 = vld [vmem:[#allocation4 + $0x28] sm:$0xf] }
 0x46d   : > { %v5650_v6 = vsel %vm9586_vm13, %v8644_v46, %v5649_v45  ;;  %v5673_v45 = vrot.slane %v5526_v56, 5  ;;  %v5527_v46 = vld [vmem:[#allocation4 + $0x9c] sm:$0xe] }
 0x46e   : > { %v5386_v51 = vpop.permute.xlu2 %5385 }
 0x46f   : > { %5704 = vrot.lane.b32.xlu1 %v5601_v15, %s8870_s10  ;;  %5469 = vst.msk [vmem:[#allocation5 + $0x34] sm:$0xf] %vm5455_vm6, %v5386_v51  ;;  %v5642_v15 = vrot.slane %v5513_v49, 5  ;;  %v5636_v51 = vsel %vm9586_vm13, %v8642_v3, %v5635_v59  ;;  %v5521_v59 = vld [vmem:[#allocation4 + $0x84] sm:$0xe] }
 0x470   : > { %v8646_v22 = vrot.slane %v5521_v59, 9  ;;  %v5533_v49 = vld [vmem:[#allocation4 + $0xb4] sm:$0xe] }
 0x471   : > { %v5643_v19 = vsel %vm9586_vm13, %v8643_v11, %v5642_v15  ;;  %v5644_v31 = vrot.slane %v5642_v15, 4  ;;  %v8650_v33 = vrot.slane %v5533_v49, 9  ;;  %v8648_v15 = vrot.slane %v5527_v46, 9  ;;  %v5833_v49 = vld [vmem:[#allocation4 + $0x3c] sm:$0xf] }
 0x472   : > { %v5684_v11 = vrot.slane %v5531_v32, 5 }
 0x473   : > { %5714 = vrot.lane.b32.xlu0 %v5618_v21, %s8870_s10  ;;  %5706 = vrot.lane.b32.xlu2 %v5604_v9, %s8870_s10  ;;  %v5658_v21 = vrot.slane %v5656_v62, 4  ;;  %v5514_v9 = vld [vmem:[#allocation4 + $0x68] sm:$0x1]  ;;  %v5530_v62 = vld [vmem:[#allocation4 + $0xa8] sm:$0xe] }
 0x474   : > { %v5645_v24 = vrot.slane %v5514_v9, 5  ;;  %v8649_v2 = vrot.slane %v5530_v62, 9 }
 0x476   : > { %v5382_v13 = vpop.permute.xlu0 %5381 }
 0x477   : > { %5710 = vrot.lane.b32.xlu1 %v5611_v4, %s8870_s10  ;;  %5467 = vst.msk [vmem:[#allocation5 + $0x2c] sm:$0xf] %vm5455_vm6, %v5382_v13  ;;  %v5660_v4 = vsel %vm9586_vm13, %v5658_v21, %v5659_v37  ;;  %v5646_v13 = vsel %vm9586_vm13, %v5644_v31, %v5645_v24  ;;  %v5532_v21 = vld [vmem:[#allocation4 + $0xb0] sm:$0x1]  ;;  %v5685_v31 = vsel %vm9586_vm13, %v8649_v2, %v5684_v11 }
 0x478   : > { %v5687_v24 = vrot.slane %v5532_v21, 5 }
 0x47b   : > { %5720 = vrot.lane.b32.xlu0 %v5629_v0, %s8870_s10  ;;  %5712 = vrot.lane.b32.xlu2 %v5615_v25, %s8870_s10  ;;  %v8647_v0 = vrot.slane %v5524_v35, 9  ;;  %v5522_v25 = vld [vmem:[#allocation4 + $0x88] sm:$0xf] }
 0x47c   : > { %v5663_v42 = vrot.slane %v5522_v25, 5 }
 0x47e   : > { %v5664_v50 = vsel %vm9586_vm13, %v8646_v22, %v5663_v42  ;;  %v5665_v52 = vrot.slane %v5663_v42, 4  ;;  %v8856_v42 = vld [vmem:[%s12341_s2] ss:$0 sm:$0xff] }
 0x47f   : > { %5716 = vrot.lane.b32.xlu1 %v5622_v53, %s8870_s10  ;;  %v5671_v53 = vsel %vm9586_vm13, %v8647_v0, %v5670_v23  ;;  %v5829_v0 = vld [vmem:[#allocation4 + $0x24] sm:$0xf] }
 0x481   : > { %v5384_v28 = vpop.permute.xlu1 %5383 }
 0x482   : > { %5468 = vst.msk [vmem:[#allocation5 + $0x30] sm:$0xf] %vm5455_vm6, %v5384_v28  ;;  %v5523_v28 = vld [vmem:[#allocation4 + $0x8c] sm:$0x1] }
 0x483   : > { %5726 = vrot.lane.b32.xlu0 %v5639_v55, %s8870_s10  ;;  %5718 = vrot.lane.b32.xlu2 %v5625_v48, %s8870_s10  ;;  %v5679_v55 = vrot.slane %v5677_v5, 4  ;;  %v4894_v48 = vld [vmem:[#allocation4 + $0xb8] sm:$0xf]  ;;  %v5666_v40 = vrot.slane %v5523_v28, 5  ;;  %v8857_v28 = vld [vmem:[%s12342_s3] ss:$0 sm:$0xff] }
 0x484   : > { %4926 = vst.msk [vmem:[#allocation5 + $0x7c] sm:$0xf] %vm4338_vm12, %v4894_v48  ;;  %v5831_v48 = vld [vmem:[#allocation4 + $0x30] sm:$0xf] }
 0x485   : > { %v5681_v34 = vsel %vm9586_vm13, %v5679_v55, %v5680_v30  ;;  %v5667_v44 = vsel %vm9586_vm13, %v5665_v52, %v5666_v40  ;;  %v5835_v30 = vld [vmem:[#allocation4 + $0x48] sm:$0xf] }
 0x487   : > { %5722 = vrot.lane.b32.xlu1 %v5632_v14, %s8870_s10  ;;  %v5672_v14 = vrot.slane %v5670_v23, 4  ;;  %v5825_v23 = vld [vmem:[#allocation4 + $0xc] sm:$0xf] }
 0x489   : > { %v5392_v29 = vpop.permute.xlu2 %5391  ;;  %v5674_v26 = vsel %vm9586_vm13, %v5672_v14, %v5673_v45 }
 0x48a   : > { %5472 = vst.msk [vmem:[#allocation5 + $0x40] sm:$0xf] %vm5455_vm6, %v5392_v29 }
 0x48b   : > { %5732 = vrot.lane.b32.xlu0 %v5650_v6, %s8870_s10  ;;  %5724 = vrot.lane.b32.xlu2 %v5636_v51, %s8870_s10  ;;  %v5691_v6 = vrot.slane %v5534_v36, 5  ;;  %v4893_v51 = vld [vmem:[#allocation4 + $0xb4] sm:$0xf] }
 0x48c   : > { %4925 = vst.msk [vmem:[#allocation5 + $0x78] sm:$0xf] %vm4338_vm12, %v4893_v51 }
 0x48d   : > { %v5692_v39 = vsel %vm9586_vm13, %v8650_v33, %v5691_v6  ;;  %v5693_v27 = vrot.slane %v5691_v6, 4  ;;  %v5838_v6 = vld [vmem:[#allocation4 + $0x58] sm:$0xf] }
 0x48f   : > { %5728 = vrot.lane.b32.xlu1 %v5643_v19, %s8870_s10  ;;  %v5678_v19 = vsel %vm9586_vm13, %v8648_v15, %v5677_v5  ;;  %v5834_v15 = vld [vmem:[#allocation4 + $0x40] sm:$0xf] }
 0x491   : > { %v5388_v16 = vpop.permute.xlu0 %5387 }
 0x492   : > { %5470 = vst.msk [vmem:[#allocation5 + $0x38] sm:$0xf] %vm5455_vm6, %v5388_v16  ;;  %v5686_v16 = vrot.slane %v5684_v11, 4 }
 0x493   : > { %5738 = vrot.lane.b32.xlu0 %v5660_v4, %s8870_s10  ;;  %5730 = vrot.lane.b32.xlu2 %v5646_v13, %s8870_s10  ;;  %v5694_v13 = vrot.slane %v5535_v63, 5  ;;  %v5837_v63 = vld [vmem:[#allocation4 + $0x54] sm:$0xf] }
 0x494   : > { %v5688_v35 = vsel %vm9586_vm13, %v5686_v16, %v5687_v24  ;;  %v5841_v24 = vld [vmem:[#allocation4 + $0x6c] sm:$0xf] }
 0x495   : > { %v5695_v1 = vsel %vm9586_vm13, %v5693_v27, %v5694_v13 }
 0x496   : > { %v5390_v12 = vpop.permute.xlu1 %5389 }
 0x497   : > { %5734 = vrot.lane.b32.xlu1 %v5653_v43, %s8870_s10  ;;  %5471 = vst.msk [vmem:[#allocation5 + $0x3c] sm:$0xf] %vm5455_vm6, %v5390_v12  ;;  %v5827_v12 = vld [vmem:[#allocation4 + $0x18] sm:$0xf] }
 0x49b   : > { %5744 = vrot.lane.b32.xlu0 %v5671_v53, %s8870_s10  ;;  %5736 = vrot.lane.b32.xlu2 %v5657_v18, %s8870_s10 }
 0x49d   : > { %v5398_v38 = vpop.permute.xlu2 %5397 }
 0x49e   : > { %5475 = vst.msk [vmem:[#allocation5 + $0x4c] sm:$0xf] %vm5455_vm6, %v5398_v38 }
 0x49f   : > { %5740 = vrot.lane.b32.xlu1 %v5664_v50, %s8870_s10 }
 0x4a3   : > { %5750 = vrot.lane.b32.xlu0 %v5681_v34, %s8870_s10  ;;  %5742 = vrot.lane.b32.xlu2 %v5667_v44, %s8870_s10 }
 0x4a5   : > { %v5394_v29 = vpop.permute.xlu0 %5393  ;;  %v5404_v3 = vpop.permute.xlu2 %5403 }
 0x4a6   : > { %5473 = vst.msk [vmem:[#allocation5 + $0x44] sm:$0xf] %vm5455_vm6, %v5394_v29  ;;  %v4856_v29 = vld [vmem:[#allocation4 + $0xc0] sm:$0xf] }
 0x4a7   : > { %5478 = vst.msk [vmem:[#allocation5 + $0x58] sm:$0xf] %vm5455_vm6, %v5404_v3  ;;  %5746 = vrot.lane.b32.xlu1 %v5674_v26, %s8870_s10 }
 0x4ab   : > { %5756 = vrot.lane.b32.xlu0 %v5692_v39, %s8870_s10  ;;  %5748 = vrot.lane.b32.xlu2 %v5678_v19, %s8870_s10  ;;  %v5836_v19 = vld [vmem:[#allocation4 + $0x4c] sm:$0xf] }
 0x4ad   : > { %v5400_v37 = vpop.permute.xlu0 %5399  ;;  %v5410_v9 = vpop.permute.xlu2 %5409 }
 0x4ae   : > { %5476 = vst.msk [vmem:[#allocation5 + $0x50] sm:$0xf] %vm5455_vm6, %v5400_v37 }
 0x4af   : > { %5481 = vst.msk [vmem:[#allocation5 + $0x64] sm:$0xf] %vm5455_vm6, %v5410_v9  ;;  %5752 = vrot.lane.b32.xlu1 %v5685_v31, %s8870_s10  ;;  %v4860_v9 = vld [vmem:[#allocation4 + $0xc8] sm:$0x1] }
 0x4b1   : > { %v5396_v4 = vpop.permute.xlu1 %5395 }
 0x4b2   : > { %5474 = vst.msk [vmem:[#allocation5 + $0x48] sm:$0xf] %vm5455_vm6, %v5396_v4  ;;  %v4229_v53 = vpop.f32.mrf.mxu3 }
 0x4b3   : > { %5891 = vrot.lane.b32.xlu0 %v5826_v20, %s8872_s12  ;;  %5754 = vrot.lane.b32.xlu2 %v5688_v35, %s8870_s10  ;;  %v4268_v5 = vmul.f32 %v8856_v42, %v4229_v53  ;;  %v5839_v35 = vld [vmem:[#allocation4 + $0x60] sm:$0xf]  ;;  %v5846_v53 = vld [vmem:[#allocation4 + $0x88] sm:$0xf] }
 0x4b5   : > { %v5406_v8 = vpop.permute.xlu0 %5405  ;;  %v5416_v41 = vpop.permute.xlu2 %5415  ;;  %v4304_v38 = vadd.f32 %v8857_v28, %v4268_v5  ;;  %v5848_v5 = vld [vmem:[#allocation4 + $0x94] sm:$0xf] }
 0x4b6   : > { %5479 = vst.msk [vmem:[#allocation5 + $0x5c] sm:$0xf] %vm5455_vm6, %v5406_v8 }
 0x4b7   : > { %5484 = vst.msk [vmem:[#allocation5 + $0x70] sm:$0xf] %vm5455_vm6, %v5416_v41  ;;  %5758 = vrot.lane.b32.xlu1 %v5695_v1, %s8870_s10  ;;  %v4336_v55 = vmax.f32 %v4304_v38, 0.0  ;;  %v5849_v38 = vld [vmem:[#allocation4 + $0x9c] sm:$0xf] }
 0x4b9   : > { %v5402_v43 = vpop.permute.xlu1 %5401  ;;  %v4424_v52 = vpack.c.bf16 %v4336_v55, %v4336_v55 }
 0x4ba   : > { %5477 = vst.msk [vmem:[#allocation5 + $0x54] sm:$0xf] %vm5455_vm6, %v5402_v43  ;;  %v4231_v40 = vpop.f32.mrf.mxu3  ;;  %v5842_v43 = vld [vmem:[#allocation4 + $0x70] sm:$0xf] }
 0x4bb   : > { %5897 = vrot.lane.b32.xlu0 %v5829_v0, %s8872_s12  ;;  %5889 = vrot.lane.b32.xlu2 %v5825_v23, %s8872_s12  ;;  %v4682_v34 = vshrl.u32 %v4424_v52, 16  ;;  %v4685_v14 = vshll.u32 %v4424_v52, 16  ;;  %v4269_v45 = vmul.f32 %v8856_v42, %v4231_v40  ;;  %v5847_v23 = vld [vmem:[#allocation4 + $0x90] sm:$0xf]  ;;  %v6022_v52 = vld [vmem:[#allocation4 + $0x1c] sm:$0xf] }
 0x4bc   : > { %v6019_v40 = vld [vmem:[#allocation4 + $0x10] sm:$0xf] }
 0x4bd   : > { %v5412_v59 = vpop.permute.xlu0 %5411  ;;  %v5422_v58 = vpop.permute.xlu2 %5421  ;;  %v4684_v36 = vrot.slane %v4682_v34, 7  ;;  %v4305_v46 = vadd.f32 %v8857_v28, %v4269_v45  ;;  %v5853_v28 = vld [vmem:[#allocation4 + $0xb4] sm:$0xf]  ;;  %v5851_v34 = vld [vmem:[#allocation4 + $0xa8] sm:$0xf] }
 0x4be   : > { %5482 = vst.msk [vmem:[#allocation5 + $0x68] sm:$0xf] %vm5455_vm6, %v5412_v59  ;;  %v5843_v59 = vld [vmem:[#allocation4 + $0x78] sm:$0xf] }
 0x4bf   : > { %5487 = vst.msk [vmem:[#allocation5 + $0x7c] sm:$0xf] %vm5455_vm6, %v5422_v58  ;;  %5893 = vrot.lane.b32.xlu1 %v5827_v12, %s8872_s12  ;;  %v4687_v26 = vor.u32 %v4685_v14, %v4684_v36  ;;  %v4337_v33 = vmax.f32 %v4305_v46, 0.0  ;;  %v4688_v21 = vrot.slane %v4684_v36, 4  ;;  %v6025_v14 = vld [vmem:[#allocation4 + $0x28] sm:$0xf] }
 0x4c1   : > { %v5408_v25 = vpop.permute.xlu1 %5407  ;;  %v4857_v62 = vsel %vm10897_vm15, %v4687_v26, %v4856_v29  ;;  %v4425_v32 = vpack.c.bf16 %v4337_v33, %v4337_v33  ;;  %v6076_v29 = vshll.u32 %v6019_v40, 16  ;;  %v6100_v33 = vshll.u32 %v6022_v52, 16 }
 0x4c2   : > { %5480 = vst.msk [vmem:[#allocation5 + $0x60] sm:$0xf] %vm5455_vm6, %v5408_v25  ;;  %v5845_v25 = vld [vmem:[#allocation4 + $0x84] sm:$0xf] }
 0x4c3   : > { %5903 = vrot.lane.b32.xlu0 %v5832_v57, %s8872_s12  ;;  %5895 = vrot.lane.b32.xlu2 %v5828_v47, %s8872_s12  ;;  %4858 = vst [vmem:[#allocation4 + $0xc0] sm:$0xf] %v4857_v62  ;;  %v4690_v39 = vshrl.u32 %v4425_v32, 16  ;;  %v4693_v2 = vshll.u32 %v4425_v32, 16  ;;  %v5850_v47 = vld [vmem:[#allocation4 + $0xa0] sm:$0xf] }
 0x4c4   : > { %v5852_v62 = vld [vmem:[#allocation4 + $0xac] sm:$0xf]  ;;  %v6104_v32 = vshrl.u32 %v6022_v52, 16 }
 0x4c5   : > { %v5418_v22 = vpop.permute.xlu0 %5417  ;;  %v5701_v18 = vpop.permute.xlu2 %5700  ;;  %v4692_v37 = vrot.slane %v4690_v39, 7  ;;  %v6034_v52 = vld [vmem:[#allocation4 + $0x4c] sm:$0xf] }
 0x4c6   : > { %5485 = vst.msk [vmem:[#allocation5 + $0x74] sm:$0xf] %vm5455_vm6, %v5418_v22 }
 0x4c7   : > { %5795 = vst.msk [vmem:[#allocation5 + $0x8] sm:$0xf] %vm5792_vm0, %v5701_v18  ;;  %5899 = vrot.lane.b32.xlu1 %v5830_v7, %s8872_s12  ;;  %v4695_v31 = vor.u32 %v4693_v2, %v4692_v37  ;;  %v4697_v16 = vrot.slane %v4692_v37, 4  ;;  %v6021_v7 = vld [vmem:[#allocation4 + $0x18] sm:$0xf]  ;;  %v6102_v37 = vrot.slane %v6100_v33, 5 }
 0x4c8   : > { %v6094_v55 = vshll.u32 %v6021_v7, 16  ;;  %v6200_v33 = vshrl.u32 %v6034_v52, 16 }
 0x4c9   : > { %v5414_v50 = vpop.permute.xlu1 %5413  ;;  %v4696_v4 = vsel %vm9096_vm9, %v4688_v21, %v4695_v31  ;;  %v4861_v20 = vsel %vm10920_vm5, %v4697_v16, %v4860_v9  ;;  %v5854_v16 = vld [vmem:[#allocation4 + $0xb8] sm:$0xf]  ;;  %vm5985_vm9 = vcmask 257216  }
 0x4ca   : > { %5483 = vst.msk [vmem:[#allocation5 + $0x6c] sm:$0xf] %vm5455_vm6, %v5414_v50  ;;  %v6091_v50 = vshrl.u32 %v6021_v7, 16  ;;  %v6096_v46 = vrot.slane %v6094_v55, 5 }
 0x4cb   : > { %5909 = vrot.lane.b32.xlu0 %v5835_v30, %s8872_s12  ;;  %5901 = vrot.lane.b32.xlu2 %v5831_v48, %s8872_s12  ;;  %4859 = vst.msk [vmem:[#allocation4 + $0xc4] sm:$0xf] %vm4338_vm12, %v4696_v4  ;;  %v6018_v30 = vld [vmem:[#allocation4 + $0xc] sm:$0xf]  ;;  %v6106_v4 = vrot.slane %v6104_v32, 4  ;;  %vm8402_vm12 = vcmask 64512  }
 0x4cc   : > { %4862 = vst [vmem:[#allocation4 + $0xc8] sm:$0x1] %v4861_v20  ;;  %v6067_v45 = vshrl.u32 %v6018_v30, 16  ;;  %v6093_v36 = vrot.slane %v6091_v50, 4  ;;  %v6028_v50 = vld [vmem:[#allocation4 + $0x34] sm:$0xf] }
 0x4cd   : > { %v5697_v56 = vpop.permute.xlu0 %5696  ;;  %v5707_v44 = vpop.permute.xlu2 %5706 }
 0x4ce   : > { %5793 = vst.msk [vmem:[#allocation5] sm:$0xf] %vm5792_vm0, %v5697_v56  ;;  %v6097_v2 = vor.u32 %v6096_v46, %v6093_v36  ;;  %v6148_v46 = vshll.u32 %v6028_v50, 16 }
 0x4cf   : > { %5798 = vst.msk [vmem:[#allocation5 + $0x14] sm:$0xf] %vm5792_vm0, %v5707_v44  ;;  %5905 = vrot.lane.b32.xlu1 %v5833_v49, %s8872_s12  ;;  %v6070_v44 = vshll.u32 %v6018_v30, 16 }
 0x4d0   : > { %v6098_v20 = vrot.slane %v6097_v2, 4 }
 0x4d1   : > { %v5420_v3 = vpop.permute.xlu1 %5419  ;;  %v6072_v39 = vrot.slane %v6070_v44, 5 }
 0x4d2   : > { %5486 = vst.msk [vmem:[#allocation5 + $0x78] sm:$0xf] %vm5455_vm6, %v5420_v3  ;;  %v5856_v49 = vld [vmem:[#allocation4 + $0xc4] sm:$0xf]  ;;  %v6080_v3 = vshrl.u32 %v6019_v40, 16 }
 0x4d3   : > { %5915 = vrot.lane.b32.xlu0 %v5838_v6, %s8872_s12  ;;  %5907 = vrot.lane.b32.xlu2 %v5834_v15, %s8872_s12  ;;  %v6124_v6 = vshll.u32 %v6025_v14, 16  ;;  %v6128_v15 = vshrl.u32 %v6025_v14, 16 }
 0x4d5   : > { %v5703_v51 = vpop.permute.xlu0 %5702  ;;  %v5713_v11 = vpop.permute.xlu2 %5712  ;;  %v11486_v9 = vrot.slane %v6124_v6, 5 }
 0x4d6   : > { %5796 = vst.msk [vmem:[#allocation5 + $0xc] sm:$0xf] %vm5792_vm0, %v5703_v51  ;;  %v6069_v51 = vrot.slane %v6067_v45, 4 }
 0x4d7   : > { %5801 = vst.msk [vmem:[#allocation5 + $0x20] sm:$0xf] %vm5792_vm0, %v5713_v11  ;;  %5911 = vrot.lane.b32.xlu1 %v5836_v19, %s8872_s12  ;;  %v6078_v11 = vrot.slane %v6076_v29, 5  ;;  %v6082_v19 = vrot.slane %v6080_v3, 4  ;;  %v6152_v3 = vshrl.u32 %v6028_v50, 16 }
 0x4d9   : > { %v5699_v17 = vpop.permute.xlu1 %5698 }
 0x4da   : > { %5794 = vst.msk [vmem:[#allocation5 + $0x4] sm:$0xf] %vm5792_vm0, %v5699_v17  ;;  %v6130_v17 = vrot.slane %v6128_v15, 4 }
 0x4db   : > { %5921 = vrot.lane.b32.xlu0 %v5841_v24, %s8872_s12  ;;  %5913 = vrot.lane.b32.xlu2 %v5837_v63, %s8872_s12  ;;  %v6026_v24 = vld [vmem:[#allocation4 + $0x2c] sm:$0x1]  ;;  %v6073_v63 = vor.u32 %v6072_v39, %v6069_v51 }
 0x4dd   : > { %v5709_v27 = vpop.permute.xlu0 %5708  ;;  %v5719_v13 = vpop.permute.xlu2 %5718 }
 0x4de   : > { %5799 = vst.msk [vmem:[#allocation5 + $0x18] sm:$0xf] %vm5792_vm0, %v5709_v27  ;;  %v6020_v27 = vld [vmem:[#allocation4 + $0x14] sm:$0x1] }
 0x4df   : > { %5804 = vst.msk [vmem:[#allocation5 + $0x2c] sm:$0xf] %vm5792_vm0, %v5719_v13  ;;  %5917 = vrot.lane.b32.xlu1 %v5839_v35, %s8872_s12  ;;  %v6083_v13 = vor.u32 %v6082_v19, %v6078_v11 }
 0x4e1   : > { %v5705_v8 = vpop.permute.xlu1 %5704 }
 0x4e2   : > { %5797 = vst.msk [vmem:[#allocation5 + $0x10] sm:$0xf] %vm5792_vm0, %v5705_v8  ;;  %v6131_v8 = vor.u32 %v6130_v17, %v11486_v9 }
 0x4e3   : > { %5927 = vrot.lane.b32.xlu0 %v5844_v60, %s8872_s12  ;;  %5919 = vrot.lane.b32.xlu2 %v5840_v54, %s8872_s12  ;;  %v6134_v60 = vshll.u32 %v6026_v24, 16  ;;  %v6023_v54 = vld [vmem:[#allocation4 + $0x20] sm:$0x1]  ;;  %v6154_v24 = vrot.slane %v6152_v3, 4 }
 0x4e5   : > { %v5715_v41 = vpop.permute.xlu0 %5714  ;;  %v5725_v1 = vpop.permute.xlu2 %5724 }
 0x4e6   : > { %5802 = vst.msk [vmem:[#allocation5 + $0x24] sm:$0xf] %vm5792_vm0, %v5715_v41  ;;  %v6030_v41 = vld [vmem:[#allocation4 + $0x3c] sm:$0xf] }
 0x4e7   : > { %5807 = vst.msk [vmem:[#allocation5 + $0x38] sm:$0xf] %vm5792_vm0, %v5725_v1  ;;  %5923 = vrot.lane.b32.xlu1 %v5842_v43, %s8872_s12  ;;  %v6103_v1 = vsel %vm8955_vm3, %v6098_v20, %v6102_v37  ;;  %v6024_v43 = vld [vmem:[#allocation4 + $0x24] sm:$0xf] }
 0x4e8   : > { %v6118_v7 = vshll.u32 %v6024_v43, 16 }
 0x4e9   : > { %v5711_v0 = vpop.permute.xlu1 %5710 }
 0x4ea   : > { %5800 = vst.msk [vmem:[#allocation5 + $0x1c] sm:$0xf] %vm5792_vm0, %v5711_v0  ;;  %v5855_v0 = vld [vmem:[#allocation4 + $0xc0] sm:$0xf]  ;;  %v6120_v36 = vrot.slane %v6118_v7, 5 }
 0x4eb   : > { %5933 = vrot.lane.b32.xlu0 %v5847_v23, %s8872_s12  ;;  %5925 = vrot.lane.b32.xlu2 %v5843_v59, %s8872_s12  ;;  %v6074_v23 = vrot.slane %v6073_v63, 4  ;;  %v6086_v59 = vshll.u32 %v6020_v27, 16 }
 0x4ed   : > { %v5721_v58 = vpop.permute.xlu0 %5720  ;;  %v5731_v12 = vpop.permute.xlu2 %5730  ;;  %v6088_v40 = vrot.slane %v6086_v59, 5 }
 0x4ee   : > { %5805 = vst.msk [vmem:[#allocation5 + $0x30] sm:$0xf] %vm5792_vm0, %v5721_v58  ;;  %v6107_v58 = vor.u32 %v6106_v4, %v6102_v37  ;;  %v6035_v4 = vld [vmem:[#allocation4 + $0x50] sm:$0x1] }
 0x4ef   : > { %5810 = vst.msk [vmem:[#allocation5 + $0x44] sm:$0xf] %vm5792_vm0, %v5731_v12  ;;  %5929 = vrot.lane.b32.xlu1 %v5845_v25, %s8872_s12  ;;  %v6027_v12 = vld [vmem:[#allocation4 + $0x30] sm:$0xf]  ;;  %v6084_v25 = vrot.slane %v6083_v13, 4 }
 0x4f0   : > { %v6139_v55 = vshrl.u32 %v6027_v12, 16  ;;  %v6142_v30 = vshll.u32 %v6027_v12, 16 }
 0x4f1   : > { %v5717_v57 = vpop.permute.xlu1 %5716  ;;  %v6089_v6 = vsel %vm8955_vm3, %v6084_v25, %v6088_v40  ;;  %v6037_v40 = vld [vmem:[#allocation4 + $0x58] sm:$0xf] }
 0x4f2   : > { %5803 = vst.msk [vmem:[#allocation5 + $0x28] sm:$0xf] %vm5792_vm0, %v5717_v57  ;;  %v6110_v57 = vshll.u32 %v6023_v54, 16  ;;  %v6144_v32 = vrot.slane %v6142_v30, 5  ;;  %v6043_v30 = vld [vmem:[#allocation4 + $0x70] sm:$0xf] }
 0x4f3   : > { %5939 = vrot.lane.b32.xlu0 %v5850_v47, %s8872_s12  ;;  %5931 = vrot.lane.b32.xlu2 %v5846_v53, %s8872_s12  ;;  %v6163_v47 = vshrl.u32 %v6030_v41, 16  ;;  %v6166_v53 = vshll.u32 %v6030_v41, 16  ;;  %v6268_v3 = vshll.u32 %v6043_v30, 16 }
 0x4f4   : > { %v6112_v15 = vrot.slane %v6110_v57, 5 }
 0x4f5   : > { %v5727_v22 = vpop.permute.xlu0 %5726  ;;  %v5737_v42 = vpop.permute.xlu2 %5736  ;;  %v6168_v14 = vrot.slane %v6166_v53, 5 }
 0x4f6   : > { %5808 = vst.msk [vmem:[#allocation5 + $0x3c] sm:$0xf] %vm5792_vm0, %v5727_v22 }
 0x4f7   : > { %5813 = vst.msk [vmem:[#allocation5 + $0x50] sm:$0xf] %vm5792_vm0, %v5737_v42  ;;  %5935 = vrot.lane.b32.xlu1 %v5848_v5, %s8872_s12  ;;  %v6132_v42 = vrot.slane %v6131_v8, 4  ;;  %v6136_v5 = vrot.slane %v6134_v60, 5  ;;  %v6039_v60 = vld [vmem:[#allocation4 + $0x60] sm:$0xf] }
 0x4f8   : > { %v6235_v25 = vshrl.u32 %v6039_v60, 16  ;;  %v6238_v57 = vshll.u32 %v6039_v60, 16 }
 0x4f9   : > { %v5723_v18 = vpop.permute.xlu1 %5722  ;;  %v6137_v44 = vsel %vm8955_vm3, %v6132_v42, %v6136_v5 }
 0x4fa   : > { %5806 = vst.msk [vmem:[#allocation5 + $0x34] sm:$0xf] %vm5792_vm0, %v5723_v18  ;;  %v6115_v18 = vshrl.u32 %v6024_v43, 16 }
 0x4fb   : > { %5945 = vrot.lane.b32.xlu0 %v5853_v28, %s8872_s12  ;;  %5937 = vrot.lane.b32.xlu2 %v5849_v38, %s8872_s12  ;;  %v6079_v38 = vsel %vm8955_vm3, %v6074_v23, %v6078_v11 }
 0x4fd   : > { %v5733_v48 = vpop.permute.xlu0 %5732  ;;  %v5743_v56 = vpop.permute.xlu2 %5742 }
 0x4fe   : > { %5811 = vst.msk [vmem:[#allocation5 + $0x48] sm:$0xf] %vm5792_vm0, %v5733_v48  ;;  %v6031_v48 = vld [vmem:[#allocation4 + $0x40] sm:$0xf] }
 0x4ff   : > { %5816 = vst.msk [vmem:[#allocation5 + $0x5c] sm:$0xf] %vm5792_vm0, %v5743_v56  ;;  %5941 = vrot.lane.b32.xlu1 %v5851_v34, %s8872_s12  ;;  %v6108_v56 = vrot.slane %v6107_v58, 4  ;;  %v6165_v34 = vrot.slane %v6163_v47, 4  ;;  %v6172_v29 = vshll.u32 %v6031_v48, 16  ;;  %v6176_v11 = vshrl.u32 %v6031_v48, 16 }
 0x500   : > { %v6032_v58 = vld [vmem:[#allocation4 + $0x44] sm:$0x1]  ;;  %v6237_v48 = vrot.slane %v6235_v25, 4 }
 0x501   : > { %v5729_v26 = vpop.permute.xlu1 %5728  ;;  %v6169_v51 = vor.u32 %v6168_v14, %v6165_v34  ;;  %v6113_v2 = vsel %vm8955_vm3, %v6108_v56, %v6112_v15  ;;  %v6174_v17 = vrot.slane %v6172_v29, 5  ;;  %v6178_v8 = vrot.slane %v6176_v11, 4 }
 0x502   : > { %5809 = vst.msk [vmem:[#allocation5 + $0x40] sm:$0xf] %vm5792_vm0, %v5729_v26  ;;  %v6196_v26 = vshll.u32 %v6034_v52, 16  ;;  %v6182_v50 = vshll.u32 %v6032_v58, 16  ;;  %v6240_v52 = vrot.slane %v6238_v57, 5  ;;  %v6220_v15 = vshll.u32 %v6037_v40, 16 }
 0x503   : > { %5951 = vrot.lane.b32.xlu0 %v5856_v49, %s8872_s12  ;;  %5943 = vrot.lane.b32.xlu2 %v5852_v62, %s8872_s12  ;;  %v6117_v49 = vrot.slane %v6115_v18, 4  ;;  %v6141_v62 = vrot.slane %v6139_v55, 4  ;;  %v6170_v20 = vrot.slane %v6169_v51, 4  ;;  %v6036_v18 = vld [vmem:[#allocation4 + $0x54] sm:$0xf] }
 0x504   : > { %v6040_v55 = vld [vmem:[#allocation4 + $0x64] sm:$0xf]  ;;  %v6211_v56 = vshrl.u32 %v6036_v18, 16  ;;  %v6214_v34 = vshll.u32 %v6036_v18, 16  ;;  %v6042_v58 = vld [vmem:[#allocation4 + $0x6c] sm:$0xf] }
 0x505   : > { %v5739_v21 = vpop.permute.xlu0 %5738  ;;  %v5749_v31 = vpop.permute.xlu2 %5748  ;;  %v6121_v19 = vor.u32 %v6120_v36, %v6117_v49  ;;  %v6145_v63 = vor.u32 %v6144_v32, %v6141_v62  ;;  %v6175_v54 = vsel %vm8955_vm3, %v6170_v20, %v6174_v17  ;;  %v6244_v29 = vshll.u32 %v6040_v55, 16 }
 0x506   : > { %5814 = vst.msk [vmem:[#allocation5 + $0x54] sm:$0xf] %vm5792_vm0, %v5739_v21  ;;  %v6150_v21 = vrot.slane %v6148_v46, 5  ;;  %v6224_v62 = vshrl.u32 %v6037_v40, 16  ;;  %v6241_v32 = vor.u32 %v6240_v52, %v6237_v48  ;;  %v6213_v51 = vrot.slane %v6211_v56, 4 }
 0x507   : > { %5819 = vst.msk [vmem:[#allocation5 + $0x68] sm:$0xf] %vm5792_vm0, %v5749_v31  ;;  %5947 = vrot.lane.b32.xlu1 %v5854_v16, %s8872_s12  ;;  %v11512_v31 = vrot.slane %v6196_v26, 5  ;;  %v6202_v16 = vrot.slane %v6200_v33, 4  ;;  %v6122_v13 = vrot.slane %v6121_v19, 4  ;;  %v6146_v59 = vrot.slane %v6145_v63, 4 }
 0x508   : > { %v6155_v43 = vor.u32 %v6154_v24, %v6150_v21  ;;  %v6272_v26 = vshrl.u32 %v6043_v30, 16  ;;  %v11540_v24 = vrot.slane %v6268_v3, 5  ;;  %v6226_v20 = vrot.slane %v6224_v62, 4  ;;  %v6052_v52 = vld [vmem:[#allocation4 + $0x94] sm:$0xf] }
 0x509   : > { %v5735_v35 = vpop.permute.xlu1 %5734  ;;  %v6203_v41 = vor.u32 %v6202_v16, %v11512_v31  ;;  %v6127_v23 = vsel %vm8955_vm3, %v6122_v13, %v11486_v9  ;;  %v6151_v53 = vsel %vm8955_vm3, %v6146_v59, %v6150_v21  ;;  %v6048_v21 = vld [vmem:[#allocation4 + $0x84] sm:$0xf]  ;;  %v6248_v16 = vshrl.u32 %v6040_v55, 16 }
 0x50a   : > { %5812 = vst.msk [vmem:[#allocation5 + $0x4c] sm:$0xf] %vm5792_vm0, %v5735_v35  ;;  %v6029_v35 = vld [vmem:[#allocation4 + $0x38] sm:$0x1]  ;;  %v6274_v63 = vrot.slane %v6272_v26, 4 }
 0x50b   : > { %6454 = vrot.lane.b32.xlu0 %v6103_v1, %s8874_s14  ;;  %5949 = vrot.lane.b32.xlu2 %v5855_v0, %s8872_s12  ;;  %v6206_v1 = vshll.u32 %v6035_v4, 16  ;;  %v6033_v0 = vld [vmem:[#allocation4 + $0x48] sm:$0xf]  ;;  %v6158_v12 = vshll.u32 %v6029_v35, 16  ;;  %v6222_v4 = vrot.slane %v6220_v15, 5  ;;  %v6307_v35 = vshrl.u32 %v6048_v21, 16 }
 0x50c   : > { %v6187_v42 = vshrl.u32 %v6033_v0, 16  ;;  %v6190_v5 = vshll.u32 %v6033_v0, 16  ;;  %v6250_v59 = vrot.slane %v6248_v16, 4  ;;  %v6344_v15 = vshrl.u32 %v6052_v52, 16  ;;  %v6051_v16 = vld [vmem:[#allocation4 + $0x90] sm:$0xf] }
 0x50d   : > { %v5745_v22 = vpop.permute.xlu0 %5744  ;;  %v5755_v28 = vpop.permute.xlu2 %5754  ;;  %v6208_v9 = vrot.slane %v6206_v1, 5  ;;  %v6038_v1 = vld [vmem:[#allocation4 + $0x5c] sm:$0x1]  ;;  %v6227_v25 = vor.u32 %v6226_v20, %v6222_v4  ;;  %v6053_v20 = vld [vmem:[#allocation4 + $0x98] sm:$0x1]  ;;  %s8875_s12 = smov 40  }
 0x50e   : > { %5817 = vst.msk [vmem:[#allocation5 + $0x60] sm:$0xf] %vm5792_vm0, %v5745_v22  ;;  %v6179_v22 = vor.u32 %v6178_v8, %v6174_v17  ;;  %v6189_v49 = vrot.slane %v6187_v42, 4  ;;  %v6192_v36 = vrot.slane %v6190_v5, 5  ;;  %v6246_v17 = vrot.slane %v6244_v29, 5 }
 0x50f   : > { %5822 = vst.msk [vmem:[#allocation5 + $0x74] sm:$0xf] %vm5792_vm0, %v5755_v28  ;;  %6450 = vrot.lane.b32.xlu1 %v6079_v38, %s8874_s14  ;;  %v6204_v28 = vrot.slane %v6203_v41, 4  ;;  %v6156_v38 = vrot.slane %v6155_v43, 4  ;;  %v6045_v8 = vld [vmem:[#allocation4 + $0x78] sm:$0xf] }
 0x510   : > { %v6193_v19 = vor.u32 %v6192_v36, %v6189_v49  ;;  %v6044_v41 = vld [vmem:[#allocation4 + $0x74] sm:$0x1]  ;;  %v6310_v43 = vshll.u32 %v6048_v21, 16  ;;  %v6283_v57 = vshrl.u32 %v6045_v8, 16  ;;  %v6286_v42 = vshll.u32 %v6045_v8, 16 }
 0x511   : > { %v5741_v45 = vpop.permute.xlu1 %5740  ;;  %v6209_v46 = vsel %vm8955_vm3, %v6204_v28, %v6208_v9  ;;  %v6230_v18 = vshll.u32 %v6038_v1, 16  ;;  %v6259_v9 = vshrl.u32 %v6042_v58, 16  ;;  %v6251_v30 = vor.u32 %v6250_v59, %v6246_v17  ;;  %v6049_v36 = vld [vmem:[#allocation4 + $0x88] sm:$0xf]  ;;  %v6047_v1 = vld [vmem:[#allocation4 + $0x80] sm:$0x1] }
 0x512   : > { %5815 = vst.msk [vmem:[#allocation5 + $0x58] sm:$0xf] %vm5792_vm0, %v5741_v45  ;;  %v6160_v45 = vrot.slane %v6158_v12, 5  ;;  %v6312_v28 = vrot.slane %v6310_v43, 5  ;;  %v6228_v48 = vrot.slane %v6227_v25, 4  ;;  %v6350_v59 = vshll.u32 %v6053_v20, 16 }
 0x513   : > { %6460 = vrot.lane.b32.xlu0 %v6137_v44, %s8874_s14  ;;  %6452 = vrot.lane.b32.xlu2 %v6089_v6, %s8874_s14  ;;  %v6180_v44 = vrot.slane %v6179_v22, 4  ;;  %v6184_v6 = vrot.slane %v6182_v50, 5  ;;  %v6309_v22 = vrot.slane %v6307_v35, 4  ;;  %v6232_v49 = vrot.slane %v6230_v18, 5 }
 0x514   : > { %v6161_v33 = vsel %vm8955_vm3, %v6156_v38, %v6160_v45  ;;  %v6262_v38 = vshll.u32 %v6042_v58, 16  ;;  %v6288_v45 = vrot.slane %v6286_v42, 5  ;;  %v6261_v29 = vrot.slane %v6259_v9, 4  ;;  %v6050_v58 = vld [vmem:[#allocation4 + $0x8c] sm:$0x1] }
 0x515   : > { %v5751_v39 = vpop.permute.xlu0 %5750  ;;  %v5890_v37 = vpop.permute.xlu2 %5889  ;;  %v6185_v11 = vsel %vm8955_vm3, %v6180_v44, %v6184_v6  ;;  %v6340_v6 = vshll.u32 %v6052_v52, 16  ;;  %v6233_v62 = vsel %vm8955_vm3, %v6228_v48, %v6232_v49  ;;  %v6334_v25 = vshll.u32 %v6051_v16, 16  ;;  %v6054_v42 = vld [vmem:[#allocation4 + $0x9c] sm:$0xf] }
 0x516   : > { %5820 = vst.msk [vmem:[#allocation5 + $0x6c] sm:$0xf] %vm5792_vm0, %v5751_v39  ;;  %v6216_v39 = vrot.slane %v6214_v34, 5  ;;  %v6046_v34 = vld [vmem:[#allocation4 + $0x7c] sm:$0xf]  ;;  %v6264_v3 = vrot.slane %v6262_v38, 5 }
 0x517   : > { %5986 = vst.msk [vmem:[#allocation5] sm:$0xf] %vm5985_vm9, %v5890_v37  ;;  %6456 = vrot.lane.b32.xlu1 %v6113_v2, %s8874_s14  ;;  %v6326_v38 = vshll.u32 %v6050_v58, 16  ;;  %v6358_v48 = vshll.u32 %v6054_v42, 16 }
 0x518   : > { %v6217_v13 = vor.u32 %v6216_v39, %v6213_v51  ;;  %v6296_v51 = vshrl.u32 %v6046_v34, 16 }
 0x519   : > { %v5747_v27 = vpop.permute.xlu1 %5746 }
 0x51a   : > { %5818 = vst.msk [vmem:[#allocation5 + $0x64] sm:$0xf] %vm5792_vm0, %v5747_v27  ;;  %v6242_v27 = vrot.slane %v6241_v32, 4  ;;  %v6292_v32 = vshll.u32 %v6046_v34, 16  ;;  %v6298_v8 = vrot.slane %v6296_v51, 4 }
 0x51b   : > { %6466 = vrot.lane.b32.xlu0 %v6175_v54, %s8874_s14  ;;  %6458 = vrot.lane.b32.xlu2 %v6127_v23, %s8874_s14  ;;  %v6194_v54 = vrot.slane %v6193_v19, 4  ;;  %v6275_v23 = vor.u32 %v6274_v63, %v11540_v24 }
 0x51c   : > { %v6247_v0 = vsel %vm8955_vm3, %v6242_v27, %v6246_v17  ;;  %v6265_v17 = vor.u32 %v6264_v3, %v6261_v29  ;;  %v11568_v27 = vrot.slane %v6340_v6, 5  ;;  %v6294_v35 = vrot.slane %v6292_v32, 5  ;;  %v6058_v3 = vld [vmem:[#allocation4 + $0xac] sm:$0xf] }
 0x51d   : > { %v5757_v47 = vpop.permute.xlu0 %5756  ;;  %v5896_v7 = vpop.permute.xlu2 %5895  ;;  %v6199_v12 = vsel %vm8955_vm3, %v6194_v54, %v11512_v31  ;;  %v6276_v55 = vrot.slane %v6275_v23, 4  ;;  %v6328_v29 = vrot.slane %v6326_v38, 5  ;;  %v6360_v6 = vrot.slane %v6358_v48, 5 }
 0x51e   : > { %5823 = vst.msk [vmem:[#allocation5 + $0x78] sm:$0xf] %vm5792_vm0, %v5757_v47  ;;  %v6218_v47 = vrot.slane %v6217_v13, 4  ;;  %v6346_v13 = vrot.slane %v6344_v15, 4  ;;  %v6266_v23 = vrot.slane %v6265_v17, 4  ;;  %v6299_v18 = vor.u32 %v6298_v8, %v6294_v35 }
 0x51f   : > { %5989 = vst.msk [vmem:[#allocation5 + $0xc] sm:$0xf] %vm5985_vm9, %v5896_v7  ;;  %6462 = vrot.lane.b32.xlu1 %v6151_v53, %s8874_s14  ;;  %v6278_v53 = vshll.u32 %v6044_v41, 16  ;;  %v6041_v7 = vld [vmem:[#allocation4 + $0x68] sm:$0x1]  ;;  %v6392_v17 = vshrl.u32 %v6058_v3, 16 }
 0x520   : > { %v6223_v31 = vsel %vm8955_vm3, %v6218_v47, %v6222_v4  ;;  %v6254_v56 = vshll.u32 %v6041_v7, 16  ;;  %v6347_v47 = vor.u32 %v6346_v13, %v11568_v27  ;;  %v6302_v7 = vshll.u32 %v6047_v1, 16  ;;  %v6056_v1 = vld [vmem:[#allocation4 + $0xa4] sm:$0x1] }
 0x521   : > { %v5753_v14 = vpop.permute.xlu1 %5752  ;;  %v6280_v40 = vrot.slane %v6278_v53, 5 }
 0x522   : > { %5821 = vst.msk [vmem:[#allocation5 + $0x70] sm:$0xf] %vm5792_vm0, %v5753_v14  ;;  %v6285_v14 = vrot.slane %v6283_v57, 4  ;;  %v6256_v39 = vrot.slane %v6254_v56, 5  ;;  %v6352_v56 = vrot.slane %v6350_v59, 5  ;;  %v6394_v59 = vrot.slane %v6392_v17, 4 }
 0x523   : > { %6472 = vrot.lane.b32.xlu0 %v6209_v46, %s8874_s14  ;;  %6464 = vrot.lane.b32.xlu2 %v6161_v33, %s8874_s14  ;;  %v6313_v46 = vor.u32 %v6312_v28, %v6309_v22  ;;  %v6281_v26 = vsel %vm8955_vm3, %v6276_v55, %v6280_v40  ;;  %v6252_v33 = vrot.slane %v6251_v30, 4  ;;  %v6336_v55 = vrot.slane %v6334_v25, 5  ;;  %v6065_v17 = vld [vmem:[#allocation4 + $0xc8] sm:$0x1] }
 0x524   : > { %v6289_v19 = vor.u32 %v6288_v45, %v6285_v14  ;;  %v6355_v30 = vshrl.u32 %v6054_v42, 16  ;;  %v6348_v40 = vrot.slane %v6347_v47, 4  ;;  %v6300_v14 = vrot.slane %v6299_v18, 4  ;;  %v6059_v47 = vld [vmem:[#allocation4 + $0xb0] sm:$0x1] }
 0x525   : > { %v5892_v2 = vpop.permute.xlu0 %5891  ;;  %v5902_v37 = vpop.permute.xlu2 %5901  ;;  %v6257_v4 = vsel %vm8955_vm3, %v6252_v33, %v6256_v39  ;;  %v6304_v45 = vrot.slane %v6302_v7, 5  ;;  %v6063_v18 = vld [vmem:[#allocation4 + $0xc0] sm:$0xf]  ;;  %v6398_v38 = vshll.u32 %v6059_v47, 16 }
 0x526   : > { %5987 = vst.msk [vmem:[#allocation5 + $0x4] sm:$0xf] %vm5985_vm9, %v5892_v2  ;;  %v6316_v2 = vshll.u32 %v6049_v36, 16  ;;  %v6290_v41 = vrot.slane %v6289_v19, 4  ;;  %v6357_v33 = vrot.slane %v6355_v30, 4  ;;  %v6353_v15 = vsel %vm8955_vm3, %v6348_v40, %v6352_v56 }
 0x527   : > { %5992 = vst.msk [vmem:[#allocation5 + $0x18] sm:$0xf] %vm5985_vm9, %v5902_v37  ;;  %6468 = vrot.lane.b32.xlu1 %v6185_v11, %s8874_s14  ;;  %v6320_v11 = vshrl.u32 %v6049_v36, 16  ;;  %v6314_v37 = vrot.slane %v6313_v46, 4  ;;  %v6055_v36 = vld [vmem:[#allocation4 + $0xa0] sm:$0xf]  ;;  %v6305_v39 = vsel %vm8955_vm3, %v6300_v14, %v6304_v45 }
 0x528   : > { %v6318_v54 = vrot.slane %v6316_v2, 5  ;;  %v6295_v28 = vsel %vm8955_vm3, %v6290_v41, %v6294_v35  ;;  %v6364_v2 = vshll.u32 %v6055_v36, 16  ;;  %v6388_v19 = vshll.u32 %v6058_v3, 16 }
 0x529   : > { %v5759_v60 = vpop.permute.xlu1 %5758  ;;  %v6322_v43 = vrot.slane %v6320_v11, 4  ;;  %v6368_v11 = vshrl.u32 %v6055_v36, 16  ;;  %v6430_v30 = vshll.u32 %v6063_v18, 16  ;;  %v6400_v14 = vrot.slane %v6398_v38, 5  ;;  %v6586_v38 = vld [vmem:[#allocation4 + $0x28] sm:$0xf] }
 0x52a   : > { %5824 = vst.msk [vmem:[#allocation5 + $0x7c] sm:$0xf] %vm5792_vm0, %v5759_v60  ;;  %v6057_v60 = vld [vmem:[#allocation4 + $0xa8] sm:$0xf]  ;;  %v6319_v57 = vsel %vm8955_vm3, %v6314_v37, %v6318_v54  ;;  %v6366_v8 = vrot.slane %v6364_v2, 5  ;;  %v6390_v41 = vrot.slane %v6388_v19, 5 }
 0x52b   : > { %6478 = vrot.lane.b32.xlu0 %v6247_v0, %s8874_s14  ;;  %6470 = vrot.lane.b32.xlu2 %v6199_v12, %s8874_s14  ;;  %v6331_v12 = vshrl.u32 %v6051_v16, 16  ;;  %v6379_v53 = vshrl.u32 %v6057_v60, 16  ;;  %v6382_v22 = vshll.u32 %v6057_v60, 16  ;;  %v6323_v9 = vor.u32 %v6322_v43, %v6318_v54  ;;  %v6062_v60 = vld [vmem:[#allocation4 + $0xbc] sm:$0x1] }
 0x52c   : > { %v6361_v16 = vor.u32 %v6360_v6, %v6357_v33  ;;  %v6370_v54 = vrot.slane %v6368_v11, 4  ;;  %v6060_v43 = vld [vmem:[#allocation4 + $0xb4] sm:$0xf]  ;;  %v6432_v36 = vrot.slane %v6430_v30, 5  ;;  %v6583_v2 = vld [vmem:[#allocation4 + $0x1c] sm:$0xf] }
 0x52d   : > { %v5898_v5 = vpop.permute.xlu0 %5897  ;;  %v5908_v50 = vpop.permute.xlu2 %5907  ;;  %v6384_v34 = vrot.slane %v6382_v22, 5  ;;  %v6324_v49 = vrot.slane %v6323_v9, 4  ;;  %v6374_v22 = vshll.u32 %v6056_v1, 16  ;;  %v6403_v42 = vshrl.u32 %v6060_v43, 16  ;;  %v6585_v30 = vld [vmem:[#allocation4 + $0x24] sm:$0xe] }
 0x52e   : > { %5990 = vst.msk [vmem:[#allocation5 + $0x10] sm:$0xf] %vm5985_vm9, %v5898_v5  ;;  %v6271_v5 = vsel %vm8955_vm3, %v6266_v23, %v11540_v24  ;;  %v6381_v24 = vrot.slane %v6379_v53, 4  ;;  %v6362_v23 = vrot.slane %v6361_v16, 4  ;;  %v6371_v53 = vor.u32 %v6370_v54, %v6366_v8 }
 0x52f   : > { %5995 = vst.msk [vmem:[#allocation5 + $0x24] sm:$0xf] %vm5985_vm9, %v5908_v50  ;;  %6474 = vrot.lane.b32.xlu1 %v6223_v31, %s8874_s14  ;;  %v6333_v31 = vrot.slane %v6331_v12, 4  ;;  %v6329_v37 = vsel %vm8955_vm3, %v6324_v49, %v6328_v29  ;;  %v6395_v9 = vor.u32 %v6394_v59, %v6390_v41  ;;  %v6405_v40 = vrot.slane %v6403_v42, 4  ;;  %v6580_v29 = vld [vmem:[#allocation4 + $0x10] sm:$0xf] }
 0x530   : > { %v6372_v48 = vrot.slane %v6371_v53, 4  ;;  %v6589_v53 = vld [vmem:[#allocation4 + $0x34] sm:$0xf] }
 0x531   : > { %v5894_v44 = vpop.permute.xlu1 %5893 }
 0x532   : > { %5988 = vst.msk [vmem:[#allocation5 + $0x8] sm:$0xf] %vm5985_vm9, %v5894_v44  ;;  %v6061_v44 = vld [vmem:[#allocation4 + $0xb8] sm:$0xf] }
 0x533   : > { %6484 = vrot.lane.b32.xlu0 %v6281_v26, %s8874_s14  ;;  %6476 = vrot.lane.b32.xlu2 %v6233_v62, %s8874_s14  ;;  %v6337_v26 = vor.u32 %v6336_v55, %v6333_v31  ;;  %v6385_v62 = vor.u32 %v6384_v34, %v6381_v24  ;;  %v6412_v32 = vshll.u32 %v6061_v44, 16  ;;  %v6416_v51 = vshrl.u32 %v6061_v44, 16  ;;  %v6064_v24 = vld [vmem:[#allocation4 + $0xc4] sm:$0xf] }
 0x534   : > { %v6427_v55 = vshrl.u32 %v6063_v18, 16  ;;  %v6396_v44 = vrot.slane %v6395_v9, 4  ;;  %v6440_v33 = vshrl.u32 %v6064_v24, 16  ;;  %v6582_v9 = vld [vmem:[#allocation4 + $0x18] sm:$0xe] }
 0x535   : > { %v5904_v21 = vpop.permute.xlu0 %5903  ;;  %v5914_v63 = vpop.permute.xlu2 %5913  ;;  %v6338_v20 = vrot.slane %v6337_v26, 4  ;;  %v11596_v13 = vrot.slane %v6412_v32, 5  ;;  %v6418_v35 = vrot.slane %v6416_v51, 4  ;;  %v6436_v26 = vshll.u32 %v6064_v24, 16 }
 0x536   : > { %5993 = vst.msk [vmem:[#allocation5 + $0x1c] sm:$0xf] %vm5985_vm9, %v5904_v21  ;;  %v6429_v49 = vrot.slane %v6427_v55, 4  ;;  %v6401_v32 = vsel %vm8955_vm3, %v6396_v44, %v6400_v14  ;;  %v6677_v51 = vrot.slane %v6580_v29, 5  ;;  %v8652_v55 = vrot.slane %v6582_v9, 9 }
 0x537   : > { %5998 = vst.msk [vmem:[#allocation5 + $0x30] sm:$0xf] %vm5985_vm9, %v5914_v63  ;;  %6480 = vrot.lane.b32.xlu1 %v6257_v4, %s8874_s14  ;;  %v6386_v4 = vrot.slane %v6385_v62, 4  ;;  %v6343_v12 = vsel %vm8955_vm3, %v6338_v20, %v11568_v27  ;;  %v6419_v25 = vor.u32 %v6418_v35, %v11596_v13  ;;  %v6438_v19 = vrot.slane %v6436_v26, 5  ;;  %v6593_v14 = vld [vmem:[#allocation4 + $0x44] sm:$0x1] }
 0x538   : > { %v6684_v20 = vrot.slane %v6583_v2, 5  ;;  %v8653_v24 = vrot.slane %v6585_v30, 9  ;;  %v6708_v29 = vrot.slane %v6593_v14, 5  ;;  %v6597_v2 = vld [vmem:[#allocation4 + $0x54] sm:$0xe] }
 0x539   : > { %v5900_v0 = vpop.permute.xlu1 %5899  ;;  %v6391_v58 = vsel %vm8955_vm3, %v6386_v4, %v6390_v41  ;;  %v6584_v41 = vld [vmem:[#allocation4 + $0x20] sm:$0x1]  ;;  %v6604_v30 = vld [vmem:[#allocation4 + $0x70] sm:$0xf] }
 0x53a   : > { %5991 = vst.msk [vmem:[#allocation5 + $0x14] sm:$0xf] %vm5985_vm9, %v5900_v0 }
 0x53b   : > { %6490 = vrot.lane.b32.xlu0 %v6319_v57, %s8874_s14  ;;  %6482 = vrot.lane.b32.xlu2 %v6271_v5, %s8874_s14  ;;  %v6422_v57 = vshll.u32 %v6062_v60, 16  ;;  %v6406_v5 = vshll.u32 %v6060_v43, 16  ;;  %v6446_v60 = vshll.u32 %v6065_v17, 16  ;;  %v6595_v17 = vld [vmem:[#allocation4 + $0x4c] sm:$0xf] }
 0x53d   : > { %v5910_v50 = vpop.permute.xlu0 %5909  ;;  %v5920_v52 = vpop.permute.xlu2 %5919  ;;  %v6424_v31 = vrot.slane %v6422_v57, 5  ;;  %v6408_v56 = vrot.slane %v6406_v5, 5  ;;  %v6448_v59 = vrot.slane %v6446_v60, 5  ;;  %v6679_v57 = vrot.slane %v6677_v51, 4  ;;  %v6588_v5 = vld [vmem:[#allocation4 + $0x30] sm:$0xe] }
 0x53e   : > { %5996 = vst.msk [vmem:[#allocation5 + $0x28] sm:$0xf] %vm5985_vm9, %v5910_v50  ;;  %v6420_v50 = vrot.slane %v6419_v25, 4  ;;  %v6712_v60 = vrot.slane %v6595_v17, 5  ;;  %v6615_v17 = vld [vmem:[#allocation4 + $0x9c] sm:$0xe] }
 0x53f   : > { %6001 = vst.msk [vmem:[#allocation5 + $0x3c] sm:$0xf] %vm5985_vm9, %v5920_v52  ;;  %6486 = vrot.lane.b32.xlu1 %v6295_v28, %s8874_s14  ;;  %v6367_v28 = vsel %vm8955_vm3, %v6362_v23, %v6366_v8  ;;  %v6376_v52 = vrot.slane %v6374_v22, 5  ;;  %v6409_v3 = vor.u32 %v6408_v56, %v6405_v40  ;;  %v6685_v56 = vsel %vm9586_vm13, %v8652_v55, %v6684_v20  ;;  %v6600_v55 = vld [vmem:[#allocation4 + $0x60] sm:$0xe] }
 0x540   : > { %v6425_v45 = vsel %vm8955_vm3, %v6420_v50, %v6424_v31  ;;  %v8654_v50 = vrot.slane %v6588_v5, 9 }
 0x541   : > { %v5906_v46 = vpop.permute.xlu1 %5905  ;;  %v6410_v11 = vrot.slane %v6409_v3, 4 }
 0x542   : > { %5994 = vst.msk [vmem:[#allocation5 + $0x20] sm:$0xf] %vm5985_vm9, %v5906_v46  ;;  %v6377_v46 = vsel %vm8955_vm3, %v6372_v48, %v6376_v52  ;;  %v6691_v52 = vrot.slane %v6586_v38, 5 }
 0x543   : > { %6496 = vrot.lane.b32.xlu0 %v6353_v15, %s8874_s14  ;;  %6488 = vrot.lane.b32.xlu2 %v6305_v39, %s8874_s14  ;;  %v6579_v15 = vld [vmem:[#allocation4 + $0xc] sm:$0xe]  ;;  %v6433_v39 = vor.u32 %v6432_v36, %v6429_v49  ;;  %v6415_v35 = vsel %vm8955_vm3, %v6410_v11, %v11596_v13  ;;  %v6687_v13 = vrot.slane %v6584_v41, 5  ;;  %v6587_v36 = vld [vmem:[#allocation4 + $0x2c] sm:$0x1] }
 0x544   : > { %v6692_v44 = vsel %vm9586_vm13, %v8653_v24, %v6691_v52  ;;  %v6694_v26 = vrot.slane %v6587_v36, 5 }
 0x545   : > { %v5916_v21 = vpop.permute.xlu0 %5915  ;;  %v5926_v63 = vpop.permute.xlu2 %5925  ;;  %v6434_v4 = vrot.slane %v6433_v39, 4 }
 0x546   : > { %5999 = vst.msk [vmem:[#allocation5 + $0x34] sm:$0xf] %vm5985_vm9, %v5916_v21  ;;  %v6442_v21 = vrot.slane %v6440_v33, 4  ;;  %v6590_v33 = vld [vmem:[#allocation4 + $0x38] sm:$0x1] }
 0x547   : > { %6004 = vst.msk [vmem:[#allocation5 + $0x48] sm:$0xf] %vm5985_vm9, %v5926_v63  ;;  %6492 = vrot.lane.b32.xlu1 %v6329_v37, %s8874_s14  ;;  %v8651_v37 = vrot.slane %v6579_v15, 9  ;;  %v6439_v43 = vsel %vm8955_vm3, %v6434_v4, %v6438_v19 }
 0x548   : > { %v6443_v8 = vor.u32 %v6442_v21, %v6438_v19 }
 0x549   : > { %v5912_v0 = vpop.permute.xlu1 %5911  ;;  %v6678_v63 = vsel %vm9586_vm13, %v8651_v37, %v6677_v51  ;;  %v6701_v51 = vrot.slane %v6590_v33, 5  ;;  %v6591_v37 = vld [vmem:[#allocation4 + $0x3c] sm:$0xe] }
 0x54a   : > { %5997 = vst.msk [vmem:[#allocation5 + $0x2c] sm:$0xf] %vm5985_vm9, %v5912_v0  ;;  %v6686_v0 = vrot.slane %v6684_v20, 4  ;;  %v6444_v23 = vrot.slane %v6443_v8, 4  ;;  %v8655_v20 = vrot.slane %v6591_v37, 9 }
 0x54b   : > { %6502 = vrot.lane.b32.xlu0 %v6391_v58, %s8874_s14  ;;  %6494 = vrot.lane.b32.xlu2 %v6343_v12, %s8874_s14  ;;  %v6581_v12 = vld [vmem:[#allocation4 + $0x14] sm:$0x1] }
 0x54c   : > { %v6688_v25 = vsel %vm9586_vm13, %v6686_v0, %v6687_v13  ;;  %v6449_v47 = vsel %vm8955_vm3, %v6444_v23, %v6448_v59  ;;  %v6680_v22 = vrot.slane %v6581_v12, 5  ;;  %v6602_v0 = vld [vmem:[#allocation4 + $0x68] sm:$0x1]  ;;  %v6714_v12 = vrot.slane %v6712_v60, 4 }
 0x54d   : > { %v5922_v7 = vpop.permute.xlu0 %5921  ;;  %v5932_v27 = vpop.permute.xlu2 %5931 }
 0x54e   : > { %6002 = vst.msk [vmem:[#allocation5 + $0x40] sm:$0xf] %vm5985_vm9, %v5922_v7  ;;  %v6681_v7 = vsel %vm9586_vm13, %v6679_v57, %v6680_v22 }
 0x54f   : > { %6007 = vst.msk [vmem:[#allocation5 + $0x54] sm:$0xf] %vm5985_vm9, %v5932_v27  ;;  %6498 = vrot.lane.b32.xlu1 %v6367_v28, %s8874_s14  ;;  %v6698_v28 = vrot.slane %v6589_v53, 5  ;;  %v6592_v27 = vld [vmem:[#allocation4 + $0x40] sm:$0xf] }
 0x550   : > { %v6705_v40 = vrot.slane %v6592_v27, 5  ;;  %v6599_v53 = vld [vmem:[#allocation4 + $0x5c] sm:$0x1] }
 0x551   : > { %v5918_v34 = vpop.permute.xlu1 %5917  ;;  %v6699_v48 = vsel %vm9586_vm13, %v8654_v50, %v6698_v28  ;;  %v6700_v15 = vrot.slane %v6698_v28, 4  ;;  %v6722_v28 = vrot.slane %v6599_v53, 5  ;;  %v6614_v53 = vld [vmem:[#allocation4 + $0x98] sm:$0x1] }
 0x552   : > { %6000 = vst.msk [vmem:[#allocation5 + $0x38] sm:$0xf] %vm5985_vm9, %v5918_v34  ;;  %v6707_v49 = vrot.slane %v6705_v40, 4  ;;  %v6706_v41 = vsel %vm9586_vm13, %v8655_v20, %v6705_v40  ;;  %v8658_v40 = vrot.slane %v6600_v55, 9 }
 0x553   : > { %6508 = vrot.lane.b32.xlu0 %v6425_v45, %s8874_s14  ;;  %6500 = vrot.lane.b32.xlu2 %v6377_v46, %s8874_s14  ;;  %v6693_v46 = vrot.slane %v6691_v52, 4  ;;  %v6702_v19 = vsel %vm9586_vm13, %v6700_v15, %v6701_v51 }
 0x555   : > { %v5928_v6 = vpop.permute.xlu0 %5927  ;;  %v5938_v62 = vpop.permute.xlu2 %5937 }
 0x556   : > { %6005 = vst.msk [vmem:[#allocation5 + $0x4c] sm:$0xf] %vm5985_vm9, %v5928_v6  ;;  %v6709_v6 = vsel %vm9586_vm13, %v6707_v49, %v6708_v29 }
 0x557   : > { %6010 = vst.msk [vmem:[#allocation5 + $0x60] sm:$0xf] %vm5985_vm9, %v5938_v62  ;;  %6504 = vrot.lane.b32.xlu1 %v6401_v32, %s8874_s14  ;;  %v6695_v62 = vsel %vm9586_vm13, %v6693_v46, %v6694_v26  ;;  %v6598_v32 = vld [vmem:[#allocation4 + $0x58] sm:$0xf]  ;;  %v6608_v46 = vld [vmem:[#allocation4 + $0x80] sm:$0x1] }
 0x558   : > { %v6719_v21 = vrot.slane %v6598_v32, 5 }
 0x559   : > { %v5924_v16 = vpop.permute.xlu1 %5923 }
 0x55a   : > { %6003 = vst.msk [vmem:[#allocation5 + $0x44] sm:$0xf] %vm5985_vm9, %v5924_v16  ;;  %v6601_v16 = vld [vmem:[#allocation4 + $0x64] sm:$0xf] }
 0x55b   : > { %6787 = vrot.lane.b32.xlu0 %v6678_v63, %s8875_s12  ;;  %6506 = vrot.lane.b32.xlu2 %v6415_v35, %s8874_s14  ;;  %v8657_v63 = vrot.slane %v6597_v2, 9  ;;  %v6594_v35 = vld [vmem:[#allocation4 + $0x48] sm:$0xe]  ;;  %v6743_v2 = vrot.slane %v6608_v46, 5 }
 0x55d   : > { %v5934_v54 = vpop.permute.xlu0 %5933  ;;  %v5944_v1 = vpop.permute.xlu2 %5943  ;;  %v6720_v8 = vsel %vm9586_vm13, %v8657_v63, %v6719_v21  ;;  %v6609_v63 = vld [vmem:[#allocation4 + $0x84] sm:$0xe] }
 0x55e   : > { %6008 = vst.msk [vmem:[#allocation5 + $0x58] sm:$0xf] %vm5985_vm9, %v5934_v54  ;;  %v6726_v54 = vrot.slane %v6601_v16, 5  ;;  %v11717_v16 = vld [vmem:[#allocation4 + $0xa0] sm:$0xf] }
 0x55f   : > { %6013 = vst.msk [vmem:[#allocation5 + $0x6c] sm:$0xf] %vm5985_vm9, %v5944_v1  ;;  %6510 = vrot.lane.b32.xlu1 %v6439_v43, %s8874_s14  ;;  %v8656_v1 = vrot.slane %v6594_v35, 9  ;;  %v6612_v35 = vld [vmem:[#allocation4 + $0x90] sm:$0xe] }
 0x560   : > { %v6728_v13 = vrot.slane %v6726_v54, 4 }
 0x561   : > { %v5930_v58 = vpop.permute.xlu1 %5929  ;;  %v6713_v59 = vsel %vm9586_vm13, %v8656_v1, %v6712_v60  ;;  %v8663_v60 = vrot.slane %v6615_v17, 9 }
 0x562   : > { %6006 = vst.msk [vmem:[#allocation5 + $0x50] sm:$0xf] %vm5985_vm9, %v5930_v58  ;;  %v6596_v58 = vld [vmem:[#allocation4 + $0x50] sm:$0x1] }
 0x563   : > { %6793 = vrot.lane.b32.xlu0 %v6688_v25, %s8875_s12  ;;  %6512 = vrot.lane.b32.xlu2 %v6449_v47, %s8874_s14  ;;  %v6729_v25 = vrot.slane %v6602_v0, 5  ;;  %v6715_v47 = vrot.slane %v6596_v58, 5  ;;  %v6613_v0 = vld [vmem:[#allocation4 + $0x94] sm:$0xf]  ;;  %v8662_v58 = vrot.slane %v6612_v35, 9  ;;  %s8877_s14 = smov 48  }
 0x564   : > { %v7137_v35 = vld [vmem:[#allocation4 + $0x84] sm:$0xf] }
 0x565   : > { %v5940_v42 = vpop.permute.xlu0 %5939  ;;  %v5950_v18 = vpop.permute.xlu2 %5949  ;;  %v6730_v22 = vsel %vm9586_vm13, %v6728_v13, %v6729_v25  ;;  %v6716_v5 = vsel %vm9586_vm13, %v6714_v12, %v6715_v47  ;;  %v6754_v12 = vrot.slane %v6613_v0, 5  ;;  %v7375_v0 = vshrl.u32 %v7137_v35, 16 }
 0x566   : > { %6011 = vst.msk [vmem:[#allocation5 + $0x64] sm:$0xf] %vm5985_vm9, %v5940_v42  ;;  %v6721_v42 = vrot.slane %v6719_v21, 4 }
 0x567   : > { %6016 = vst.msk [vmem:[#allocation5 + $0x78] sm:$0xf] %vm5985_vm9, %v5950_v18  ;;  %6789 = vrot.lane.b32.xlu1 %v6681_v7, %s8875_s12  ;;  %v6606_v18 = vld [vmem:[#allocation4 + $0x78] sm:$0xe]  ;;  %v6607_v7 = vld [vmem:[#allocation4 + $0x7c] sm:$0xf] }
 0x568   : > { %v6723_v27 = vsel %vm9586_vm13, %v6721_v42, %v6722_v28  ;;  %v8660_v50 = vrot.slane %v6606_v18, 9  ;;  %v6756_v28 = vrot.slane %v6754_v12, 4 }
 0x569   : > { %v5936_v31 = vpop.permute.xlu1 %5935 }
 0x56a   : > { %6009 = vst.msk [vmem:[#allocation5 + $0x5c] sm:$0xf] %vm5985_vm9, %v5936_v31  ;;  %v6740_v31 = vrot.slane %v6607_v7, 5 }
 0x56b   : > { %6799 = vrot.lane.b32.xlu0 %v6699_v48, %s8875_s12  ;;  %6791 = vrot.lane.b32.xlu2 %v6685_v56, %s8875_s12  ;;  %v6610_v48 = vld [vmem:[#allocation4 + $0x88] sm:$0xf]  ;;  %v6603_v56 = vld [vmem:[#allocation4 + $0x6c] sm:$0xe] }
 0x56c   : > { %v6741_v24 = vsel %vm9586_vm13, %v8660_v50, %v6740_v31  ;;  %v6747_v14 = vrot.slane %v6610_v48, 5  ;;  %v8659_v49 = vrot.slane %v6603_v56, 9  ;;  %v7136_v56 = vld [vmem:[#allocation4 + $0x80] sm:$0x1] }
 0x56d   : > { %v5946_v34 = vpop.permute.xlu0 %5945  ;;  %v6453_v45 = vpop.permute.xlu2 %6452 }
 0x56e   : > { %6014 = vst.msk [vmem:[#allocation5 + $0x70] sm:$0xf] %vm5985_vm9, %v5946_v34  ;;  %v6733_v34 = vrot.slane %v6604_v30, 5  ;;  %v6749_v26 = vrot.slane %v6747_v14, 4 }
 0x56f   : > { %6548 = vst.msk [vmem:[#allocation5 + $0x4] sm:$0xf] %vm6546_vm1, %v6453_v45  ;;  %6795 = vrot.lane.b32.xlu1 %v6692_v44, %s8875_s12  ;;  %v6727_v45 = vsel %vm9586_vm13, %v8658_v40, %v6726_v54  ;;  %v6611_v44 = vld [vmem:[#allocation4 + $0x8c] sm:$0x1]  ;;  %v6761_v54 = vrot.slane %v11717_v16, 5 }
 0x570   : > { %v6750_v33 = vrot.slane %v6611_v44, 5  ;;  %v6735_v15 = vrot.slane %v6733_v34, 4  ;;  %v7697_v40 = vld [vmem:[#allocation4 + $0x80] sm:$0x1] }
 0x571   : > { %v5942_v3 = vpop.permute.xlu1 %5941  ;;  %v6762_v13 = vsel %vm9586_vm13, %v8663_v60, %v6761_v54 }
 0x572   : > { %6012 = vst.msk [vmem:[#allocation5 + $0x68] sm:$0xf] %vm5985_vm9, %v5942_v3  ;;  %v6734_v3 = vsel %vm9586_vm13, %v8659_v49, %v6733_v34 }
 0x573   : > { %6805 = vrot.lane.b32.xlu0 %v6709_v6, %s8875_s12  ;;  %6797 = vrot.lane.b32.xlu2 %v6695_v62, %s8875_s12  ;;  %v6605_v6 = vld [vmem:[#allocation4 + $0x74] sm:$0x1]  ;;  %v7134_v62 = vld [vmem:[#allocation4 + $0x78] sm:$0xf] }
 0x574   : > { %v6736_v51 = vrot.slane %v6605_v6, 5  ;;  %v7354_v21 = vshll.u32 %v7134_v62, 16 }
 0x575   : > { %v5952_v39 = vpop.permute.xlu0 %5951  ;;  %v6459_v11 = vpop.permute.xlu2 %6458 }
 0x576   : > { %6017 = vst.msk [vmem:[#allocation5 + $0x7c] sm:$0xf] %vm5985_vm9, %v5952_v39  ;;  %v6742_v39 = vrot.slane %v6740_v31, 4  ;;  %v6737_v37 = vsel %vm9586_vm13, %v6735_v15, %v6736_v51  ;;  %v7356_v1 = vrot.slane %v7354_v21, 5  ;;  %v7110_v31 = vld [vmem:[#allocation4 + $0x18] sm:$0xf] }
 0x577   : > { %6551 = vst.msk [vmem:[#allocation5 + $0x10] sm:$0xf] %vm6546_vm1, %v6459_v11  ;;  %6801 = vrot.lane.b32.xlu1 %v6702_v19, %s8875_s12  ;;  %v6751_v11 = vsel %vm9586_vm13, %v6749_v26, %v6750_v33  ;;  %v7351_v19 = vshrl.u32 %v7134_v62, 16  ;;  %v7162_v34 = vshll.u32 %v7110_v31, 16 }
 0x578   : > { %v6744_v20 = vsel %vm9586_vm13, %v6742_v39, %v6743_v2  ;;  %v6934_v39 = vld [vmem:[#allocation4 + $0x7c] sm:$0xf] }
 0x579   : > { %v5948_v4 = vpop.permute.xlu1 %5947  ;;  %v7164_v33 = vrot.slane %v7162_v34, 5  ;;  %v11783_v34 = vld [vmem:[#allocation4 + $0x88] sm:$0xf] }
 0x57a   : > { %6015 = vst.msk [vmem:[#allocation5 + $0x74] sm:$0xf] %vm5985_vm9, %v5948_v4 }
 0x57b   : > { %6811 = vrot.lane.b32.xlu0 %v6720_v8, %s8875_s12  ;;  %6803 = vrot.lane.b32.xlu2 %v6706_v41, %s8875_s12  ;;  %v7353_v41 = vrot.slane %v7351_v19, 4 }
 0x57d   : > { %v6455_v43 = vpop.permute.xlu0 %6454  ;;  %v6465_v23 = vpop.permute.xlu2 %6464  ;;  %v7357_v25 = vor.u32 %v7356_v1, %v7353_v41 }
 0x57e   : > { %6549 = vst.msk [vmem:[#allocation5 + $0x8] sm:$0xf] %vm6546_vm1, %v6455_v43  ;;  %v8661_v43 = vrot.slane %v6609_v63, 9 }
 0x57f   : > { %6554 = vst.msk [vmem:[#allocation5 + $0x1c] sm:$0xf] %vm6546_vm1, %v6465_v23  ;;  %6807 = vrot.lane.b32.xlu1 %v6713_v59, %s8875_s12  ;;  %v7135_v59 = vld [vmem:[#allocation4 + $0x7c] sm:$0xf]  ;;  %v7358_v18 = vrot.slane %v7357_v25, 4 }
 0x580   : > { %v7360_v47 = vshll.u32 %v7135_v59, 16  ;;  %v7364_v7 = vshrl.u32 %v7135_v59, 16  ;;  %v7112_v25 = vld [vmem:[#allocation4 + $0x20] sm:$0x1] }
 0x581   : > { %v6451_v57 = vpop.permute.xlu1 %6450 }
 0x582   : > { %6547 = vst.msk [vmem:[#allocation5] sm:$0xf] %vm6546_vm1, %v6451_v57  ;;  %v6748_v57 = vsel %vm9586_vm13, %v8661_v43, %v6747_v14  ;;  %v7366_v48 = vrot.slane %v7364_v7, 4 }
 0x583   : > { %6817 = vrot.lane.b32.xlu0 %v6730_v22, %s8875_s12  ;;  %6809 = vrot.lane.b32.xlu2 %v6716_v5, %s8875_s12  ;;  %v6755_v5 = vsel %vm9586_vm13, %v8662_v58, %v6754_v12  ;;  %v6917_v58 = vld [vmem:[#allocation4 + $0x18] sm:$0xf]  ;;  %v7673_v12 = vld [vmem:[#allocation4 + $0x20] sm:$0x1] }
 0x585   : > { %v6461_v9 = vpop.permute.xlu0 %6460  ;;  %v6471_v38 = vpop.permute.xlu2 %6470 }
 0x586   : > { %6552 = vst.msk [vmem:[#allocation5 + $0x14] sm:$0xf] %vm6546_vm1, %v6461_v9  ;;  %v6757_v9 = vrot.slane %v6614_v53, 5 }
 0x587   : > { %6557 = vst.msk [vmem:[#allocation5 + $0x28] sm:$0xf] %vm6546_vm1, %v6471_v38  ;;  %6813 = vrot.lane.b32.xlu1 %v6723_v27, %s8875_s12  ;;  %v11740_v38 = vld [vmem:[#allocation4 + $0x7c] sm:$0xf]  ;;  %v7362_v27 = vrot.slane %v7360_v47, 5 }
 0x588   : > { %v7825_v30 = vrot.slane %v11740_v38, 5 }
 0x589   : > { %v6457_v52 = vpop.permute.xlu1 %6456  ;;  %v7363_v55 = vsel %vm8955_vm3, %v7358_v18, %v7362_v27  ;;  %v7367_v46 = vor.u32 %v7366_v48, %v7362_v27  ;;  %v7178_v18 = vshll.u32 %v7112_v25, 16  ;;  %v7140_v25 = vld [vmem:[#allocation4 + $0x90] sm:$0xf] }
 0x58a   : > { %6550 = vst.msk [vmem:[#allocation5 + $0xc] sm:$0xf] %vm6546_vm1, %v6457_v52  ;;  %v6758_v52 = vsel %vm9586_vm13, %v6756_v28, %v6757_v9  ;;  %v7827_v49 = vrot.slane %v7825_v30, 4  ;;  %v7138_v28 = vld [vmem:[#allocation4 + $0x88] sm:$0xf] }
 0x58b   : > { %6823 = vrot.lane.b32.xlu0 %v6741_v24, %s8875_s12  ;;  %6815 = vrot.lane.b32.xlu2 %v6727_v45, %s8875_s12  ;;  %v7159_v24 = vshrl.u32 %v7110_v31, 16  ;;  %v6933_v45 = vld [vmem:[#allocation4 + $0x78] sm:$0xf]  ;;  %v7368_v62 = vrot.slane %v7367_v46, 4  ;;  %v7180_v31 = vrot.slane %v7178_v18, 5  ;;  %v7832_v46 = vrot.slane %v11783_v34, 5 }
 0x58c   : > { %v7402_v18 = vshll.u32 %v7140_v25, 16 }
 0x58d   : > { %v6467_v36 = vpop.permute.xlu0 %6466  ;;  %v6477_v29 = vpop.permute.xlu2 %6476  ;;  %v7161_v26 = vrot.slane %v7159_v24, 4  ;;  %v7671_v24 = vld [vmem:[#allocation4 + $0x18] sm:$0xe] }
 0x58e   : > { %6555 = vst.msk [vmem:[#allocation5 + $0x20] sm:$0xf] %vm6546_vm1, %v6467_v36  ;;  %v7828_v36 = vrot.slane %v7697_v40, 5 }
 0x58f   : > { %6560 = vst.msk [vmem:[#allocation5 + $0x34] sm:$0xf] %vm6546_vm1, %v6477_v29  ;;  %6819 = vrot.lane.b32.xlu1 %v6734_v3, %s8875_s12  ;;  %v7370_v29 = vshll.u32 %v7136_v56, 16  ;;  %v7111_v3 = vld [vmem:[#allocation4 + $0x1c] sm:$0xf]  ;;  %v7165_v2 = vor.u32 %v7164_v33, %v7161_v26  ;;  %v7388_v56 = vshrl.u32 %v7138_v28, 16 }
 0x590   : > { %v7829_v15 = vsel %vm9586_vm13, %v7827_v49, %v7828_v36  ;;  %v7168_v51 = vshll.u32 %v7111_v3, 16  ;;  %v7172_v63 = vshrl.u32 %v7111_v3, 16  ;;  %v7113_v49 = vld [vmem:[#allocation4 + $0x24] sm:$0xf]  ;;  %v7700_v26 = vld [vmem:[#allocation4 + $0x8c] sm:$0x1] }
 0x591   : > { %v6463_v32 = vpop.permute.xlu1 %6462  ;;  %v7139_v33 = vld [vmem:[#allocation4 + $0x8c] sm:$0x1] }
 0x592   : > { %6553 = vst.msk [vmem:[#allocation5 + $0x18] sm:$0xf] %vm6546_vm1, %v6463_v32  ;;  %v7372_v32 = vrot.slane %v7370_v29, 5  ;;  %v7170_v17 = vrot.slane %v7168_v51, 5  ;;  %v7174_v43 = vrot.slane %v7172_v63, 4  ;;  %v7390_v29 = vrot.slane %v7388_v56, 4 }
 0x593   : > { %6829 = vrot.lane.b32.xlu0 %v6751_v11, %s8875_s12  ;;  %6821 = vrot.lane.b32.xlu2 %v6737_v37, %s8875_s12  ;;  %v7695_v11 = vld [vmem:[#allocation4 + $0x78] sm:$0xe] }
 0x594   : > { %v7373_v37 = vsel %vm8955_vm3, %v7368_v62, %v7372_v32  ;;  %v7175_v53 = vor.u32 %v7174_v43, %v7170_v17  ;;  %v6935_v32 = vld [vmem:[#allocation4 + $0x84] sm:$0xf] }
 0x595   : > { %v6473_v4 = vpop.permute.xlu0 %6472  ;;  %v6483_v8 = vpop.permute.xlu2 %6482 }
 0x596   : > { %6558 = vst.msk [vmem:[#allocation5 + $0x2c] sm:$0xf] %vm6546_vm1, %v6473_v4  ;;  %v7672_v4 = vld [vmem:[#allocation4 + $0x1c] sm:$0xf]  ;;  %v7176_v38 = vrot.slane %v7175_v53, 4 }
 0x597   : > { %6563 = vst.msk [vmem:[#allocation5 + $0x40] sm:$0xf] %vm6546_vm1, %v6483_v8  ;;  %6825 = vrot.lane.b32.xlu1 %v6744_v20, %s8875_s12  ;;  %v8675_v20 = vrot.slane %v7695_v11, 9  ;;  %v7166_v8 = vrot.slane %v7165_v2, 4  ;;  %v7769_v41 = vrot.slane %v7672_v4, 5  ;;  %v7835_v2 = vrot.slane %v7700_v26, 5 }
 0x599   : > { %v6469_v23 = vpop.permute.xlu1 %6468  ;;  %v7171_v1 = vsel %vm8955_vm3, %v7166_v8, %v7170_v17  ;;  %v7826_v59 = vsel %vm9586_vm13, %v8675_v20, %v7825_v30  ;;  %v7771_v47 = vrot.slane %v7769_v41, 4 }
 0x59a   : > { %6556 = vst.msk [vmem:[#allocation5 + $0x24] sm:$0xf] %vm6546_vm1, %v6469_v23  ;;  %v7378_v23 = vshll.u32 %v7137_v35, 16 }
 0x59b   : > { %6835 = vrot.lane.b32.xlu0 %v6762_v13, %s8875_s12  ;;  %6827 = vrot.lane.b32.xlu2 %v6748_v57, %s8875_s12 }
 0x59d   : > { %v6479_v22 = vpop.permute.xlu0 %6478  ;;  %v6489_v42 = vpop.permute.xlu2 %6488 }
 0x59e   : > { %6561 = vst.msk [vmem:[#allocation5 + $0x38] sm:$0xf] %vm6546_vm1, %v6479_v22  ;;  %v7377_v22 = vrot.slane %v7375_v0, 4 }
 0x59f   : > { %6566 = vst.msk [vmem:[#allocation5 + $0x4c] sm:$0xf] %vm6546_vm1, %v6489_v42  ;;  %6831 = vrot.lane.b32.xlu1 %v6755_v5, %s8875_s12  ;;  %v7380_v42 = vrot.slane %v7378_v23, 5  ;;  %v7772_v5 = vrot.slane %v7673_v12, 5 }
 0x5a1   : > { %v6475_v50 = vpop.permute.xlu1 %6474  ;;  %v7773_v9 = vsel %vm9586_vm13, %v7771_v47, %v7772_v5  ;;  %v7381_v27 = vor.u32 %v7380_v42, %v7377_v22  ;;  %v7399_v5 = vshrl.u32 %v7140_v25, 16 }
 0x5a2   : > { %6559 = vst.msk [vmem:[#allocation5 + $0x30] sm:$0xf] %vm6546_vm1, %v6475_v50  ;;  %v6918_v50 = vld [vmem:[#allocation4 + $0x1c] sm:$0xf] }
 0x5a3   : > { %7574 = vrot.lane.b32.xlu0 %v7363_v55, %s8876_s13  ;;  %6833 = vrot.lane.b32.xlu2 %v6758_v52, %s8875_s12  ;;  %v7384_v55 = vshll.u32 %v7138_v28, 16  ;;  %v7181_v52 = vsel %vm8955_vm3, %v7176_v38, %v7180_v31  ;;  %v7382_v40 = vrot.slane %v7381_v27, 4  ;;  %v7676_v38 = vld [vmem:[#allocation4 + $0x2c] sm:$0x1] }
 0x5a4   : > { %v7115_v27 = vld [vmem:[#allocation4 + $0x2c] sm:$0x1] }
 0x5a5   : > { %v6485_v14 = vpop.permute.xlu0 %6484  ;;  %v6495_v44 = vpop.permute.xlu2 %6494 }
 0x5a6   : > { %6564 = vst.msk [vmem:[#allocation5 + $0x44] sm:$0xf] %vm6546_vm1, %v6485_v14  ;;  %v7386_v14 = vrot.slane %v7384_v55, 5 }
 0x5a7   : > { %6569 = vst.msk [vmem:[#allocation5 + $0x58] sm:$0xf] %vm6546_vm1, %v6495_v44  ;;  %7013 = vrot.lane.b32.xlu1 %v6933_v45, %s8877_s14  ;;  %v8667_v44 = vrot.slane %v7671_v24, 9  ;;  %v7141_v24 = vld [vmem:[#allocation4 + $0x94] sm:$0xf] }
 0x5a8   : > { %v7387_v36 = vsel %vm8955_vm3, %v7382_v40, %v7386_v14  ;;  %v7391_v11 = vor.u32 %v7390_v29, %v7386_v14  ;;  %v7202_v40 = vshll.u32 %v7115_v27, 16  ;;  %v7143_v27 = vld [vmem:[#allocation4 + $0x9c] sm:$0xf] }
 0x5a9   : > { %v6481_v6 = vpop.permute.xlu1 %6480  ;;  %v7770_v3 = vsel %vm9586_vm13, %v8667_v44, %v7769_v41  ;;  %v6920_v44 = vld [vmem:[#allocation4 + $0x28] sm:$0xf] }
 0x5aa   : > { %6562 = vst.msk [vmem:[#allocation5 + $0x3c] sm:$0xf] %vm6546_vm1, %v6481_v6  ;;  %v7183_v6 = vshrl.u32 %v7113_v49, 16  ;;  %v7392_v20 = vrot.slane %v7391_v11, 4 }
 0x5ab   : > { %7913 = vrot.lane.b32.xlu0 %v7829_v15, %s8878_s15  ;;  %7015 = vrot.lane.b32.xlu2 %v6934_v39, %s8877_s14  ;;  %v7186_v15 = vshll.u32 %v7113_v49, 16  ;;  %v7834_v39 = vrot.slane %v7832_v46, 4  ;;  %v7204_v49 = vrot.slane %v7202_v40, 5  ;;  %v7426_v40 = vshll.u32 %v7143_v27, 16 }
 0x5ad   : > { %v6491_v19 = vpop.permute.xlu0 %6490  ;;  %v6501_v21 = vpop.permute.xlu2 %6500  ;;  %v7188_v17 = vrot.slane %v7186_v15, 5  ;;  %v7836_v4 = vsel %vm9586_vm13, %v7834_v39, %v7835_v2  ;;  %v7702_v15 = vld [vmem:[#allocation4 + $0x94] sm:$0xf]  ;;  %v7116_v39 = vld [vmem:[#allocation4 + $0x30] sm:$0xf] }
 0x5ae   : > { %6567 = vst.msk [vmem:[#allocation5 + $0x50] sm:$0xf] %vm6546_vm1, %v6491_v19  ;;  %v7394_v19 = vshll.u32 %v7139_v33, 16  ;;  %v7412_v33 = vshrl.u32 %v7141_v24, 16  ;;  %v7839_v11 = vrot.slane %v7702_v15, 5 }
 0x5af   : > { %6572 = vst.msk [vmem:[#allocation5 + $0x64] sm:$0xf] %vm6546_vm1, %v6501_v21  ;;  %7576 = vrot.lane.b32.xlu1 %v7373_v37, %s8876_s13  ;;  %v7114_v21 = vld [vmem:[#allocation4 + $0x28] sm:$0xf]  ;;  %v7185_v37 = vrot.slane %v7183_v6, 4 }
 0x5b0   : > { %v7396_v35 = vrot.slane %v7394_v19, 5  ;;  %v7192_v8 = vshll.u32 %v7114_v21, 16  ;;  %v7674_v6 = vld [vmem:[#allocation4 + $0x24] sm:$0xe]  ;;  %v7414_v19 = vrot.slane %v7412_v33, 4 }
 0x5b1   : > { %v6487_v60 = vpop.permute.xlu1 %6486  ;;  %v7189_v41 = vor.u32 %v7188_v17, %v7185_v37  ;;  %v7703_v37 = vld [vmem:[#allocation4 + $0x98] sm:$0x1] }
 0x5b2   : > { %6565 = vst.msk [vmem:[#allocation5 + $0x48] sm:$0xf] %vm6546_vm1, %v6487_v60  ;;  %v6936_v60 = vld [vmem:[#allocation4 + $0x88] sm:$0xf]  ;;  %v7397_v23 = vsel %vm8955_vm3, %v7392_v20, %v7396_v35  ;;  %v7142_v17 = vld [vmem:[#allocation4 + $0x98] sm:$0x1] }
 0x5b3   : > { %7542 = vrot.lane.b32.xlu0 %v7171_v1, %s8876_s13  ;;  %7911 = vrot.lane.b32.xlu2 %v7826_v59, %s8878_s15  ;;  %v7698_v1 = vld [vmem:[#allocation4 + $0x84] sm:$0xe]  ;;  %v7194_v59 = vrot.slane %v7192_v8, 5  ;;  %v6937_v35 = vld [vmem:[#allocation4 + $0x90] sm:$0xf] }
 0x5b4   : > { %v8676_v12 = vrot.slane %v7698_v1, 9 }
 0x5b5   : > { %v6497_v13 = vpop.permute.xlu0 %6496  ;;  %v6507_v57 = vpop.permute.xlu2 %6506 }
 0x5b6   : > { %6570 = vst.msk [vmem:[#allocation5 + $0x5c] sm:$0xf] %vm6546_vm1, %v6497_v13  ;;  %v7196_v13 = vshrl.u32 %v7114_v21, 16 }
 0x5b7   : > { %6575 = vst.msk [vmem:[#allocation5 + $0x70] sm:$0xf] %vm6546_vm1, %v6507_v57  ;;  %6981 = vrot.lane.b32.xlu1 %v6917_v58, %s8877_s14  ;;  %v7675_v58 = vld [vmem:[#allocation4 + $0x28] sm:$0xf]  ;;  %v7190_v57 = vrot.slane %v7189_v41, 4  ;;  %v7842_v41 = vrot.slane %v7703_v37, 5 }
 0x5b8   : > { %v7776_v53 = vrot.slane %v7675_v58, 5  ;;  %v7198_v42 = vrot.slane %v7196_v13, 4 }
 0x5b9   : > { %v6493_v7 = vpop.permute.xlu1 %6492  ;;  %v7195_v22 = vsel %vm8955_vm3, %v7190_v57, %v7194_v59 }
 0x5ba   : > { %6568 = vst.msk [vmem:[#allocation5 + $0x54] sm:$0xf] %vm6546_vm1, %v6493_v7  ;;  %v7833_v7 = vsel %vm9586_vm13, %v8676_v12, %v7832_v46  ;;  %v7778_v31 = vrot.slane %v7776_v53, 4  ;;  %v7199_v55 = vor.u32 %v7198_v42, %v7194_v59 }
 0x5bb   : > { %7881 = vrot.lane.b32.xlu0 %v7773_v9, %s8878_s15  ;;  %6983 = vrot.lane.b32.xlu2 %v6918_v50, %s8877_s14  ;;  %v6919_v9 = vld [vmem:[#allocation4 + $0x24] sm:$0xf] }
 0x5bc   : > { %v7200_v14 = vrot.slane %v7199_v55, 4 }
 0x5bd   : > { %v6503_v30 = vpop.permute.xlu0 %6502  ;;  %v6513_v48 = vpop.permute.xlu2 %6512 }
 0x5be   : > { %6573 = vst.msk [vmem:[#allocation5 + $0x68] sm:$0xf] %vm6546_vm1, %v6503_v30  ;;  %v7401_v30 = vrot.slane %v7399_v5, 4 }
 0x5bf   : > { %6578 = vst.msk [vmem:[#allocation5 + $0x7c] sm:$0xf] %vm6546_vm1, %v6513_v48  ;;  %7544 = vrot.lane.b32.xlu1 %v7181_v52, %s8876_s13  ;;  %v7404_v48 = vrot.slane %v7402_v18, 5  ;;  %v7779_v52 = vrot.slane %v7676_v38, 5 }
 0x5c1   : > { %v6499_v45 = vpop.permute.xlu1 %6498  ;;  %v7780_v34 = vsel %vm9586_vm13, %v7778_v31, %v7779_v52  ;;  %v7423_v52 = vshrl.u32 %v7143_v27, 16  ;;  %v7120_v27 = vld [vmem:[#allocation4 + $0x40] sm:$0xf] }
 0x5c2   : > { %6571 = vst.msk [vmem:[#allocation5 + $0x60] sm:$0xf] %vm6546_vm1, %v6499_v45  ;;  %v7405_v45 = vor.u32 %v7404_v48, %v7401_v30 }
 0x5c3   : > { %7578 = vrot.lane.b32.xlu0 %v7387_v36, %s8876_s13  ;;  %7879 = vrot.lane.b32.xlu2 %v7770_v3, %s8878_s15  ;;  %v7408_v36 = vshll.u32 %v7141_v24, 16  ;;  %v7205_v3 = vsel %vm8955_vm3, %v7200_v14, %v7204_v49  ;;  %v7679_v14 = vld [vmem:[#allocation4 + $0x38] sm:$0x1] }
 0x5c4   : > { %v7406_v26 = vrot.slane %v7405_v45, 4  ;;  %v7118_v45 = vld [vmem:[#allocation4 + $0x38] sm:$0x1] }
 0x5c5   : > { %v6509_v62 = vpop.permute.xlu0 %6508  ;;  %v6792_v51 = vpop.permute.xlu2 %6791 }
 0x5c6   : > { %6576 = vst.msk [vmem:[#allocation5 + $0x74] sm:$0xf] %vm6546_vm1, %v6509_v62  ;;  %v7410_v62 = vrot.slane %v7408_v36, 5 }
 0x5c7   : > { %6886 = vst.msk [vmem:[#allocation5 + $0x8] sm:$0xf] %vm6883_vm2, %v6792_v51  ;;  %7017 = vrot.lane.b32.xlu1 %v6935_v32, %s8877_s14  ;;  %v8668_v51 = vrot.slane %v7674_v6, 9  ;;  %v7144_v6 = vld [vmem:[#allocation4 + $0xa0] sm:$0xf] }
 0x5c8   : > { %v7411_v2 = vsel %vm8955_vm3, %v7406_v26, %v7410_v62  ;;  %v7415_v1 = vor.u32 %v7414_v19, %v7410_v62  ;;  %v7226_v26 = vshll.u32 %v7118_v45, 16 }
 0x5c9   : > { %v6505_v63 = vpop.permute.xlu1 %6504  ;;  %v7777_v21 = vsel %vm9586_vm13, %v8668_v51, %v7776_v53  ;;  %v6922_v51 = vld [vmem:[#allocation4 + $0x34] sm:$0xf] }
 0x5ca   : > { %6574 = vst.msk [vmem:[#allocation5 + $0x6c] sm:$0xf] %vm6546_vm1, %v6505_v63  ;;  %v7207_v63 = vshrl.u32 %v7116_v39, 16  ;;  %v7416_v12 = vrot.slane %v7415_v1, 4 }
 0x5cb   : > { %7917 = vrot.lane.b32.xlu0 %v7836_v4, %s8878_s15  ;;  %7019 = vrot.lane.b32.xlu2 %v6936_v60, %s8877_s14  ;;  %v7210_v4 = vshll.u32 %v7116_v39, 16  ;;  %v7841_v60 = vrot.slane %v7839_v11, 4  ;;  %v7228_v39 = vrot.slane %v7226_v26, 5  ;;  %v7681_v26 = vld [vmem:[#allocation4 + $0x40] sm:$0xf] }
 0x5cd   : > { %v6788_v43 = vpop.permute.xlu0 %6787  ;;  %v6798_v0 = vpop.permute.xlu2 %6797  ;;  %v7212_v59 = vrot.slane %v7210_v4, 5  ;;  %v7843_v58 = vsel %vm9586_vm13, %v7841_v60, %v7842_v41 }
 0x5ce   : > { %6884 = vst.msk [vmem:[#allocation5] sm:$0xf] %vm6883_vm2, %v6788_v43  ;;  %v7418_v43 = vshll.u32 %v7142_v17, 16 }
 0x5cf   : > { %6889 = vst.msk [vmem:[#allocation5 + $0x14] sm:$0xf] %vm6883_vm2, %v6798_v0  ;;  %7580 = vrot.lane.b32.xlu1 %v7397_v23, %s8876_s13  ;;  %v7117_v0 = vld [vmem:[#allocation4 + $0x34] sm:$0xf]  ;;  %v7209_v23 = vrot.slane %v7207_v63, 4 }
 0x5d0   : > { %v7420_v25 = vrot.slane %v7418_v43, 5  ;;  %v7216_v57 = vshll.u32 %v7117_v0, 16  ;;  %v7119_v43 = vld [vmem:[#allocation4 + $0x3c] sm:$0xf] }
 0x5d1   : > { %v6511_v47 = vpop.permute.xlu1 %6510  ;;  %v7213_v53 = vor.u32 %v7212_v59, %v7209_v23 }
 0x5d2   : > { %6577 = vst.msk [vmem:[#allocation5 + $0x78] sm:$0xf] %vm6546_vm1, %v6511_v47  ;;  %v6938_v47 = vld [vmem:[#allocation4 + $0x94] sm:$0xf]  ;;  %v7421_v18 = vsel %vm8955_vm3, %v7416_v12, %v7420_v25  ;;  %v7706_v25 = vld [vmem:[#allocation4 + $0xa4] sm:$0x1] }
 0x5d3   : > { %7546 = vrot.lane.b32.xlu0 %v7195_v22, %s8876_s13  ;;  %7915 = vrot.lane.b32.xlu2 %v7833_v7, %s8878_s15  ;;  %v7701_v22 = vld [vmem:[#allocation4 + $0x90] sm:$0xe]  ;;  %v7218_v7 = vrot.slane %v7216_v57, 5  ;;  %v7145_v57 = vld [vmem:[#allocation4 + $0xa4] sm:$0x1] }
 0x5d4   : > { %v8677_v38 = vrot.slane %v7701_v22, 9 }
 0x5d5   : > { %v6794_v28 = vpop.permute.xlu0 %6793  ;;  %v6804_v50 = vpop.permute.xlu2 %6803 }
 0x5d6   : > { %6887 = vst.msk [vmem:[#allocation5 + $0xc] sm:$0xf] %vm6883_vm2, %v6794_v28  ;;  %v7220_v28 = vshrl.u32 %v7117_v0, 16 }
 0x5d7   : > { %6892 = vst.msk [vmem:[#allocation5 + $0x20] sm:$0xf] %vm6883_vm2, %v6804_v50  ;;  %6985 = vrot.lane.b32.xlu1 %v6919_v9, %s8877_s14  ;;  %v11844_v9 = vld [vmem:[#allocation4 + $0x34] sm:$0xf]  ;;  %v7214_v50 = vrot.slane %v7213_v53, 4  ;;  %v7234_v53 = vshll.u32 %v7119_v43, 16 }
 0x5d8   : > { %v7783_v55 = vrot.slane %v11844_v9, 5  ;;  %v7222_v48 = vrot.slane %v7220_v28, 4  ;;  %v7442_v9 = vshll.u32 %v7145_v57, 16 }
 0x5d9   : > { %v6790_v56 = vpop.permute.xlu1 %6789  ;;  %v7219_v30 = vsel %vm8955_vm3, %v7214_v50, %v7218_v7 }
 0x5da   : > { %6885 = vst.msk [vmem:[#allocation5 + $0x4] sm:$0xf] %vm6883_vm2, %v6790_v56  ;;  %v7840_v56 = vsel %vm9586_vm13, %v8677_v38, %v7839_v11  ;;  %v7785_v49 = vrot.slane %v7783_v55, 4  ;;  %v7223_v36 = vor.u32 %v7222_v48, %v7218_v7  ;;  %v8048_v11 = vld [vmem:[%s12343_s4 + $0x20] sm:$0xf]  ;;  %v7849_v7 = vrot.slane %v7706_v25, 5 }
 0x5db   : > { %7885 = vrot.lane.b32.xlu0 %v7780_v34, %s8878_s15  ;;  %6987 = vrot.lane.b32.xlu2 %v6920_v44, %s8877_s14  ;;  %v6921_v34 = vld [vmem:[#allocation4 + $0x30] sm:$0xf]  ;;  %v8146_v37 = vunpack.c.l.b16 %v8048_v11  ;;  %v8819_v38 = vld [vmem:[%s12343_s4 + $0x10] sm:$0xff]  ;;  %v7121_v11 = vld [vmem:[#allocation4 + $0x44] sm:$0x1] }
 0x5dc   : > { %v7224_v62 = vrot.slane %v7223_v36, 4  ;;  %v7147_v25 = vld [vmem:[#allocation4 + $0xac] sm:$0xf] }
 0x5dd   : > { %v6800_v46 = vpop.permute.xlu0 %6799  ;;  %v6810_v29 = vpop.permute.xlu2 %6809 }
 0x5de   : > { %6890 = vst.msk [vmem:[#allocation5 + $0x18] sm:$0xf] %vm6883_vm2, %v6800_v46  ;;  %v7425_v46 = vrot.slane %v7423_v52, 4  ;;  %v7229_v63 = vsel %vm8955_vm3, %v7224_v62, %v7228_v39  ;;  %v7444_v52 = vrot.slane %v7442_v9, 5  ;;  %v7790_v62 = vrot.slane %v7681_v26, 5 }
 0x5df   : > { %6895 = vst.msk [vmem:[#allocation5 + $0x2c] sm:$0xf] %vm6883_vm2, %v6810_v29  ;;  %7548 = vrot.lane.b32.xlu1 %v7205_v3, %s8876_s13  ;;  %v7428_v29 = vrot.slane %v7426_v40, 5  ;;  %v7786_v3 = vrot.slane %v7679_v14, 5  ;;  %v7240_v40 = vshll.u32 %v7120_v27, 16 }
 0x5e0   : > { %v7704_v14 = vld [vmem:[#allocation4 + $0x9c] sm:$0xe] }
 0x5e1   : > { %v6796_v32 = vpop.permute.xlu1 %6795  ;;  %v7787_v15 = vsel %vm9586_vm13, %v7785_v49, %v7786_v3  ;;  %v7242_v36 = vrot.slane %v7240_v40, 5  ;;  %v8678_v3 = vrot.slane %v7704_v14, 9  ;;  %v7148_v40 = vld [vmem:[#allocation4 + $0xb0] sm:$0x1] }
 0x5e2   : > { %6888 = vst.msk [vmem:[#allocation5 + $0x10] sm:$0xf] %vm6883_vm2, %v6796_v32  ;;  %v7429_v32 = vor.u32 %v7428_v29, %v7425_v46  ;;  %v7244_v46 = vshrl.u32 %v7120_v27, 16  ;;  %v8817_v29 = vld [vmem:[%s12343_s4] sm:$0xff] }
 0x5e3   : > { %7582 = vrot.lane.b32.xlu0 %v7411_v2, %s8876_s13  ;;  %7883 = vrot.lane.b32.xlu2 %v7777_v21, %s8878_s15  ;;  %v7432_v2 = vshll.u32 %v7144_v6, 16  ;;  %v7677_v21 = vld [vmem:[#allocation4 + $0x30] sm:$0xe]  ;;  %v7708_v27 = vld [vmem:[#allocation4 + $0xac] sm:$0xf] }
 0x5e4   : > { %v7430_v4 = vrot.slane %v7429_v32, 4  ;;  %v8669_v1 = vrot.slane %v7677_v21, 9  ;;  %v7246_v32 = vrot.slane %v7244_v46, 4  ;;  %v6923_v21 = vld [vmem:[#allocation4 + $0x3c] sm:$0xf] }
 0x5e5   : > { %v6806_v20 = vpop.permute.xlu0 %6805  ;;  %v6816_v8 = vpop.permute.xlu2 %6815  ;;  %v7434_v60 = vrot.slane %v7432_v2, 5  ;;  %v7682_v2 = vld [vmem:[#allocation4 + $0x44] sm:$0x1] }
 0x5e6   : > { %6893 = vst.msk [vmem:[#allocation5 + $0x24] sm:$0xf] %vm6883_vm2, %v6806_v20  ;;  %v7436_v20 = vshrl.u32 %v7144_v6, 16  ;;  %v7784_v12 = vsel %vm9586_vm13, %v8669_v1, %v7783_v55 }
 0x5e7   : > { %6898 = vst.msk [vmem:[#allocation5 + $0x38] sm:$0xf] %vm6883_vm2, %v6816_v8  ;;  %7021 = vrot.lane.b32.xlu1 %v6937_v35, %s8877_s14  ;;  %v11872_v35 = vld [vmem:[#allocation4 + $0xa0] sm:$0xf]  ;;  %v8151_v8 = vpack.c.b16 %v8146_v37, %v8146_v37  ;;  %v7435_v23 = vsel %vm8955_vm3, %v7430_v4, %v7434_v60  ;;  %v7792_v37 = vrot.slane %v7790_v62, 4  ;;  %v7250_v4 = vshll.u32 %v7121_v11, 16 }
 0x5e8   : > { %v7846_v59 = vrot.slane %v11872_v35, 5 }
 0x5e9   : > { %v6802_v13 = vpop.permute.xlu1 %6801  ;;  %v8207_v0 = vsel %vm8205_vm4, %v8151_v8, 0  ;;  %v7252_v1 = vrot.slane %v7250_v4, 5 }
 0x5ea   : > { %6891 = vst.msk [vmem:[#allocation5 + $0x1c] sm:$0xf] %vm6883_vm2, %v6802_v13  ;;  %v7438_v13 = vrot.slane %v7436_v20, 4  ;;  %8824 = vmatpush.bf16.msra.mxu2 %v8207_v0  ;;  %8212 = vmatpush.bf16.msra.mxu1 %v8207_v0  ;;  %v7680_v0 = vld [vmem:[#allocation4 + $0x3c] sm:$0xe] }
 0x5eb   : > { %7921 = vrot.lane.b32.xlu0 %v7843_v58, %s8878_s15  ;;  %7023 = vrot.lane.b32.xlu2 %v6938_v47, %s8877_s14  ;;  %v8820_v58 = vld [vmem:[%s12343_s4 + $0x18] sm:$0xff]  ;;  %v7231_v47 = vshrl.u32 %v7119_v43, 16  ;;  %v8670_v57 = vrot.slane %v7680_v0, 9 }
 0x5ec   : > { %v7439_v28 = vor.u32 %v7438_v13, %v7434_v60  ;;  %v7146_v60 = vld [vmem:[#allocation4 + $0xa8] sm:$0xf] }
 0x5ed   : > { %v6812_v42 = vpop.permute.xlu0 %6811  ;;  %v6822_v5 = vpop.permute.xlu2 %6821  ;;  %v7233_v50 = vrot.slane %v7231_v47, 4  ;;  %v7791_v9 = vsel %vm9586_vm13, %v8670_v57, %v7790_v62  ;;  %v7709_v62 = vld [vmem:[#allocation4 + $0xb0] sm:$0x1] }
 0x5ee   : > { %6896 = vst.msk [vmem:[#allocation5 + $0x30] sm:$0xf] %vm6883_vm2, %v6812_v42  ;;  %v6939_v42 = vld [vmem:[#allocation4 + $0x9c] sm:$0xf]  ;;  %8825 = vmatpush.bf16.msra.mxu2 %v8820_v58  ;;  %8213 = vmatpush.bf16.msra.mxu1 %v8820_v58  ;;  %v7440_v48 = vrot.slane %v7439_v28, 4  ;;  %v7460_v28 = vshrl.u32 %v7147_v25, 16 }
 0x5ef   : > { %6901 = vst.msk [vmem:[#allocation5 + $0x44] sm:$0xf] %vm6883_vm2, %v6822_v5  ;;  %7584 = vrot.lane.b32.xlu1 %v7421_v18, %s8876_s13  ;;  %v7848_v18 = vrot.slane %v7846_v59, 4  ;;  %v7856_v11 = vrot.slane %v7709_v62, 5 }
 0x5f0   : > { %v7445_v49 = vsel %vm8955_vm3, %v7440_v48, %v7444_v52  ;;  %v7462_v52 = vrot.slane %v7460_v28, 4 }
 0x5f1   : > { %v6808_v31 = vpop.permute.xlu1 %6807 }
 0x5f2   : > { %6894 = vst.msk [vmem:[#allocation5 + $0x28] sm:$0xf] %vm6883_vm2, %v6808_v31  ;;  %v7236_v31 = vrot.slane %v7234_v53, 5  ;;  %8826 = vmatpush.bf16.msra.mxu2 %v8819_v38  ;;  %8214 = vmatpush.bf16.msra.mxu1 %v8819_v38  ;;  %v6763_v53 = vrot.slane %v6761_v54, 4  ;;  %v7707_v38 = vld [vmem:[#allocation4 + $0xa8] sm:$0xe] }
 0x5f3   : > { %7550 = vrot.lane.b32.xlu0 %v7219_v30, %s8876_s13  ;;  %7919 = vrot.lane.b32.xlu2 %v7840_v56, %s8878_s15  ;;  %v7850_v30 = vsel %vm9586_vm13, %v7848_v18, %v7849_v7  ;;  %v8818_v56 = vld [vmem:[%s12343_s4 + $0x8] sm:$0xff]  ;;  %v6942_v18 = vld [vmem:[#allocation4 + $0xac] sm:$0xf]  ;;  %v7456_v7 = vshll.u32 %v7147_v25, 16 }
 0x5f4   : > { %v7124_v25 = vld [vmem:[#allocation4 + $0x50] sm:$0x1] }
 0x5f5   : > { %v6818_v24 = vpop.permute.xlu0 %6817  ;;  %v6828_v44 = vpop.permute.xlu2 %6827  ;;  %v7458_v48 = vrot.slane %v7456_v7, 5 }
 0x5f6   : > { %6899 = vst.msk [vmem:[#allocation5 + $0x3c] sm:$0xf] %vm6883_vm2, %v6818_v24  ;;  %v6940_v24 = vld [vmem:[#allocation4 + $0xa0] sm:$0xf]  ;;  %8827 = vmatpush.bf16.msra.mxu2 %v8818_v56  ;;  %8215 = vmatpush.bf16.msra.mxu1 %v8818_v56 }
 0x5f7   : > { %6904 = vst.msk [vmem:[#allocation5 + $0x50] sm:$0xf] %vm6883_vm2, %v6828_v44  ;;  %6989 = vrot.lane.b32.xlu1 %v6921_v34, %s8877_s14  ;;  %v7237_v34 = vor.u32 %v7236_v31, %v7233_v50  ;;  %v8679_v31 = vrot.slane %v7707_v38, 9  ;;  %v7274_v38 = vshll.u32 %v7124_v25, 16 }
 0x5f9   : > { %v6814_v33 = vpop.permute.xlu1 %6813 }
 0x5fa   : > { %6897 = vst.msk [vmem:[#allocation5 + $0x34] sm:$0xf] %vm6883_vm2, %v6814_v33  ;;  %v7238_v33 = vrot.slane %v7237_v34, 4  ;;  %8828 = vmatpush.bf16.msra.mxu2 %v8817_v29  ;;  %8216 = vmatpush.bf16.msra.mxu1 %v8817_v29 }
 0x5fb   : > { %7889 = vrot.lane.b32.xlu0 %v7787_v15, %s8878_s15  ;;  %6991 = vrot.lane.b32.xlu2 %v6922_v51, %s8877_s14  ;;  %v7847_v51 = vsel %vm9586_vm13, %v8678_v3, %v7846_v59  ;;  %v7450_v59 = vshll.u32 %v7146_v60, 16 }
 0x5fc   : > { %v7243_v15 = vsel %vm8955_vm3, %v7238_v33, %v7242_v36 }
 0x5fd   : > { %v6824_v19 = vpop.permute.xlu0 %6823  ;;  %v6834_v17 = vpop.permute.xlu2 %6833 }
 0x5fe   : > { %6902 = vst.msk [vmem:[#allocation5 + $0x48] sm:$0xf] %vm6883_vm2, %v6824_v19 }
 0x5ff   : > { %6907 = vst.msk [vmem:[#allocation5 + $0x5c] sm:$0xf] %vm6883_vm2, %v6834_v17  ;;  %7552 = vrot.lane.b32.xlu1 %v7229_v63, %s8876_s13  ;;  %v7247_v17 = vor.u32 %v7246_v32, %v7242_v36  ;;  %v7793_v63 = vrot.slane %v7682_v2, 5  ;;  %v7466_v36 = vshll.u32 %v7148_v40, 16  ;;  %v7123_v32 = vld [vmem:[#allocation4 + $0x4c] sm:$0xf] }
 0x600   : > { %v7150_v40 = vld [vmem:[#allocation4 + $0xb8] sm:$0xf] }
 0x601   : > { %v6820_v41 = vpop.permute.xlu1 %6819  ;;  %v7794_v35 = vsel %vm9586_vm13, %v7792_v37, %v7793_v63  ;;  %v7248_v8 = vrot.slane %v7247_v17, 4  ;;  %v7684_v17 = vld [vmem:[#allocation4 + $0x4c] sm:$0xf] }
 0x602   : > { %6900 = vst.msk [vmem:[#allocation5 + $0x40] sm:$0xf] %vm6883_vm2, %v6820_v41  ;;  %v6924_v41 = vld [vmem:[#allocation4 + $0x40] sm:$0xf] }
 0x603   : > { %7586 = vrot.lane.b32.xlu0 %v7435_v23, %s8876_s13  ;;  %7887 = vrot.lane.b32.xlu2 %v7784_v12, %s8878_s15  ;;  %v7447_v23 = vshrl.u32 %v7146_v60, 16  ;;  %v7253_v58 = vsel %vm8955_vm3, %v7248_v8, %v7252_v1  ;;  %v6617_v12 = vld [vmem:[#allocation4 + $0xa4] sm:$0x1] }
 0x605   : > { %v6830_v22 = vpop.permute.xlu0 %6829  ;;  %v7016_v5 = vpop.permute.xlu2 %7015 }
 0x606   : > { %6905 = vst.msk [vmem:[#allocation5 + $0x54] sm:$0xf] %vm6883_vm2, %v6830_v22  ;;  %v6764_v22 = vrot.slane %v6617_v12, 5  ;;  %v6925_v12 = vld [vmem:[#allocation4 + $0x48] sm:$0xf] }
 0x607   : > { %7095 = vst.msk [vmem:[#allocation5 + $0x44] sm:$0xf] %vm7077_vm7, %v7016_v5  ;;  %7025 = vrot.lane.b32.xlu1 %v6939_v42, %s8877_s14  ;;  %v7449_v42 = vrot.slane %v7447_v23, 4  ;;  %v7452_v5 = vrot.slane %v7450_v59, 5  ;;  %v11962_v23 = vld [vmem:[#allocation4 + $0xac] sm:$0xf] }
 0x608   : > { %v6765_v50 = vsel %vm9586_vm13, %v6763_v53, %v6764_v22  ;;  %v7149_v59 = vld [vmem:[#allocation4 + $0xb4] sm:$0xf]  ;;  %v6768_v53 = vrot.slane %v11962_v23, 5 }
 0x609   : > { %v6826_v55 = vpop.permute.xlu1 %6825  ;;  %v7471_v22 = vshrl.u32 %v7149_v59, 16 }
 0x60a   : > { %6903 = vst.msk [vmem:[#allocation5 + $0x4c] sm:$0xf] %vm6883_vm2, %v6826_v55  ;;  %v7853_v55 = vrot.slane %v7708_v27, 5 }
 0x60b   : > { %7925 = vrot.lane.b32.xlu0 %v7850_v30, %s8878_s15  ;;  %7027 = vrot.lane.b32.xlu2 %v6940_v24, %s8877_s14  ;;  %v7453_v30 = vor.u32 %v7452_v5, %v7449_v42  ;;  %v7474_v42 = vshll.u32 %v7149_v59, 16 }
 0x60c   : > { %v7854_v24 = vsel %vm9586_vm13, %v8679_v31, %v7853_v55  ;;  %v7855_v2 = vrot.slane %v7853_v55, 4 }
 0x60d   : > { %v6836_v45 = vpop.permute.xlu0 %6835  ;;  %v7912_v44 = vpop.permute.xlu2 %7911  ;;  %v7454_v14 = vrot.slane %v7453_v30, 4  ;;  %v7476_v31 = vrot.slane %v7474_v42, 5 }
 0x60e   : > { %6908 = vst.msk [vmem:[#allocation5 + $0x60] sm:$0xf] %vm6883_vm2, %v6836_v45  ;;  %v7122_v45 = vld [vmem:[#allocation4 + $0x48] sm:$0xf]  ;;  %v7857_v60 = vsel %vm9586_vm13, %v7855_v2, %v7856_v11 }
 0x60f   : > { %7588 = vrot.lane.b32.xlu1 %v7445_v49, %s8876_s13  ;;  %v7463_v49 = vor.u32 %v7462_v52, %v7458_v48  ;;  %v7459_v3 = vsel %vm8955_vm3, %v7454_v14, %v7458_v48  ;;  %v7255_v26 = vshrl.u32 %v7122_v45, 16  ;;  %v7258_v33 = vshll.u32 %v7122_v45, 16  ;;  %v7685_v52 = vld [vmem:[#allocation4 + $0x50] sm:$0x1] }
 0x610   : > { %v7276_v48 = vrot.slane %v7274_v38, 5  ;;  %v7800_v45 = vrot.slane %v7685_v52, 5  ;;  %v7127_v52 = vld [vmem:[#allocation4 + $0x5c] sm:$0x1] }
 0x611   : > { %v6832_v6 = vpop.permute.xlu1 %6831  ;;  %v7257_v63 = vrot.slane %v7255_v26, 4  ;;  %v7260_v4 = vrot.slane %v7258_v33, 5  ;;  %v7484_v26 = vshrl.u32 %v7150_v40, 16 }
 0x612   : > { %6906 = vst.msk [vmem:[#allocation5 + $0x58] sm:$0xf] %vm6883_vm2, %v6832_v6  ;;  %v7464_v6 = vrot.slane %v7463_v49, 4  ;;  %v6618_v49 = vld [vmem:[#allocation4 + $0xa8] sm:$0xe] }
 0x613   : > { %7554 = vrot.lane.b32.xlu0 %v7243_v15, %s8876_s13  ;;  %7923 = vrot.lane.b32.xlu2 %v7847_v51, %s8878_s15  ;;  %v7468_v15 = vrot.slane %v7466_v36, 5  ;;  %v7261_v0 = vor.u32 %v7260_v4, %v7257_v63  ;;  %v8664_v33 = vrot.slane %v6618_v49, 9  ;;  %v7486_v11 = vrot.slane %v7484_v26, 4  ;;  %v6928_v26 = vld [vmem:[#allocation4 + $0x58] sm:$0xf] }
 0x615   : > { %v7575_v39 = vpop.permute.xlu0 %7574  ;;  %v6984_v19 = vpop.permute.xlu2 %6983  ;;  %v7469_v37 = vsel %vm8955_vm3, %v7464_v6, %v7468_v15  ;;  %v7262_v5 = vrot.slane %v7261_v0, 4  ;;  %v7711_v6 = vld [vmem:[#allocation4 + $0xb8] sm:$0xf] }
 0x616   : > { %7079 = vst.msk [vmem:[#allocation5 + $0x4] sm:$0xf] %vm7077_vm7, %v6984_v19  ;;  %v7264_v19 = vshll.u32 %v7123_v32, 16  ;;  %v7860_v2 = vrot.slane %v7711_v6, 5 }
 0x617   : > { %6993 = vrot.lane.b32.xlu1 %v6923_v21, %s8877_s14  ;;  %v7268_v21 = vshrl.u32 %v7123_v32, 16  ;;  %v7125_v32 = vld [vmem:[#allocation4 + $0x54] sm:$0xf] }
 0x618   : > { %v7266_v1 = vrot.slane %v7264_v19, 5  ;;  %v6769_v19 = vsel %vm9586_vm13, %v8664_v33, %v6768_v53  ;;  %v7282_v63 = vshll.u32 %v7125_v32, 16 }
 0x619   : > { %v7014_v20 = vpop.permute.xlu1 %7013 }
 0x61a   : > { %7094 = vst.msk [vmem:[#allocation5 + $0x40] sm:$0xf] %vm7077_vm7, %v7014_v20  ;;  %v7284_v23 = vrot.slane %v7282_v63, 5 }
 0x61b   : > { %7655 = vst.msk [vmem:[#allocation5 + $0x40] sm:$0xf] %vm7638_vm8, %v7575_v39  ;;  %7893 = vrot.lane.b32.xlu0 %v7794_v35, %s8878_s15  ;;  %6995 = vrot.lane.b32.xlu2 %v6924_v41, %s8877_s14  ;;  %v6926_v39 = vld [vmem:[#allocation4 + $0x4c] sm:$0xf]  ;;  %v7683_v35 = vld [vmem:[#allocation4 + $0x48] sm:$0xe] }
 0x61c   : > { %7992 = vst.msk [vmem:[#allocation5 + $0x40] sm:$0xf] %vm7975_vm10, %v7912_v44  ;;  %v6941_v44 = vld [vmem:[#allocation4 + $0xa8] sm:$0xf]  ;;  %v7797_v41 = vrot.slane %v7684_v17, 5  ;;  %v7279_v17 = vshrl.u32 %v7125_v32, 16 }
 0x61d   : > { %v7914_v43 = vpop.permute.xlu0 %7913  ;;  %v7880_v13 = vpop.permute.xlu2 %7879 }
 0x61e   : > { %v7281_v0 = vrot.slane %v7279_v17, 4 }
 0x61f   : > { %7556 = vrot.lane.b32.xlu1 %v7253_v58, %s8876_s13 }
 0x621   : > { %v7577_v47 = vpop.permute.xlu1 %7576 }
 0x622   : > { %7656 = vst.msk [vmem:[#allocation5 + $0x44] sm:$0xf] %vm7638_vm8, %v7577_v47 }
 0x623   : > { %7993 = vst.msk [vmem:[#allocation5 + $0x44] sm:$0xf] %vm7975_vm10, %v7914_v43  ;;  %7031 = vrot.lane.b32.xlu0 %v6942_v18, %s8877_s14  ;;  %7891 = vrot.lane.b32.xlu2 %v7791_v9, %s8878_s15  ;;  %v7270_v43 = vrot.slane %v7268_v21, 4  ;;  %v6620_v18 = vld [vmem:[#allocation4 + $0xb0] sm:$0x1]  ;;  %v7267_v9 = vsel %vm8955_vm3, %v7262_v5, %v7266_v1 }
 0x624   : > { %v7712_v21 = vld [vmem:[#allocation4 + $0xbc] sm:$0x1] }
 0x625   : > { %v7543_v16 = vpop.permute.xlu0 %7542  ;;  %v7020_v54 = vpop.permute.xlu2 %7019  ;;  %v7271_v7 = vor.u32 %v7270_v43, %v7266_v1  ;;  %v7126_v43 = vld [vmem:[#allocation4 + $0x58] sm:$0xf] }
 0x626   : > { %7097 = vst.msk [vmem:[#allocation5 + $0x4c] sm:$0xf] %vm7077_vm7, %v7020_v54  ;;  %v6771_v54 = vrot.slane %v6620_v18, 5  ;;  %v7288_v25 = vshll.u32 %v7126_v43, 16 }
 0x627   : > { %6837 = vrot.lane.b32.xlu1 %v6765_v50, %s8875_s12  ;;  %v7473_v50 = vrot.slane %v7471_v22, 4  ;;  %v7272_v55 = vrot.slane %v7271_v7, 4  ;;  %v7292_v7 = vshrl.u32 %v7126_v43, 16 }
 0x628   : > { %v7290_v18 = vrot.slane %v7288_v25, 5 }
 0x629   : > { %v6982_v56 = vpop.permute.xlu1 %6981  ;;  %v7277_v14 = vsel %vm8955_vm3, %v7272_v55, %v7276_v48  ;;  %v7688_v48 = vld [vmem:[#allocation4 + $0x5c] sm:$0x1] }
 0x62a   : > { %7078 = vst.msk [vmem:[#allocation5] sm:$0xf] %vm7077_vm7, %v6982_v56  ;;  %v8809_v34 = vld [vmem:[#allocation5 + $0x40] sm:$0xff] }
 0x62b   : > { %7639 = vst.msk [vmem:[#allocation5] sm:$0xf] %vm7638_vm8, %v7543_v16  ;;  %7927 = vrot.lane.b32.xlu0 %v7854_v24, %s8878_s15  ;;  %7029 = vrot.lane.b32.xlu2 %v6941_v44, %s8877_s14  ;;  %v6770_v16 = vrot.slane %v6768_v53, 4  ;;  %v7799_v24 = vrot.slane %v7797_v41, 4  ;;  %v7480_v44 = vshll.u32 %v7150_v40, 16 }
 0x62c   : > { %7976 = vst.msk [vmem:[#allocation5] sm:$0xf] %vm7975_vm10, %v7880_v13  ;;  %8771 = vmatmul.msk.bf16.vlgmr.msra.gmra.mxu2 %vm8156_vm11, %v8809_v34  ;;  %v8671_v13 = vrot.slane %v7683_v35, 9  ;;  %v7477_v34 = vor.u32 %v7476_v31, %v7473_v50  ;;  %v6943_v35 = vld [vmem:[#allocation4 + $0xb4] sm:$0xf]  ;;  %v7294_v31 = vrot.slane %v7292_v7, 4 }
 0x62d   : > { %v7882_v46 = vpop.permute.xlu0 %7881  ;;  %v7916_v29 = vpop.permute.xlu2 %7915  ;;  %v6772_v56 = vsel %vm9586_vm13, %v6770_v16, %v6771_v54  ;;  %v7482_v15 = vrot.slane %v7480_v44, 5  ;;  %v7710_v53 = vld [vmem:[#allocation4 + $0xb4] sm:$0xe]  ;;  %v7298_v44 = vshll.u32 %v7127_v52, 16  ;;  %v6929_v52 = vld [vmem:[#allocation4 + $0x60] sm:$0xf] }
 0x62e   : > { %v7798_v57 = vsel %vm9586_vm13, %v8671_v13, %v7797_v41 }
 0x62f   : > { %7590 = vrot.lane.b32.xlu1 %v7459_v3, %s8876_s13  ;;  %v7478_v3 = vrot.slane %v7477_v34, 4  ;;  %v7487_v41 = vor.u32 %v7486_v11, %v7482_v15  ;;  %v7295_v34 = vor.u32 %v7294_v31, %v7290_v18  ;;  %v7300_v33 = vrot.slane %v7298_v44, 5 }
 0x631   : > { %v7545_v51 = vpop.permute.xlu1 %7544 }
 0x632   : > { %7640 = vst.msk [vmem:[#allocation5 + $0x4] sm:$0xf] %vm7638_vm8, %v7545_v51  ;;  %v7483_v51 = vsel %vm8955_vm3, %v7478_v3, %v7482_v15  ;;  %v7686_v15 = vld [vmem:[#allocation4 + $0x54] sm:$0xe] }
 0x633   : > { %7977 = vst.msk [vmem:[#allocation5 + $0x4] sm:$0xf] %vm7975_vm10, %v7882_v46  ;;  %6999 = vrot.lane.b32.xlu0 %v6926_v39, %s8877_s14  ;;  %7592 = vrot.lane.b32.xlu2 %v7469_v37, %s8876_s13  ;;  %v7151_v37 = vld [vmem:[#allocation4 + $0xbc] sm:$0x1]  ;;  %v8672_v17 = vrot.slane %v7686_v15, 9 }
 0x634   : > { %v7490_v1 = vshll.u32 %v7151_v37, 16 }
 0x635   : > { %v7579_v20 = vpop.permute.xlu0 %7578  ;;  %v6988_v8 = vpop.permute.xlu2 %6987 }
 0x636   : > { %7081 = vst.msk [vmem:[#allocation5 + $0xc] sm:$0xf] %vm7077_vm7, %v6988_v8  ;;  %v7862_v8 = vrot.slane %v7860_v2, 4 }
 0x637   : > { %7929 = vrot.lane.b32.xlu1 %v7857_v60, %s8878_s15  ;;  %v7863_v60 = vrot.slane %v7712_v21, 5  ;;  %v7152_v21 = vld [vmem:[#allocation4 + $0xc0] sm:$0xf] }
 0x638   : > { %v7498_v43 = vshll.u32 %v7152_v21, 16 }
 0x639   : > { %v7018_v58 = vpop.permute.xlu1 %7017  ;;  %v7864_v13 = vsel %vm9586_vm13, %v7862_v8, %v7863_v60 }
 0x63a   : > { %7096 = vst.msk [vmem:[#allocation5 + $0x48] sm:$0xf] %vm7077_vm7, %v7018_v58  ;;  %v8801_v47 = vld [vmem:[#allocation5] sm:$0xff]  ;;  %v7488_v58 = vrot.slane %v7487_v41, 4 }
 0x63b   : > { %7657 = vst.msk [vmem:[#allocation5 + $0x48] sm:$0xf] %vm7638_vm8, %v7579_v20  ;;  %7895 = vrot.lane.b32.xlu0 %v7798_v57, %s8878_s15  ;;  %6997 = vrot.lane.b32.xlu2 %v6925_v12, %s8877_s14  ;;  %v7492_v12 = vrot.slane %v7490_v1, 5  ;;  %v6944_v57 = vld [vmem:[#allocation4 + $0xb8] sm:$0xf]  ;;  %v7495_v1 = vshrl.u32 %v7152_v21, 16 }
 0x63c   : > { %7994 = vst.msk [vmem:[#allocation5 + $0x48] sm:$0xf] %vm7975_vm10, %v7916_v29  ;;  %8763 = vmatmul.msk.bf16.vlgmr.msra.gmra.mxu1 %vm8156_vm11, %v8801_v47  ;;  %v7801_v29 = vsel %vm9586_vm13, %v7799_v24, %v7800_v45  ;;  %v7285_v47 = vor.u32 %v7284_v23, %v7281_v0  ;;  %v7807_v45 = vrot.slane %v7688_v48, 5  ;;  %v6623_v0 = vld [vmem:[#allocation4 + $0xbc] sm:$0x1] }
 0x63d   : > { %v7918_v28 = vpop.permute.xlu0 %7917  ;;  %v7884_v27 = vpop.permute.xlu2 %7883  ;;  %v7493_v5 = vsel %vm8955_vm3, %v7488_v58, %v7492_v12  ;;  %v6624_v21 = vld [vmem:[#allocation4 + $0xc0] sm:$0xe] }
 0x63e   : > { %v7286_v38 = vrot.slane %v7285_v47, 4  ;;  %v7497_v47 = vrot.slane %v7495_v1, 4 }
 0x63f   : > { %7558 = vrot.lane.b32.xlu1 %v7267_v9, %s8876_s13  ;;  %v7687_v9 = vld [vmem:[#allocation4 + $0x58] sm:$0xf] }
 0x640   : > { %v7291_v16 = vsel %vm8955_vm3, %v7286_v38, %v7290_v18  ;;  %v7804_v50 = vrot.slane %v7687_v9, 5 }
 0x641   : > { %v7581_v30 = vpop.permute.xlu1 %7580 }
 0x642   : > { %7658 = vst.msk [vmem:[#allocation5 + $0x4c] sm:$0xf] %vm7638_vm8, %v7581_v30  ;;  %v7806_v24 = vrot.slane %v7804_v50, 4  ;;  %v7805_v41 = vsel %vm9586_vm13, %v8672_v17, %v7804_v50 }
 0x643   : > { %7995 = vst.msk [vmem:[#allocation5 + $0x4c] sm:$0xf] %vm7975_vm10, %v7918_v28  ;;  %6841 = vrot.lane.b32.xlu0 %v6772_v56, %s8875_s12  ;;  %7560 = vrot.lane.b32.xlu2 %v7277_v14, %s8876_s13  ;;  %v8680_v28 = vrot.slane %v7710_v53, 9  ;;  %v6927_v56 = vld [vmem:[#allocation4 + $0x54] sm:$0xf]  ;;  %v7500_v53 = vrot.slane %v7498_v43, 5 }
 0x644   : > { %v7153_v14 = vld [vmem:[#allocation4 + $0xc4] sm:$0xf]  ;;  %v7689_v43 = vld [vmem:[#allocation4 + $0x60] sm:$0xe] }
 0x645   : > { %v7547_v36 = vpop.permute.xlu0 %7546  ;;  %v7024_v46 = vpop.permute.xlu2 %7023  ;;  %v7861_v55 = vsel %vm9586_vm13, %v8680_v28, %v7860_v2  ;;  %v7508_v3 = vshrl.u32 %v7153_v14, 16  ;;  %v7501_v9 = vor.u32 %v7500_v53, %v7497_v47  ;;  %v7691_v53 = vld [vmem:[#allocation4 + $0x68] sm:$0x1] }
 0x646   : > { %7099 = vst.msk [vmem:[#allocation5 + $0x54] sm:$0xf] %vm7077_vm7, %v7024_v46  ;;  %v7296_v46 = vrot.slane %v7295_v34, 4 }
 0x647   : > { %7897 = vrot.lane.b32.xlu1 %v7801_v29, %s8878_s15  ;;  %v7504_v29 = vshll.u32 %v7153_v14, 16  ;;  %v7510_v11 = vrot.slane %v7508_v3, 4 }
 0x648   : > { %v7301_v32 = vsel %vm8955_vm3, %v7296_v46, %v7300_v33 }
 0x649   : > { %v6986_v62 = vpop.permute.xlu1 %6985  ;;  %v12028_v2 = vrot.slane %v7504_v29, 5 }
 0x64a   : > { %7080 = vst.msk [vmem:[#allocation5 + $0x8] sm:$0xf] %vm7077_vm7, %v6986_v62  ;;  %v8810_v39 = vld [vmem:[#allocation5 + $0x48] sm:$0xff] }
 0x64b   : > { %7641 = vst.msk [vmem:[#allocation5 + $0x8] sm:$0xf] %vm7638_vm8, %v7547_v36  ;;  %7594 = vrot.lane.b32.xlu0 %v7483_v51, %s8876_s13  ;;  %6839 = vrot.lane.b32.xlu2 %v6769_v19, %s8875_s12  ;;  %v7808_v36 = vsel %vm9586_vm13, %v7806_v24, %v7807_v45  ;;  %v6621_v51 = vld [vmem:[#allocation4 + $0xb4] sm:$0xe]  ;;  %v7154_v19 = vld [vmem:[#allocation4 + $0xc8] sm:$0x1]  ;;  %v7511_v8 = vor.u32 %v7510_v11, %v12028_v2 }
 0x64c   : > { %7978 = vst.msk [vmem:[#allocation5 + $0x8] sm:$0xf] %vm7975_vm10, %v7884_v27  ;;  %8772 = vmatmul.msk.bf16.gmra.mxu2 %vm8156_vm11, %v8810_v39  ;;  %v6622_v39 = vld [vmem:[#allocation4 + $0xb8] sm:$0xf]  ;;  %v8665_v63 = vrot.slane %v6621_v51, 9  ;;  %v7514_v60 = vshll.u32 %v7154_v19, 16 }
 0x64d   : > { %v7886_v4 = vpop.permute.xlu0 %7885  ;;  %v7920_v20 = vpop.permute.xlu2 %7919  ;;  %v7512_v58 = vrot.slane %v7511_v8, 4 }
 0x64e   : > { %v7516_v12 = vrot.slane %v7514_v60, 5  ;;  %v7690_v60 = vld [vmem:[#allocation4 + $0x64] sm:$0xf] }
 0x64f   : > { %7033 = vrot.lane.b32.xlu1 %v6943_v35, %s8877_s14 }
 0x651   : > { %v7549_v59 = vpop.permute.xlu1 %7548 }
 0x652   : > { %7642 = vst.msk [vmem:[#allocation5 + $0xc] sm:$0xf] %vm7638_vm8, %v7549_v59 }
 0x653   : > { %7979 = vst.msk [vmem:[#allocation5 + $0xc] sm:$0xf] %vm7975_vm10, %v7886_v4  ;;  %7933 = vrot.lane.b32.xlu0 %v7864_v13, %s8878_s15  ;;  %7035 = vrot.lane.b32.xlu2 %v6944_v57, %s8877_s14  ;;  %v6775_v4 = vrot.slane %v6622_v39, 5  ;;  %v6778_v57 = vrot.slane %v6623_v0, 5  ;;  %v7155_v0 = vld [vmem:[#allocation4 + $0xcc] sm:$0xf] }
 0x655   : > { %v7583_v22 = vpop.permute.xlu0 %7582  ;;  %v6992_v42 = vpop.permute.xlu2 %6991  ;;  %v6776_v13 = vsel %vm9586_vm13, %v8665_v63, %v6775_v4  ;;  %v6777_v25 = vrot.slane %v6775_v4, 4 }
 0x656   : > { %7083 = vst.msk [vmem:[#allocation5 + $0x14] sm:$0xf] %vm7077_vm7, %v6992_v42 }
 0x657   : > { %7596 = vrot.lane.b32.xlu1 %v7493_v5, %s8876_s13  ;;  %v7517_v5 = vsel %vm8955_vm3, %v7512_v58, %v7516_v12  ;;  %v6779_v28 = vsel %vm9586_vm13, %v6777_v25, %v6778_v57  ;;  %v8673_v12 = vrot.slane %v7689_v43, 9  ;;  %v7519_v25 = vshrl.u32 %v7155_v0, 16 }
 0x658   : > { %v7522_v57 = vshll.u32 %v7155_v0, 16 }
 0x659   : > { %v7022_v27 = vpop.permute.xlu1 %7021 }
 0x65a   : > { %7098 = vst.msk [vmem:[#allocation5 + $0x50] sm:$0xf] %vm7077_vm7, %v7022_v27  ;;  %v8802_v54 = vld [vmem:[#allocation5 + $0x8] sm:$0xff] }
 0x65b   : > { %7659 = vst.msk [vmem:[#allocation5 + $0x50] sm:$0xf] %vm7638_vm8, %v7583_v22  ;;  %7562 = vrot.lane.b32.xlu0 %v7291_v16, %s8876_s13  ;;  %7931 = vrot.lane.b32.xlu2 %v7861_v55, %s8878_s15  ;;  %v7129_v22 = vld [vmem:[#allocation4 + $0x64] sm:$0xf]  ;;  %v7502_v55 = vrot.slane %v7501_v9, 4  ;;  %v7814_v9 = vrot.slane %v7691_v53, 5 }
 0x65c   : > { %7996 = vst.msk [vmem:[#allocation5 + $0x50] sm:$0xf] %vm7975_vm10, %v7920_v20  ;;  %8764 = vmatmul.msk.bf16.gmra.mxu1 %vm8156_vm11, %v8802_v54  ;;  %v6945_v20 = vld [vmem:[#allocation4 + $0xc0] sm:$0xf]  ;;  %v7312_v18 = vshll.u32 %v7129_v22, 16  ;;  %v7316_v7 = vshrl.u32 %v7129_v22, 16 }
 0x65d   : > { %v7922_v30 = vpop.permute.xlu0 %7921  ;;  %v7888_v40 = vpop.permute.xlu2 %7887  ;;  %v6946_v16 = vld [vmem:[#allocation4 + $0xc4] sm:$0xf]  ;;  %v7713_v54 = vld [vmem:[#allocation4 + $0xc0] sm:$0xe]  ;;  %v7507_v44 = vsel %vm8955_vm3, %v7502_v55, %v12028_v2 }
 0x65e   : > { %v12052_v50 = vrot.slane %v7312_v18, 5  ;;  %v7318_v31 = vrot.slane %v7316_v7, 4  ;;  %v8681_v34 = vrot.slane %v7713_v54, 9  ;;  %v6626_v7 = vld [vmem:[#allocation4 + $0xc8] sm:$0x1] }
 0x65f   : > { %7001 = vrot.lane.b32.xlu1 %v6927_v56, %s8877_s14  ;;  %v7128_v56 = vld [vmem:[#allocation4 + $0x60] sm:$0xf]  ;;  %v7716_v54 = vld [vmem:[#allocation4 + $0xcc] sm:$0xe] }
 0x660   : > { %v7319_v45 = vor.u32 %v7318_v31, %v12052_v50  ;;  %v7303_v29 = vshrl.u32 %v7128_v56, 16  ;;  %v7306_v3 = vshll.u32 %v7128_v56, 16 }
 0x661   : > { %v7585_v49 = vpop.permute.xlu1 %7584 }
 0x662   : > { %7660 = vst.msk [vmem:[#allocation5 + $0x54] sm:$0xf] %vm7638_vm8, %v7585_v49  ;;  %v7305_v39 = vrot.slane %v7303_v29, 4  ;;  %v7308_v2 = vrot.slane %v7306_v3, 5 }
 0x663   : > { %7997 = vst.msk [vmem:[#allocation5 + $0x54] sm:$0xf] %vm7975_vm10, %v7922_v30  ;;  %7901 = vrot.lane.b32.xlu0 %v7808_v36, %s8878_s15  ;;  %7003 = vrot.lane.b32.xlu2 %v6928_v26, %s8877_s14  ;;  %v7714_v30 = vld [vmem:[#allocation4 + $0xc4] sm:$0xf]  ;;  %v7715_v36 = vld [vmem:[#allocation4 + $0xc8] sm:$0x1] }
 0x664   : > { %v7867_v14 = vrot.slane %v7714_v30, 5  ;;  %v7309_v63 = vor.u32 %v7308_v2, %v7305_v39  ;;  %v7718_v2 = vld [vmem:[#allocation4 + $0xd4] sm:$0x1] }
 0x665   : > { %v7551_v6 = vpop.permute.xlu0 %7550  ;;  %v7028_v62 = vpop.permute.xlu2 %7027 }
 0x666   : > { %7101 = vst.msk [vmem:[#allocation5 + $0x5c] sm:$0xf] %vm7077_vm7, %v7028_v62  ;;  %v7868_v33 = vsel %vm9586_vm13, %v8681_v34, %v7867_v14  ;;  %v7869_v15 = vrot.slane %v7867_v14, 4  ;;  %v7870_v62 = vrot.slane %v7715_v36, 5  ;;  %v7310_v1 = vrot.slane %v7309_v63, 4 }
 0x667   : > { %7564 = vrot.lane.b32.xlu1 %v7301_v32, %s8876_s13  ;;  %v7157_v36 = vld [vmem:[#allocation4 + $0xd4] sm:$0x1] }
 0x668   : > { %v7871_v19 = vsel %vm9586_vm13, %v7869_v15, %v7870_v62  ;;  %v7315_v58 = vsel %vm8955_vm3, %v7310_v1, %v12052_v50  ;;  %v7717_v50 = vld [vmem:[#allocation4 + $0xd0] sm:$0xf] }
 0x669   : > { %v6990_v37 = vpop.permute.xlu1 %6989  ;;  %v7874_v56 = vrot.slane %v7717_v50, 5  ;;  %v12141_v50 = vld [vmem:[%s12345_s6] ss:$0 sm:$0xff] }
 0x66a   : > { %7082 = vst.msk [vmem:[#allocation5 + $0x10] sm:$0xf] %vm7077_vm7, %v6990_v37  ;;  %v8811_v35 = vld [vmem:[#allocation5 + $0x50] sm:$0xff]  ;;  %v6625_v37 = vld [vmem:[#allocation4 + $0xc4] sm:$0xf] }
 0x66b   : > { %7643 = vst.msk [vmem:[#allocation5 + $0x10] sm:$0xf] %vm7638_vm8, %v7551_v6  ;;  %7037 = vrot.lane.b32.xlu0 %v6945_v20, %s8877_s14  ;;  %7899 = vrot.lane.b32.xlu2 %v7805_v41, %s8878_s15  ;;  %v7320_v6 = vrot.slane %v7319_v45, 4  ;;  %v6930_v20 = vld [vmem:[#allocation4 + $0x64] sm:$0xf]  ;;  %v6782_v8 = vrot.slane %v6625_v37, 5 }
 0x66c   : > { %7980 = vst.msk [vmem:[#allocation5 + $0x10] sm:$0xf] %vm7975_vm10, %v7888_v40  ;;  %8773 = vmatmul.msk.bf16.gmra.mxu2 %vm8156_vm11, %v8811_v35  ;;  %v7130_v40 = vld [vmem:[#allocation4 + $0x68] sm:$0x1]  ;;  %v8666_v35 = vrot.slane %v6624_v21, 9  ;;  %v7876_v21 = vrot.slane %v7874_v56, 4 }
 0x66d   : > { %v7890_v23 = vpop.permute.xlu0 %7889  ;;  %v7924_v59 = vpop.permute.xlu2 %7923  ;;  %v7322_v49 = vshll.u32 %v7130_v40, 16  ;;  %v6784_v30 = vrot.slane %v6782_v8, 4  ;;  %v8682_v40 = vrot.slane %v7716_v54, 9  ;;  %v7877_v37 = vrot.slane %v7718_v2, 5 }
 0x66f   : > { %6843 = vrot.lane.b32.xlu1 %v6776_v13, %s8875_s12  ;;  %v7324_v32 = vrot.slane %v7322_v49, 5  ;;  %v7811_v13 = vrot.slane %v7690_v60, 5  ;;  %v7693_v60 = vld [vmem:[#allocation4 + $0x70] sm:$0xf]  ;;  %v7878_v43 = vsel %vm9586_vm13, %v7876_v21, %v7877_v37 }
 0x671   : > { %v7553_v42 = vpop.permute.xlu1 %7552  ;;  %v7325_v11 = vsel %vm8955_vm3, %v7320_v6, %v7324_v32  ;;  %v7813_v18 = vrot.slane %v7811_v13, 4  ;;  %v7538_v6 = vshll.u32 %v7157_v36, 16 }
 0x672   : > { %7644 = vst.msk [vmem:[#allocation5 + $0x14] sm:$0xf] %vm7638_vm8, %v7553_v42  ;;  %v7812_v42 = vsel %vm9586_vm13, %v8673_v12, %v7811_v13  ;;  %v7692_v13 = vld [vmem:[#allocation4 + $0x6c] sm:$0xe]  ;;  %v7818_v12 = vrot.slane %v7693_v60, 5 }
 0x673   : > { %7981 = vst.msk [vmem:[#allocation5 + $0x14] sm:$0xf] %vm7975_vm10, %v7890_v23  ;;  %7600 = vrot.lane.b32.xlu0 %v7517_v5, %s8876_s13  ;;  %6845 = vrot.lane.b32.xlu2 %v6779_v28, %s8875_s12  ;;  %v6783_v23 = vsel %vm9586_vm13, %v8666_v35, %v6782_v8  ;;  %v7156_v5 = vld [vmem:[#allocation4 + $0xd0] sm:$0xf]  ;;  %v7540_v39 = vrot.slane %v7538_v6, 5 }
 0x674   : > { %v6948_v28 = vld [vmem:[#allocation4 + $0xd0] sm:$0xf]  ;;  %v7528_v31 = vshll.u32 %v7156_v5, 16  ;;  %v7532_v55 = vshrl.u32 %v7156_v5, 16  ;;  %v7133_v5 = vld [vmem:[#allocation4 + $0x74] sm:$0x1] }
 0x675   : > { %v7587_v38 = vpop.permute.xlu0 %7586  ;;  %v6996_v27 = vpop.permute.xlu2 %6995  ;;  %v6932_v8 = vld [vmem:[#allocation4 + $0x70] sm:$0xf] }
 0x676   : > { %7085 = vst.msk [vmem:[#allocation5 + $0x1c] sm:$0xf] %vm7077_vm7, %v6996_v27  ;;  %v7524_v27 = vrot.slane %v7522_v57, 5  ;;  %v7530_v14 = vrot.slane %v7528_v31, 5  ;;  %v7534_v45 = vrot.slane %v7532_v55, 4 }
 0x677   : > { %7039 = vrot.lane.b32.xlu1 %v6946_v16, %s8877_s14 }
 0x679   : > { %v7026_v48 = vpop.permute.xlu1 %7025 }
 0x67a   : > { %7100 = vst.msk [vmem:[#allocation5 + $0x58] sm:$0xf] %vm7077_vm7, %v7026_v48  ;;  %v8803_v24 = vld [vmem:[#allocation5 + $0x10] sm:$0xff]  ;;  %v6785_v48 = vrot.slane %v6626_v7, 5 }
 0x67b   : > { %7661 = vst.msk [vmem:[#allocation5 + $0x58] sm:$0xf] %vm7638_vm8, %v7587_v38  ;;  %7005 = vrot.lane.b32.xlu0 %v6929_v52, %s8877_s14  ;;  %7598 = vrot.lane.b32.xlu2 %v7507_v44, %s8876_s13  ;;  %v7521_v38 = vrot.slane %v7519_v25, 4  ;;  %v7815_v52 = vsel %vm9586_vm13, %v7813_v18, %v7814_v9  ;;  %v6931_v18 = vld [vmem:[#allocation4 + $0x6c] sm:$0xf] }
 0x67c   : > { %7998 = vst.msk [vmem:[#allocation5 + $0x58] sm:$0xf] %vm7975_vm10, %v7924_v59  ;;  %8765 = vmatmul.msk.bf16.gmra.mxu1 %vm8156_vm11, %v8803_v24  ;;  %v6786_v49 = vsel %vm9586_vm13, %v6784_v30, %v6785_v48  ;;  %v12134_v9 = vld [vmem:[%s12344_s5] ss:$0 sm:$0xff] }
 0x67d   : > { %v7926_v46 = vpop.permute.xlu0 %7925  ;;  %v7892_v26 = vpop.permute.xlu2 %7891  ;;  %v7525_v24 = vor.u32 %v7524_v27, %v7521_v38  ;;  %v7346_v27 = vshll.u32 %v7133_v5, 16 }
 0x67f   : > { %7935 = vrot.lane.b32.xlu1 %v7868_v33, %s8878_s15  ;;  %v7526_v29 = vrot.slane %v7525_v24, 4  ;;  %v7535_v33 = vor.u32 %v7534_v45, %v7530_v14 }
 0x681   : > { %v7589_v51 = vpop.permute.xlu1 %7588  ;;  %v7531_v62 = vsel %vm8955_vm3, %v7526_v29, %v7530_v14 }
 0x682   : > { %7662 = vst.msk [vmem:[#allocation5 + $0x5c] sm:$0xf] %vm7638_vm8, %v7589_v51  ;;  %v7536_v51 = vrot.slane %v7535_v33, 4 }
 0x683   : > { %7999 = vst.msk [vmem:[#allocation5 + $0x5c] sm:$0xf] %vm7975_vm10, %v7926_v46  ;;  %7568 = vrot.lane.b32.xlu0 %v7325_v11, %s8876_s13  ;;  %7937 = vrot.lane.b32.xlu2 %v7871_v19, %s8878_s15  ;;  %v7875_v46 = vsel %vm9586_vm13, %v8682_v40, %v7874_v56  ;;  %v7131_v11 = vld [vmem:[#allocation4 + $0x6c] sm:$0xf]  ;;  %v7694_v56 = vld [vmem:[#allocation4 + $0x74] sm:$0x1] }
 0x684   : > { %v7327_v63 = vshrl.u32 %v7131_v11, 16  ;;  %v7541_v35 = vsel %vm8955_vm3, %v7536_v51, %v7540_v39 }
 0x685   : > { %v7555_v17 = vpop.permute.xlu0 %7554  ;;  %v7030_v4 = vpop.permute.xlu2 %7029 }
 0x686   : > { %7102 = vst.msk [vmem:[#allocation5 + $0x60] sm:$0xf] %vm7077_vm7, %v7030_v4  ;;  %v7330_v4 = vshll.u32 %v7131_v11, 16  ;;  %v7329_v0 = vrot.slane %v7327_v63, 4 }
 0x687   : > { %7007 = vrot.lane.b32.xlu1 %v6930_v20, %s8877_s14 }
 0x689   : > { %v6994_v41 = vpop.permute.xlu1 %6993 }
 0x68a   : > { %7084 = vst.msk [vmem:[#allocation5 + $0x18] sm:$0xf] %vm7077_vm7, %v6994_v41  ;;  %v8812_v59 = vld [vmem:[#allocation5 + $0x58] sm:$0xff] }
 0x68b   : > { %7645 = vst.msk [vmem:[#allocation5 + $0x18] sm:$0xf] %vm7638_vm8, %v7555_v17  ;;  %6847 = vrot.lane.b32.xlu0 %v6783_v23, %s8875_s12  ;;  %7566 = vrot.lane.b32.xlu2 %v7315_v58, %s8876_s13  ;;  %v7132_v17 = vld [vmem:[#allocation4 + $0x70] sm:$0xf]  ;;  %v7332_v23 = vrot.slane %v7330_v4, 5 }
 0x68c   : > { %7982 = vst.msk [vmem:[#allocation5 + $0x18] sm:$0xf] %vm7975_vm10, %v7892_v26  ;;  %8774 = vmatmul.msk.bf16.gmra.mxu2 %vm8156_vm11, %v8812_v59  ;;  %v6947_v26 = vld [vmem:[#allocation4 + $0xcc] sm:$0xf]  ;;  %v7336_v41 = vshll.u32 %v7132_v17, 16  ;;  %v7340_v1 = vshrl.u32 %v7132_v17, 16 }
 0x68d   : > { %v7894_v47 = vpop.permute.xlu0 %7893  ;;  %v7593_v22 = vpop.permute.xlu2 %7592  ;;  %v7333_v53 = vor.u32 %v7332_v23, %v7329_v0 }
 0x68e   : > { %v7338_v25 = vrot.slane %v7336_v41, 5  ;;  %v7342_v57 = vrot.slane %v7340_v1, 4 }
 0x68f   : > { %7903 = vrot.lane.b32.xlu1 %v7812_v42, %s8878_s15 }
 0x690   : > { %v7343_v7 = vor.u32 %v7342_v57, %v7338_v25 }
 0x691   : > { %v7557_v16 = vpop.permute.xlu1 %7556 }
 0x692   : > { %7646 = vst.msk [vmem:[#allocation5 + $0x1c] sm:$0xf] %vm7638_vm8, %v7557_v16  ;;  %v7344_v55 = vrot.slane %v7343_v7, 4 }
 0x693   : > { %7983 = vst.msk [vmem:[#allocation5 + $0x1c] sm:$0xf] %vm7975_vm10, %v7894_v47  ;;  %7043 = vrot.lane.b32.xlu0 %v6948_v28, %s8877_s14  ;;  %7905 = vrot.lane.b32.xlu2 %v7815_v52, %s8878_s15  ;;  %v8674_v47 = vrot.slane %v7692_v13, 9  ;;  %v7334_v28 = vrot.slane %v7333_v53, 4  ;;  %v7348_v52 = vrot.slane %v7346_v27, 5 }
 0x695   : > { %v7032_v34 = vpop.permute.xlu0 %7031  ;;  %v6998_v44 = vpop.permute.xlu2 %6997  ;;  %v7819_v42 = vsel %vm9586_vm13, %v8674_v47, %v7818_v12  ;;  %v7339_v54 = vsel %vm8955_vm3, %v7334_v28, %v7338_v25  ;;  %v7349_v14 = vsel %vm8955_vm3, %v7344_v55, %v7348_v52 }
 0x696   : > { %7086 = vst.msk [vmem:[#allocation5 + $0x20] sm:$0xf] %vm7077_vm7, %v6998_v44  ;;  %v7821_v44 = vrot.slane %v7694_v56, 5 }
 0x697   : > { %6849 = vrot.lane.b32.xlu1 %v6786_v49, %s8875_s12  ;;  %s12151_s12 = scalar_lea.vmem %s12346_s7, %s8782_s9 }
 0x699   : > { %v6838_v3 = vpop.permute.xlu1 %6837 }
 0x69a   : > { %6909 = vst.msk [vmem:[#allocation5 + $0x64] sm:$0xf] %vm6883_vm2, %v6838_v3  ;;  %v8804_v15 = vld [vmem:[#allocation5 + $0x18] sm:$0xff] }
 0x69b   : > { %7103 = vst.msk [vmem:[#allocation5 + $0x64] sm:$0xf] %vm7077_vm7, %v7032_v34  ;;  %7939 = vrot.lane.b32.xlu0 %v7875_v46, %s8878_s15  ;;  %7041 = vrot.lane.b32.xlu2 %v6947_v26, %s8877_s14  ;;  %v7820_v34 = vrot.slane %v7818_v12, 4 }
 0x69c   : > { %7664 = vst.msk [vmem:[#allocation5 + $0x64] sm:$0xf] %vm7638_vm8, %v7593_v22  ;;  %8766 = vmatmul.msk.bf16.gmra.mxu1 %vm8156_vm11, %v8804_v15 }
 0x69d   : > { %v7928_v32 = vpop.permute.xlu0 %7927  ;;  %v7561_v19 = vpop.permute.xlu2 %7560  ;;  %v7822_v46 = vsel %vm9586_vm13, %v7820_v34, %v7821_v44 }
 0x69f   : > { %7602 = vrot.lane.b32.xlu1 %v7531_v62, %s8876_s13 }
 0x6a1   : > { %v7591_v20 = vpop.permute.xlu1 %7590 }
 0x6a2   : > { %7663 = vst.msk [vmem:[#allocation5 + $0x60] sm:$0xf] %vm7638_vm8, %v7591_v20 }
 0x6a3   : > { %8000 = vst.msk [vmem:[#allocation5 + $0x60] sm:$0xf] %vm7975_vm10, %v7928_v32  ;;  %7011 = vrot.lane.b32.xlu0 %v6932_v8, %s8877_s14  ;;  %7604 = vrot.lane.b32.xlu2 %v7541_v35, %s8876_s13 }
 0x6a5   : > { %v7000_v59 = vpop.permute.xlu0 %6999  ;;  %v6840_v58 = vpop.permute.xlu2 %6839 }
 0x6a6   : > { %7087 = vst.msk [vmem:[#allocation5 + $0x24] sm:$0xf] %vm7077_vm7, %v7000_v59 }
 0x6a7   : > { %7648 = vst.msk [vmem:[#allocation5 + $0x24] sm:$0xf] %vm7638_vm8, %v7561_v19  ;;  %7941 = vrot.lane.b32.xlu1 %v7878_v43, %s8878_s15 }
 0x6a8   : > { %6910 = vst.msk [vmem:[#allocation5 + $0x68] sm:$0xf] %vm6883_vm2, %v6840_v58 }
 0x6a9   : > { %v7930_v22 = vpop.permute.xlu1 %7929 }
 0x6aa   : > { %8001 = vst.msk [vmem:[#allocation5 + $0x64] sm:$0xf] %vm7975_vm10, %v7930_v22 }
 0x6ab   : > { %7907 = vrot.lane.b32.xlu0 %v7819_v42, %s8878_s15  ;;  %7009 = vrot.lane.b32.xlu2 %v6931_v18, %s8877_s14 }
 0x6ad   : > { %v7896_v38 = vpop.permute.xlu0 %7895  ;;  %v7036_v16 = vpop.permute.xlu2 %7035 }
 0x6af   : > { %7570 = vrot.lane.b32.xlu1 %v7339_v54, %s8876_s13  ;;  %v8258_v31 = vpop.f32.mrf.mxu2 }
 0x6b0   : > { %v8318_v30 = vmul.f32 %v12134_v9, %v8258_v31 }
 0x6b1   : > { %v7559_v48 = vpop.permute.xlu1 %7558  ;;  %v8813_v40 = vld [vmem:[#allocation5 + $0x60] sm:$0xff] }
 0x6b2   : > { %v8354_v24 = vadd.f32 %v12141_v50, %v8318_v30  ;;  %7647 = vst.msk [vmem:[#allocation5 + $0x20] sm:$0xf] %vm7638_vm8, %v7559_v48  ;;  %8775 = vmatmul.msk.bf16.gmra.mxu2 %vm8156_vm11, %v8813_v40 }
 0x6b3   : > { %7984 = vst.msk [vmem:[#allocation5 + $0x20] sm:$0xf] %vm7975_vm10, %v7896_v38  ;;  %7572 = vrot.lane.b32.xlu2 %v7349_v14, %s8876_s13 }
 0x6b4   : > { %v8386_v45 = vmax.f32 %v8354_v24, 0.0 }
 0x6b5   : > { %v6842_v49 = vpop.permute.xlu0 %6841  ;;  %v7932_v36 = vpop.permute.xlu2 %7931 }
 0x6b6   : > { %8419 = vst.msk [vmem:[%s12151_s12 + $0x80] sm:$0xff] %vm8402_vm12, %v8386_v45 }
 0x6b7   : > { %6911 = vst.msk [vmem:[#allocation5 + $0x6c] sm:$0xf] %vm6883_vm2, %v6842_v49  ;;  %7909 = vrot.lane.b32.xlu1 %v7822_v46, %s8878_s15  ;;  %v8260_v10 = vpop.f32.mrf.mxu2 }
 0x6b8   : > { %7105 = vst.msk [vmem:[#allocation5 + $0x6c] sm:$0xf] %vm7077_vm7, %v7036_v16  ;;  %v8319_v29 = vmul.f32 %v12134_v9, %v8260_v10 }
 0x6b9   : > { %v7898_v3 = vpop.permute.xlu1 %7897  ;;  %v8218_v26 = vpop.f32.mrf.mxu1 }
 0x6ba   : > { %v8355_v33 = vadd.f32 %v12141_v50, %v8319_v29  ;;  %7985 = vst.msk [vmem:[#allocation5 + $0x24] sm:$0xf] %vm7975_vm10, %v7898_v3  ;;  %v8302_v6 = vmul.f32 %v12134_v9, %v8218_v26 }
 0x6bc   : > { %v8387_v61 = vmax.f32 %v8355_v33, 0.0  ;;  %v8338_v15 = vadd.f32 %v12141_v50, %v8302_v6 }
 0x6bd   : > { %v7595_v62 = vpop.permute.xlu0 %7594  ;;  %v7004_v51 = vpop.permute.xlu2 %7003 }
 0x6be   : > { %8420 = vst.msk [vmem:[%s12151_s12 + $0x88] sm:$0xff] %vm8402_vm12, %v8387_v61  ;;  %v8370_v32 = vmax.f32 %v8338_v15, 0.0 }
 0x6bf   : > { %7089 = vst.msk [vmem:[#allocation5 + $0x2c] sm:$0xf] %vm7077_vm7, %v7004_v51 }
 0x6c0   : > { %8403 = vst.msk [vmem:[%s12151_s12] sm:$0xff] %vm8402_vm12, %v8370_v32 }
 0x6c1   : > { %v7034_v39 = vpop.permute.xlu1 %7033  ;;  %v8220_v2 = vpop.f32.mrf.mxu1  ;;  %v8805_v11 = vld [vmem:[#allocation5 + $0x20] sm:$0xff] }
 0x6c2   : > { %7104 = vst.msk [vmem:[#allocation5 + $0x68] sm:$0xf] %vm7077_vm7, %v7034_v39  ;;  %v8303_v19 = vmul.f32 %v12134_v9, %v8220_v2  ;;  %8767 = vmatmul.msk.bf16.gmra.mxu1 %vm8156_vm11, %v8805_v11 }
 0x6c3   : > { %7665 = vst.msk [vmem:[#allocation5 + $0x68] sm:$0xf] %vm7638_vm8, %v7595_v62 }
 0x6c4   : > { %8002 = vst.msk [vmem:[#allocation5 + $0x68] sm:$0xf] %vm7975_vm10, %v7932_v36  ;;  %v8339_v21 = vadd.f32 %v12141_v50, %v8303_v19 }
 0x6c5   : > { %v7934_v37 = vpop.permute.xlu0 %7933  ;;  %v7900_v63 = vpop.permute.xlu2 %7899 }
 0x6c6   : > { %v8371_v17 = vmax.f32 %v8339_v21, 0.0 }
 0x6c8   : > { %8404 = vst.msk [vmem:[%s12151_s12 + $0x8] sm:$0xff] %vm8402_vm12, %v8371_v17 }
 0x6c9   : > { %v7597_v4 = vpop.permute.xlu1 %7596 }
 0x6ca   : > { %7666 = vst.msk [vmem:[#allocation5 + $0x6c] sm:$0xf] %vm7638_vm8, %v7597_v4 }
 0x6cb   : > { %8003 = vst.msk [vmem:[#allocation5 + $0x6c] sm:$0xf] %vm7975_vm10, %v7934_v37 }
 0x6cd   : > { %v7563_v20 = vpop.permute.xlu0 %7562  ;;  %v6846_v35 = vpop.permute.xlu2 %6845 }
 0x6ce   : > { %6913 = vst.msk [vmem:[#allocation5 + $0x74] sm:$0xf] %vm6883_vm2, %v6846_v35 }
 0x6cf   : > { %v8263_v8 = vpop.f32.mrf.mxu2 }
 0x6d0   : > { %v8320_v60 = vmul.f32 %v12134_v9, %v8263_v8 }
 0x6d1   : > { %v7002_v41 = vpop.permute.xlu1 %7001 }
 0x6d2   : > { %v8356_v1 = vadd.f32 %v12141_v50, %v8320_v60  ;;  %7088 = vst.msk [vmem:[#allocation5 + $0x28] sm:$0xf] %vm7077_vm7, %v7002_v41  ;;  %v8814_v43 = vld [vmem:[#allocation5 + $0x68] sm:$0xff] }
 0x6d3   : > { %7649 = vst.msk [vmem:[#allocation5 + $0x28] sm:$0xf] %vm7638_vm8, %v7563_v20  ;;  %8776 = vmatmul.msk.bf16.gmra.mxu2 %vm8156_vm11, %v8814_v43 }
 0x6d4   : > { %v8388_v0 = vmax.f32 %v8356_v1, 0.0  ;;  %7986 = vst.msk [vmem:[#allocation5 + $0x28] sm:$0xf] %vm7975_vm10, %v7900_v63 }
 0x6d5   : > { %v7902_v23 = vpop.permute.xlu0 %7901  ;;  %v7599_v59 = vpop.permute.xlu2 %7598 }
 0x6d6   : > { %8421 = vst.msk [vmem:[%s12151_s12 + $0x90] sm:$0xff] %vm8402_vm12, %v8388_v0 }
 0x6d7   : > { %v8265_v13 = vpop.f32.mrf.mxu2 }
 0x6d8   : > { %v8321_v58 = vmul.f32 %v12134_v9, %v8265_v13 }
 0x6d9   : > { %v7565_v12 = vpop.permute.xlu1 %7564  ;;  %v8223_v25 = vpop.f32.mrf.mxu1 }
 0x6da   : > { %v8357_v57 = vadd.f32 %v12141_v50, %v8321_v58  ;;  %7650 = vst.msk [vmem:[#allocation5 + $0x2c] sm:$0xf] %vm7638_vm8, %v7565_v12  ;;  %v8304_v47 = vmul.f32 %v12134_v9, %v8223_v25 }
 0x6db   : > { %7987 = vst.msk [vmem:[#allocation5 + $0x2c] sm:$0xf] %vm7975_vm10, %v7902_v23 }
 0x6dc   : > { %v8389_v53 = vmax.f32 %v8357_v57, 0.0  ;;  %v8340_v22 = vadd.f32 %v12141_v50, %v8304_v47 }
 0x6dd   : > { %v7038_v42 = vpop.permute.xlu0 %7037  ;;  %v7938_v18 = vpop.permute.xlu2 %7937 }
 0x6de   : > { %8422 = vst.msk [vmem:[%s12151_s12 + $0x98] sm:$0xff] %vm8402_vm12, %v8389_v53  ;;  %v8372_v5 = vmax.f32 %v8340_v22, 0.0 }
 0x6e0   : > { %8405 = vst.msk [vmem:[%s12151_s12 + $0x10] sm:$0xff] %vm8402_vm12, %v8372_v5 }
 0x6e1   : > { %v6844_v7 = vpop.permute.xlu1 %6843  ;;  %v8225_v28 = vpop.f32.mrf.mxu1 }
 0x6e2   : > { %6912 = vst.msk [vmem:[#allocation5 + $0x70] sm:$0xf] %vm6883_vm2, %v6844_v7  ;;  %v8305_v38 = vmul.f32 %v12134_v9, %v8225_v28  ;;  %v8806_v27 = vld [vmem:[#allocation5 + $0x28] sm:$0xff] }
 0x6e3   : > { %7106 = vst.msk [vmem:[#allocation5 + $0x70] sm:$0xf] %vm7077_vm7, %v7038_v42  ;;  %8768 = vmatmul.msk.bf16.gmra.mxu1 %vm8156_vm11, %v8806_v27 }
 0x6e4   : > { %7667 = vst.msk [vmem:[#allocation5 + $0x70] sm:$0xf] %vm7638_vm8, %v7599_v59  ;;  %v8341_v16 = vadd.f32 %v12141_v50, %v8305_v38 }
 0x6e5   : > { %v7601_v54 = vpop.permute.xlu0 %7600  ;;  %v7567_v55 = vpop.permute.xlu2 %7566 }
 0x6e6   : > { %v8373_v31 = vmax.f32 %v8341_v16, 0.0 }
 0x6e8   : > { %8406 = vst.msk [vmem:[%s12151_s12 + $0x18] sm:$0xff] %vm8402_vm12, %v8373_v31 }
 0x6e9   : > { %v7040_v30 = vpop.permute.xlu1 %7039 }
 0x6ea   : > { %7107 = vst.msk [vmem:[#allocation5 + $0x74] sm:$0xf] %vm7077_vm7, %v7040_v30 }
 0x6eb   : > { %7668 = vst.msk [vmem:[#allocation5 + $0x74] sm:$0xf] %vm7638_vm8, %v7601_v54 }
 0x6ec   : > { %8005 = vst.msk [vmem:[#allocation5 + $0x74] sm:$0xf] %vm7975_vm10, %v7938_v18 }
 0x6ed   : > { %v7006_v48 = vpop.permute.xlu0 %7005  ;;  %v7906_v52 = vpop.permute.xlu2 %7905 }
 0x6ee   : > { %7090 = vst.msk [vmem:[#allocation5 + $0x30] sm:$0xf] %vm7077_vm7, %v7006_v48 }
 0x6ef   : > { %7651 = vst.msk [vmem:[#allocation5 + $0x30] sm:$0xf] %vm7638_vm8, %v7567_v55  ;;  %v8268_v40 = vpop.f32.mrf.mxu2 }
 0x6f0   : > { %v8322_v56 = vmul.f32 %v12134_v9, %v8268_v40 }
 0x6f1   : > { %v7936_v24 = vpop.permute.xlu1 %7935 }
 0x6f2   : > { %v8358_v34 = vadd.f32 %v12141_v50, %v8322_v56  ;;  %8004 = vst.msk [vmem:[#allocation5 + $0x70] sm:$0xf] %vm7975_vm10, %v7936_v24 }
 0x6f4   : > { %v8390_v14 = vmax.f32 %v8358_v34, 0.0 }
 0x6f5   : > { %v7569_v45 = vpop.permute.xlu0 %7568  ;;  %v7042_v44 = vpop.permute.xlu2 %7041 }
 0x6f6   : > { %8423 = vst.msk [vmem:[%s12151_s12 + $0xa0] sm:$0xff] %vm8402_vm12, %v8390_v14 }
 0x6f7   : > { %v8270_v49 = vpop.f32.mrf.mxu2 }
 0x6f8   : > { %v8323_v36 = vmul.f32 %v12134_v9, %v8270_v49 }
 0x6f9   : > { %v7008_v46 = vpop.permute.xlu1 %7007  ;;  %v8228_v10 = vpop.f32.mrf.mxu1  ;;  %v8815_v29 = vld [vmem:[#allocation5 + $0x70] sm:$0xff] }
 0x6fa   : > { %v8359_v3 = vadd.f32 %v12141_v50, %v8323_v36  ;;  %7091 = vst.msk [vmem:[#allocation5 + $0x34] sm:$0xf] %vm7077_vm7, %v7008_v46  ;;  %v8306_v26 = vmul.f32 %v12134_v9, %v8228_v10  ;;  %8777 = vmatmul.msk.bf16.gmra.mxu2 %vm8156_vm11, %v8815_v29 }
 0x6fb   : > { %7652 = vst.msk [vmem:[#allocation5 + $0x34] sm:$0xf] %vm7638_vm8, %v7569_v45 }
 0x6fc   : > { %v8391_v33 = vmax.f32 %v8359_v3, 0.0  ;;  %7989 = vst.msk [vmem:[#allocation5 + $0x34] sm:$0xf] %vm7975_vm10, %v7906_v52  ;;  %v8342_v6 = vadd.f32 %v12141_v50, %v8306_v26 }
 0x6fd   : > { %v6848_v61 = vpop.permute.xlu0 %6847  ;;  %v7605_v62 = vpop.permute.xlu2 %7604 }
 0x6fe   : > { %8424 = vst.msk [vmem:[%s12151_s12 + $0xa8] sm:$0xff] %vm8402_vm12, %v8391_v33  ;;  %v8374_v15 = vmax.f32 %v8342_v6, 0.0 }
 0x6ff   : > { %6914 = vst.msk [vmem:[#allocation5 + $0x78] sm:$0xf] %vm6883_vm2, %v6848_v61 }
 0x700   : > { %8407 = vst.msk [vmem:[%s12151_s12 + $0x20] sm:$0xff] %vm8402_vm12, %v8374_v15 }
 0x701   : > { %7108 = vst.msk [vmem:[#allocation5 + $0x78] sm:$0xf] %vm7077_vm7, %v7042_v44  ;;  %v7904_v32 = vpop.permute.xlu1 %7903  ;;  %v8230_v51 = vpop.f32.mrf.mxu1 }
 0x702   : > { %7988 = vst.msk [vmem:[#allocation5 + $0x30] sm:$0xf] %vm7975_vm10, %v7904_v32  ;;  %v8307_v39 = vmul.f32 %v12134_v9, %v8230_v51 }
 0x704   : > { %v8343_v2 = vadd.f32 %v12141_v50, %v8307_v39 }
 0x705   : > { %v7044_v11 = vpop.permute.xlu0 %7043  ;;  %v7010_v21 = vpop.permute.xlu2 %7009 }
 0x706   : > { %v8375_v19 = vmax.f32 %v8343_v2, 0.0  ;;  %7092 = vst.msk [vmem:[#allocation5 + $0x38] sm:$0xf] %vm7077_vm7, %v7010_v21 }
 0x708   : > { %8408 = vst.msk [vmem:[%s12151_s12 + $0x28] sm:$0xff] %vm8402_vm12, %v8375_v19 }
 0x709   : > { %v6850_v37 = vpop.permute.xlu1 %6849  ;;  %v8807_v17 = vld [vmem:[#allocation5 + $0x30] sm:$0xff] }
 0x70a   : > { %6915 = vst.msk [vmem:[#allocation5 + $0x7c] sm:$0xf] %vm6883_vm2, %v6850_v37  ;;  %8769 = vmatmul.msk.bf16.gmra.mxu1 %vm8156_vm11, %v8807_v17 }
 0x70b   : > { %7109 = vst.msk [vmem:[#allocation5 + $0x7c] sm:$0xf] %vm7077_vm7, %v7044_v11 }
 0x70c   : > { %7670 = vst.msk [vmem:[#allocation5 + $0x7c] sm:$0xf] %vm7638_vm8, %v7605_v62 }
 0x70d   : > { %v7940_v63 = vpop.permute.xlu0 %7939  ;;  %v7573_v1 = vpop.permute.xlu2 %7572 }
 0x70f   : > { %v8273_v4 = vpop.f32.mrf.mxu2 }
 0x710   : > { %v8324_v20 = vmul.f32 %v12134_v9, %v8273_v4 }
 0x711   : > { %v7603_v35 = vpop.permute.xlu1 %7602 }
 0x712   : > { %v8360_v8 = vadd.f32 %v12141_v50, %v8324_v20  ;;  %7669 = vst.msk [vmem:[#allocation5 + $0x78] sm:$0xf] %vm7638_vm8, %v7603_v35 }
 0x713   : > { %8006 = vst.msk [vmem:[#allocation5 + $0x78] sm:$0xf] %vm7975_vm10, %v7940_v63 }
 0x714   : > { %v8392_v60 = vmax.f32 %v8360_v8, 0.0 }
 0x715   : > { %v7012_v41 = vpop.permute.xlu0 %7011 }
 0x716   : > { %8425 = vst.msk [vmem:[%s12151_s12 + $0xb0] sm:$0xff] %vm8402_vm12, %v8392_v60 }
 0x717   : > { %7093 = vst.msk [vmem:[#allocation5 + $0x3c] sm:$0xf] %vm7077_vm7, %v7012_v41  ;;  %v8275_v43 = vpop.f32.mrf.mxu2 }
 0x718   : > { %7654 = vst.msk [vmem:[#allocation5 + $0x3c] sm:$0xf] %vm7638_vm8, %v7573_v1  ;;  %v8325_v0 = vmul.f32 %v12134_v9, %v8275_v43 }
 0x719   : > { %v7942_v23 = vpop.permute.xlu1 %7941  ;;  %v8233_v59 = vpop.f32.mrf.mxu1 }
 0x71a   : > { %v8361_v13 = vadd.f32 %v12141_v50, %v8325_v0  ;;  %8007 = vst.msk [vmem:[#allocation5 + $0x7c] sm:$0xf] %vm7975_vm10, %v7942_v23  ;;  %v8308_v58 = vmul.f32 %v12134_v9, %v8233_v59 }
 0x71c   : > { %v8393_v12 = vmax.f32 %v8361_v13, 0.0  ;;  %v8344_v25 = vadd.f32 %v12141_v50, %v8308_v58 }
 0x71d   : > { %v7908_v42 = vpop.permute.xlu0 %7907 }
 0x71e   : > { %8426 = vst.msk [vmem:[%s12151_s12 + $0xb8] sm:$0xff] %vm8402_vm12, %v8393_v12  ;;  %v8376_v57 = vmax.f32 %v8344_v25, 0.0 }
 0x720   : > { %8409 = vst.msk [vmem:[%s12151_s12 + $0x30] sm:$0xff] %vm8402_vm12, %v8376_v57 }
 0x721   : > { %v7571_v47 = vpop.permute.xlu1 %7570  ;;  %v8235_v53 = vpop.f32.mrf.mxu1  ;;  %v8816_v22 = vld [vmem:[#allocation5 + $0x78] sm:$0xff] }
 0x722   : > { %7653 = vst.msk [vmem:[#allocation5 + $0x38] sm:$0xf] %vm7638_vm8, %v7571_v47  ;;  %v8309_v5 = vmul.f32 %v12134_v9, %v8235_v53  ;;  %8778 = vmatmul.msk.bf16.gmra.mxu2 %vm8156_vm11, %v8816_v22 }
 0x723   : > { %7990 = vst.msk [vmem:[#allocation5 + $0x38] sm:$0xf] %vm7975_vm10, %v7908_v42 }
 0x724   : > { %v8345_v18 = vadd.f32 %v12141_v50, %v8309_v5 }
 0x726   : > { %v8377_v7 = vmax.f32 %v8345_v18, 0.0 }
 0x728   : > { %8410 = vst.msk [vmem:[%s12151_s12 + $0x38] sm:$0xff] %vm8402_vm12, %v8377_v7 }
 0x729   : > { %v7910_v28 = vpop.permute.xlu1 %7909 }
 0x72a   : > { %7991 = vst.msk [vmem:[#allocation5 + $0x3c] sm:$0xf] %vm7975_vm10, %v7910_v28 }
 0x731   : > { %v8808_v38 = vld [vmem:[#allocation5 + $0x38] sm:$0xff] }
 0x732   : > { %8770 = vmatmul.msk.bf16.gmra.mxu1 %vm8156_vm11, %v8808_v38 }
 0x735   : > { %v8278_v27 = vpop.f32.mrf.mxu2 }
 0x736   : > { %v8326_v16 = vmul.f32 %v12134_v9, %v8278_v27 }
 0x738   : > { %v8362_v54 = vadd.f32 %v12141_v50, %v8326_v16 }
 0x73a   : > { %v8394_v31 = vmax.f32 %v8362_v54, 0.0 }
 0x73c   : > { %8427 = vst.msk [vmem:[%s12151_s12 + $0xc0] sm:$0xff] %vm8402_vm12, %v8394_v31 }
 0x73d   : > { %v8280_v55 = vpop.f32.mrf.mxu2 }
 0x73e   : > { %v8327_v30 = vmul.f32 %v12134_v9, %v8280_v55 }
 0x73f   : > { %v8238_v48 = vpop.f32.mrf.mxu1 }
 0x740   : > { %v8363_v52 = vadd.f32 %v12141_v50, %v8327_v30  ;;  %v8310_v40 = vmul.f32 %v12134_v9, %v8238_v48 }
 0x742   : > { %v8395_v56 = vmax.f32 %v8363_v52, 0.0  ;;  %v8346_v24 = vadd.f32 %v12141_v50, %v8310_v40 }
 0x744   : > { %8428 = vst.msk [vmem:[%s12151_s12 + $0xc8] sm:$0xff] %vm8402_vm12, %v8395_v56  ;;  %v8378_v34 = vmax.f32 %v8346_v24, 0.0 }
 0x746   : > { %8411 = vst.msk [vmem:[%s12151_s12 + $0x40] sm:$0xff] %vm8402_vm12, %v8378_v34 }
 0x747   : > { %v8240_v14 = vpop.f32.mrf.mxu1 }
 0x748   : > { %v8311_v45 = vmul.f32 %v12134_v9, %v8240_v14 }
 0x74a   : > { %v8347_v44 = vadd.f32 %v12141_v50, %v8311_v45 }
 0x74c   : > { %v8379_v49 = vmax.f32 %v8347_v44, 0.0 }
 0x74e   : > { %8412 = vst.msk [vmem:[%s12151_s12 + $0x48] sm:$0xff] %vm8402_vm12, %v8379_v49 }
 0x756   : > { %v8283_v36 = vpop.f32.mrf.mxu2 }
 0x757   : > { %v8328_v46 = vmul.f32 %v12134_v9, %v8283_v36 }
 0x759   : > { %v8364_v10 = vadd.f32 %v12141_v50, %v8328_v46 }
 0x75b   : > { %v8396_v29 = vmax.f32 %v8364_v10, 0.0 }
 0x75d   : > { %8429 = vst.msk [vmem:[%s12151_s12 + $0xd0] sm:$0xff] %vm8402_vm12, %v8396_v29 }
 0x75e   : > { %v8285_v3 = vpop.f32.mrf.mxu2 }
 0x75f   : > { %v8329_v26 = vmul.f32 %v12134_v9, %v8285_v3 }
 0x760   : > { %v8243_v33 = vpop.f32.mrf.mxu1 }
 0x761   : > { %v8365_v6 = vadd.f32 %v12141_v50, %v8329_v26  ;;  %v8312_v61 = vmul.f32 %v12134_v9, %v8243_v33 }
 0x763   : > { %v8397_v15 = vmax.f32 %v8365_v6, 0.0  ;;  %v8348_v62 = vadd.f32 %v12141_v50, %v8312_v61 }
 0x765   : > { %8430 = vst.msk [vmem:[%s12151_s12 + $0xd8] sm:$0xff] %vm8402_vm12, %v8397_v15  ;;  %v8380_v32 = vmax.f32 %v8348_v62, 0.0 }
 0x767   : > { %8413 = vst.msk [vmem:[%s12151_s12 + $0x50] sm:$0xff] %vm8402_vm12, %v8380_v32 }
 0x768   : > { %v8245_v51 = vpop.f32.mrf.mxu1 }
 0x769   : > { %v8313_v39 = vmul.f32 %v12134_v9, %v8245_v51 }
 0x76b   : > { %v8349_v2 = vadd.f32 %v12141_v50, %v8313_v39 }
 0x76d   : > { %v8381_v11 = vmax.f32 %v8349_v2, 0.0 }
 0x76f   : > { %8414 = vst.msk [vmem:[%s12151_s12 + $0x58] sm:$0xff] %vm8402_vm12, %v8381_v11 }
 0x77d   : > { %v8288_v19 = vpop.f32.mrf.mxu2 }
 0x77e   : > { %v8330_v21 = vmul.f32 %v12134_v9, %v8288_v19 }
 0x780   : > { %v8366_v37 = vadd.f32 %v12141_v50, %v8330_v21 }
 0x782   : > { %v8398_v17 = vmax.f32 %v8366_v37, 0.0 }
 0x784   : > { %8431 = vst.msk [vmem:[%s12151_s12 + $0xe0] sm:$0xff] %vm8402_vm12, %v8398_v17 }
 0x785   : > { %v8290_v63 = vpop.f32.mrf.mxu2 }
 0x786   : > { %v8331_v4 = vmul.f32 %v12134_v9, %v8290_v63 }
 0x787   : > { %v8248_v20 = vpop.f32.mrf.mxu1 }
 0x788   : > { %v8367_v35 = vadd.f32 %v12141_v50, %v8331_v4  ;;  %v8314_v8 = vmul.f32 %v12134_v9, %v8248_v20 }
 0x78a   : > { %v8399_v60 = vmax.f32 %v8367_v35, 0.0  ;;  %v8350_v41 = vadd.f32 %v12141_v50, %v8314_v8 }
 0x78c   : > { %8432 = vst.msk [vmem:[%s12151_s12 + $0xe8] sm:$0xff] %vm8402_vm12, %v8399_v60  ;;  %v8382_v1 = vmax.f32 %v8350_v41, 0.0 }
 0x78e   : > { %8415 = vst.msk [vmem:[%s12151_s12 + $0x60] sm:$0xff] %vm8402_vm12, %v8382_v1 }
 0x78f   : > { %v8250_v43 = vpop.f32.mrf.mxu1 }
 0x790   : > { %v8315_v0 = vmul.f32 %v12134_v9, %v8250_v43 }
 0x792   : > { %v8351_v23 = vadd.f32 %v12141_v50, %v8315_v0 }
 0x794   : > { %v8383_v59 = vmax.f32 %v8351_v23, 0.0 }
 0x796   : > { %8416 = vst.msk [vmem:[%s12151_s12 + $0x68] sm:$0xff] %vm8402_vm12, %v8383_v59 }
 0x7a5   : > { %v8293_v13 = vpop.f32.mrf.mxu2 }
 0x7a6   : > { %v8332_v58 = vmul.f32 %v12134_v9, %v8293_v13 }
 0x7a8   : > { %v8368_v12 = vadd.f32 %v12141_v50, %v8332_v58 }
 0x7aa   : > { %v8400_v25 = vmax.f32 %v8368_v12, 0.0 }
 0x7ac   : > { %8433 = vst.msk [vmem:[%s12151_s12 + $0xf0] sm:$0xff] %vm8402_vm12, %v8400_v25 }
 0x7ad   : > { %v8295_v57 = vpop.f32.mrf.mxu2 }
 0x7ae   : > { %v8333_v47 = vmul.f32 %v12134_v9, %v8295_v57 }
 0x7af   : > { %v8253_v53 = vpop.f32.mrf.mxu1 }
 0x7b0   : > { %v8369_v22 = vadd.f32 %v12141_v50, %v8333_v47  ;;  %v8316_v42 = vmul.f32 %v12134_v9, %v8253_v53 }
 0x7b2   : > { %v8401_v5 = vmax.f32 %v8369_v22, 0.0  ;;  %v8352_v18 = vadd.f32 %v12141_v50, %v8316_v42 }
 0x7b4   : > { %8434 = vst.msk [vmem:[%s12151_s12 + $0xf8] sm:$0xff] %vm8402_vm12, %v8401_v5  ;;  %v8384_v7 = vmax.f32 %v8352_v18, 0.0 }
 0x7b6   : > { %8417 = vst.msk [vmem:[%s12151_s12 + $0x70] sm:$0xff] %vm8402_vm12, %v8384_v7 }
 0x7b7   : > { %v8255_v28 = vpop.f32.mrf.mxu1 }
 0x7b8   : > { %v8317_v38 = vmul.f32 %v12134_v9, %v8255_v28 }
 0x7ba   : > { %v8353_v27 = vadd.f32 %v12141_v50, %v8317_v38 }
 0x7bc   : > { %v8385_v16 = vmax.f32 %v8353_v27, 0.0 }
 0x7be   : > { %8418 = vst.msk [vmem:[%s12151_s12 + $0x78] sm:$0xff] %vm8402_vm12, %v8385_v16 }
 0x7bf PF: > { %s17_s24 = sadd.s32 1, %s8864_s24  }
 0x7c0   : > { %p14_p4 = scmp.ge.s32.totalorder %s17_s24, 4  }
 0x7c2   :  { %16 = sbr.rel (!%p14_p4) target bundleno = 1 (0x1), region = 82 }

</bundles_post_ra>
